<compile_context>
chip_gen: v5e
topology: v5e:2x2
jax: 0.10.0
libtpu: 0.0.40
codegen_flags: <defaults>
</compile_context>

<pallas_src>
import functools

import jax
import jax.numpy as jnp
from jax.experimental import pallas as pl
from jax.experimental.pallas import tpu as pltpu

# ----------------------------- model configuration -----------------------------
IN_CH = 2           # input_modalites
OUT_CH = 3          # output_channels
BASE = 2            # base_channel
NUM_LAYERS = 2      # num_layers
HIDDEN = BASE * 16  # ConvLSTM hidden dim (base_channel * 16)

C0 = 2 * BASE       # stem channels
C1 = 4 * BASE       # down_conv1 channels
C2 = 8 * BASE       # down_conv2 channels (== _LSTM_input_dim)

try:
    _MOSAIC_PARAMS = pltpu.CompilerParams(dimension_semantics=("parallel",))
except Exception:  # older jax fallback: let Mosaic pick defaults
    _MOSAIC_PARAMS = None


# ----------------------------- Pallas kernels -----------------------------
def _mm_t_kernel(w_ref, x_ref, b_ref, o_ref, *, act, softmax):
    """Fused transposed-GEMM conv: y(N,M) = epilogue(W(N,K) @ x(K,M) + b(N,1)).

    bf16 MXU operands, f32 accumulation; output is lane-dense (big M on the lane axis)."""
    acc = jnp.dot(w_ref[...], x_ref[...], preferred_element_type=jnp.float32)
    acc = acc + b_ref[...]
    if act == "relu":
        acc = jnp.maximum(acc, 0.0)
    if softmax:  # channel softmax fused into the out-conv epilogue (reduction over sublanes)
        m = jnp.max(acc, axis=0, keepdims=True)
        e = jnp.exp(acc - m)
        acc = e / jnp.sum(e, axis=0, keepdims=True)
    o_ref[...] = acc.astype(o_ref.dtype)


def _lstm_step_kernel(wh_ref, hcol_ref, xg_ref, c_ref, h_ref, c_out_ref):
    """Fused ConvLSTM step (both directions stacked along M):
    gates = W_h @ hcol + precomputed_x_gates; [i,f,o,g] are sublane-aligned 32-row blocks."""
    g = jnp.dot(wh_ref[...], hcol_ref[...], preferred_element_type=jnp.float32)
    g = g + xg_ref[...].astype(jnp.float32)
    i = jax.nn.sigmoid(g[0 * HIDDEN:1 * HIDDEN, :])
    f = jax.nn.sigmoid(g[1 * HIDDEN:2 * HIDDEN, :])
    o = jax.nn.sigmoid(g[2 * HIDDEN:3 * HIDDEN, :])
    gg = jnp.tanh(g[3 * HIDDEN:4 * HIDDEN, :])
    c_next = f * c_ref[...] + i * gg
    h_ref[...] = (o * jnp.tanh(c_next)).astype(h_ref.dtype)
    c_out_ref[...] = c_next


# ----------------------------- tiling helpers -----------------------------
def _tiling(m):
    """Return (padded_M, tile) for the lane/column axis.

    * M % 128 == 0 and M >= 256  -> >= 2 lane-dense tiles (both v7x TensorCores busy).
    * small / non-divisible M    -> one full block (<= 512 cols, VMEM-bounded).
    * large non-divisible M      -> zero-pad to a multiple of 512 (shape-independent)."""
    if m % 128 == 0 and m >= 256:
        for t in (512, 256, 128):
            if m % t == 0 and m // t >= 2:
                return m, t
    if m <= 512:
        return m, m
    tm = 512
    return ((m + tm - 1) // tm) * tm, tm


def _pad_cols(a, mp):
    m = a.shape[1]
    if mp == m:
        return a
    return jnp.pad(a, ((0, 0), (0, mp - m)))


# ----------------------------- Pallas wrappers -----------------------------
def matmul_conv(w, x, b, *, act=None, softmax=False, out_dtype=jnp.bfloat16):
    """y = epilogue(w @ x + b); w:(N,K) bf16, x:(K,M), b:(N,1) f32 -> (N,M) out_dtype."""
    N, K = w.shape
    M = x.shape[1]
    Mp, tm = _tiling(M)
    xp = _pad_cols(x, Mp)
    kern = functools.partial(_mm_t_kernel, act=act, softmax=softmax)
    y = pl.pallas_call(
        kern,
        grid=(Mp // tm,),
        in_specs=[pl.BlockSpec((N, K), lambda i: (0, 0)),
                  pl.BlockSpec((K, tm), lambda i: (0, i)),
                  pl.BlockSpec((N, 1), lambda i: (0, 0))],
        out_specs=pl.BlockSpec((N, tm), lambda i: (0, i)),
        out_shape=jax.ShapeDtypeStruct((N, Mp), out_dtype),
        compiler_params=_MOSAIC_PARAMS,
    )(w, xp, b)
    return y[:, :M] if Mp != M else y


def lstm_step(wh, hcol, xg, c):
    """(h, c_next) from one fused bidirectional ConvLSTM step.

    wh:(4H, 27H) bf16, hcol:(27H, M) bf16, xg:(4H, M) bf16 (x-projection + bias,
    precomputed outside the loop), c:(H, M) f32."""
    Kh = wh.shape[1]
    M = hcol.shape[1]
    Mp, tm = _tiling(M)
    hcolp, xgp, cp = _pad_cols(hcol, Mp), _pad_cols(xg, Mp), _pad_cols(c, Mp)
    h, c_next = pl.pallas_call(
        _lstm_step_kernel,
        grid=(Mp // tm,),
        in_specs=[pl.BlockSpec((4 * HIDDEN, Kh), lambda i: (0, 0)),
                  pl.BlockSpec((Kh, tm), lambda i: (0, i)),
                  pl.BlockSpec((4 * HIDDEN, tm), lambda i: (0, i)),
                  pl.BlockSpec((HIDDEN, tm), lambda i: (0, i))],
        out_specs=(pl.BlockSpec((HIDDEN, tm), lambda i: (0, i)),
                   pl.BlockSpec((HIDDEN, tm), lambda i: (0, i))),
        out_shape=(jax.ShapeDtypeStruct((HIDDEN, Mp), jnp.bfloat16),
                   jax.ShapeDtypeStruct((HIDDEN, Mp), jnp.float32)),
        compiler_params=_MOSAIC_PARAMS,
    )(wh, hcolp, xgp, cp)
    if Mp != M:
        h, c_next = h[:, :M], c_next[:, :M]
    return h, c_next


# ----------------------------- conv building blocks (channels-first) -----------------------------
def _im2col(x, k, stride, padding):
    """Channels-first im2col; x:(C,B,D,H,W) -> (k^3*C, B*Do*Ho*Wo); K order (dz,dy,dx,c)."""
    C, B, D, H, W = x.shape
    if padding:
        p = padding
        x = jnp.pad(x, ((0, 0), (0, 0), (p, p), (p, p), (p, p)))
    Do = (D + 2 * padding - k) // stride + 1
    Ho = (H + 2 * padding - k) // stride + 1
    Wo = (W + 2 * padding - k) // stride + 1
    cols = []
    for dz in range(k):
        for dy in range(k):
            for dx in range(k):
                cols.append(x[:, :, dz:dz + Do * stride:stride,
                               dy:dy + Ho * stride:stride,
                               dx:dx + Wo * stride:stride])
    xcol = jnp.concatenate(cols, axis=0).reshape(k * k * k * C, B * Do * Ho * Wo)
    return xcol, (B, Do, Ho, Wo)


def conv3d(x, p, *, stride=1, padding=1, act=None):
    xcol, (B, Do, Ho, Wo) = _im2col(x, 3, stride, padding)
    y = matmul_conv(p["w"], xcol, p["b"], act=act)
    return y.reshape(p["w"].shape[0], B, Do, Ho, Wo)


def res_block(x, p, *, stride=1):
    """relu(conv3x3x3(x) + conv1x1x1(x)); 1x1x1 shortcut folded into the centre tap at init."""
    return conv3d(x, p, stride=stride, padding=1, act="relu")


def conv1x1(x, p, *, act=None, softmax=False, out_dtype=jnp.bfloat16):
    sp = x.shape[1:]
    y = matmul_conv(p["w"], x.reshape(x.shape[0], -1), p["b"],
                    act=act, softmax=softmax, out_dtype=out_dtype)
    return y.reshape((p["w"].shape[0],) + sp)


def conv_transpose2x(x, p):
    """ConvTranspose3d(kernel=2, stride=2): one per-voxel matmul + layout rearrange."""
    Cin, B, D, H, W = x.shape
    Cout = p["w"].shape[0] // 8
    y = matmul_conv(p["w"], x.reshape(Cin, B * D * H * W), p["b"])
    y = y.reshape(Cout, 2, 2, 2, B, D, H, W)
    # TODO(synk): layout-only interleave kept as an XLA transpose (fuses with consumer).
    return jnp.transpose(y, (0, 4, 5, 1, 6, 2, 7, 3)).reshape(Cout, B, 2 * D, 2 * H, 2 * W)


def pad_skip(skip, up):
    """ResUNet.pad(method='pad'): symmetric pad/crop of the decoder tensor so its spatial
    dims equal the skip connection's (negative diff => centre crop)."""
    slices = [slice(None), slice(None)]
    pads = [(0, 0), (0, 0)]
    for ax in (2, 3, 4):
        diff = skip.shape[ax] - up.shape[ax]
        lo = diff // 2
        hi = diff - lo
        pads.append((max(lo, 0), max(hi, 0)))
        slices.append(slice(max(-lo, 0), up.shape[ax] - max(-hi, 0)))
    up = up[tuple(slices)]
    if any(pw != (0, 0) for pw in pads):
        up = jnp.pad(up, pads)
    return up


# ----------------------------- encoder / decoder -----------------------------
def encoder(x, params):
    stem = res_block(x, params["stem"], stride=1)
    d1 = res_block(stem, params["down1"], stride=2)
    d2 = res_block(d1, params["down2"], stride=2)
    return d2, (stem, d1, d2)


def decoder(h, shortcut, params):
    stem, d1, d2 = shortcut
    u2 = pad_skip(d2, conv_transpose2x(h, params["up_sample_2"]))
    uc3 = res_block(jnp.concatenate([d2, u2], axis=0), params["up_conv3"])
    u1 = pad_skip(d1, conv_transpose2x(uc3, params["up_sample_1"]))
    uc2 = res_block(jnp.concatenate([d1, u1], axis=0), params["up_conv2"])
    u0 = pad_skip(stem, conv_transpose2x(uc2, params["up_sample_stem"]))
    uc1 = res_block(jnp.concatenate([stem, u0], axis=0), params["up_conv1"])
    # final 1x1x1 conv with the channel softmax fused into the same kernel epilogue (f32 out)
    return conv1x1(uc1, params["out"], softmax=True, out_dtype=jnp.float32)


# ----------------------------- full BiResCenterLSTM forward -----------------------------
def bires_center_lstm_forward(params, x):
    """x: (B, T, C, D, H, W) -> (B, T, OUT_CH, D, H, W); connect='normal', return_sequence."""
    B, T, _, D, H, W = x.shape
    # encoder / decoder have no cross-time dependence: fold T into the batch axis
    xt = jnp.transpose(x, (2, 0, 1, 3, 4, 5)).reshape(IN_CH, B * T, D, H, W)
    xt = xt.astype(jnp.bfloat16)
    bridge_in, down_blocks = encoder(xt, params)            # (C2, B*T, bd, bh, bw)

    bd, bh, bw = bridge_in.shape[2:]
    vox = bd * bh * bw
    # bridge sequence kept time-major: (C, T, B, bd, bh, bw)
    seq = bridge_in.reshape(C2, B, T, bd, bh, bw).swapaxes(1, 2)

    for i in range(NUM_LAYERS):
        lp = params["lstm"][i]
        cin = seq.shape[0]
        # (1) hoisted x-projection: one big parallel gate matmul over ALL timesteps
        #     (bias folded here; the sequential kernel adds only the recurrent term).
        xcol, _ = _im2col(seq.reshape(cin, T * B, bd, bh, bw), 3, 1, 1)
        xg = matmul_conv(lp["wx"], xcol, lp["b"])            # (4H, T*B*vox) bf16
        xg = xg.reshape(4 * HIDDEN, T, B * vox)

        # (2) recurrence: forward & backward directions stacked along the column (M) axis.
        #     Pairing of h_f(t) with the backward state that has consumed frames T-1..T-1-t
        #     at the same loop index matches the PyTorch reference loop exactly.
        h_state = jnp.zeros((HIDDEN, 2 * B, bd, bh, bw), jnp.bfloat16)
        c_state = jnp.zeros((HIDDEN, 2 * B * vox), jnp.float32)
        steps = []
        for t in range(T):
            hcol, _ = _im2col(h_state, 3, 1, 1)                          # (27H, 2*B*vox)
            xg_t = jnp.concatenate([xg[:, t], xg[:, T - 1 - t]], axis=1)  # (4H, 2*B*vox)
            h_flat, c_state = lstm_step(lp["wh"], hcol, xg_t, c_state)
            h_state = h_flat.reshape(HIDDEN, 2 * B, bd, bh, bw)
            steps.append(h_state.reshape(HIDDEN, 2, B, bd, bh, bw))

        # (3) compress conv hoisted out of the time loop: one time-batched 1x1 conv per layer
        # connect == 'normal': ConvLayer(2*HIDDEN -> HIDDEN, kernel=1)  (impl: conv1x1 + ReLU)
        comb = jnp.stack(steps, axis=2)                       # (H, 2, T, B, bd, bh, bw)
        comb = jnp.swapaxes(comb, 0, 1).reshape(2 * HIDDEN, T, B, bd, bh, bw)
        seq = conv1x1(comb, params["compress"][i], act="relu")  # (H, T, B, bd, bh, bw)

    bridge_out = jnp.swapaxes(seq, 1, 2).reshape(HIDDEN, B * T, bd, bh, bw)
    res = decoder(bridge_out, down_blocks, params)           # (OUT_CH, B*T, D, H, W) f32
    res = res.reshape(OUT_CH, B, T, D, H, W)
    return jnp.transpose(res, (1, 2, 0, 3, 4, 5))


# ----------------------------- deterministic parameter init -----------------------------
def init_params(key):
    keys = iter(jax.random.split(key, 64))

    def _normal(shape):
        return 0.1 * jax.random.normal(next(keys), shape, dtype=jnp.float32)

    def _flat_t(w):  # (3,3,3,cin,cout) -> (cout, 27*cin), K order (dz,dy,dx,cin)
        cout = w.shape[-1]
        return jnp.transpose(w, (4, 0, 1, 2, 3)).reshape(cout, -1)

    def conv_block(cin, cout):
        w = _normal((3, 3, 3, cin, cout))
        b = _normal((cout,))
        ws = _normal((1, 1, 1, cin, cout))
        bs = _normal((cout,))
        # fold the 1x1x1 projection shortcut into the centre tap of the 3x3x3 conv (exact)
        w = w.at[1, 1, 1].add(ws[0, 0, 0])
        b = b + bs
        return {"w": _flat_t(w).astype(jnp.bfloat16), "b": b.reshape(cout, 1)}

    def conv_t(cin, cout):
        # ConvTranspose3d(k=2, s=2) weight flattened to (8*Cout, Cin), row order (c, od, oh, ow)
        return {"w": _normal((cout, 2, 2, 2, cin)).reshape(8 * cout, cin).astype(jnp.bfloat16),
                "b": jnp.repeat(_normal((cout,)), 8).reshape(8 * cout, 1)}

    def conv_1x1(cin, cout):
        return {"w": _normal((cout, cin)).astype(jnp.bfloat16),
                "b": _normal((cout,)).reshape(cout, 1)}

    p = {"stem": conv_block(IN_CH, C0),
         "down1": conv_block(C0, C1),
         "down2": conv_block(C1, C2),
         "lstm": [], "compress": []}
    for i in range(NUM_LAYERS):
        cin = C2 if i == 0 else HIDDEN
        # gate rows grouped as contiguous [i, f, o, g] blocks; W split into x / h halves
        p["lstm"].append(
            {"wx": _flat_t(_normal((3, 3, 3, cin, 4 * HIDDEN))).astype(jnp.bfloat16),
             "wh": _flat_t(_normal((3, 3, 3, HIDDEN, 4 * HIDDEN))).astype(jnp.bfloat16),
             "b": _normal((4 * HIDDEN,)).reshape(4 * HIDDEN, 1)})
        p["compress"].append(conv_1x1(2 * HIDDEN, HIDDEN))
    p["up_sample_2"] = conv_t(HIDDEN, C2)
    p["up_conv3"] = conv_block(2 * C2, C2)
    p["up_sample_1"] = conv_t(C2, C1)
    p["up_conv2"] = conv_block(2 * C1, C1)
    p["up_sample_stem"] = conv_t(C1, C0)
    p["up_conv1"] = conv_block(2 * C0, C0)
    p["out"] = conv_1x1(C0, OUT_CH)
    return p


# ----------------------------- main -----------------------------
if __name__ == "__main__":
    key = jax.random.PRNGKey(0)
    pkey, xkey = jax.random.split(key)
    params = init_params(pkey)

    B, T, D, H, W = 1, 2, 8, 8, 8
    x = jax.random.normal(xkey, (B, T, IN_CH, D, H, W), dtype=jnp.float32)

    fwd = jax.jit(bires_center_lstm_forward)
    out = jax.block_until_ready(fwd(params, x))

    assert out.shape == (B, T, OUT_CH, D, H, W), out.shape
    assert bool(jnp.all(jnp.isfinite(out)))
    # per-voxel channel softmax should sum to ~1 (computed and stored in f32)
    sums = jnp.sum(out, axis=2)
    assert bool(jnp.allclose(sums, 1.0, atol=1e-3)), float(jnp.max(jnp.abs(sums - 1.0)))
    print("KERNEL_OK")
</pallas_src>

<mosaic_0001>
module attributes {stable_mosaic.version = 11 : i64} {
  func.func @_mm_t_kernel(%arg0: i32, %arg1: memref<4x54xbf16, #tpu.memory_space<vmem>>, %arg2: memref<54x512xbf16, #tpu.memory_space<vmem>>, %arg3: memref<4x1xf32, #tpu.memory_space<vmem>>, %arg4: memref<4x512xbf16, #tpu.memory_space<vmem>>) attributes {dimension_semantics = [#tpu.dimension_semantics<parallel>], iteration_bounds = array<i64: 2>, scalar_prefetch = 0 : i64, scratch_operands = 0 : i64, tpu.core_type = #tpu.core_type<tc>, window_params = [{pipeline_mode = #tpu.pipeline_mode<synchronous>, transform_indices = @transform_0, window_bounds = array<i64: 4, 54>}, {transform_indices = @transform_1, window_bounds = array<i64: 54, 512>}, {pipeline_mode = #tpu.pipeline_mode<synchronous>, transform_indices = @transform_2, window_bounds = array<i64: 4, 1>}, {transform_indices = @transform_3, window_bounds = array<i64: 4, 512>}]} {
    %c0 = arith.constant 0 : index
    %c0_0 = arith.constant 0 : index
    %0 = vector.load %arg1[%c0, %c0_0] : memref<4x54xbf16, #tpu.memory_space<vmem>>, vector<4x54xbf16>
    %c0_1 = arith.constant 0 : index
    %c0_2 = arith.constant 0 : index
    %1 = vector.load %arg2[%c0_1, %c0_2] : memref<54x512xbf16, #tpu.memory_space<vmem>>, vector<54x512xbf16>
    %cst = arith.constant dense<0.000000e+00> : vector<4x512xf32>
    %2 = tpu.matmul %0, %1, %cst {dimension_numbers = #tpu.dot_dimension_numbers<[1], [0], [0], [1], [0, 0, 1, 1], [], []>} : vector<4x54xbf16>, vector<54x512xbf16>, vector<4x512xf32> -> vector<4x512xf32>
    %c0_3 = arith.constant 0 : index
    %c0_4 = arith.constant 0 : index
    %3 = vector.load %arg3[%c0_3, %c0_4] : memref<4x1xf32, #tpu.memory_space<vmem>>, vector<4x1xf32>
    %4 = vector.broadcast %3 : vector<4x1xf32> to vector<4x512xf32>
    %5 = arith.addf %2, %4 : vector<4x512xf32>
    %cst_5 = arith.constant 0.000000e+00 : f32
    %6 = vector.broadcast %cst_5 : f32 to vector<4x512xf32>
    %7 = arith.maximumf %5, %6 : vector<4x512xf32>
    %8 = arith.truncf %7 : vector<4x512xf32> to vector<4x512xbf16>
    %c0_6 = arith.constant 0 : index
    %c0_7 = arith.constant 0 : index
    %9 = vector.load %arg4[%c0_6, %c0_7] : memref<4x512xbf16, #tpu.memory_space<vmem>>, vector<4x512xbf16>
    tpu.vector_store %arg4[%c0_6, %c0_7], %8 {strides = array<i32>} : memref<4x512xbf16, #tpu.memory_space<vmem>>, vector<4x512xbf16>,
    return
  }
  func.func @transform_0(%arg0: i32) -> (i32, i32) {
    %c0_i32 = arith.constant 0 : i32
    %c0_i32_0 = arith.constant 0 : i32
    %c0_i32_1 = arith.constant 0 : i32
    return %c0_i32, %c0_i32_0 : i32, i32
  }
  func.func @transform_1(%arg0: i32) -> (i32, i32) {
    %c0_i32 = arith.constant 0 : i32
    %c0_i32_0 = arith.constant 0 : i32
    return %c0_i32, %arg0 : i32, i32
  }
  func.func @transform_2(%arg0: i32) -> (i32, i32) {
    %c0_i32 = arith.constant 0 : i32
    %c0_i32_0 = arith.constant 0 : i32
    %c0_i32_1 = arith.constant 0 : i32
    return %c0_i32, %c0_i32_0 : i32, i32
  }
  func.func @transform_3(%arg0: i32) -> (i32, i32) {
    %c0_i32 = arith.constant 0 : i32
    %c0_i32_0 = arith.constant 0 : i32
    return %c0_i32, %arg0 : i32, i32
  }
}

module attributes {stable_mosaic.version = 11 : i64} {
  func.func @_mm_t_kernel(%arg0: i32, %arg1: memref<8x108xbf16, #tpu.memory_space<vmem>>, %arg2: memref<108x128xbf16, #tpu.memory_space<vmem>>, %arg3: memref<8x1xf32, #tpu.memory_space<vmem>>, %arg4: memref<8x128xbf16, #tpu.memory_space<vmem>>) attributes {dimension_semantics = [#tpu.dimension_semantics<parallel>], iteration_bounds = array<i64: 1>, scalar_prefetch = 0 : i64, scratch_operands = 0 : i64, tpu.core_type = #tpu.core_type<tc>, window_params = [{pipeline_mode = #tpu.pipeline_mode<synchronous>, transform_indices = @transform_0, window_bounds = array<i64: 8, 108>}, {transform_indices = @transform_1, window_bounds = array<i64: 108, 128>}, {pipeline_mode = #tpu.pipeline_mode<synchronous>, transform_indices = @transform_2, window_bounds = array<i64: 8, 1>}, {transform_indices = @transform_3, window_bounds = array<i64: 8, 128>}]} {
    %c0 = arith.constant 0 : index
    %c0_0 = arith.constant 0 : index
    %0 = vector.load %arg1[%c0, %c0_0] : memref<8x108xbf16, #tpu.memory_space<vmem>>, vector<8x108xbf16>
    %c0_1 = arith.constant 0 : index
    %c0_2 = arith.constant 0 : index
    %1 = vector.load %arg2[%c0_1, %c0_2] : memref<108x128xbf16, #tpu.memory_space<vmem>>, vector<108x128xbf16>
    %cst = arith.constant dense<0.000000e+00> : vector<8x128xf32>
    %2 = tpu.matmul %0, %1, %cst {dimension_numbers = #tpu.dot_dimension_numbers<[1], [0], [0], [1], [0, 0, 1, 1], [], []>} : vector<8x108xbf16>, vector<108x128xbf16>, vector<8x128xf32> -> vector<8x128xf32>
    %c0_3 = arith.constant 0 : index
    %c0_4 = arith.constant 0 : index
    %3 = vector.load %arg3[%c0_3, %c0_4] : memref<8x1xf32, #tpu.memory_space<vmem>>, vector<8x1xf32>
    %4 = vector.broadcast %3 : vector<8x1xf32> to vector<8x128xf32>
    %5 = arith.addf %2, %4 : vector<8x128xf32>
    %cst_5 = arith.constant 0.000000e+00 : f32
    %6 = vector.broadcast %cst_5 : f32 to vector<8x128xf32>
    %7 = arith.maximumf %5, %6 : vector<8x128xf32>
    %8 = arith.truncf %7 : vector<8x128xf32> to vector<8x128xbf16>
    %c0_6 = arith.constant 0 : index
    %c0_7 = arith.constant 0 : index
    %9 = vector.load %arg4[%c0_6, %c0_7] : memref<8x128xbf16, #tpu.memory_space<vmem>>, vector<8x128xbf16>
    tpu.vector_store %arg4[%c0_6, %c0_7], %8 {strides = array<i32>} : memref<8x128xbf16, #tpu.memory_space<vmem>>, vector<8x128xbf16>,
    return
  }
  func.func @transform_0(%arg0: i32) -> (i32, i32) {
    %c0_i32 = arith.constant 0 : i32
    %c0_i32_0 = arith.constant 0 : i32
    %c0_i32_1 = arith.constant 0 : i32
    return %c0_i32, %c0_i32_0 : i32, i32
  }
  func.func @transform_1(%arg0: i32) -> (i32, i32) {
    %c0_i32 = arith.constant 0 : i32
    %c0_i32_0 = arith.constant 0 : i32
    return %c0_i32, %arg0 : i32, i32
  }
  func.func @transform_2(%arg0: i32) -> (i32, i32) {
    %c0_i32 = arith.constant 0 : i32
    %c0_i32_0 = arith.constant 0 : i32
    %c0_i32_1 = arith.constant 0 : i32
    return %c0_i32, %c0_i32_0 : i32, i32
  }
  func.func @transform_3(%arg0: i32) -> (i32, i32) {
    %c0_i32 = arith.constant 0 : i32
    %c0_i32_0 = arith.constant 0 : i32
    return %c0_i32, %arg0 : i32, i32
  }
}

module attributes {stable_mosaic.version = 11 : i64} {
  func.func @_mm_t_kernel(%arg0: i32, %arg1: memref<16x216xbf16, #tpu.memory_space<vmem>>, %arg2: memref<216x16xbf16, #tpu.memory_space<vmem>>, %arg3: memref<16x1xf32, #tpu.memory_space<vmem>>, %arg4: memref<16x16xbf16, #tpu.memory_space<vmem>>) attributes {dimension_semantics = [#tpu.dimension_semantics<parallel>], iteration_bounds = array<i64: 1>, scalar_prefetch = 0 : i64, scratch_operands = 0 : i64, tpu.core_type = #tpu.core_type<tc>, window_params = [{pipeline_mode = #tpu.pipeline_mode<synchronous>, transform_indices = @transform_0, window_bounds = array<i64: 16, 216>}, {transform_indices = @transform_1, window_bounds = array<i64: 216, 16>}, {pipeline_mode = #tpu.pipeline_mode<synchronous>, transform_indices = @transform_2, window_bounds = array<i64: 16, 1>}, {transform_indices = @transform_3, window_bounds = array<i64: 16, 16>}]} {
    %c0 = arith.constant 0 : index
    %c0_0 = arith.constant 0 : index
    %0 = vector.load %arg1[%c0, %c0_0] : memref<16x216xbf16, #tpu.memory_space<vmem>>, vector<16x216xbf16>
    %c0_1 = arith.constant 0 : index
    %c0_2 = arith.constant 0 : index
    %1 = vector.load %arg2[%c0_1, %c0_2] : memref<216x16xbf16, #tpu.memory_space<vmem>>, vector<216x16xbf16>
    %cst = arith.constant dense<0.000000e+00> : vector<16x16xf32>
    %2 = tpu.matmul %0, %1, %cst {dimension_numbers = #tpu.dot_dimension_numbers<[1], [0], [0], [1], [0, 0, 1, 1], [], []>} : vector<16x216xbf16>, vector<216x16xbf16>, vector<16x16xf32> -> vector<16x16xf32>
    %c0_3 = arith.constant 0 : index
    %c0_4 = arith.constant 0 : index
    %3 = vector.load %arg3[%c0_3, %c0_4] : memref<16x1xf32, #tpu.memory_space<vmem>>, vector<16x1xf32>
    %4 = vector.broadcast %3 : vector<16x1xf32> to vector<16x16xf32>
    %5 = arith.addf %2, %4 : vector<16x16xf32>
    %cst_5 = arith.constant 0.000000e+00 : f32
    %6 = vector.broadcast %cst_5 : f32 to vector<16x16xf32>
    %7 = arith.maximumf %5, %6 : vector<16x16xf32>
    %8 = arith.truncf %7 : vector<16x16xf32> to vector<16x16xbf16>
    %c0_6 = arith.constant 0 : index
    %c0_7 = arith.constant 0 : index
    %9 = vector.load %arg4[%c0_6, %c0_7] : memref<16x16xbf16, #tpu.memory_space<vmem>>, vector<16x16xbf16>
    tpu.vector_store %arg4[%c0_6, %c0_7], %8 {strides = array<i32>} : memref<16x16xbf16, #tpu.memory_space<vmem>>, vector<16x16xbf16>,
    return
  }
  func.func @transform_0(%arg0: i32) -> (i32, i32) {
    %c0_i32 = arith.constant 0 : i32
    %c0_i32_0 = arith.constant 0 : i32
    %c0_i32_1 = arith.constant 0 : i32
    return %c0_i32, %c0_i32_0 : i32, i32
  }
  func.func @transform_1(%arg0: i32) -> (i32, i32) {
    %c0_i32 = arith.constant 0 : i32
    %c0_i32_0 = arith.constant 0 : i32
    return %c0_i32, %arg0 : i32, i32
  }
  func.func @transform_2(%arg0: i32) -> (i32, i32) {
    %c0_i32 = arith.constant 0 : i32
    %c0_i32_0 = arith.constant 0 : i32
    %c0_i32_1 = arith.constant 0 : i32
    return %c0_i32, %c0_i32_0 : i32, i32
  }
  func.func @transform_3(%arg0: i32) -> (i32, i32) {
    %c0_i32 = arith.constant 0 : i32
    %c0_i32_0 = arith.constant 0 : i32
    return %c0_i32, %arg0 : i32, i32
  }
}

module attributes {stable_mosaic.version = 11 : i64} {
  func.func @_mm_t_kernel(%arg0: i32, %arg1: memref<128x432xbf16, #tpu.memory_space<vmem>>, %arg2: memref<432x16xbf16, #tpu.memory_space<vmem>>, %arg3: memref<128x1xf32, #tpu.memory_space<vmem>>, %arg4: memref<128x16xbf16, #tpu.memory_space<vmem>>) attributes {dimension_semantics = [#tpu.dimension_semantics<parallel>], iteration_bounds = array<i64: 1>, scalar_prefetch = 0 : i64, scratch_operands = 0 : i64, tpu.core_type = #tpu.core_type<tc>, window_params = [{pipeline_mode = #tpu.pipeline_mode<synchronous>, transform_indices = @transform_0, window_bounds = array<i64: 128, 432>}, {transform_indices = @transform_1, window_bounds = array<i64: 432, 16>}, {pipeline_mode = #tpu.pipeline_mode<synchronous>, transform_indices = @transform_2, window_bounds = array<i64: 128, 1>}, {transform_indices = @transform_3, window_bounds = array<i64: 128, 16>}]} {
    %c0 = arith.constant 0 : index
    %c0_0 = arith.constant 0 : index
    %0 = vector.load %arg1[%c0, %c0_0] : memref<128x432xbf16, #tpu.memory_space<vmem>>, vector<128x432xbf16>
    %c0_1 = arith.constant 0 : index
    %c0_2 = arith.constant 0 : index
    %1 = vector.load %arg2[%c0_1, %c0_2] : memref<432x16xbf16, #tpu.memory_space<vmem>>, vector<432x16xbf16>
    %cst = arith.constant dense<0.000000e+00> : vector<128x16xf32>
    %2 = tpu.matmul %0, %1, %cst {dimension_numbers = #tpu.dot_dimension_numbers<[1], [0], [0], [1], [0, 0, 1, 1], [], []>} : vector<128x432xbf16>, vector<432x16xbf16>, vector<128x16xf32> -> vector<128x16xf32>
    %c0_3 = arith.constant 0 : index
    %c0_4 = arith.constant 0 : index
    %3 = vector.load %arg3[%c0_3, %c0_4] : memref<128x1xf32, #tpu.memory_space<vmem>>, vector<128x1xf32>
    %4 = vector.broadcast %3 : vector<128x1xf32> to vector<128x16xf32>
    %5 = arith.addf %2, %4 : vector<128x16xf32>
    %6 = arith.truncf %5 : vector<128x16xf32> to vector<128x16xbf16>
    %c0_5 = arith.constant 0 : index
    %c0_6 = arith.constant 0 : index
    %7 = vector.load %arg4[%c0_5, %c0_6] : memref<128x16xbf16, #tpu.memory_space<vmem>>, vector<128x16xbf16>
    tpu.vector_store %arg4[%c0_5, %c0_6], %6 {strides = array<i32>} : memref<128x16xbf16, #tpu.memory_space<vmem>>, vector<128x16xbf16>,
    return
  }
  func.func @transform_0(%arg0: i32) -> (i32, i32) {
    %c0_i32 = arith.constant 0 : i32
    %c0_i32_0 = arith.constant 0 : i32
    %c0_i32_1 = arith.constant 0 : i32
    return %c0_i32, %c0_i32_0 : i32, i32
  }
  func.func @transform_1(%arg0: i32) -> (i32, i32) {
    %c0_i32 = arith.constant 0 : i32
    %c0_i32_0 = arith.constant 0 : i32
    return %c0_i32, %arg0 : i32, i32
  }
  func.func @transform_2(%arg0: i32) -> (i32, i32) {
    %c0_i32 = arith.constant 0 : i32
    %c0_i32_0 = arith.constant 0 : i32
    %c0_i32_1 = arith.constant 0 : i32
    return %c0_i32, %c0_i32_0 : i32, i32
  }
  func.func @transform_3(%arg0: i32) -> (i32, i32) {
    %c0_i32 = arith.constant 0 : i32
    %c0_i32_0 = arith.constant 0 : i32
    return %c0_i32, %arg0 : i32, i32
  }
}

module attributes {stable_mosaic.version = 11 : i64} {
  func.func @_lstm_step_kernel(%arg0: i32, %arg1: memref<128x864xbf16, #tpu.memory_space<vmem>>, %arg2: memref<864x16xbf16, #tpu.memory_space<vmem>>, %arg3: memref<128x16xbf16, #tpu.memory_space<vmem>>, %arg4: memref<32x16xf32, #tpu.memory_space<vmem>>, %arg5: memref<32x16xbf16, #tpu.memory_space<vmem>>, %arg6: memref<32x16xf32, #tpu.memory_space<vmem>>) attributes {dimension_semantics = [#tpu.dimension_semantics<parallel>], iteration_bounds = array<i64: 1>, scalar_prefetch = 0 : i64, scratch_operands = 0 : i64, tpu.core_type = #tpu.core_type<tc>, window_params = [{pipeline_mode = #tpu.pipeline_mode<synchronous>, transform_indices = @transform_0, window_bounds = array<i64: 128, 864>}, {transform_indices = @transform_1, window_bounds = array<i64: 864, 16>}, {transform_indices = @transform_2, window_bounds = array<i64: 128, 16>}, {transform_indices = @transform_3, window_bounds = array<i64: 32, 16>}, {transform_indices = @transform_4, window_bounds = array<i64: 32, 16>}, {transform_indices = @transform_5, window_bounds = array<i64: 32, 16>}]} {
    %c0 = arith.constant 0 : index
    %c0_0 = arith.constant 0 : index
    %0 = vector.load %arg1[%c0, %c0_0] : memref<128x864xbf16, #tpu.memory_space<vmem>>, vector<128x864xbf16>
    %c0_1 = arith.constant 0 : index
    %c0_2 = arith.constant 0 : index
    %1 = vector.load %arg2[%c0_1, %c0_2] : memref<864x16xbf16, #tpu.memory_space<vmem>>, vector<864x16xbf16>
    %cst = arith.constant dense<0.000000e+00> : vector<128x16xf32>
    %2 = tpu.matmul %0, %1, %cst {dimension_numbers = #tpu.dot_dimension_numbers<[1], [0], [0], [1], [0, 0, 1, 1], [], []>} : vector<128x864xbf16>, vector<864x16xbf16>, vector<128x16xf32> -> vector<128x16xf32>
    %c0_3 = arith.constant 0 : index
    %c0_4 = arith.constant 0 : index
    %3 = vector.load %arg3[%c0_3, %c0_4] : memref<128x16xbf16, #tpu.memory_space<vmem>>, vector<128x16xbf16>
    %4 = arith.extf %3 : vector<128x16xbf16> to vector<128x16xf32>
    %5 = arith.addf %2, %4 : vector<128x16xf32>
    %6 = vector.extract_strided_slice %5 {offsets = [0, 0], sizes = [32, 16], strides = [1, 1]} : vector<128x16xf32> to vector<32x16xf32>
    %7 = arith.negf %6 : vector<32x16xf32>
    %8 = math.exp %7 : vector<32x16xf32>
    %cst_5 = arith.constant 1.000000e+00 : f32
    %9 = vector.broadcast %cst_5 : f32 to vector<32x16xf32>
    %10 = arith.addf %9, %8 : vector<32x16xf32>
    %11 = arith.divf %9, %10 : vector<32x16xf32>
    %12 = vector.extract_strided_slice %5 {offsets = [32, 0], sizes = [32, 16], strides = [1, 1]} : vector<128x16xf32> to vector<32x16xf32>
    %13 = arith.negf %12 : vector<32x16xf32>
    %14 = math.exp %13 : vector<32x16xf32>
    %cst_6 = arith.constant 1.000000e+00 : f32
    %15 = vector.broadcast %cst_6 : f32 to vector<32x16xf32>
    %16 = arith.addf %15, %14 : vector<32x16xf32>
    %17 = arith.divf %15, %16 : vector<32x16xf32>
    %18 = vector.extract_strided_slice %5 {offsets = [64, 0], sizes = [32, 16], strides = [1, 1]} : vector<128x16xf32> to vector<32x16xf32>
    %19 = arith.negf %18 : vector<32x16xf32>
    %20 = math.exp %19 : vector<32x16xf32>
    %cst_7 = arith.constant 1.000000e+00 : f32
    %21 = vector.broadcast %cst_7 : f32 to vector<32x16xf32>
    %22 = arith.addf %21, %20 : vector<32x16xf32>
    %23 = arith.divf %21, %22 : vector<32x16xf32>
    %24 = vector.extract_strided_slice %5 {offsets = [96, 0], sizes = [32, 16], strides = [1, 1]} : vector<128x16xf32> to vector<32x16xf32>
    %25 = math.tanh %24 : vector<32x16xf32>
    %c0_8 = arith.constant 0 : index
    %c0_9 = arith.constant 0 : index
    %26 = vector.load %arg4[%c0_8, %c0_9] : memref<32x16xf32, #tpu.memory_space<vmem>>, vector<32x16xf32>
    %27 = arith.mulf %17, %26 : vector<32x16xf32>
    %28 = arith.mulf %11, %25 : vector<32x16xf32>
    %29 = arith.addf %27, %28 : vector<32x16xf32>
    %30 = math.tanh %29 : vector<32x16xf32>
    %31 = arith.mulf %23, %30 : vector<32x16xf32>
    %32 = arith.truncf %31 : vector<32x16xf32> to vector<32x16xbf16>
    %c0_10 = arith.constant 0 : index
    %c0_11 = arith.constant 0 : index
    %33 = vector.load %arg5[%c0_10, %c0_11] : memref<32x16xbf16, #tpu.memory_space<vmem>>, vector<32x16xbf16>
    tpu.vector_store %arg5[%c0_10, %c0_11], %32 {strides = array<i32>} : memref<32x16xbf16, #tpu.memory_space<vmem>>, vector<32x16xbf16>,
    %c0_12 = arith.constant 0 : index
    %c0_13 = arith.constant 0 : index
    %34 = vector.load %arg6[%c0_12, %c0_13] : memref<32x16xf32, #tpu.memory_space<vmem>>, vector<32x16xf32>
    tpu.vector_store %arg6[%c0_12, %c0_13], %29 {strides = array<i32>} : memref<32x16xf32, #tpu.memory_space<vmem>>, vector<32x16xf32>,
    return
  }
  func.func @transform_0(%arg0: i32) -> (i32, i32) {
    %c0_i32 = arith.constant 0 : i32
    %c0_i32_0 = arith.constant 0 : i32
    %c0_i32_1 = arith.constant 0 : i32
    return %c0_i32, %c0_i32_0 : i32, i32
  }
  func.func @transform_1(%arg0: i32) -> (i32, i32) {
    %c0_i32 = arith.constant 0 : i32
    %c0_i32_0 = arith.constant 0 : i32
    return %c0_i32, %arg0 : i32, i32
  }
  func.func @transform_2(%arg0: i32) -> (i32, i32) {
    %c0_i32 = arith.constant 0 : i32
    %c0_i32_0 = arith.constant 0 : i32
    return %c0_i32, %arg0 : i32, i32
  }
  func.func @transform_3(%arg0: i32) -> (i32, i32) {
    %c0_i32 = arith.constant 0 : i32
    %c0_i32_0 = arith.constant 0 : i32
    return %c0_i32, %arg0 : i32, i32
  }
  func.func @transform_4(%arg0: i32) -> (i32, i32) {
    %c0_i32 = arith.constant 0 : i32
    %c0_i32_0 = arith.constant 0 : i32
    return %c0_i32, %arg0 : i32, i32
  }
  func.func @transform_5(%arg0: i32) -> (i32, i32) {
    %c0_i32 = arith.constant 0 : i32
    %c0_i32_0 = arith.constant 0 : i32
    return %c0_i32, %arg0 : i32, i32
  }
}

module attributes {stable_mosaic.version = 11 : i64} {
  func.func @_lstm_step_kernel(%arg0: i32, %arg1: memref<128x864xbf16, #tpu.memory_space<vmem>>, %arg2: memref<864x16xbf16, #tpu.memory_space<vmem>>, %arg3: memref<128x16xbf16, #tpu.memory_space<vmem>>, %arg4: memref<32x16xf32, #tpu.memory_space<vmem>>, %arg5: memref<32x16xbf16, #tpu.memory_space<vmem>>, %arg6: memref<32x16xf32, #tpu.memory_space<vmem>>) attributes {dimension_semantics = [#tpu.dimension_semantics<parallel>], iteration_bounds = array<i64: 1>, scalar_prefetch = 0 : i64, scratch_operands = 0 : i64, tpu.core_type = #tpu.core_type<tc>, window_params = [{pipeline_mode = #tpu.pipeline_mode<synchronous>, transform_indices = @transform_0, window_bounds = array<i64: 128, 864>}, {transform_indices = @transform_1, window_bounds = array<i64: 864, 16>}, {transform_indices = @transform_2, window_bounds = array<i64: 128, 16>}, {transform_indices = @transform_3, window_bounds = array<i64: 32, 16>}, {transform_indices = @transform_4, window_bounds = array<i64: 32, 16>}, {transform_indices = @transform_5, window_bounds = array<i64: 32, 16>}]} {
    %c0 = arith.constant 0 : index
    %c0_0 = arith.constant 0 : index
    %0 = vector.load %arg1[%c0, %c0_0] : memref<128x864xbf16, #tpu.memory_space<vmem>>, vector<128x864xbf16>
    %c0_1 = arith.constant 0 : index
    %c0_2 = arith.constant 0 : index
    %1 = vector.load %arg2[%c0_1, %c0_2] : memref<864x16xbf16, #tpu.memory_space<vmem>>, vector<864x16xbf16>
    %cst = arith.constant dense<0.000000e+00> : vector<128x16xf32>
    %2 = tpu.matmul %0, %1, %cst {dimension_numbers = #tpu.dot_dimension_numbers<[1], [0], [0], [1], [0, 0, 1, 1], [], []>} : vector<128x864xbf16>, vector<864x16xbf16>, vector<128x16xf32> -> vector<128x16xf32>
    %c0_3 = arith.constant 0 : index
    %c0_4 = arith.constant 0 : index
    %3 = vector.load %arg3[%c0_3, %c0_4] : memref<128x16xbf16, #tpu.memory_space<vmem>>, vector<128x16xbf16>
    %4 = arith.extf %3 : vector<128x16xbf16> to vector<128x16xf32>
    %5 = arith.addf %2, %4 : vector<128x16xf32>
    %6 = vector.extract_strided_slice %5 {offsets = [0, 0], sizes = [32, 16], strides = [1, 1]} : vector<128x16xf32> to vector<32x16xf32>
    %7 = arith.negf %6 : vector<32x16xf32>
    %8 = math.exp %7 : vector<32x16xf32>
    %cst_5 = arith.constant 1.000000e+00 : f32
    %9 = vector.broadcast %cst_5 : f32 to vector<32x16xf32>
    %10 = arith.addf %9, %8 : vector<32x16xf32>
    %11 = arith.divf %9, %10 : vector<32x16xf32>
    %12 = vector.extract_strided_slice %5 {offsets = [32, 0], sizes = [32, 16], strides = [1, 1]} : vector<128x16xf32> to vector<32x16xf32>
    %13 = arith.negf %12 : vector<32x16xf32>
    %14 = math.exp %13 : vector<32x16xf32>
    %cst_6 = arith.constant 1.000000e+00 : f32
    %15 = vector.broadcast %cst_6 : f32 to vector<32x16xf32>
    %16 = arith.addf %15, %14 : vector<32x16xf32>
    %17 = arith.divf %15, %16 : vector<32x16xf32>
    %18 = vector.extract_strided_slice %5 {offsets = [64, 0], sizes = [32, 16], strides = [1, 1]} : vector<128x16xf32> to vector<32x16xf32>
    %19 = arith.negf %18 : vector<32x16xf32>
    %20 = math.exp %19 : vector<32x16xf32>
    %cst_7 = arith.constant 1.000000e+00 : f32
    %21 = vector.broadcast %cst_7 : f32 to vector<32x16xf32>
    %22 = arith.addf %21, %20 : vector<32x16xf32>
    %23 = arith.divf %21, %22 : vector<32x16xf32>
    %24 = vector.extract_strided_slice %5 {offsets = [96, 0], sizes = [32, 16], strides = [1, 1]} : vector<128x16xf32> to vector<32x16xf32>
    %25 = math.tanh %24 : vector<32x16xf32>
    %c0_8 = arith.constant 0 : index
    %c0_9 = arith.constant 0 : index
    %26 = vector.load %arg4[%c0_8, %c0_9] : memref<32x16xf32, #tpu.memory_space<vmem>>, vector<32x16xf32>
    %27 = arith.mulf %17, %26 : vector<32x16xf32>
    %28 = arith.mulf %11, %25 : vector<32x16xf32>
    %29 = arith.addf %27, %28 : vector<32x16xf32>
    %30 = math.tanh %29 : vector<32x16xf32>
    %31 = arith.mulf %23, %30 : vector<32x16xf32>
    %32 = arith.truncf %31 : vector<32x16xf32> to vector<32x16xbf16>
    %c0_10 = arith.constant 0 : index
    %c0_11 = arith.constant 0 : index
    %33 = vector.load %arg5[%c0_10, %c0_11] : memref<32x16xbf16, #tpu.memory_space<vmem>>, vector<32x16xbf16>
    tpu.vector_store %arg5[%c0_10, %c0_11], %32 {strides = array<i32>} : memref<32x16xbf16, #tpu.memory_space<vmem>>, vector<32x16xbf16>,
    %c0_12 = arith.constant 0 : index
    %c0_13 = arith.constant 0 : index
    %34 = vector.load %arg6[%c0_12, %c0_13] : memref<32x16xf32, #tpu.memory_space<vmem>>, vector<32x16xf32>
    tpu.vector_store %arg6[%c0_12, %c0_13], %29 {strides = array<i32>} : memref<32x16xf32, #tpu.memory_space<vmem>>, vector<32x16xf32>,
    return
  }
  func.func @transform_0(%arg0: i32) -> (i32, i32) {
    %c0_i32 = arith.constant 0 : i32
    %c0_i32_0 = arith.constant 0 : i32
    %c0_i32_1 = arith.constant 0 : i32
    return %c0_i32, %c0_i32_0 : i32, i32
  }
  func.func @transform_1(%arg0: i32) -> (i32, i32) {
    %c0_i32 = arith.constant 0 : i32
    %c0_i32_0 = arith.constant 0 : i32
    return %c0_i32, %arg0 : i32, i32
  }
  func.func @transform_2(%arg0: i32) -> (i32, i32) {
    %c0_i32 = arith.constant 0 : i32
    %c0_i32_0 = arith.constant 0 : i32
    return %c0_i32, %arg0 : i32, i32
  }
  func.func @transform_3(%arg0: i32) -> (i32, i32) {
    %c0_i32 = arith.constant 0 : i32
    %c0_i32_0 = arith.constant 0 : i32
    return %c0_i32, %arg0 : i32, i32
  }
  func.func @transform_4(%arg0: i32) -> (i32, i32) {
    %c0_i32 = arith.constant 0 : i32
    %c0_i32_0 = arith.constant 0 : i32
    return %c0_i32, %arg0 : i32, i32
  }
  func.func @transform_5(%arg0: i32) -> (i32, i32) {
    %c0_i32 = arith.constant 0 : i32
    %c0_i32_0 = arith.constant 0 : i32
    return %c0_i32, %arg0 : i32, i32
  }
}

module attributes {stable_mosaic.version = 11 : i64} {
  func.func @_mm_t_kernel(%arg0: i32, %arg1: memref<32x64xbf16, #tpu.memory_space<vmem>>, %arg2: memref<64x16xbf16, #tpu.memory_space<vmem>>, %arg3: memref<32x1xf32, #tpu.memory_space<vmem>>, %arg4: memref<32x16xbf16, #tpu.memory_space<vmem>>) attributes {dimension_semantics = [#tpu.dimension_semantics<parallel>], iteration_bounds = array<i64: 1>, scalar_prefetch = 0 : i64, scratch_operands = 0 : i64, tpu.core_type = #tpu.core_type<tc>, window_params = [{pipeline_mode = #tpu.pipeline_mode<synchronous>, transform_indices = @transform_0, window_bounds = array<i64: 32, 64>}, {transform_indices = @transform_1, window_bounds = array<i64: 64, 16>}, {pipeline_mode = #tpu.pipeline_mode<synchronous>, transform_indices = @transform_2, window_bounds = array<i64: 32, 1>}, {transform_indices = @transform_3, window_bounds = array<i64: 32, 16>}]} {
    %c0 = arith.constant 0 : index
    %c0_0 = arith.constant 0 : index
    %0 = vector.load %arg1[%c0, %c0_0] : memref<32x64xbf16, #tpu.memory_space<vmem>>, vector<32x64xbf16>
    %c0_1 = arith.constant 0 : index
    %c0_2 = arith.constant 0 : index
    %1 = vector.load %arg2[%c0_1, %c0_2] : memref<64x16xbf16, #tpu.memory_space<vmem>>, vector<64x16xbf16>
    %cst = arith.constant dense<0.000000e+00> : vector<32x16xf32>
    %2 = tpu.matmul %0, %1, %cst {dimension_numbers = #tpu.dot_dimension_numbers<[1], [0], [0], [1], [0, 0, 1, 1], [], []>} : vector<32x64xbf16>, vector<64x16xbf16>, vector<32x16xf32> -> vector<32x16xf32>
    %c0_3 = arith.constant 0 : index
    %c0_4 = arith.constant 0 : index
    %3 = vector.load %arg3[%c0_3, %c0_4] : memref<32x1xf32, #tpu.memory_space<vmem>>, vector<32x1xf32>
    %4 = vector.broadcast %3 : vector<32x1xf32> to vector<32x16xf32>
    %5 = arith.addf %2, %4 : vector<32x16xf32>
    %cst_5 = arith.constant 0.000000e+00 : f32
    %6 = vector.broadcast %cst_5 : f32 to vector<32x16xf32>
    %7 = arith.maximumf %5, %6 : vector<32x16xf32>
    %8 = arith.truncf %7 : vector<32x16xf32> to vector<32x16xbf16>
    %c0_6 = arith.constant 0 : index
    %c0_7 = arith.constant 0 : index
    %9 = vector.load %arg4[%c0_6, %c0_7] : memref<32x16xbf16, #tpu.memory_space<vmem>>, vector<32x16xbf16>
    tpu.vector_store %arg4[%c0_6, %c0_7], %8 {strides = array<i32>} : memref<32x16xbf16, #tpu.memory_space<vmem>>, vector<32x16xbf16>,
    return
  }
  func.func @transform_0(%arg0: i32) -> (i32, i32) {
    %c0_i32 = arith.constant 0 : i32
    %c0_i32_0 = arith.constant 0 : i32
    %c0_i32_1 = arith.constant 0 : i32
    return %c0_i32, %c0_i32_0 : i32, i32
  }
  func.func @transform_1(%arg0: i32) -> (i32, i32) {
    %c0_i32 = arith.constant 0 : i32
    %c0_i32_0 = arith.constant 0 : i32
    return %c0_i32, %arg0 : i32, i32
  }
  func.func @transform_2(%arg0: i32) -> (i32, i32) {
    %c0_i32 = arith.constant 0 : i32
    %c0_i32_0 = arith.constant 0 : i32
    %c0_i32_1 = arith.constant 0 : i32
    return %c0_i32, %c0_i32_0 : i32, i32
  }
  func.func @transform_3(%arg0: i32) -> (i32, i32) {
    %c0_i32 = arith.constant 0 : i32
    %c0_i32_0 = arith.constant 0 : i32
    return %c0_i32, %arg0 : i32, i32
  }
}

module attributes {stable_mosaic.version = 11 : i64} {
  func.func @_mm_t_kernel(%arg0: i32, %arg1: memref<128x864xbf16, #tpu.memory_space<vmem>>, %arg2: memref<864x16xbf16, #tpu.memory_space<vmem>>, %arg3: memref<128x1xf32, #tpu.memory_space<vmem>>, %arg4: memref<128x16xbf16, #tpu.memory_space<vmem>>) attributes {dimension_semantics = [#tpu.dimension_semantics<parallel>], iteration_bounds = array<i64: 1>, scalar_prefetch = 0 : i64, scratch_operands = 0 : i64, tpu.core_type = #tpu.core_type<tc>, window_params = [{pipeline_mode = #tpu.pipeline_mode<synchronous>, transform_indices = @transform_0, window_bounds = array<i64: 128, 864>}, {transform_indices = @transform_1, window_bounds = array<i64: 864, 16>}, {pipeline_mode = #tpu.pipeline_mode<synchronous>, transform_indices = @transform_2, window_bounds = array<i64: 128, 1>}, {transform_indices = @transform_3, window_bounds = array<i64: 128, 16>}]} {
    %c0 = arith.constant 0 : index
    %c0_0 = arith.constant 0 : index
    %0 = vector.load %arg1[%c0, %c0_0] : memref<128x864xbf16, #tpu.memory_space<vmem>>, vector<128x864xbf16>
    %c0_1 = arith.constant 0 : index
    %c0_2 = arith.constant 0 : index
    %1 = vector.load %arg2[%c0_1, %c0_2] : memref<864x16xbf16, #tpu.memory_space<vmem>>, vector<864x16xbf16>
    %cst = arith.constant dense<0.000000e+00> : vector<128x16xf32>
    %2 = tpu.matmul %0, %1, %cst {dimension_numbers = #tpu.dot_dimension_numbers<[1], [0], [0], [1], [0, 0, 1, 1], [], []>} : vector<128x864xbf16>, vector<864x16xbf16>, vector<128x16xf32> -> vector<128x16xf32>
    %c0_3 = arith.constant 0 : index
    %c0_4 = arith.constant 0 : index
    %3 = vector.load %arg3[%c0_3, %c0_4] : memref<128x1xf32, #tpu.memory_space<vmem>>, vector<128x1xf32>
    %4 = vector.broadcast %3 : vector<128x1xf32> to vector<128x16xf32>
    %5 = arith.addf %2, %4 : vector<128x16xf32>
    %6 = arith.truncf %5 : vector<128x16xf32> to vector<128x16xbf16>
    %c0_5 = arith.constant 0 : index
    %c0_6 = arith.constant 0 : index
    %7 = vector.load %arg4[%c0_5, %c0_6] : memref<128x16xbf16, #tpu.memory_space<vmem>>, vector<128x16xbf16>
    tpu.vector_store %arg4[%c0_5, %c0_6], %6 {strides = array<i32>} : memref<128x16xbf16, #tpu.memory_space<vmem>>, vector<128x16xbf16>,
    return
  }
  func.func @transform_0(%arg0: i32) -> (i32, i32) {
    %c0_i32 = arith.constant 0 : i32
    %c0_i32_0 = arith.constant 0 : i32
    %c0_i32_1 = arith.constant 0 : i32
    return %c0_i32, %c0_i32_0 : i32, i32
  }
  func.func @transform_1(%arg0: i32) -> (i32, i32) {
    %c0_i32 = arith.constant 0 : i32
    %c0_i32_0 = arith.constant 0 : i32
    return %c0_i32, %arg0 : i32, i32
  }
  func.func @transform_2(%arg0: i32) -> (i32, i32) {
    %c0_i32 = arith.constant 0 : i32
    %c0_i32_0 = arith.constant 0 : i32
    %c0_i32_1 = arith.constant 0 : i32
    return %c0_i32, %c0_i32_0 : i32, i32
  }
  func.func @transform_3(%arg0: i32) -> (i32, i32) {
    %c0_i32 = arith.constant 0 : i32
    %c0_i32_0 = arith.constant 0 : i32
    return %c0_i32, %arg0 : i32, i32
  }
}

module attributes {stable_mosaic.version = 11 : i64} {
  func.func @_mm_t_kernel(%arg0: i32, %arg1: memref<128x32xbf16, #tpu.memory_space<vmem>>, %arg2: memref<32x16xbf16, #tpu.memory_space<vmem>>, %arg3: memref<128x1xf32, #tpu.memory_space<vmem>>, %arg4: memref<128x16xbf16, #tpu.memory_space<vmem>>) attributes {dimension_semantics = [#tpu.dimension_semantics<parallel>], iteration_bounds = array<i64: 1>, scalar_prefetch = 0 : i64, scratch_operands = 0 : i64, tpu.core_type = #tpu.core_type<tc>, window_params = [{pipeline_mode = #tpu.pipeline_mode<synchronous>, transform_indices = @transform_0, window_bounds = array<i64: 128, 32>}, {transform_indices = @transform_1, window_bounds = array<i64: 32, 16>}, {pipeline_mode = #tpu.pipeline_mode<synchronous>, transform_indices = @transform_2, window_bounds = array<i64: 128, 1>}, {transform_indices = @transform_3, window_bounds = array<i64: 128, 16>}]} {
    %c0 = arith.constant 0 : index
    %c0_0 = arith.constant 0 : index
    %0 = vector.load %arg1[%c0, %c0_0] : memref<128x32xbf16, #tpu.memory_space<vmem>>, vector<128x32xbf16>
    %c0_1 = arith.constant 0 : index
    %c0_2 = arith.constant 0 : index
    %1 = vector.load %arg2[%c0_1, %c0_2] : memref<32x16xbf16, #tpu.memory_space<vmem>>, vector<32x16xbf16>
    %cst = arith.constant dense<0.000000e+00> : vector<128x16xf32>
    %2 = tpu.matmul %0, %1, %cst {dimension_numbers = #tpu.dot_dimension_numbers<[1], [0], [0], [1], [0, 0, 1, 1], [], []>} : vector<128x32xbf16>, vector<32x16xbf16>, vector<128x16xf32> -> vector<128x16xf32>
    %c0_3 = arith.constant 0 : index
    %c0_4 = arith.constant 0 : index
    %3 = vector.load %arg3[%c0_3, %c0_4] : memref<128x1xf32, #tpu.memory_space<vmem>>, vector<128x1xf32>
    %4 = vector.broadcast %3 : vector<128x1xf32> to vector<128x16xf32>
    %5 = arith.addf %2, %4 : vector<128x16xf32>
    %6 = arith.truncf %5 : vector<128x16xf32> to vector<128x16xbf16>
    %c0_5 = arith.constant 0 : index
    %c0_6 = arith.constant 0 : index
    %7 = vector.load %arg4[%c0_5, %c0_6] : memref<128x16xbf16, #tpu.memory_space<vmem>>, vector<128x16xbf16>
    tpu.vector_store %arg4[%c0_5, %c0_6], %6 {strides = array<i32>} : memref<128x16xbf16, #tpu.memory_space<vmem>>, vector<128x16xbf16>,
    return
  }
  func.func @transform_0(%arg0: i32) -> (i32, i32) {
    %c0_i32 = arith.constant 0 : i32
    %c0_i32_0 = arith.constant 0 : i32
    %c0_i32_1 = arith.constant 0 : i32
    return %c0_i32, %c0_i32_0 : i32, i32
  }
  func.func @transform_1(%arg0: i32) -> (i32, i32) {
    %c0_i32 = arith.constant 0 : i32
    %c0_i32_0 = arith.constant 0 : i32
    return %c0_i32, %arg0 : i32, i32
  }
  func.func @transform_2(%arg0: i32) -> (i32, i32) {
    %c0_i32 = arith.constant 0 : i32
    %c0_i32_0 = arith.constant 0 : i32
    %c0_i32_1 = arith.constant 0 : i32
    return %c0_i32, %c0_i32_0 : i32, i32
  }
  func.func @transform_3(%arg0: i32) -> (i32, i32) {
    %c0_i32 = arith.constant 0 : i32
    %c0_i32_0 = arith.constant 0 : i32
    return %c0_i32, %arg0 : i32, i32
  }
}

module attributes {stable_mosaic.version = 11 : i64} {
  func.func @_mm_t_kernel(%arg0: i32, %arg1: memref<64x16xbf16, #tpu.memory_space<vmem>>, %arg2: memref<16x16xbf16, #tpu.memory_space<vmem>>, %arg3: memref<64x1xf32, #tpu.memory_space<vmem>>, %arg4: memref<64x16xbf16, #tpu.memory_space<vmem>>) attributes {dimension_semantics = [#tpu.dimension_semantics<parallel>], iteration_bounds = array<i64: 1>, scalar_prefetch = 0 : i64, scratch_operands = 0 : i64, tpu.core_type = #tpu.core_type<tc>, window_params = [{pipeline_mode = #tpu.pipeline_mode<synchronous>, transform_indices = @transform_0, window_bounds = array<i64: 64, 16>}, {transform_indices = @transform_1, window_bounds = array<i64: 16, 16>}, {pipeline_mode = #tpu.pipeline_mode<synchronous>, transform_indices = @transform_2, window_bounds = array<i64: 64, 1>}, {transform_indices = @transform_3, window_bounds = array<i64: 64, 16>}]} {
    %c0 = arith.constant 0 : index
    %c0_0 = arith.constant 0 : index
    %0 = vector.load %arg1[%c0, %c0_0] : memref<64x16xbf16, #tpu.memory_space<vmem>>, vector<64x16xbf16>
    %c0_1 = arith.constant 0 : index
    %c0_2 = arith.constant 0 : index
    %1 = vector.load %arg2[%c0_1, %c0_2] : memref<16x16xbf16, #tpu.memory_space<vmem>>, vector<16x16xbf16>
    %cst = arith.constant dense<0.000000e+00> : vector<64x16xf32>
    %2 = tpu.matmul %0, %1, %cst {dimension_numbers = #tpu.dot_dimension_numbers<[1], [0], [0], [1], [0, 0, 1, 1], [], []>} : vector<64x16xbf16>, vector<16x16xbf16>, vector<64x16xf32> -> vector<64x16xf32>
    %c0_3 = arith.constant 0 : index
    %c0_4 = arith.constant 0 : index
    %3 = vector.load %arg3[%c0_3, %c0_4] : memref<64x1xf32, #tpu.memory_space<vmem>>, vector<64x1xf32>
    %4 = vector.broadcast %3 : vector<64x1xf32> to vector<64x16xf32>
    %5 = arith.addf %2, %4 : vector<64x16xf32>
    %6 = arith.truncf %5 : vector<64x16xf32> to vector<64x16xbf16>
    %c0_5 = arith.constant 0 : index
    %c0_6 = arith.constant 0 : index
    %7 = vector.load %arg4[%c0_5, %c0_6] : memref<64x16xbf16, #tpu.memory_space<vmem>>, vector<64x16xbf16>
    tpu.vector_store %arg4[%c0_5, %c0_6], %6 {strides = array<i32>} : memref<64x16xbf16, #tpu.memory_space<vmem>>, vector<64x16xbf16>,
    return
  }
  func.func @transform_0(%arg0: i32) -> (i32, i32) {
    %c0_i32 = arith.constant 0 : i32
    %c0_i32_0 = arith.constant 0 : i32
    %c0_i32_1 = arith.constant 0 : i32
    return %c0_i32, %c0_i32_0 : i32, i32
  }
  func.func @transform_1(%arg0: i32) -> (i32, i32) {
    %c0_i32 = arith.constant 0 : i32
    %c0_i32_0 = arith.constant 0 : i32
    return %c0_i32, %arg0 : i32, i32
  }
  func.func @transform_2(%arg0: i32) -> (i32, i32) {
    %c0_i32 = arith.constant 0 : i32
    %c0_i32_0 = arith.constant 0 : i32
    %c0_i32_1 = arith.constant 0 : i32
    return %c0_i32, %c0_i32_0 : i32, i32
  }
  func.func @transform_3(%arg0: i32) -> (i32, i32) {
    %c0_i32 = arith.constant 0 : i32
    %c0_i32_0 = arith.constant 0 : i32
    return %c0_i32, %arg0 : i32, i32
  }
}

module attributes {stable_mosaic.version = 11 : i64} {
  func.func @_mm_t_kernel(%arg0: i32, %arg1: memref<16x864xbf16, #tpu.memory_space<vmem>>, %arg2: memref<864x16xbf16, #tpu.memory_space<vmem>>, %arg3: memref<16x1xf32, #tpu.memory_space<vmem>>, %arg4: memref<16x16xbf16, #tpu.memory_space<vmem>>) attributes {dimension_semantics = [#tpu.dimension_semantics<parallel>], iteration_bounds = array<i64: 1>, scalar_prefetch = 0 : i64, scratch_operands = 0 : i64, tpu.core_type = #tpu.core_type<tc>, window_params = [{pipeline_mode = #tpu.pipeline_mode<synchronous>, transform_indices = @transform_0, window_bounds = array<i64: 16, 864>}, {transform_indices = @transform_1, window_bounds = array<i64: 864, 16>}, {pipeline_mode = #tpu.pipeline_mode<synchronous>, transform_indices = @transform_2, window_bounds = array<i64: 16, 1>}, {transform_indices = @transform_3, window_bounds = array<i64: 16, 16>}]} {
    %c0 = arith.constant 0 : index
    %c0_0 = arith.constant 0 : index
    %0 = vector.load %arg1[%c0, %c0_0] : memref<16x864xbf16, #tpu.memory_space<vmem>>, vector<16x864xbf16>
    %c0_1 = arith.constant 0 : index
    %c0_2 = arith.constant 0 : index
    %1 = vector.load %arg2[%c0_1, %c0_2] : memref<864x16xbf16, #tpu.memory_space<vmem>>, vector<864x16xbf16>
    %cst = arith.constant dense<0.000000e+00> : vector<16x16xf32>
    %2 = tpu.matmul %0, %1, %cst {dimension_numbers = #tpu.dot_dimension_numbers<[1], [0], [0], [1], [0, 0, 1, 1], [], []>} : vector<16x864xbf16>, vector<864x16xbf16>, vector<16x16xf32> -> vector<16x16xf32>
    %c0_3 = arith.constant 0 : index
    %c0_4 = arith.constant 0 : index
    %3 = vector.load %arg3[%c0_3, %c0_4] : memref<16x1xf32, #tpu.memory_space<vmem>>, vector<16x1xf32>
    %4 = vector.broadcast %3 : vector<16x1xf32> to vector<16x16xf32>
    %5 = arith.addf %2, %4 : vector<16x16xf32>
    %cst_5 = arith.constant 0.000000e+00 : f32
    %6 = vector.broadcast %cst_5 : f32 to vector<16x16xf32>
    %7 = arith.maximumf %5, %6 : vector<16x16xf32>
    %8 = arith.truncf %7 : vector<16x16xf32> to vector<16x16xbf16>
    %c0_6 = arith.constant 0 : index
    %c0_7 = arith.constant 0 : index
    %9 = vector.load %arg4[%c0_6, %c0_7] : memref<16x16xbf16, #tpu.memory_space<vmem>>, vector<16x16xbf16>
    tpu.vector_store %arg4[%c0_6, %c0_7], %8 {strides = array<i32>} : memref<16x16xbf16, #tpu.memory_space<vmem>>, vector<16x16xbf16>,
    return
  }
  func.func @transform_0(%arg0: i32) -> (i32, i32) {
    %c0_i32 = arith.constant 0 : i32
    %c0_i32_0 = arith.constant 0 : i32
    %c0_i32_1 = arith.constant 0 : i32
    return %c0_i32, %c0_i32_0 : i32, i32
  }
  func.func @transform_1(%arg0: i32) -> (i32, i32) {
    %c0_i32 = arith.constant 0 : i32
    %c0_i32_0 = arith.constant 0 : i32
    return %c0_i32, %arg0 : i32, i32
  }
  func.func @transform_2(%arg0: i32) -> (i32, i32) {
    %c0_i32 = arith.constant 0 : i32
    %c0_i32_0 = arith.constant 0 : i32
    %c0_i32_1 = arith.constant 0 : i32
    return %c0_i32, %c0_i32_0 : i32, i32
  }
  func.func @transform_3(%arg0: i32) -> (i32, i32) {
    %c0_i32 = arith.constant 0 : i32
    %c0_i32_0 = arith.constant 0 : i32
    return %c0_i32, %arg0 : i32, i32
  }
}

module attributes {stable_mosaic.version = 11 : i64} {
  func.func @_mm_t_kernel(%arg0: i32, %arg1: memref<8x432xbf16, #tpu.memory_space<vmem>>, %arg2: memref<432x128xbf16, #tpu.memory_space<vmem>>, %arg3: memref<8x1xf32, #tpu.memory_space<vmem>>, %arg4: memref<8x128xbf16, #tpu.memory_space<vmem>>) attributes {dimension_semantics = [#tpu.dimension_semantics<parallel>], iteration_bounds = array<i64: 1>, scalar_prefetch = 0 : i64, scratch_operands = 0 : i64, tpu.core_type = #tpu.core_type<tc>, window_params = [{pipeline_mode = #tpu.pipeline_mode<synchronous>, transform_indices = @transform_0, window_bounds = array<i64: 8, 432>}, {transform_indices = @transform_1, window_bounds = array<i64: 432, 128>}, {pipeline_mode = #tpu.pipeline_mode<synchronous>, transform_indices = @transform_2, window_bounds = array<i64: 8, 1>}, {transform_indices = @transform_3, window_bounds = array<i64: 8, 128>}]} {
    %c0 = arith.constant 0 : index
    %c0_0 = arith.constant 0 : index
    %0 = vector.load %arg1[%c0, %c0_0] : memref<8x432xbf16, #tpu.memory_space<vmem>>, vector<8x432xbf16>
    %c0_1 = arith.constant 0 : index
    %c0_2 = arith.constant 0 : index
    %1 = vector.load %arg2[%c0_1, %c0_2] : memref<432x128xbf16, #tpu.memory_space<vmem>>, vector<432x128xbf16>
    %cst = arith.constant dense<0.000000e+00> : vector<8x128xf32>
    %2 = tpu.matmul %0, %1, %cst {dimension_numbers = #tpu.dot_dimension_numbers<[1], [0], [0], [1], [0, 0, 1, 1], [], []>} : vector<8x432xbf16>, vector<432x128xbf16>, vector<8x128xf32> -> vector<8x128xf32>
    %c0_3 = arith.constant 0 : index
    %c0_4 = arith.constant 0 : index
    %3 = vector.load %arg3[%c0_3, %c0_4] : memref<8x1xf32, #tpu.memory_space<vmem>>, vector<8x1xf32>
    %4 = vector.broadcast %3 : vector<8x1xf32> to vector<8x128xf32>
    %5 = arith.addf %2, %4 : vector<8x128xf32>
    %cst_5 = arith.constant 0.000000e+00 : f32
    %6 = vector.broadcast %cst_5 : f32 to vector<8x128xf32>
    %7 = arith.maximumf %5, %6 : vector<8x128xf32>
    %8 = arith.truncf %7 : vector<8x128xf32> to vector<8x128xbf16>
    %c0_6 = arith.constant 0 : index
    %c0_7 = arith.constant 0 : index
    %9 = vector.load %arg4[%c0_6, %c0_7] : memref<8x128xbf16, #tpu.memory_space<vmem>>, vector<8x128xbf16>
    tpu.vector_store %arg4[%c0_6, %c0_7], %8 {strides = array<i32>} : memref<8x128xbf16, #tpu.memory_space<vmem>>, vector<8x128xbf16>,
    return
  }
  func.func @transform_0(%arg0: i32) -> (i32, i32) {
    %c0_i32 = arith.constant 0 : i32
    %c0_i32_0 = arith.constant 0 : i32
    %c0_i32_1 = arith.constant 0 : i32
    return %c0_i32, %c0_i32_0 : i32, i32
  }
  func.func @transform_1(%arg0: i32) -> (i32, i32) {
    %c0_i32 = arith.constant 0 : i32
    %c0_i32_0 = arith.constant 0 : i32
    return %c0_i32, %arg0 : i32, i32
  }
  func.func @transform_2(%arg0: i32) -> (i32, i32) {
    %c0_i32 = arith.constant 0 : i32
    %c0_i32_0 = arith.constant 0 : i32
    %c0_i32_1 = arith.constant 0 : i32
    return %c0_i32, %c0_i32_0 : i32, i32
  }
  func.func @transform_3(%arg0: i32) -> (i32, i32) {
    %c0_i32 = arith.constant 0 : i32
    %c0_i32_0 = arith.constant 0 : i32
    return %c0_i32, %arg0 : i32, i32
  }
}

module attributes {stable_mosaic.version = 11 : i64} {
  func.func @_mm_t_kernel(%arg0: i32, %arg1: memref<32x8xbf16, #tpu.memory_space<vmem>>, %arg2: memref<8x128xbf16, #tpu.memory_space<vmem>>, %arg3: memref<32x1xf32, #tpu.memory_space<vmem>>, %arg4: memref<32x128xbf16, #tpu.memory_space<vmem>>) attributes {dimension_semantics = [#tpu.dimension_semantics<parallel>], iteration_bounds = array<i64: 1>, scalar_prefetch = 0 : i64, scratch_operands = 0 : i64, tpu.core_type = #tpu.core_type<tc>, window_params = [{pipeline_mode = #tpu.pipeline_mode<synchronous>, transform_indices = @transform_0, window_bounds = array<i64: 32, 8>}, {transform_indices = @transform_1, window_bounds = array<i64: 8, 128>}, {pipeline_mode = #tpu.pipeline_mode<synchronous>, transform_indices = @transform_2, window_bounds = array<i64: 32, 1>}, {transform_indices = @transform_3, window_bounds = array<i64: 32, 128>}]} {
    %c0 = arith.constant 0 : index
    %c0_0 = arith.constant 0 : index
    %0 = vector.load %arg1[%c0, %c0_0] : memref<32x8xbf16, #tpu.memory_space<vmem>>, vector<32x8xbf16>
    %c0_1 = arith.constant 0 : index
    %c0_2 = arith.constant 0 : index
    %1 = vector.load %arg2[%c0_1, %c0_2] : memref<8x128xbf16, #tpu.memory_space<vmem>>, vector<8x128xbf16>
    %cst = arith.constant dense<0.000000e+00> : vector<32x128xf32>
    %2 = tpu.matmul %0, %1, %cst {dimension_numbers = #tpu.dot_dimension_numbers<[1], [0], [0], [1], [0, 0, 1, 1], [], []>} : vector<32x8xbf16>, vector<8x128xbf16>, vector<32x128xf32> -> vector<32x128xf32>
    %c0_3 = arith.constant 0 : index
    %c0_4 = arith.constant 0 : index
    %3 = vector.load %arg3[%c0_3, %c0_4] : memref<32x1xf32, #tpu.memory_space<vmem>>, vector<32x1xf32>
    %4 = vector.broadcast %3 : vector<32x1xf32> to vector<32x128xf32>
    %5 = arith.addf %2, %4 : vector<32x128xf32>
    %6 = arith.truncf %5 : vector<32x128xf32> to vector<32x128xbf16>
    %c0_5 = arith.constant 0 : index
    %c0_6 = arith.constant 0 : index
    %7 = vector.load %arg4[%c0_5, %c0_6] : memref<32x128xbf16, #tpu.memory_space<vmem>>, vector<32x128xbf16>
    tpu.vector_store %arg4[%c0_5, %c0_6], %6 {strides = array<i32>} : memref<32x128xbf16, #tpu.memory_space<vmem>>, vector<32x128xbf16>,
    return
  }
  func.func @transform_0(%arg0: i32) -> (i32, i32) {
    %c0_i32 = arith.constant 0 : i32
    %c0_i32_0 = arith.constant 0 : i32
    %c0_i32_1 = arith.constant 0 : i32
    return %c0_i32, %c0_i32_0 : i32, i32
  }
  func.func @transform_1(%arg0: i32) -> (i32, i32) {
    %c0_i32 = arith.constant 0 : i32
    %c0_i32_0 = arith.constant 0 : i32
    return %c0_i32, %arg0 : i32, i32
  }
  func.func @transform_2(%arg0: i32) -> (i32, i32) {
    %c0_i32 = arith.constant 0 : i32
    %c0_i32_0 = arith.constant 0 : i32
    %c0_i32_1 = arith.constant 0 : i32
    return %c0_i32, %c0_i32_0 : i32, i32
  }
  func.func @transform_3(%arg0: i32) -> (i32, i32) {
    %c0_i32 = arith.constant 0 : i32
    %c0_i32_0 = arith.constant 0 : i32
    return %c0_i32, %arg0 : i32, i32
  }
}

module attributes {stable_mosaic.version = 11 : i64} {
  func.func @_mm_t_kernel(%arg0: i32, %arg1: memref<4x216xbf16, #tpu.memory_space<vmem>>, %arg2: memref<216x512xbf16, #tpu.memory_space<vmem>>, %arg3: memref<4x1xf32, #tpu.memory_space<vmem>>, %arg4: memref<4x512xbf16, #tpu.memory_space<vmem>>) attributes {dimension_semantics = [#tpu.dimension_semantics<parallel>], iteration_bounds = array<i64: 2>, scalar_prefetch = 0 : i64, scratch_operands = 0 : i64, tpu.core_type = #tpu.core_type<tc>, window_params = [{pipeline_mode = #tpu.pipeline_mode<synchronous>, transform_indices = @transform_0, window_bounds = array<i64: 4, 216>}, {transform_indices = @transform_1, window_bounds = array<i64: 216, 512>}, {pipeline_mode = #tpu.pipeline_mode<synchronous>, transform_indices = @transform_2, window_bounds = array<i64: 4, 1>}, {transform_indices = @transform_3, window_bounds = array<i64: 4, 512>}]} {
    %c0 = arith.constant 0 : index
    %c0_0 = arith.constant 0 : index
    %0 = vector.load %arg1[%c0, %c0_0] : memref<4x216xbf16, #tpu.memory_space<vmem>>, vector<4x216xbf16>
    %c0_1 = arith.constant 0 : index
    %c0_2 = arith.constant 0 : index
    %1 = vector.load %arg2[%c0_1, %c0_2] : memref<216x512xbf16, #tpu.memory_space<vmem>>, vector<216x512xbf16>
    %cst = arith.constant dense<0.000000e+00> : vector<4x512xf32>
    %2 = tpu.matmul %0, %1, %cst {dimension_numbers = #tpu.dot_dimension_numbers<[1], [0], [0], [1], [0, 0, 1, 1], [], []>} : vector<4x216xbf16>, vector<216x512xbf16>, vector<4x512xf32> -> vector<4x512xf32>
    %c0_3 = arith.constant 0 : index
    %c0_4 = arith.constant 0 : index
    %3 = vector.load %arg3[%c0_3, %c0_4] : memref<4x1xf32, #tpu.memory_space<vmem>>, vector<4x1xf32>
    %4 = vector.broadcast %3 : vector<4x1xf32> to vector<4x512xf32>
    %5 = arith.addf %2, %4 : vector<4x512xf32>
    %cst_5 = arith.constant 0.000000e+00 : f32
    %6 = vector.broadcast %cst_5 : f32 to vector<4x512xf32>
    %7 = arith.maximumf %5, %6 : vector<4x512xf32>
    %8 = arith.truncf %7 : vector<4x512xf32> to vector<4x512xbf16>
    %c0_6 = arith.constant 0 : index
    %c0_7 = arith.constant 0 : index
    %9 = vector.load %arg4[%c0_6, %c0_7] : memref<4x512xbf16, #tpu.memory_space<vmem>>, vector<4x512xbf16>
    tpu.vector_store %arg4[%c0_6, %c0_7], %8 {strides = array<i32>} : memref<4x512xbf16, #tpu.memory_space<vmem>>, vector<4x512xbf16>,
    return
  }
  func.func @transform_0(%arg0: i32) -> (i32, i32) {
    %c0_i32 = arith.constant 0 : i32
    %c0_i32_0 = arith.constant 0 : i32
    %c0_i32_1 = arith.constant 0 : i32
    return %c0_i32, %c0_i32_0 : i32, i32
  }
  func.func @transform_1(%arg0: i32) -> (i32, i32) {
    %c0_i32 = arith.constant 0 : i32
    %c0_i32_0 = arith.constant 0 : i32
    return %c0_i32, %arg0 : i32, i32
  }
  func.func @transform_2(%arg0: i32) -> (i32, i32) {
    %c0_i32 = arith.constant 0 : i32
    %c0_i32_0 = arith.constant 0 : i32
    %c0_i32_1 = arith.constant 0 : i32
    return %c0_i32, %c0_i32_0 : i32, i32
  }
  func.func @transform_3(%arg0: i32) -> (i32, i32) {
    %c0_i32 = arith.constant 0 : i32
    %c0_i32_0 = arith.constant 0 : i32
    return %c0_i32, %arg0 : i32, i32
  }
}

module attributes {stable_mosaic.version = 11 : i64} {
  func.func @_mm_t_kernel(%arg0: i32, %arg1: memref<3x4xbf16, #tpu.memory_space<vmem>>, %arg2: memref<4x512xbf16, #tpu.memory_space<vmem>>, %arg3: memref<3x1xf32, #tpu.memory_space<vmem>>, %arg4: memref<3x512xf32, #tpu.memory_space<vmem>>) attributes {dimension_semantics = [#tpu.dimension_semantics<parallel>], iteration_bounds = array<i64: 2>, scalar_prefetch = 0 : i64, scratch_operands = 0 : i64, tpu.core_type = #tpu.core_type<tc>, window_params = [{pipeline_mode = #tpu.pipeline_mode<synchronous>, transform_indices = @transform_0, window_bounds = array<i64: 3, 4>}, {transform_indices = @transform_1, window_bounds = array<i64: 4, 512>}, {pipeline_mode = #tpu.pipeline_mode<synchronous>, transform_indices = @transform_2, window_bounds = array<i64: 3, 1>}, {transform_indices = @transform_3, window_bounds = array<i64: 3, 512>}]} {
    %c0 = arith.constant 0 : index
    %c0_0 = arith.constant 0 : index
    %0 = vector.load %arg1[%c0, %c0_0] : memref<3x4xbf16, #tpu.memory_space<vmem>>, vector<3x4xbf16>
    %c0_1 = arith.constant 0 : index
    %c0_2 = arith.constant 0 : index
    %1 = vector.load %arg2[%c0_1, %c0_2] : memref<4x512xbf16, #tpu.memory_space<vmem>>, vector<4x512xbf16>
    %cst = arith.constant dense<0.000000e+00> : vector<3x512xf32>
    %2 = tpu.matmul %0, %1, %cst {dimension_numbers = #tpu.dot_dimension_numbers<[1], [0], [0], [1], [0, 0, 1, 1], [], []>} : vector<3x4xbf16>, vector<4x512xbf16>, vector<3x512xf32> -> vector<3x512xf32>
    %c0_3 = arith.constant 0 : index
    %c0_4 = arith.constant 0 : index
    %3 = vector.load %arg3[%c0_3, %c0_4] : memref<3x1xf32, #tpu.memory_space<vmem>>, vector<3x1xf32>
    %4 = vector.broadcast %3 : vector<3x1xf32> to vector<3x512xf32>
    %5 = arith.addf %2, %4 : vector<3x512xf32>
    %cst_5 = arith.constant dense<0xFF800000> : vector<512xf32>
    %6 = vector.multi_reduction <maximumf>, %5, %cst_5 [0] : vector<3x512xf32> to vector<512xf32>
    %7 = vector.shape_cast %6 : vector<512xf32> to vector<1x512xf32>
    %8 = vector.broadcast %7 : vector<1x512xf32> to vector<3x512xf32>
    %9 = arith.subf %5, %8 : vector<3x512xf32>
    %10 = math.exp %9 : vector<3x512xf32>
    %cst_6 = arith.constant dense<0.000000e+00> : vector<512xf32>
    %11 = vector.multi_reduction <add>, %10, %cst_6 [0] : vector<3x512xf32> to vector<512xf32>
    %12 = vector.shape_cast %11 : vector<512xf32> to vector<1x512xf32>
    %13 = vector.broadcast %12 : vector<1x512xf32> to vector<3x512xf32>
    %14 = arith.divf %10, %13 : vector<3x512xf32>
    %c0_7 = arith.constant 0 : index
    %c0_8 = arith.constant 0 : index
    %15 = vector.load %arg4[%c0_7, %c0_8] : memref<3x512xf32, #tpu.memory_space<vmem>>, vector<3x512xf32>
    tpu.vector_store %arg4[%c0_7, %c0_8], %14 {strides = array<i32>} : memref<3x512xf32, #tpu.memory_space<vmem>>, vector<3x512xf32>,
    return
  }
  func.func @transform_0(%arg0: i32) -> (i32, i32) {
    %c0_i32 = arith.constant 0 : i32
    %c0_i32_0 = arith.constant 0 : i32
    %c0_i32_1 = arith.constant 0 : i32
    return %c0_i32, %c0_i32_0 : i32, i32
  }
  func.func @transform_1(%arg0: i32) -> (i32, i32) {
    %c0_i32 = arith.constant 0 : i32
    %c0_i32_0 = arith.constant 0 : i32
    return %c0_i32, %arg0 : i32, i32
  }
  func.func @transform_2(%arg0: i32) -> (i32, i32) {
    %c0_i32 = arith.constant 0 : i32
    %c0_i32_0 = arith.constant 0 : i32
    %c0_i32_1 = arith.constant 0 : i32
    return %c0_i32, %c0_i32_0 : i32, i32
  }
  func.func @transform_3(%arg0: i32) -> (i32, i32) {
    %c0_i32 = arith.constant 0 : i32
    %c0_i32_0 = arith.constant 0 : i32
    return %c0_i32, %arg0 : i32, i32
  }
}

</mosaic_0001>

<bundles_post_ra>
// kernel: bires_center_lstm_forward.18
= control target key start
LH: loop header
LB: loop body
LE: loop exit
PB: predicated region body
PF: predicated region fallthrough
CT: control target
= control target key end

     0   :  { %s614_s12 = smov 0   ;;  %s616_s13 = smov 0   ;;  %s704_s0 = inlined_call_operand.vmem [shape: bf16[4,54], index: 0, kind: input, shape index: {}]   ;;  %s705_s1 = inlined_call_operand.vmem [shape: bf16[54,1024], index: 1, kind: input, shape index: {}]   ;;  %s706_s2 = inlined_call_operand.vmem [shape: f32[4,1], index: 2, kind: input, shape index: {}]   ;;  %s707_s3 = inlined_call_operand.vmem [shape: bf16[4,1024], index: 3, kind: output, shape index: {}]  }
   0x1   :  { %s618_s14 = smov 0  }
   0x2 LB: > { %s465_s15 = sadd.s32 4294967295, %s591_s14   ;;  %s631_s16 = sadd.s32 1, %s591_s14   ;;  %s591_s14 = sphi %s618_s14, %s710_s14   ;;  %s587_s13 = sphi %s616_s13, %s709_s13   ;;  %s583_s12 = sphi %s614_s12, %s708_s12  }
   0x3   : > { %s38_s17 = ssub.s32 %s591_s14, %s631_s16  ;;  %s41_s18 = sadd.s32 1, %s587_s13 }
   0x4   : > { %p39_p0 = scmp.eq.s32.totalorder %s38_s17, 0  ;;  %p48_p1 = scmp.ne.s32.totalorder %s587_s13, %s583_s12 }
   0x5   : > { %p49_p2 = scmp.eq.s32.totalorder %s591_s14, 0  ;;  %p468_p4 = scmp.ge.s32.totalorder %s591_s14, 2 }
   0x6   : > { %s640_s19 = scalar_select %p39_p0, %s587_s13, %s41_s18  }
   0x7   : > { %p50_p3 = por %p49_p2, %p48_p1  ;;  %127 = sbr.rel (%p468_p4) target bundleno = 30 (0x1e), region = 24 }
   0xc   : > { %130 = sbr.rel (!%p50_p3) target bundleno = 30 (0x1e), region = 28  ;;  %s132_s20 = sand.u32 (%p50_p3), 1, %s587_s13  }
   0xd   : > { %s528_s21 = sshll.u32 (%p50_p3), %s591_s14, 4  ;;  %s541_s22 = smul.u32 (%p50_p3), 112, %s132_s20 }
   0xe   : > { %s137_s25 = scalar_lea.vmem (%p50_p3), %s705_s1, %s528_s21 }
   0xf   : > { %v150_v0 = vld [vmem:[%s137_s25] sm:$0xff] (%p50_p3)  ;;  %v152_v1 = vld [vmem:[%s137_s25 + $0x8] sm:$0xff] (%p50_p3)  ;;  %s134_s26 = scalar_lea.vmem (%p50_p3), [#allocation2], %s541_s22 }
  0x10   : > { %v154_v2 = vld [vmem:[%s137_s25 + $0x20] sm:$0xff] (%p50_p3)  ;;  %151 = vst [vmem:[%s134_s26] sm:$0xff] (%p50_p3), %v150_v0  ;;  %v156_v3 = vld [vmem:[%s137_s25 + $0x28] sm:$0xff] (%p50_p3) }
  0x11   : > { %153 = vst [vmem:[%s134_s26 + $0x8] sm:$0xff] %v152_v1  ;;  %v158_v4 = vld [vmem:[%s137_s25 + $0x40] sm:$0xff]  ;;  %v160_v5 = vld [vmem:[%s137_s25 + $0x48] sm:$0xff] }
  0x12   : > { %155 = vst [vmem:[%s134_s26 + $0x10] sm:$0xff] %v154_v2  ;;  %v162_v6 = vld [vmem:[%s137_s25 + $0x60] sm:$0xff]  ;;  %v164_v7 = vld [vmem:[%s137_s25 + $0x68] sm:$0xff] }
  0x13   : > { %157 = vst [vmem:[%s134_s26 + $0x18] sm:$0xff] %v156_v3  ;;  %v166_v8 = vld [vmem:[%s137_s25 + $0x80] sm:$0xff]  ;;  %v168_v9 = vld [vmem:[%s137_s25 + $0x88] sm:$0xff] }
  0x14   : > { %159 = vst [vmem:[%s134_s26 + $0x20] sm:$0xff] %v158_v4  ;;  %v170_v10 = vld [vmem:[%s137_s25 + $0xa0] sm:$0xff]  ;;  %v172_v11 = vld [vmem:[%s137_s25 + $0xa8] sm:$0xff] }
  0x15   : > { %161 = vst [vmem:[%s134_s26 + $0x28] sm:$0xff] %v160_v5  ;;  %v174_v12 = vld [vmem:[%s137_s25 + $0xc0] sm:$0xff]  ;;  %v176_v13 = vld [vmem:[%s137_s25 + $0xc8] sm:$0xff] }
  0x16   : > { %163 = vst [vmem:[%s134_s26 + $0x30] sm:$0xff] %v162_v6 }
  0x17   : > { %165 = vst [vmem:[%s134_s26 + $0x38] sm:$0xff] %v164_v7 }
  0x18   : > { %167 = vst [vmem:[%s134_s26 + $0x40] sm:$0xff] %v166_v8 }
  0x19   : > { %169 = vst [vmem:[%s134_s26 + $0x48] sm:$0xff] %v168_v9 }
  0x1a   : > { %171 = vst [vmem:[%s134_s26 + $0x50] sm:$0xff] %v170_v10 }
  0x1b   : > { %173 = vst [vmem:[%s134_s26 + $0x58] sm:$0xff] %v172_v11 }
  0x1c   : > { %175 = vst [vmem:[%s134_s26 + $0x60] sm:$0xff] %v174_v12 }
  0x1d   : > { %177 = vst [vmem:[%s134_s26 + $0x68] sm:$0xff] %v176_v13 }
  0x1e PF: > { %p471_p5 = scmp.ge.s32.totalorder %s591_s14, 1  ;;  %p182_p6 = scmp.lt.s32.totalorder %s591_s14, 3 }
  0x20   : > { %p183_p7 = pnand %p471_p5, %p182_p6 }
  0x21   : > { %s189_s27 = sand.u32 (!%p183_p7), 1, %s583_s12   ;;  %s472_s7 = sshll.u32 (!%p183_p7), %s465_s15, 2 }
  0x22   : > { %186 = sbr.rel (%p183_p7) target bundleno = 203 (0xcb), region = 51  ;;  %p214_p8 = scmp.lt.s32.totalorder (!%p183_p7), %s472_s7, 7 }
  0x23   : > { %s542_s28 = smul.u32 (!%p183_p7), 112, %s189_s27 }
  0x25   : > { %s654_s4 = scalar_lea.vmem (!%p183_p7), [#allocation2], %s542_s28 }
  0x27   : > { %v593_v14 = vmov 0   ;;  %v235_v15 = vld [vmem:[%s706_s2] sm:$0xf]  ;;  %v234_v17 = vld [vmem:[%s654_s4 + $0x68] sm:$0x77]  ;;  %vm315_vm0 = vcmask 1042432  }
  0x28   : > { %568 = vset.pattern.permute.xlu0 %v593_v14  ;;  %v233_v16 = vld [vmem:[%s654_s4 + $0x60] sm:$0x77]  ;;  %v281_v20 = vunpack.c.l.b16 %v234_v17  ;;  %v282_v21 = vunpack.c.h.b16 %v234_v17  ;;  %v539_v23 = vld [vmem:[%s654_s4 + $0x4c] sm:$0xf0]  ;;  %v510_v29 = vld [vmem:[%s654_s4 + $0x50] sm:$0xf0] }
  0x29   : > { %238 = vperm.xlu0 %568, %v235_v15   ;;  %v279_v18 = vunpack.c.l.b16 %v233_v16  ;;  %v280_v19 = vunpack.c.h.b16 %v233_v16  ;;  %v508_v22 = vld [vmem:[%s654_s4 + $0x40] sm:$0xf]  ;;  %v537_v28 = vld [vmem:[%s654_s4 + $0x44] sm:$0xf]  ;;  %v516_v30 = vld [vmem:[%s654_s4 + $0x48] sm:$0xf] }
  0x2a   : > { %v297_v26 = vpack.c.b16 %v281_v20, %v281_v20  ;;  %v298_v27 = vpack.c.b16 %v282_v21, %v282_v21  ;;  %v540_v31 = vld [vmem:[%s654_s4 + $0x54] sm:$0xf0]  ;;  %v538_v32 = vld [vmem:[%s654_s4 + $0x4c] sm:$0xf]  ;;  %v518_v33 = vld [vmem:[%s654_s4 + $0x58] sm:$0xf0]  ;;  %v509_v38 = vor.u32 %v539_v23, %v508_v22  ;;  %v513_v39 = vor.u32 %v537_v28, %v510_v29 }
  0x2b   : > { %v295_v24 = vpack.c.b16 %v279_v18, %v279_v18  ;;  %v296_v25 = vpack.c.b16 %v280_v19, %v280_v19  ;;  %v492_v40 = vld [vmem:[%s654_s4 + $0x20] sm:$0xf]  ;;  %v535_v41 = vld [vmem:[%s654_s4 + $0x2c] sm:$0xf0]  ;;  %v517_v42 = vor.u32 %v540_v31, %v516_v30  ;;  %v521_v43 = vor.u32 %v538_v32, %v518_v33  ;;  %v533_v44 = vld [vmem:[%s654_s4 + $0x24] sm:$0xf] }
  0x2c   : > { %v323_v36 = vsel %vm315_vm0, %v297_v26, 0  ;;  %v326_v37 = vsel %vm315_vm0, %v298_v27, 0  ;;  %v494_v45 = vld [vmem:[%s654_s4 + $0x30] sm:$0xf0]  ;;  %v500_v46 = vld [vmem:[%s654_s4 + $0x28] sm:$0xf]  ;;  %v493_v50 = vor.u32 %v535_v41, %v492_v40 }
  0x2d   : > { %v317_v34 = vsel %vm315_vm0, %v295_v24, 0  ;;  %v320_v35 = vsel %vm315_vm0, %v296_v25, 0  ;;  %358 = vmatpush.bf16.msra.mxu2 %v323_v36  ;;  %371 = vmatpush.bf16.msra.mxu3 %v326_v37  ;;  %v536_v47 = vld [vmem:[%s654_s4 + $0x34] sm:$0xf0]  ;;  %v534_v48 = vld [vmem:[%s654_s4 + $0x2c] sm:$0xf]  ;;  %v497_v51 = vor.u32 %v533_v44, %v494_v45 }
  0x2e   : > { %332 = vmatpush.bf16.msra.mxu0 %v317_v34  ;;  %345 = vmatpush.bf16.msra.mxu1 %v320_v35  ;;  %v502_v49 = vld [vmem:[%s654_s4 + $0x38] sm:$0xf0]  ;;  %v476_v52 = vld [vmem:[%s654_s4] sm:$0xf]  ;;  %v531_v53 = vld [vmem:[%s654_s4 + $0xc] sm:$0xf0]  ;;  %v501_v54 = vor.u32 %v536_v47, %v500_v46 }
  0x2f   : > { %v505_v55 = vor.u32 %v534_v48, %v502_v49  ;;  %v529_v56 = vld [vmem:[%s654_s4 + $0x4] sm:$0xf]  ;;  %v478_v57 = vld [vmem:[%s654_s4 + $0x10] sm:$0xf0]  ;;  %v484_v58 = vld [vmem:[%s654_s4 + $0x8] sm:$0xf]  ;;  %v477_v62 = vor.u32 %v531_v53, %v476_v52 }
  0x30   : > { %v532_v59 = vld [vmem:[%s654_s4 + $0x14] sm:$0xf0]  ;;  %v530_v60 = vld [vmem:[%s654_s4 + $0xc] sm:$0xf]  ;;  %v486_v61 = vld [vmem:[%s654_s4 + $0x18] sm:$0xf0]  ;;  %v481_v63 = vor.u32 %v529_v56, %v478_v57 }
  0x31   : > { %359 = vmatpush.bf16.msra.mxu2 %v517_v42  ;;  %372 = vmatpush.bf16.msra.mxu3 %v521_v43  ;;  %v485_v0 = vor.u32 %v532_v59, %v484_v58  ;;  %v489_v1 = vor.u32 %v530_v60, %v486_v61  ;;  %v220_v2 = vld [vmem:[%s704_s0] sm:$0x3]  ;;  %vm311_vm1 = vcmask 441344   ;;  %s712_s7 = smov (!%p214_p8, %s472_s7), 7  ;;  %vm391_vm2 = vcmask 1041408  }
  0x32   : > { %333 = vmatpush.bf16.msra.mxu0 %v509_v38  ;;  %346 = vmatpush.bf16.msra.mxu1 %v513_v39  ;;  %s473_s8 = sshll.u32 %s712_s7, 1  ;;  %vm395_vm3 = vcmask 1045508   ;;  %vm399_vm4 = vcmask 1043456  }
  0x33   : > { %s217_s11 = scalar_lea.vmem %s707_s3, %s473_s8 }
  0x35   : > { %360 = vmatpush.bf16.msra.mxu2 %v501_v54  ;;  %373 = vmatpush.bf16.msra.mxu3 %v505_v55 }
  0x36   : > { %334 = vmatpush.bf16.msra.mxu0 %v493_v50  ;;  %347 = vmatpush.bf16.msra.mxu1 %v497_v51 }
  0x39   : > { %361 = vmatpush.bf16.msra.mxu2 %v485_v0  ;;  %374 = vmatpush.bf16.msra.mxu3 %v489_v1 }
  0x3a   : > { %335 = vmatpush.bf16.msra.mxu0 %v477_v62  ;;  %348 = vmatpush.bf16.msra.mxu1 %v481_v63 }
  0x3c   : > { %524 = vmatmul.msk.bf16.vlgmr.msra.gmra.mxu2 %vm311_vm1, %v220_v2  ;;  %525 = vmatmul.msk.bf16.vlgmr.msra.gmra.mxu3 %vm311_vm1, %v220_v2 }
  0x3d   : > { %522 = vmatmul.msk.bf16.vlgmr.msra.gmra.mxu0 %vm311_vm1, %v220_v2  ;;  %523 = vmatmul.msk.bf16.vlgmr.msra.gmra.mxu1 %vm311_vm1, %v220_v2 }
  0x9b   : > { %v239_v3 = vpop.permute.xlu0 %238 }
  0xba   : > { %v337_v4 = vpop.f32.mrf.mxu0  ;;  %v350_v5 = vpop.f32.mrf.mxu1 }
  0xbb   : > { %v338_v6 = vadd.f32 %v337_v4, %v239_v3  ;;  %v351_v7 = vadd.f32 %v350_v5, %v239_v3 }
  0xbd   : > { %v380_v8 = vmax.f32 %v338_v6, 0.0  ;;  %v381_v9 = vmax.f32 %v351_v7, 0.0 }
  0xbf   : > { %v363_v10 = vpop.f32.mrf.mxu2  ;;  %v376_v11 = vpop.f32.mrf.mxu3  ;;  %v384_v12 = vpack.c.bf16 %v381_v9, %v380_v8 }
  0xc0   : > { %v364_v13 = vadd.f32 %v363_v10, %v239_v3  ;;  %v377_v14 = vadd.f32 %v376_v11, %v239_v3 }
  0xc1   : > { %v388_v19 = vrot.slane %v384_v12, 2 }
  0xc2   : > { %v339_v15 = vpop.f32.mrf.mxu0  ;;  %v352_v16 = vpop.f32.mrf.mxu1  ;;  %v382_v17 = vmax.f32 %v364_v13, 0.0  ;;  %v383_v18 = vmax.f32 %v377_v14, 0.0 }
  0xc3   : > { %v394_v25 = vsel %vm391_vm2, %v384_v12, %v388_v19 }
  0xc4   : > { %v385_v20 = vpack.c.bf16 %v383_v18, %v382_v17 }
  0xc6   : > { %v389_v21 = vrot.slane %v385_v20, 4  ;;  %v390_v22 = vrot.slane %v385_v20, 6 }
  0xc7   : > { %v365_v23 = vpop.f32.mrf.mxu2  ;;  %v378_v24 = vpop.f32.mrf.mxu3 }
  0xc8   : > { %v398_v26 = vsel %vm395_vm3, %v389_v21, %v390_v22 }
  0xc9   : > { %v400_v27 = vsel %vm399_vm4, %v394_v25, %v398_v26 }
  0xca   : > { %402 = vst [vmem:[%s217_s11] sm:$0xff] %v400_v27 }
  0xcb PF: > { %p10_p9 = scmp.ge.s32.totalorder %s631_s16, 4   ;;  %s708_s12 = smov %s587_s13 }
  0xcc   : > { %s709_s13 = smov %s640_s19  ;;  %s710_s14 = smov %s631_s16 }
  0xcd   :  { %12 = sbr.rel (!%p10_p9) target bundleno = 2 (0x2), region = 90 }

// kernel: bires_center_lstm_forward.19
= control target key start
LH: loop header
LB: loop body
LE: loop exit
PB: predicated region body
PF: predicated region fallthrough
CT: control target
= control target key end

     0   :  { %vm81_vm0 = vcmask 1045504   ;;  %v143_v2 = vmov 0   ;;  %vm77_vm1 = vcmask 883712   ;;  %s197_s1 = inlined_call_operand.vmem [shape: bf16[108,128], index: 1, kind: input, shape index: {}]   ;;  %s198_s2 = inlined_call_operand.vmem [shape: f32[8,1], index: 2, kind: input, shape index: {}]   ;;  %s199_s0 = inlined_call_operand.vmem [shape: bf16[8,108], index: 0, kind: input, shape index: {}]   ;;  %s200_s3 = inlined_call_operand.vmem [shape: bf16[8,128], index: 3, kind: output, shape index: {}]  }
   0x1   :  { %v131_v0 = vld [vmem:[%s197_s1 + $0x30] sm:$0xf]  ;;  %v140_v1 = vld [vmem:[%s197_s1 + $0x30] sm:$0x30]  ;;  %142 = vset.pattern.permute.xlu0 %v143_v2  ;;  %v30_v5 = vld [vmem:[%s198_s2] sm:$0xff] }
   0x2   :  { %v132_v3 = vor.u32 %v140_v1, %v131_v0  ;;  %v139_v6 = vld [vmem:[%s197_s1 + $0x28] sm:$0xff]  ;;  %33 = vperm.xlu0 %142, %v30_v5   ;;  %v138_v7 = vld [vmem:[%s197_s1 + $0x20] sm:$0xff]  ;;  %v137_v8 = vld [vmem:[%s197_s1 + $0x18] sm:$0xff] }
   0x3   :  { %v136_v9 = vld [vmem:[%s197_s1 + $0x10] sm:$0xff]  ;;  %v135_v10 = vld [vmem:[%s197_s1 + $0x8] sm:$0xff]  ;;  %v134_v11 = vld [vmem:[%s197_s1] sm:$0xff] }
   0x4   :  { %v83_v4 = vsel %vm81_vm0, %v132_v3, 0  ;;  %v15_v12 = vld [vmem:[%s199_s0] sm:$0xf] }
   0x5   :  { %86 = vmatpush.bf16.msra.mxu0 %v83_v4 }
   0x9   :  { %87 = vmatpush.bf16.msra.mxu0 %v139_v6 }
   0xd   :  { %88 = vmatpush.bf16.msra.mxu0 %v138_v7 }
  0x11   :  { %89 = vmatpush.bf16.msra.mxu0 %v137_v8 }
  0x15   :  { %90 = vmatpush.bf16.msra.mxu0 %v136_v9 }
  0x19   :  { %91 = vmatpush.bf16.msra.mxu0 %v135_v10 }
  0x1d   :  { %92 = vmatpush.bf16.msra.mxu0 %v134_v11 }
  0x20   :  { %133 = vmatmul.msk.bf16.vlgmr.msra.gmra.mxu0 %vm77_vm1, %v15_v12 }
  0x74   :  { %v34_v13 = vpop.permute.xlu0 %33 }
  0x9d   :  { %v94_v14 = vpop.f32.mrf.mxu0 }
  0x9e   :  { %v95_v15 = vadd.f32 %v94_v14, %v34_v13 }
  0xa0   :  { %v98_v16 = vmax.f32 %v95_v15, 0.0 }
  0xa2   :  { %v99_v17 = vpack.c.bf16 %v98_v16, %v98_v16 }
  0xa4   :  { %100 = vst [vmem:[%s200_s3] sm:$0xf] %v99_v17 }
  0xa5   :  { %v96_v18 = vpop.f32.mrf.mxu0 }

// kernel: bires_center_lstm_forward.20
= control target key start
LH: loop header
LB: loop body
LE: loop exit
PB: predicated region body
PF: predicated region fallthrough
CT: control target
= control target key end

     0   :  { %vm150_vm0 = vcmask 1043456   ;;  %v271_v4 = vmov 0   ;;  %vm146_vm1 = vcmask 719872   ;;  %vm186_vm2 = vcmask 125952   ;;  %s358_s1 = inlined_call_operand.vmem [shape: bf16[216,16], index: 1, kind: input, shape index: {}]   ;;  %s359_s2 = inlined_call_operand.vmem [shape: f32[16,1], index: 2, kind: input, shape index: {}]   ;;  %s360_s0 = inlined_call_operand.vmem [shape: bf16[16,216], index: 0, kind: input, shape index: {}]   ;;  %s361_s3 = inlined_call_operand.vmem [shape: bf16[16,16], index: 3, kind: output, shape index: {}]  }
   0x1   :  { %v263_v0 = vld [vmem:[%s358_s1 + $0x38] sm:$0xff]  ;;  %v43_v1 = vld [vmem:[%s358_s1 + $0x68] sm:$0xf]  ;;  %v262_v3 = vld [vmem:[%s358_s1 + $0x30] sm:$0xff]  ;;  %270 = vset.pattern.permute.xlu0 %v271_v4 }
   0x2   :  { %v118_v2 = vunpack.c.l.b16 %v43_v1  ;;  %154 = vmatpush.bf16.msra.mxu0 %v263_v0  ;;  %v268_v7 = vld [vmem:[%s358_s1 + $0x60] sm:$0xff]  ;;  %v261_v8 = vld [vmem:[%s358_s1 + $0x28] sm:$0xff]  ;;  %v267_v10 = vld [vmem:[%s358_s1 + $0x58] sm:$0xff] }
   0x3   :  { %v44_v9 = vld [vmem:[%s359_s2] sm:$0xff]  ;;  %v45_v12 = vld [vmem:[%s359_s2 + $0x8] sm:$0xff]  ;;  %v266_v13 = vld [vmem:[%s358_s1 + $0x50] sm:$0xff] }
   0x4   :  { %v132_v5 = vpack.c.b16 %v118_v2, %v118_v2  ;;  %48 = vperm.xlu0 %270, %v44_v9   ;;  %v260_v11 = vld [vmem:[%s358_s1 + $0x20] sm:$0xff]  ;;  %v259_v14 = vld [vmem:[%s358_s1 + $0x18] sm:$0xff]  ;;  %v265_v15 = vld [vmem:[%s358_s1 + $0x48] sm:$0xff] }
   0x5   :  { %v258_v16 = vld [vmem:[%s358_s1 + $0x10] sm:$0xff]  ;;  %v264_v17 = vld [vmem:[%s358_s1 + $0x40] sm:$0xff]  ;;  %v257_v18 = vld [vmem:[%s358_s1 + $0x8] sm:$0xff] }
   0x6   :  { %v152_v6 = vsel %vm150_vm0, %v132_v5, 0  ;;  %155 = vmatpush.bf16.msra.mxu0 %v262_v3  ;;  %v254_v19 = vld [vmem:[%s360_s0 + $0x4] sm:$0xf]  ;;  %v197_v20 = vld [vmem:[%s360_s0 + $0x8] sm:$0xf0] }
   0x7   :  { %170 = vmatpush.bf16.msra.mxu1 %v152_v6  ;;  %v200_v21 = vor.u32 %v254_v19, %v197_v20  ;;  %v256_v22 = vld [vmem:[%s358_s1] sm:$0xff]  ;;  %v255_v24 = vld [vmem:[%s360_s0 + $0x4] sm:$0xf0] }
   0x8   :  { %v195_v23 = vld [vmem:[%s360_s0] sm:$0xf] }
   0x9   :  { %v196_v25 = vor.u32 %v255_v24, %v195_v23 }
   0xa   :  { %156 = vmatpush.bf16.msra.mxu0 %v261_v8 }
   0xb   :  { %171 = vmatpush.bf16.msra.mxu1 %v268_v7 }
   0xc   :  { %53 = vperm.xlu0 %270, %v45_v12  }
   0xe   :  { %157 = vmatpush.bf16.msra.mxu0 %v260_v11 }
   0xf   :  { %172 = vmatpush.bf16.msra.mxu1 %v267_v10 }
  0x12   :  { %158 = vmatpush.bf16.msra.mxu0 %v259_v14 }
  0x13   :  { %173 = vmatpush.bf16.msra.mxu1 %v266_v13 }
  0x16   :  { %159 = vmatpush.bf16.msra.mxu0 %v258_v16 }
  0x17   :  { %174 = vmatpush.bf16.msra.mxu1 %v265_v15 }
  0x1a   :  { %160 = vmatpush.bf16.msra.mxu0 %v257_v18 }
  0x1b   :  { %175 = vmatpush.bf16.msra.mxu1 %v264_v17 }
  0x1e   :  { %253 = vmatmul.msk.bf16.vlgmr.msra.gmra.mxu1 %vm146_vm1, %v200_v21  ;;  %161 = vmatpush.bf16.msra.mxu0 %v256_v22 }
  0x21   :  { %162 = vmatmul.bf16.vlgmr.msra.gmra.mxu0 %v196_v25 }
  0x76   :  { %v49_v26 = vpop.permute.xlu0 %48 }
  0x7e   :  { %v54_v33 = vpop.permute.xlu0 %53 }
  0x9b   :  { %v177_v27 = vpop.f32.mrf.mxu1 }
  0x9e   :  { %v163_v28 = vpop.f32.mrf.mxu0 }
  0x9f   :  { %v164_v29 = vadd.f32 %v163_v28, %v49_v26 }
  0xa1   :  { %v178_v30 = vadd.f32 %v177_v27, %v164_v29 }
  0xa3   :  { %v182_v31 = vmax.f32 %v178_v30, 0.0  ;;  %v179_v36 = vpop.f32.mrf.mxu1 }
  0xa5   :  { %v184_v32 = vpack.c.bf16 %v182_v31, %v182_v31 }
  0xa6   :  { %v165_v34 = vpop.f32.mrf.mxu0 }
  0xa7   :  { %187 = vst.msk [vmem:[%s361_s3] sm:$0xf] %vm186_vm2, %v184_v32  ;;  %v166_v35 = vadd.f32 %v165_v34, %v54_v33 }
  0xa9   :  { %v180_v37 = vadd.f32 %v179_v36, %v166_v35 }
  0xab   :  { %v183_v38 = vmax.f32 %v180_v37, 0.0 }
  0xad   :  { %v185_v39 = vpack.c.bf16 %v183_v38, %v183_v38 }
  0xaf   :  { %188 = vst.msk [vmem:[%s361_s3 + $0x4] sm:$0xf] %vm186_vm2, %v185_v39 }

// kernel: bires_center_lstm_forward.21
= control target key start
LH: loop header
LB: loop body
LE: loop exit
PB: predicated region body
PF: predicated region fallthrough
CT: control target
= control target key end

     0   :  { %v1076_v6 = vmov 0   ;;  %vm511_vm0 = vcmask 392192   ;;  %vm748_vm1 = vcmask 125952   ;;  %s1490_s1 = inlined_call_operand.vmem [shape: bf16[432,16], index: 1, kind: input, shape index: {}]   ;;  %s1491_s0 = inlined_call_operand.vmem [shape: bf16[128,432], index: 0, kind: input, shape index: {}]   ;;  %s1492_s2 = inlined_call_operand.vmem [shape: f32[128,1], index: 2, kind: input, shape index: {}]   ;;  %s1493_s3 = inlined_call_operand.vmem [shape: bf16[128,16], index: 3, kind: output, shape index: {}]  }
   0x1   :  { %v1052_v0 = vld [vmem:[%s1490_s1 + $0x38] sm:$0xff]  ;;  %v1051_v3 = vld [vmem:[%s1490_s1 + $0x30] sm:$0xff]  ;;  %1073 = vset.pattern.permute.xlu0 %v1076_v6  ;;  %1074 = vset.pattern.permute.xlu1 %v1076_v6  ;;  %v1050_v8 = vld [vmem:[%s1490_s1 + $0x28] sm:$0xff] }
   0x2   :  { %v1060_v1 = vld [vmem:[%s1490_s1 + $0x78] sm:$0xff]  ;;  %536 = vmatpush.bf16.msra.mxu0 %v1052_v0  ;;  %v1059_v4 = vld [vmem:[%s1490_s1 + $0x70] sm:$0xff]  ;;  %1075 = vset.pattern.permute.xlu2 %v1076_v6  ;;  %v1058_v9 = vld [vmem:[%s1490_s1 + $0x68] sm:$0xff] }
   0x3   :  { %v1068_v2 = vld [vmem:[%s1490_s1 + $0xb8] sm:$0xff]  ;;  %585 = vmatpush.bf16.msra.mxu1 %v1060_v1  ;;  %v1067_v5 = vld [vmem:[%s1490_s1 + $0xb0] sm:$0xff]  ;;  %v1066_v10 = vld [vmem:[%s1490_s1 + $0xa8] sm:$0xff] }
   0x4   :  { %634 = vmatpush.bf16.msra.mxu2 %v1068_v2  ;;  %v1071_v7 = vld [vmem:[%s1490_s1 + $0xd0] sm:$0xff]  ;;  %v1070_v11 = vld [vmem:[%s1490_s1 + $0xc8] sm:$0xff]  ;;  %v1049_v12 = vld [vmem:[%s1490_s1 + $0x20] sm:$0xff] }
   0x5   :  { %688 = vmatpush.bf16.msra.mxu3 %v1071_v7  ;;  %v1057_v13 = vld [vmem:[%s1490_s1 + $0x60] sm:$0xff]  ;;  %v1014_v16 = vld [vmem:[%s1491_s0 + $0xc] sm:$0xf]  ;;  %v781_v17 = vld [vmem:[%s1491_s0 + $0x18] sm:$0xf0] }
   0x6   :  { %537 = vmatpush.bf16.msra.mxu0 %v1051_v3  ;;  %v1065_v14 = vld [vmem:[%s1490_s1 + $0xa0] sm:$0xff]  ;;  %v1048_v19 = vld [vmem:[%s1490_s1 + $0x18] sm:$0xff]  ;;  %v784_v22 = vor.u32 %v1014_v16, %v781_v17  ;;  %v1047_v23 = vld [vmem:[%s1490_s1 + $0x10] sm:$0xff] }
   0x7   :  { %586 = vmatpush.bf16.msra.mxu1 %v1059_v4  ;;  %v1069_v15 = vld [vmem:[%s1490_s1 + $0xc0] sm:$0xff]  ;;  %v1056_v20 = vld [vmem:[%s1490_s1 + $0x58] sm:$0xff]  ;;  %v1055_v24 = vld [vmem:[%s1490_s1 + $0x50] sm:$0xff] }
   0x8   :  { %635 = vmatpush.bf16.msra.mxu2 %v1067_v5  ;;  %v101_v18 = vld [vmem:[%s1492_s2] sm:$0xff]  ;;  %v1064_v21 = vld [vmem:[%s1490_s1 + $0x98] sm:$0xff]  ;;  %v102_v25 = vld [vmem:[%s1492_s2 + $0x8] sm:$0xff] }
   0x9   :  { %689 = vmatpush.bf16.msra.mxu3 %v1070_v11  ;;  %119 = vperm.xlu0 %1073, %v101_v18   ;;  %v1063_v26 = vld [vmem:[%s1490_s1 + $0x90] sm:$0xff]  ;;  %v1046_v28 = vld [vmem:[%s1490_s1 + $0x8] sm:$0xff]  ;;  %v1045_v31 = vld [vmem:[%s1490_s1] sm:$0xff] }
   0xa   :  { %538 = vmatpush.bf16.msra.mxu0 %v1050_v8  ;;  %v103_v27 = vld [vmem:[%s1492_s2 + $0x10] sm:$0xff]  ;;  %v1054_v29 = vld [vmem:[%s1490_s1 + $0x48] sm:$0xff]  ;;  %v1053_v32 = vld [vmem:[%s1490_s1 + $0x40] sm:$0xff] }
   0xb   :  { %587 = vmatpush.bf16.msra.mxu1 %v1058_v9  ;;  %129 = vperm.xlu1 %1074, %v103_v27   ;;  %v1062_v30 = vld [vmem:[%s1490_s1 + $0x88] sm:$0xff]  ;;  %v771_v33 = vld [vmem:[%s1491_s0] sm:$0xf]  ;;  %v1015_v34 = vld [vmem:[%s1491_s0 + $0xc] sm:$0xf0] }
   0xc   :  { %636 = vmatpush.bf16.msra.mxu2 %v1066_v10  ;;  %v1013_v35 = vld [vmem:[%s1491_s0 + $0x4] sm:$0xf]  ;;  %v773_v36 = vld [vmem:[%s1491_s0 + $0x10] sm:$0xf0]  ;;  %v779_v38 = vld [vmem:[%s1491_s0 + $0x8] sm:$0xf]  ;;  %v772_v42 = vor.u32 %v1015_v34, %v771_v33 }
   0xd   :  { %690 = vmatpush.bf16.msra.mxu3 %v1069_v15  ;;  %v1061_v37 = vld [vmem:[%s1490_s1 + $0x80] sm:$0xff]  ;;  %v1016_v39 = vld [vmem:[%s1491_s0 + $0x14] sm:$0xf0]  ;;  %v1018_v40 = vld [vmem:[%s1491_s0 + $0x2c] sm:$0xf]  ;;  %v776_v43 = vor.u32 %v1013_v35, %v773_v36 }
   0xe   :  { %539 = vmatpush.bf16.msra.mxu0 %v1049_v12  ;;  %v797_v41 = vld [vmem:[%s1491_s0 + $0x38] sm:$0xf0]  ;;  %v780_v44 = vor.u32 %v1016_v39, %v779_v38  ;;  %v787_v47 = vld [vmem:[%s1491_s0 + $0x20] sm:$0xf]  ;;  %v1019_v48 = vld [vmem:[%s1491_s0 + $0x2c] sm:$0xf0] }
   0xf   :  { %588 = vmatpush.bf16.msra.mxu1 %v1057_v13  ;;  %v800_v45 = vor.u32 %v1018_v40, %v797_v41  ;;  %v104_v46 = vld [vmem:[%s1492_s2 + $0x18] sm:$0xff]  ;;  %v1017_v49 = vld [vmem:[%s1491_s0 + $0x24] sm:$0xf]  ;;  %v789_v50 = vld [vmem:[%s1491_s0 + $0x30] sm:$0xf0]  ;;  %v788_v55 = vor.u32 %v1019_v48, %v787_v47 }
  0x10   :  { %637 = vmatpush.bf16.msra.mxu2 %v1065_v14  ;;  %1005 = vmatmul.msk.bf16.vlgmr.msra.gmra.mxu3 %vm511_vm0, %v784_v22  ;;  %v795_v51 = vld [vmem:[%s1491_s0 + $0x28] sm:$0xf]  ;;  %v1020_v52 = vld [vmem:[%s1491_s0 + $0x34] sm:$0xf0]  ;;  %v1022_v53 = vld [vmem:[%s1491_s0 + $0x4c] sm:$0xf]  ;;  %v792_v56 = vor.u32 %v1017_v49, %v789_v50 }
  0x11   :  { %124 = vperm.xlu0 %1073, %v102_v25   ;;  %v813_v54 = vld [vmem:[%s1491_s0 + $0x58] sm:$0xf0]  ;;  %v796_v57 = vor.u32 %v1020_v52, %v795_v51  ;;  %v107_v59 = vld [vmem:[%s1492_s2 + $0x30] sm:$0xff]  ;;  %v803_v60 = vld [vmem:[%s1491_s0 + $0x40] sm:$0xf] }
  0x12   :  { %540 = vmatpush.bf16.msra.mxu0 %v1048_v19  ;;  %v816_v58 = vor.u32 %v1022_v53, %v813_v54  ;;  %v1023_v61 = vld [vmem:[%s1491_s0 + $0x4c] sm:$0xf0]  ;;  %v1021_v62 = vld [vmem:[%s1491_s0 + $0x44] sm:$0xf]  ;;  %v805_v63 = vld [vmem:[%s1491_s0 + $0x50] sm:$0xf0] }
  0x13   :  { %589 = vmatpush.bf16.msra.mxu1 %v1056_v20  ;;  %134 = vperm.xlu1 %1074, %v104_v46   ;;  %v811_v0 = vld [vmem:[%s1491_s0 + $0x48] sm:$0xf]  ;;  %v1024_v1 = vld [vmem:[%s1491_s0 + $0x54] sm:$0xf0]  ;;  %v1026_v2 = vld [vmem:[%s1491_s0 + $0x6c] sm:$0xf]  ;;  %v804_v4 = vor.u32 %v1023_v61, %v803_v60  ;;  %v808_v5 = vor.u32 %v1021_v62, %v805_v63 }
  0x14   :  { %638 = vmatpush.bf16.msra.mxu2 %v1064_v21  ;;  %v829_v3 = vld [vmem:[%s1491_s0 + $0x78] sm:$0xf0]  ;;  %v812_v6 = vor.u32 %v1024_v1, %v811_v0  ;;  %v105_v8 = vld [vmem:[%s1492_s2 + $0x20] sm:$0xff]  ;;  %v110_v10 = vld [vmem:[%s1492_s2 + $0x48] sm:$0xff] }
  0x15   :  { %v832_v7 = vor.u32 %v1026_v2, %v829_v3  ;;  %v108_v9 = vld [vmem:[%s1492_s2 + $0x38] sm:$0xff]  ;;  %139 = vperm.xlu2 %1075, %v105_v8   ;;  %v106_v11 = vld [vmem:[%s1492_s2 + $0x28] sm:$0xff]  ;;  %v819_v12 = vld [vmem:[%s1491_s0 + $0x60] sm:$0xf] }
  0x16   :  { %541 = vmatpush.bf16.msra.mxu0 %v1047_v23  ;;  %v1027_v13 = vld [vmem:[%s1491_s0 + $0x6c] sm:$0xf0]  ;;  %v1025_v14 = vld [vmem:[%s1491_s0 + $0x64] sm:$0xf]  ;;  %v821_v15 = vld [vmem:[%s1491_s0 + $0x70] sm:$0xf0] }
  0x17   :  { %590 = vmatpush.bf16.msra.mxu1 %v1055_v24  ;;  %v827_v16 = vld [vmem:[%s1491_s0 + $0x68] sm:$0xf]  ;;  %v1028_v17 = vld [vmem:[%s1491_s0 + $0x74] sm:$0xf0]  ;;  %v1030_v18 = vld [vmem:[%s1491_s0 + $0x8c] sm:$0xf]  ;;  %v820_v20 = vor.u32 %v1027_v13, %v819_v12  ;;  %v824_v21 = vor.u32 %v1025_v14, %v821_v15 }
  0x18   :  { %639 = vmatpush.bf16.msra.mxu2 %v1063_v26  ;;  %v845_v19 = vld [vmem:[%s1491_s0 + $0x98] sm:$0xf0]  ;;  %v828_v22 = vor.u32 %v1028_v17, %v827_v16  ;;  %v113_v24 = vld [vmem:[%s1492_s2 + $0x60] sm:$0xff]  ;;  %v111_v25 = vld [vmem:[%s1492_s2 + $0x50] sm:$0xff] }
  0x19   :  { %149 = vperm.xlu0 %1073, %v107_v59   ;;  %v848_v23 = vor.u32 %v1030_v18, %v845_v19  ;;  %v116_v26 = vld [vmem:[%s1492_s2 + $0x78] sm:$0xff]  ;;  %v835_v27 = vld [vmem:[%s1491_s0 + $0x80] sm:$0xf]  ;;  %v1034_v33 = vld [vmem:[%s1491_s0 + $0xac] sm:$0xf] }
  0x1a   :  { %542 = vmatpush.bf16.msra.mxu0 %v1046_v28  ;;  %v1031_v28 = vld [vmem:[%s1491_s0 + $0x8c] sm:$0xf0]  ;;  %v861_v34 = vld [vmem:[%s1491_s0 + $0xb8] sm:$0xf0]  ;;  %v109_v39 = vld [vmem:[%s1492_s2 + $0x40] sm:$0xff] }
  0x1b   :  { %591 = vmatpush.bf16.msra.mxu1 %v1054_v29  ;;  %154 = vperm.xlu1 %1074, %v108_v9   ;;  %v1029_v29 = vld [vmem:[%s1491_s0 + $0x84] sm:$0xf]  ;;  %v836_v35 = vor.u32 %v1031_v28, %v835_v27  ;;  %v864_v38 = vor.u32 %v1034_v33, %v861_v34  ;;  %v114_v40 = vld [vmem:[%s1492_s2 + $0x68] sm:$0xff]  ;;  %v851_v41 = vld [vmem:[%s1491_s0 + $0xa0] sm:$0xf] }
  0x1c   :  { %640 = vmatpush.bf16.msra.mxu2 %v1062_v30  ;;  %v837_v30 = vld [vmem:[%s1491_s0 + $0x90] sm:$0xf0]  ;;  %v1036_v46 = vld [vmem:[%s1491_s0 + $0xb4] sm:$0xf0]  ;;  %v1038_v47 = vld [vmem:[%s1491_s0 + $0xcc] sm:$0xf] }
  0x1d   :  { %144 = vperm.xlu2 %1075, %v106_v11   ;;  %v840_v36 = vor.u32 %v1029_v29, %v837_v30  ;;  %v877_v48 = vld [vmem:[%s1491_s0 + $0xd8] sm:$0xf0]  ;;  %v115_v54 = vld [vmem:[%s1492_s2 + $0x70] sm:$0xff]  ;;  %v875_v59 = vld [vmem:[%s1491_s0 + $0xc8] sm:$0xf] }
  0x1e   :  { %543 = vmatpush.bf16.msra.mxu0 %v1045_v31  ;;  %v843_v31 = vld [vmem:[%s1491_s0 + $0x88] sm:$0xf]  ;;  %v880_v52 = vor.u32 %v1038_v47, %v877_v48  ;;  %v112_v53 = vld [vmem:[%s1492_s2 + $0x58] sm:$0xff]  ;;  %v1042_v61 = vld [vmem:[%s1491_s0 + $0xec] sm:$0xf] }
  0x1f   :  { %592 = vmatpush.bf16.msra.mxu1 %v1053_v32  ;;  %v1032_v32 = vld [vmem:[%s1491_s0 + $0x94] sm:$0xf0]  ;;  %v893_v62 = vld [vmem:[%s1491_s0 + $0xf8] sm:$0xf0]  ;;  %v883_v3 = vld [vmem:[%s1491_s0 + $0xe0] sm:$0xf] }
  0x20   :  { %641 = vmatpush.bf16.msra.mxu2 %v1061_v37  ;;  %1006 = vmatmul.msk.bf16.gmra.mxu3 %vm511_vm0, %v800_v45  ;;  %v844_v37 = vor.u32 %v1032_v32, %v843_v31  ;;  %v859_v45 = vld [vmem:[%s1491_s0 + $0xa8] sm:$0xf]  ;;  %v1040_v60 = vld [vmem:[%s1491_s0 + $0xd4] sm:$0xf0]  ;;  %v896_v2 = vor.u32 %v1042_v61, %v893_v62 }
  0x21   :  { %544 = vmatmul.bf16.vlgmr.msra.gmra.mxu0 %v772_v42  ;;  %164 = vperm.xlu0 %1073, %v110_v10   ;;  %v1035_v42 = vld [vmem:[%s1491_s0 + $0xac] sm:$0xf0]  ;;  %v860_v51 = vor.u32 %v1036_v46, %v859_v45  ;;  %v876_v1 = vor.u32 %v1040_v60, %v875_v59  ;;  %v1044_v8 = vld [vmem:[%s1491_s0 + $0xf4] sm:$0xf0] }
  0x22   :  { %593 = vmatmul.bf16.vlgmr.msra.gmra.mxu1 %v776_v43  ;;  %v1033_v43 = vld [vmem:[%s1491_s0 + $0xa4] sm:$0xf]  ;;  %v852_v49 = vor.u32 %v1035_v42, %v851_v41 }
  0x23   :  { %642 = vmatmul.bf16.vlgmr.msra.gmra.mxu2 %v780_v44  ;;  %169 = vperm.xlu1 %1074, %v111_v25   ;;  %v853_v44 = vld [vmem:[%s1491_s0 + $0xb0] sm:$0xf0] }
  0x24   :  { %v856_v50 = vor.u32 %v1033_v43, %v853_v44 }
  0x25   :  { %159 = vperm.xlu2 %1075, %v109_v39  }
  0x29   :  { %179 = vperm.xlu0 %1073, %v113_v24  }
  0x2b   :  { %184 = vperm.xlu1 %1074, %v114_v40  }
  0x2d   :  { %174 = vperm.xlu2 %1075, %v112_v53  }
  0x30   :  { %1007 = vmatmul.msk.bf16.gmra.mxu3 %vm511_vm0, %v816_v58  ;;  %v869_v58 = vld [vmem:[%s1491_s0 + $0xd0] sm:$0xf0] }
  0x31   :  { %549 = vmatmul.bf16.gmra.mxu0 %v788_v55  ;;  %194 = vperm.xlu0 %1073, %v116_v26   ;;  %v867_v55 = vld [vmem:[%s1491_s0 + $0xc0] sm:$0xf] }
  0x32   :  { %598 = vmatmul.bf16.gmra.mxu1 %v792_v56  ;;  %v1039_v56 = vld [vmem:[%s1491_s0 + $0xcc] sm:$0xf0] }
  0x33   :  { %647 = vmatmul.bf16.gmra.mxu2 %v796_v57  ;;  %v1037_v57 = vld [vmem:[%s1491_s0 + $0xc4] sm:$0xf]  ;;  %v868_v63 = vor.u32 %v1039_v56, %v867_v55 }
  0x34   :  { %v872_v0 = vor.u32 %v1037_v57, %v869_v58 }
  0x35   :  { %189 = vperm.xlu2 %1075, %v115_v54  }
  0x40   :  { %1008 = vmatmul.msk.bf16.gmra.mxu3 %vm511_vm0, %v832_v7  ;;  %v891_v7 = vld [vmem:[%s1491_s0 + $0xe8] sm:$0xf] }
  0x41   :  { %554 = vmatmul.bf16.gmra.mxu0 %v804_v4  ;;  %v1043_v4 = vld [vmem:[%s1491_s0 + $0xec] sm:$0xf0]  ;;  %v892_v11 = vor.u32 %v1044_v8, %v891_v7 }
  0x42   :  { %603 = vmatmul.bf16.gmra.mxu1 %v808_v5  ;;  %v1041_v5 = vld [vmem:[%s1491_s0 + $0xe4] sm:$0xf]  ;;  %v884_v9 = vor.u32 %v1043_v4, %v883_v3 }
  0x43   :  { %652 = vmatmul.bf16.gmra.mxu2 %v812_v6  ;;  %v885_v6 = vld [vmem:[%s1491_s0 + $0xf0] sm:$0xf0] }
  0x44   :  { %v888_v10 = vor.u32 %v1041_v5, %v885_v6 }
  0x50   :  { %1009 = vmatmul.msk.bf16.gmra.mxu3 %vm511_vm0, %v848_v23 }
  0x51   :  { %559 = vmatmul.bf16.gmra.mxu0 %v820_v20 }
  0x52   :  { %608 = vmatmul.bf16.gmra.mxu1 %v824_v21 }
  0x53   :  { %657 = vmatmul.bf16.gmra.mxu2 %v828_v22 }
  0x60   :  { %1010 = vmatmul.msk.bf16.gmra.mxu3 %vm511_vm0, %v864_v38 }
  0x61   :  { %564 = vmatmul.bf16.gmra.mxu0 %v836_v35 }
  0x62   :  { %613 = vmatmul.bf16.gmra.mxu1 %v840_v36 }
  0x63   :  { %662 = vmatmul.bf16.gmra.mxu2 %v844_v37 }
  0x6f   :  { %v140_v48 = vpop.permute.xlu2 %139 }
  0x70   :  { %1011 = vmatmul.msk.bf16.gmra.mxu3 %vm511_vm0, %v880_v52 }
  0x71   :  { %569 = vmatmul.bf16.gmra.mxu0 %v852_v49 }
  0x72   :  { %618 = vmatmul.bf16.gmra.mxu1 %v856_v50 }
  0x73   :  { %667 = vmatmul.bf16.gmra.mxu2 %v860_v51 }
  0x77   :  { %v145_v60 = vpop.permute.xlu2 %144 }
  0x7b   :  { %v120_v13 = vpop.permute.xlu0 %119 }
  0x7d   :  { %v130_v28 = vpop.permute.xlu1 %129 }
  0x80   :  { %1012 = vmatmul.msk.bf16.gmra.mxu3 %vm511_vm0, %v896_v2 }
  0x81   :  { %574 = vmatmul.bf16.gmra.mxu0 %v868_v63 }
  0x82   :  { %623 = vmatmul.bf16.gmra.mxu1 %v872_v0 }
  0x83   :  { %672 = vmatmul.bf16.gmra.mxu2 %v876_v1  ;;  %v125_v20 = vpop.permute.xlu0 %124 }
  0x85   :  { %v135_v40 = vpop.permute.xlu1 %134 }
  0x8b   :  { %v150_v5 = vpop.permute.xlu0 %149 }
  0x91   :  { %579 = vmatmul.bf16.gmra.mxu0 %v884_v9 }
  0x92   :  { %628 = vmatmul.bf16.gmra.mxu1 %v888_v10 }
  0x93   :  { %677 = vmatmul.bf16.gmra.mxu2 %v892_v11  ;;  %v692_v12 = vpop.f32.mrf.mxu3 }
  0x9b   :  { %v694_v17 = vpop.f32.mrf.mxu3 }
  0x9e   :  { %v545_v14 = vpop.f32.mrf.mxu0 }
  0x9f   :  { %v594_v15 = vpop.f32.mrf.mxu1  ;;  %v546_v16 = vadd.f32 %v545_v14, %v120_v13 }
  0xa1   :  { %v595_v18 = vadd.f32 %v594_v15, %v546_v16  ;;  %v155_v16 = vpop.permute.xlu1 %154 }
  0xa3   :  { %v697_v24 = vpop.f32.mrf.mxu3 }
  0xa6   :  { %v643_v19 = vpop.f32.mrf.mxu2  ;;  %v547_v22 = vpop.f32.mrf.mxu0 }
  0xa7   :  { %v644_v21 = vadd.f32 %v643_v19, %v595_v18  ;;  %v596_v23 = vpop.f32.mrf.mxu1  ;;  %v548_v26 = vadd.f32 %v547_v22, %v125_v20 }
  0xa9   :  { %v693_v25 = vadd.f32 %v692_v12, %v644_v21  ;;  %v597_v29 = vadd.f32 %v596_v23, %v548_v26 }
  0xab   :  { %v732_v27 = vpack.c.bf16 %v693_v25, %v693_v25  ;;  %v699_v35 = vpop.f32.mrf.mxu3  ;;  %v160_v25 = vpop.permute.xlu2 %159 }
  0xad   :  { %749 = vst.msk [vmem:[%s1493_s3] sm:$0xf] %vm748_vm1, %v732_v27 }
  0xae   :  { %v645_v30 = vpop.f32.mrf.mxu2  ;;  %v550_v32 = vpop.f32.mrf.mxu0 }
  0xaf   :  { %v646_v31 = vadd.f32 %v645_v30, %v597_v29  ;;  %v599_v33 = vpop.f32.mrf.mxu1  ;;  %v551_v34 = vadd.f32 %v550_v32, %v130_v28 }
  0xb1   :  { %v695_v36 = vadd.f32 %v694_v17, %v646_v31  ;;  %v600_v38 = vadd.f32 %v599_v33, %v551_v34 }
  0xb3   :  { %v733_v37 = vpack.c.bf16 %v695_v36, %v695_v36  ;;  %v702_v44 = vpop.f32.mrf.mxu3 }
  0xb5   :  { %750 = vst.msk [vmem:[%s1493_s3 + $0x4] sm:$0xf] %vm748_vm1, %v733_v37 }
  0xb6   :  { %v648_v39 = vpop.f32.mrf.mxu2  ;;  %v552_v42 = vpop.f32.mrf.mxu0 }
  0xb7   :  { %v649_v41 = vadd.f32 %v648_v39, %v600_v38  ;;  %v601_v43 = vpop.f32.mrf.mxu1  ;;  %v553_v46 = vadd.f32 %v552_v42, %v135_v40  ;;  %v165_v39 = vpop.permute.xlu0 %164 }
  0xb9   :  { %v698_v45 = vadd.f32 %v697_v24, %v649_v41  ;;  %v602_v49 = vadd.f32 %v601_v43, %v553_v46 }
  0xbb   :  { %v734_v47 = vpack.c.bf16 %v698_v45, %v698_v45  ;;  %v704_v55 = vpop.f32.mrf.mxu3 }
  0xbd   :  { %751 = vst.msk [vmem:[%s1493_s3 + $0x8] sm:$0xf] %vm748_vm1, %v734_v47 }
  0xbe   :  { %v650_v50 = vpop.f32.mrf.mxu2  ;;  %v555_v52 = vpop.f32.mrf.mxu0 }
  0xbf   :  { %v651_v51 = vadd.f32 %v650_v50, %v602_v49  ;;  %v604_v53 = vpop.f32.mrf.mxu1  ;;  %v556_v54 = vadd.f32 %v555_v52, %v140_v48 }
  0xc1   :  { %v700_v56 = vadd.f32 %v699_v35, %v651_v51  ;;  %v605_v58 = vadd.f32 %v604_v53, %v556_v54 }
  0xc3   :  { %v735_v57 = vpack.c.bf16 %v700_v56, %v700_v56  ;;  %v707_v0 = vpop.f32.mrf.mxu3 }
  0xc5   :  { %752 = vst.msk [vmem:[%s1493_s3 + $0xc] sm:$0xf] %vm748_vm1, %v735_v57 }
  0xc6   :  { %v653_v59 = vpop.f32.mrf.mxu2  ;;  %v557_v62 = vpop.f32.mrf.mxu0 }
  0xc7   :  { %v654_v61 = vadd.f32 %v653_v59, %v605_v58  ;;  %v606_v63 = vpop.f32.mrf.mxu1  ;;  %v558_v2 = vadd.f32 %v557_v62, %v145_v60  ;;  %v175_v58 = vpop.permute.xlu2 %174 }
  0xc9   :  { %v703_v1 = vadd.f32 %v702_v44, %v654_v61  ;;  %v607_v4 = vadd.f32 %v606_v63, %v558_v2  ;;  %v170_v44 = vpop.permute.xlu1 %169 }
  0xcb   :  { %v736_v3 = vpack.c.bf16 %v703_v1, %v703_v1  ;;  %v709_v11 = vpop.f32.mrf.mxu3 }
  0xcd   :  { %753 = vst.msk [vmem:[%s1493_s3 + $0x10] sm:$0xf] %vm748_vm1, %v736_v3 }
  0xce   :  { %v655_v6 = vpop.f32.mrf.mxu2  ;;  %v560_v8 = vpop.f32.mrf.mxu0 }
  0xcf   :  { %v656_v7 = vadd.f32 %v655_v6, %v607_v4  ;;  %v609_v9 = vpop.f32.mrf.mxu1  ;;  %v561_v10 = vadd.f32 %v560_v8, %v150_v5  ;;  %v180_v4 = vpop.permute.xlu0 %179 }
  0xd1   :  { %v705_v12 = vadd.f32 %v704_v55, %v656_v7  ;;  %v610_v14 = vadd.f32 %v609_v9, %v561_v10 }
  0xd3   :  { %v737_v13 = vpack.c.bf16 %v705_v12, %v705_v12  ;;  %v712_v22 = vpop.f32.mrf.mxu3 }
  0xd5   :  { %754 = vst.msk [vmem:[%s1493_s3 + $0x14] sm:$0xf] %vm748_vm1, %v737_v13  ;;  %v185_v13 = vpop.permute.xlu1 %184 }
  0xd6   :  { %v658_v15 = vpop.f32.mrf.mxu2  ;;  %v562_v18 = vpop.f32.mrf.mxu0 }
  0xd7   :  { %v659_v17 = vadd.f32 %v658_v15, %v610_v14  ;;  %v611_v19 = vpop.f32.mrf.mxu1  ;;  %v563_v21 = vadd.f32 %v562_v18, %v155_v16 }
  0xd9   :  { %v708_v20 = vadd.f32 %v707_v0, %v659_v17  ;;  %v612_v24 = vadd.f32 %v611_v19, %v563_v21 }
  0xdb   :  { %v738_v23 = vpack.c.bf16 %v708_v20, %v708_v20  ;;  %v714_v34 = vpop.f32.mrf.mxu3 }
  0xdd   :  { %755 = vst.msk [vmem:[%s1493_s3 + $0x18] sm:$0xf] %vm748_vm1, %v738_v23  ;;  %v190_v23 = vpop.permute.xlu2 %189 }
  0xde   :  { %v660_v26 = vpop.f32.mrf.mxu2  ;;  %v565_v28 = vpop.f32.mrf.mxu0 }
  0xdf   :  { %v661_v27 = vadd.f32 %v660_v26, %v612_v24  ;;  %v614_v29 = vpop.f32.mrf.mxu1  ;;  %v566_v30 = vadd.f32 %v565_v28, %v160_v25 }
  0xe1   :  { %v710_v31 = vadd.f32 %v709_v11, %v661_v27  ;;  %v615_v33 = vadd.f32 %v614_v29, %v566_v30 }
  0xe3   :  { %v739_v32 = vpack.c.bf16 %v710_v31, %v710_v31  ;;  %v717_v46 = vpop.f32.mrf.mxu3 }
  0xe5   :  { %756 = vst.msk [vmem:[%s1493_s3 + $0x1c] sm:$0xf] %vm748_vm1, %v739_v32 }
  0xe6   :  { %v663_v35 = vpop.f32.mrf.mxu2  ;;  %v567_v37 = vpop.f32.mrf.mxu0 }
  0xe7   :  { %v664_v36 = vadd.f32 %v663_v35, %v615_v33  ;;  %v616_v38 = vpop.f32.mrf.mxu1  ;;  %v568_v41 = vadd.f32 %v567_v37, %v165_v39  ;;  %v195_v33 = vpop.permute.xlu0 %194 }
  0xe9   :  { %v713_v40 = vadd.f32 %v712_v22, %v664_v36  ;;  %v617_v43 = vadd.f32 %v616_v38, %v568_v41 }
  0xeb   :  { %v740_v42 = vpack.c.bf16 %v713_v40, %v713_v40  ;;  %v719_v59 = vpop.f32.mrf.mxu3 }
  0xed   :  { %757 = vst.msk [vmem:[%s1493_s3 + $0x20] sm:$0xf] %vm748_vm1, %v740_v42 }
  0xee   :  { %v665_v45 = vpop.f32.mrf.mxu2  ;;  %v570_v48 = vpop.f32.mrf.mxu0 }
  0xef   :  { %v666_v47 = vadd.f32 %v665_v45, %v617_v43  ;;  %v619_v49 = vpop.f32.mrf.mxu1  ;;  %v571_v50 = vadd.f32 %v570_v48, %v170_v44 }
  0xf1   :  { %v715_v51 = vadd.f32 %v714_v34, %v666_v47  ;;  %v620_v53 = vadd.f32 %v619_v49, %v571_v50 }
  0xf3   :  { %v741_v52 = vpack.c.bf16 %v715_v51, %v715_v51  ;;  %v722_v7 = vpop.f32.mrf.mxu3 }
  0xf5   :  { %758 = vst.msk [vmem:[%s1493_s3 + $0x24] sm:$0xf] %vm748_vm1, %v741_v52 }
  0xf6   :  { %v668_v54 = vpop.f32.mrf.mxu2  ;;  %v572_v56 = vpop.f32.mrf.mxu0 }
  0xf7   :  { %v669_v55 = vadd.f32 %v668_v54, %v620_v53  ;;  %v621_v57 = vpop.f32.mrf.mxu1  ;;  %v573_v61 = vadd.f32 %v572_v56, %v175_v58 }
  0xf9   :  { %v718_v60 = vadd.f32 %v717_v46, %v669_v55  ;;  %v622_v63 = vadd.f32 %v621_v57, %v573_v61 }
  0xfb   :  { %v742_v62 = vpack.c.bf16 %v718_v60, %v718_v60  ;;  %v724_v18 = vpop.f32.mrf.mxu3 }
  0xfd   :  { %759 = vst.msk [vmem:[%s1493_s3 + $0x28] sm:$0xf] %vm748_vm1, %v742_v62 }
  0xfe   :  { %v670_v0 = vpop.f32.mrf.mxu2  ;;  %v575_v2 = vpop.f32.mrf.mxu0 }
  0xff   :  { %v671_v1 = vadd.f32 %v670_v0, %v622_v63  ;;  %v624_v3 = vpop.f32.mrf.mxu1  ;;  %v576_v6 = vadd.f32 %v575_v2, %v180_v4 }
 0x101   :  { %v720_v5 = vadd.f32 %v719_v59, %v671_v1  ;;  %v625_v9 = vadd.f32 %v624_v3, %v576_v6 }
 0x103   :  { %v743_v8 = vpack.c.bf16 %v720_v5, %v720_v5  ;;  %v727_v29 = vpop.f32.mrf.mxu3 }
 0x105   :  { %760 = vst.msk [vmem:[%s1493_s3 + $0x2c] sm:$0xf] %vm748_vm1, %v743_v8 }
 0x106   :  { %v673_v10 = vpop.f32.mrf.mxu2  ;;  %v577_v12 = vpop.f32.mrf.mxu0 }
 0x107   :  { %v674_v11 = vadd.f32 %v673_v10, %v625_v9  ;;  %v626_v14 = vpop.f32.mrf.mxu1  ;;  %v578_v16 = vadd.f32 %v577_v12, %v185_v13 }
 0x109   :  { %v723_v15 = vadd.f32 %v722_v7, %v674_v11  ;;  %v627_v19 = vadd.f32 %v626_v14, %v578_v16 }
 0x10b   :  { %v744_v17 = vpack.c.bf16 %v723_v15, %v723_v15  ;;  %v729_v41 = vpop.f32.mrf.mxu3 }
 0x10d   :  { %761 = vst.msk [vmem:[%s1493_s3 + $0x30] sm:$0xf] %vm748_vm1, %v744_v17 }
 0x10e   :  { %v675_v20 = vpop.f32.mrf.mxu2  ;;  %v580_v22 = vpop.f32.mrf.mxu0 }
 0x10f   :  { %v676_v21 = vadd.f32 %v675_v20, %v627_v19  ;;  %v581_v25 = vadd.f32 %v580_v22, %v190_v23  ;;  %v629_v26 = vpop.f32.mrf.mxu1 }
 0x111   :  { %v725_v24 = vadd.f32 %v724_v18, %v676_v21  ;;  %v630_v28 = vadd.f32 %v629_v26, %v581_v25 }
 0x113   :  { %v745_v27 = vpack.c.bf16 %v725_v24, %v725_v24 }
 0x115   :  { %762 = vst.msk [vmem:[%s1493_s3 + $0x34] sm:$0xf] %vm748_vm1, %v745_v27 }
 0x116   :  { %v678_v30 = vpop.f32.mrf.mxu2  ;;  %v582_v32 = vpop.f32.mrf.mxu0 }
 0x117   :  { %v679_v31 = vadd.f32 %v678_v30, %v630_v28  ;;  %v583_v35 = vadd.f32 %v582_v32, %v195_v33  ;;  %v631_v37 = vpop.f32.mrf.mxu1 }
 0x119   :  { %v728_v34 = vadd.f32 %v727_v29, %v679_v31  ;;  %v632_v38 = vadd.f32 %v631_v37, %v583_v35 }
 0x11b   :  { %v746_v36 = vpack.c.bf16 %v728_v34, %v728_v34 }
 0x11d   :  { %763 = vst.msk [vmem:[%s1493_s3 + $0x38] sm:$0xf] %vm748_vm1, %v746_v36 }
 0x11e   :  { %v680_v39 = vpop.f32.mrf.mxu2 }
 0x11f   :  { %v681_v40 = vadd.f32 %v680_v39, %v632_v38 }
 0x121   :  { %v730_v42 = vadd.f32 %v729_v41, %v681_v40 }
 0x123   :  { %v747_v43 = vpack.c.bf16 %v730_v42, %v730_v42 }
 0x125   :  { %764 = vst.msk [vmem:[%s1493_s3 + $0x3c] sm:$0xf] %vm748_vm1, %v747_v43 }

// kernel: bires_center_lstm_forward.22
= control target key start
LH: loop header
LB: loop body
LE: loop exit
PB: predicated region body
PF: predicated region fallthrough
CT: control target
= control target key end

     0   :  { %vm828_vm0 = vcmask 785408   ;;  %s3208_s1 = inlined_call_operand.vmem [shape: bf16[864,16], index: 1, kind: input, shape index: {}]   ;;  %s3209_s0 = inlined_call_operand.vmem [shape: bf16[128,864], index: 0, kind: input, shape index: {}]   ;;  %s3210_s2 = inlined_call_operand.vmem [shape: bf16[128,16], index: 2, kind: input, shape index: {}]   ;;  %s3211_s3 = inlined_call_operand.vmem [shape: f32[32,16], index: 3, kind: input, shape index: {}]   ;;  %s3212_s5 = inlined_call_operand.vmem [shape: f32[32,16], index: 5, kind: output, shape index: {1}]   ;;  %s3213_s4 = inlined_call_operand.vmem [shape: bf16[32,16], index: 4, kind: output, shape index: {0}]  }
   0x1   :  { %v1997_v0 = vld [vmem:[%s3208_s1 + $0x38] sm:$0xff]  ;;  %v1996_v3 = vld [vmem:[%s3208_s1 + $0x30] sm:$0xff]  ;;  %v1995_v6 = vld [vmem:[%s3208_s1 + $0x28] sm:$0xff] }
   0x2   :  { %v2207_v1 = vld [vmem:[%s3208_s1 + $0xb8] sm:$0xff]  ;;  %853 = vmatpush.bf16.msra.mxu0 %v1997_v0  ;;  %2083 = vmatpush.bf16.msra.mxu3 %v1997_v0  ;;  %v2222_v4 = vld [vmem:[%s3208_s1 + $0xb0] sm:$0xff]  ;;  %v2237_v7 = vld [vmem:[%s3208_s1 + $0xa8] sm:$0xff] }
   0x3   :  { %v2212_v2 = vld [vmem:[%s3208_s1 + $0x78] sm:$0xff]  ;;  %2099 = vmatpush.bf16.msra.mxu2 %v2207_v1  ;;  %v2227_v5 = vld [vmem:[%s3208_s1 + $0x70] sm:$0xff]  ;;  %v2242_v8 = vld [vmem:[%s3208_s1 + $0x68] sm:$0xff] }
   0x4   :  { %2091 = vmatpush.bf16.msra.mxu1 %v2212_v2  ;;  %v1994_v9 = vld [vmem:[%s3208_s1 + $0x20] sm:$0xff]  ;;  %v1993_v12 = vld [vmem:[%s3208_s1 + $0x18] sm:$0xff]  ;;  %v1992_v15 = vld [vmem:[%s3208_s1 + $0x10] sm:$0xff] }
   0x5   :  { %v2252_v10 = vld [vmem:[%s3208_s1 + $0xa0] sm:$0xff]  ;;  %v2267_v13 = vld [vmem:[%s3208_s1 + $0x98] sm:$0xff]  ;;  %v2282_v16 = vld [vmem:[%s3208_s1 + $0x90] sm:$0xff] }
   0x6   :  { %854 = vmatpush.bf16.msra.mxu0 %v1996_v3  ;;  %2084 = vmatpush.bf16.msra.mxu3 %v1996_v3  ;;  %v2257_v11 = vld [vmem:[%s3208_s1 + $0x60] sm:$0xff]  ;;  %v2272_v14 = vld [vmem:[%s3208_s1 + $0x58] sm:$0xff]  ;;  %v2287_v17 = vld [vmem:[%s3208_s1 + $0x50] sm:$0xff] }
   0x7   :  { %2100 = vmatpush.bf16.msra.mxu2 %v2222_v4  ;;  %v1991_v18 = vld [vmem:[%s3208_s1 + $0x8] sm:$0xff]  ;;  %v1990_v21 = vld [vmem:[%s3208_s1] sm:$0xff]  ;;  %v1937_v25 = vld [vmem:[%s3209_s0 + $0x18] sm:$0xf0] }
   0x8   :  { %2092 = vmatpush.bf16.msra.mxu1 %v2227_v5  ;;  %v2297_v19 = vld [vmem:[%s3208_s1 + $0x88] sm:$0xff]  ;;  %v2310_v22 = vld [vmem:[%s3208_s1 + $0x80] sm:$0xff]  ;;  %v1532_v26 = vld [vmem:[%s3209_s0 + $0x70] sm:$0xf] }
   0x9   :  { %v2302_v20 = vld [vmem:[%s3208_s1 + $0x48] sm:$0xff]  ;;  %v2315_v23 = vld [vmem:[%s3208_s1 + $0x40] sm:$0xff]  ;;  %v1540_v28 = vld [vmem:[%s3209_s0 + $0x78] sm:$0xf] }
   0xa   :  { %855 = vmatpush.bf16.msra.mxu0 %v1995_v6  ;;  %2085 = vmatpush.bf16.msra.mxu3 %v1995_v6  ;;  %v1476_v24 = vld [vmem:[%s3209_s0] sm:$0xf]  ;;  %v1951_v27 = vld [vmem:[%s3209_s0 + $0x88] sm:$0xf0]  ;;  %v1952_v29 = vld [vmem:[%s3209_s0 + $0x90] sm:$0xf0] }
   0xb   :  { %2101 = vmatpush.bf16.msra.mxu2 %v2237_v7  ;;  %v1948_v30 = vld [vmem:[%s3209_s0 + $0x74] sm:$0xf]  ;;  %v1534_v31 = vld [vmem:[%s3209_s0 + $0x8c] sm:$0xf0]  ;;  %v2021_v32 = vld [vmem:[%s3208_s1 + $0xf8] sm:$0xff]  ;;  %v1477_v33 = vor.u32 %v1937_v25, %v1476_v24  ;;  %v1533_v34 = vor.u32 %v1951_v27, %v1532_v26  ;;  %v1541_v35 = vor.u32 %v1952_v29, %v1540_v28 }
   0xc   :  { %2093 = vmatpush.bf16.msra.mxu1 %v2242_v8  ;;  %v1537_v36 = vor.u32 %v1948_v30, %v1534_v31  ;;  %v2043_v37 = vld [vmem:[%s3208_s1 + $0x1a8] sm:$0xff]  ;;  %v2037_v38 = vld [vmem:[%s3208_s1 + $0x178] sm:$0xff]  ;;  %v2020_v39 = vld [vmem:[%s3208_s1 + $0xf0] sm:$0xff] }
   0xd   :  { %v2036_v40 = vld [vmem:[%s3208_s1 + $0x170] sm:$0xff]  ;;  %v2042_v41 = vld [vmem:[%s3208_s1 + $0x1a0] sm:$0xff]  ;;  %v2019_v42 = vld [vmem:[%s3208_s1 + $0xe8] sm:$0xff] }
   0xe   :  { %856 = vmatpush.bf16.msra.mxu0 %v1994_v9  ;;  %2086 = vmatpush.bf16.msra.mxu3 %v1994_v9  ;;  %v2035_v43 = vld [vmem:[%s3208_s1 + $0x168] sm:$0xff]  ;;  %v2041_v44 = vld [vmem:[%s3208_s1 + $0x198] sm:$0xff]  ;;  %v2018_v45 = vld [vmem:[%s3208_s1 + $0xe0] sm:$0xff] }
   0xf   :  { %2102 = vmatpush.bf16.msra.mxu2 %v2252_v10  ;;  %v1504_v46 = vld [vmem:[%s3209_s0 + $0x38] sm:$0xf]  ;;  %v1944_v47 = vld [vmem:[%s3209_s0 + $0x50] sm:$0xf0]  ;;  %v1560_v48 = vld [vmem:[%s3209_s0 + $0xa8] sm:$0xf] }
  0x10   :  { %2094 = vmatpush.bf16.msra.mxu1 %v2257_v11  ;;  %v1958_v49 = vld [vmem:[%s3209_s0 + $0xc0] sm:$0xf0]  ;;  %v1568_v50 = vld [vmem:[%s3209_s0 + $0xb0] sm:$0xf]  ;;  %v1959_v51 = vld [vmem:[%s3209_s0 + $0xc8] sm:$0xf0]  ;;  %v1505_v55 = vor.u32 %v1944_v47, %v1504_v46 }
  0x11   :  { %v1955_v52 = vld [vmem:[%s3209_s0 + $0xac] sm:$0xf]  ;;  %v1562_v53 = vld [vmem:[%s3209_s0 + $0xc4] sm:$0xf0]  ;;  %v2034_v54 = vld [vmem:[%s3208_s1 + $0x160] sm:$0xff]  ;;  %v1561_v56 = vor.u32 %v1958_v49, %v1560_v48  ;;  %v1569_v57 = vor.u32 %v1959_v51, %v1568_v50 }
  0x12   :  { %857 = vmatpush.bf16.msra.mxu0 %v1993_v12  ;;  %2087 = vmatpush.bf16.msra.mxu3 %v1993_v12  ;;  %v1565_v58 = vor.u32 %v1955_v52, %v1562_v53  ;;  %v2017_v59 = vld [vmem:[%s3208_s1 + $0xd8] sm:$0xff]  ;;  %v2040_v60 = vld [vmem:[%s3208_s1 + $0x190] sm:$0xff]  ;;  %v1588_v63 = vld [vmem:[%s3209_s0 + $0xe0] sm:$0xf] }
  0x13   :  { %2103 = vmatpush.bf16.msra.mxu2 %v2267_v13  ;;  %v2033_v61 = vld [vmem:[%s3208_s1 + $0x158] sm:$0xff]  ;;  %v2016_v62 = vld [vmem:[%s3208_s1 + $0xd0] sm:$0xff]  ;;  %v1478_v3 = vld [vmem:[%s3209_s0 + $0x1c] sm:$0xf0] }
  0x14   :  { %2095 = vmatpush.bf16.msra.mxu1 %v2272_v14  ;;  %v1965_v0 = vld [vmem:[%s3209_s0 + $0xf8] sm:$0xf0]  ;;  %v1966_v6 = vld [vmem:[%s3209_s0 + $0x100] sm:$0xf0]  ;;  %v1590_v9 = vld [vmem:[%s3209_s0 + $0xfc] sm:$0xf0] }
  0x15   :  { %v1973_v24 = vld [vmem:[%s3209_s0 + $0x138] sm:$0xf0]  ;;  %v1618_v26 = vld [vmem:[%s3209_s0 + $0x134] sm:$0xf0]  ;;  %v2014_v31 = vld [vmem:[%s3208_s1 + $0xc0] sm:$0xff] }
  0x16   :  { %858 = vmatpush.bf16.msra.mxu0 %v1992_v15  ;;  %2088 = vmatpush.bf16.msra.mxu3 %v1992_v15  ;;  %v1969_v25 = vld [vmem:[%s3209_s0 + $0x11c] sm:$0xf]  ;;  %v1672_v47 = vld [vmem:[%s3209_s0 + $0x188] sm:$0xf]  ;;  %v1986_v48 = vld [vmem:[%s3209_s0 + $0x1a0] sm:$0xf0] }
  0x17   :  { %2104 = vmatpush.bf16.msra.mxu2 %v2282_v16  ;;  %v1621_v30 = vor.u32 %v1969_v25, %v1618_v26  ;;  %v2025_v46 = vld [vmem:[%s3208_s1 + $0x118] sm:$0xff]  ;;  %v1512_v49 = vld [vmem:[%s3209_s0 + $0x40] sm:$0xf]  ;;  %v1680_v51 = vld [vmem:[%s3209_s0 + $0x190] sm:$0xf] }
  0x18   :  { %2096 = vmatpush.bf16.msra.mxu1 %v2287_v17  ;;  %v1945_v50 = vld [vmem:[%s3209_s0 + $0x58] sm:$0xf0]  ;;  %v1987_v52 = vld [vmem:[%s3209_s0 + $0x1a8] sm:$0xf0] }
  0x19   :  { %v1983_v53 = vld [vmem:[%s3209_s0 + $0x18c] sm:$0xf] }
  0x1a   :  { %859 = vmatpush.bf16.msra.mxu0 %v1991_v18  ;;  %2089 = vmatpush.bf16.msra.mxu3 %v1991_v18  ;;  %v2039_v18 = vld [vmem:[%s3208_s1 + $0x188] sm:$0xff] }
  0x1b   :  { %2105 = vmatpush.bf16.msra.mxu2 %v2297_v19 }
  0x1c   :  { %2097 = vmatpush.bf16.msra.mxu1 %v2302_v20 }
  0x1e   :  { %860 = vmatpush.bf16.msra.mxu0 %v1990_v21  ;;  %2090 = vmatpush.bf16.msra.mxu3 %v1990_v21  ;;  %v1972_v21 = vld [vmem:[%s3209_s0 + $0x130] sm:$0xf0] }
  0x1f   :  { %2106 = vmatpush.bf16.msra.mxu2 %v2310_v22 }
  0x20   :  { %2098 = vmatpush.bf16.msra.mxu1 %v2315_v23 }
  0x21   :  { %861 = vmatmul.bf16.vlgmr.msra.gmra.mxu0 %v1477_v33  ;;  %871 = vmatmul.bf16.vlgmr.msra.gmra.mxu3 %v1533_v34  ;;  %v2030_v33 = vld [vmem:[%s3208_s1 + $0x140] sm:$0xff]  ;;  %v1979_v34 = vld [vmem:[%s3209_s0 + $0x168] sm:$0xf0] }
  0x22   :  { %1000 = vmatpush.bf16.msrb.mxu3 %v2021_v32  ;;  %902 = vmatpush.bf16.msrb.mxu0 %v2212_v2  ;;  %v1934_v2 = vld [vmem:[%s3209_s0 + $0x4] sm:$0xf] }
  0x23   :  { %969 = vmatmul.bf16.vlgmr.msra.gmra.mxu2 %v1541_v35  ;;  %920 = vmatmul.bf16.vlgmr.msra.gmra.mxu1 %v1537_v36  ;;  %v1481_v12 = vor.u32 %v1934_v2, %v1478_v3  ;;  %v2038_v32 = vld [vmem:[%s3208_s1 + $0x180] sm:$0xff]  ;;  %v1652_v36 = vld [vmem:[%s3209_s0 + $0x158] sm:$0xf]  ;;  %v1939_v2 = vld [vmem:[%s3209_s0 + $0x28] sm:$0xf0] }
  0x24   :  { %1149 = vmatpush.bf16.msrb.mxu2 %v2043_v37  ;;  %1098 = vmatpush.bf16.msrb.mxu1 %v2037_v38  ;;  %v1938_v35 = vld [vmem:[%s3209_s0 + $0x20] sm:$0xf0]  ;;  %v1980_v37 = vld [vmem:[%s3209_s0 + $0x170] sm:$0xf0]  ;;  %v1500_v3 = vld [vmem:[%s3209_s0 + $0x18] sm:$0xf] }
  0x25   :  { %v1976_v38 = vld [vmem:[%s3209_s0 + $0x154] sm:$0xf] }
  0x26   :  { %903 = vmatpush.bf16.msrb.mxu0 %v2227_v5  ;;  %1001 = vmatpush.bf16.msrb.mxu3 %v2020_v39  ;;  %v1596_v5 = vld [vmem:[%s3209_s0 + $0xe8] sm:$0xf]  ;;  %v1646_v39 = vld [vmem:[%s3209_s0 + $0x16c] sm:$0xf0] }
  0x28   :  { %1099 = vmatpush.bf16.msrb.mxu1 %v2036_v40  ;;  %1150 = vmatpush.bf16.msrb.mxu2 %v2042_v41  ;;  %v2028_v40 = vld [vmem:[%s3208_s1 + $0x130] sm:$0xff] }
  0x2a   :  { %904 = vmatpush.bf16.msrb.mxu0 %v2242_v8  ;;  %1002 = vmatpush.bf16.msrb.mxu3 %v2019_v42  ;;  %v1962_v8 = vld [vmem:[%s3209_s0 + $0xe4] sm:$0xf] }
  0x2b   :  { %v1593_v15 = vor.u32 %v1962_v8, %v1590_v9  ;;  %v1494_v8 = vld [vmem:[%s3209_s0 + $0x2c] sm:$0xf0] }
  0x2c   :  { %1100 = vmatpush.bf16.msrb.mxu1 %v2035_v43  ;;  %1151 = vmatpush.bf16.msrb.mxu2 %v2041_v44  ;;  %v1649_v43 = vor.u32 %v1976_v38, %v1646_v39  ;;  %v2027_v44 = vld [vmem:[%s3208_s1 + $0x128] sm:$0xff] }
  0x2e   :  { %905 = vmatpush.bf16.msrb.mxu0 %v2257_v11  ;;  %1003 = vmatpush.bf16.msrb.mxu3 %v2018_v45  ;;  %v1589_v11 = vor.u32 %v1965_v0, %v1588_v63  ;;  %v2026_v45 = vld [vmem:[%s3208_s1 + $0x120] sm:$0xff]  ;;  %v1486_v63 = vld [vmem:[%s3209_s0 + $0x24] sm:$0xf0]  ;;  %v1492_v0 = vld [vmem:[%s3209_s0 + $0x10] sm:$0xf] }
  0x30   :  { %1101 = vmatpush.bf16.msrb.mxu1 %v2034_v54  ;;  %1152 = vmatpush.bf16.msrb.mxu2 %v2040_v60  ;;  %v1674_v54 = vld [vmem:[%s3209_s0 + $0x1a4] sm:$0xf0] }
  0x31   :  { %866 = vmatmul.bf16.gmra.mxu0 %v1505_v55  ;;  %876 = vmatmul.bf16.gmra.mxu3 %v1561_v56  ;;  %v2024_v55 = vld [vmem:[%s3208_s1 + $0x110] sm:$0xff]  ;;  %v1673_v56 = vor.u32 %v1986_v48, %v1672_v47  ;;  %v2023_v60 = vld [vmem:[%s3208_s1 + $0x108] sm:$0xff]  ;;  %v1576_v48 = vld [vmem:[%s3209_s0 + $0xb8] sm:$0xf] }
  0x32   :  { %906 = vmatpush.bf16.msrb.mxu0 %v2272_v14  ;;  %1004 = vmatpush.bf16.msrb.mxu3 %v2017_v59  ;;  %v1597_v14 = vor.u32 %v1966_v6, %v1596_v5  ;;  %v1677_v59 = vor.u32 %v1983_v53, %v1674_v54  ;;  %v1940_v5 = vld [vmem:[%s3209_s0 + $0x30] sm:$0xf0]  ;;  %v1570_v47 = vld [vmem:[%s3209_s0 + $0xcc] sm:$0xf0]  ;;  %v1578_v53 = vld [vmem:[%s3209_s0 + $0xd4] sm:$0xf0] }
  0x33   :  { %974 = vmatmul.bf16.gmra.mxu2 %v1569_v57  ;;  %925 = vmatmul.bf16.gmra.mxu1 %v1565_v58  ;;  %v1513_v57 = vor.u32 %v1945_v50, %v1512_v49  ;;  %v1681_v58 = vor.u32 %v1987_v52, %v1680_v51  ;;  %v1936_v6 = vld [vmem:[%s3209_s0 + $0x14] sm:$0xf]  ;;  %v1584_v50 = vld [vmem:[%s3209_s0 + $0xc0] sm:$0xf]  ;;  %v1961_v51 = vld [vmem:[%s3209_s0 + $0xd8] sm:$0xf0] }
  0x34   :  { %1102 = vmatpush.bf16.msrb.mxu1 %v2033_v61  ;;  %1153 = vmatpush.bf16.msrb.mxu2 %v2039_v18  ;;  %v2022_v61 = vld [vmem:[%s3208_s1 + $0x100] sm:$0xff]  ;;  %v1520_v18 = vld [vmem:[%s3209_s0 + $0x48] sm:$0xf]  ;;  %v1960_v49 = vld [vmem:[%s3209_s0 + $0xd0] sm:$0xf0] }
  0x35   :  { %v1957_v52 = vld [vmem:[%s3209_s0 + $0xbc] sm:$0xf] }
  0x36   :  { %907 = vmatpush.bf16.msrb.mxu0 %v2287_v17  ;;  %1005 = vmatpush.bf16.msrb.mxu3 %v2016_v62  ;;  %v2032_v17 = vld [vmem:[%s3208_s1 + $0x150] sm:$0xff]  ;;  %v1935_v62 = vld [vmem:[%s3209_s0 + $0xc] sm:$0xf] }
  0x37   :  { %v1489_v9 = vor.u32 %v1935_v62, %v1486_v63  ;;  %v2078_v62 = vld [vmem:[%s3210_s2 + $0x18] sm:$0xff]  }
  0x38   :  { %1103 = vmatpush.bf16.msrb.mxu1 %v2032_v17  ;;  %1154 = vmatpush.bf16.msrb.mxu2 %v2038_v32  ;;  %v1514_v17 = vld [vmem:[%s3209_s0 + $0x5c] sm:$0xf0]  ;;  %v1950_v32 = vld [vmem:[%s3209_s0 + $0x84] sm:$0xf] }
  0x3a   :  { %908 = vmatpush.bf16.msrb.mxu0 %v2302_v20  ;;  %v1616_v20 = vld [vmem:[%s3209_s0 + $0x118] sm:$0xf] }
  0x3b   :  { %v1617_v27 = vor.u32 %v1972_v21, %v1616_v20  ;;  %v1528_v20 = vld [vmem:[%s3209_s0 + $0x50] sm:$0xf]  ;;  %v1947_v21 = vld [vmem:[%s3209_s0 + $0x68] sm:$0xf0] }
  0x3c   :  { %v1529_v25 = vor.u32 %v1947_v21, %v1528_v20  ;;  %v1598_v20 = vld [vmem:[%s3209_s0 + $0x104] sm:$0xf0]  ;;  %v1604_v21 = vld [vmem:[%s3209_s0 + $0xf0] sm:$0xf] }
  0x3e   :  { %909 = vmatpush.bf16.msrb.mxu0 %v2315_v23  ;;  %v1506_v23 = vld [vmem:[%s3209_s0 + $0x54] sm:$0xf0] }
  0x41   :  { %881 = vmatmul.bf16.gmra.mxu3 %v1589_v11  ;;  %910 = vmatmul.bf16.vlgmr.msrb.gmra.mxu0 %v1481_v12  ;;  %v1493_v11 = vor.u32 %v1939_v2, %v1492_v0  ;;  %v1501_v12 = vor.u32 %v1940_v5, %v1500_v3  ;;  %v2058_v3 = vunpack.c.l.bf16 %v2078_v62 }
  0x42   :  { %951 = vmatpush.bf16.msra.mxu0 %v2207_v1  ;;  %v2015_v1 = vld [vmem:[%s3208_s1 + $0xc8] sm:$0xff] }
  0x43   :  { %979 = vmatmul.bf16.gmra.mxu2 %v1597_v14  ;;  %930 = vmatmul.bf16.gmra.mxu1 %v1593_v15  ;;  %v1497_v14 = vor.u32 %v1936_v6, %v1494_v8  ;;  %v1942_v15 = vld [vmem:[%s3209_s0 + $0x44] sm:$0xf] }
  0x44   :  { %1006 = vmatpush.bf16.msrb.mxu3 %v2015_v1  ;;  %v1946_v1 = vld [vmem:[%s3209_s0 + $0x60] sm:$0xf0] }
  0x46   :  { %952 = vmatpush.bf16.msra.mxu0 %v2222_v4  ;;  %v1941_v4 = vld [vmem:[%s3209_s0 + $0x3c] sm:$0xf] }
  0x47   :  { %v1509_v28 = vor.u32 %v1941_v4, %v1506_v23  ;;  %v1943_v4 = vld [vmem:[%s3209_s0 + $0x4c] sm:$0xf]  ;;  %v1522_v23 = vld [vmem:[%s3209_s0 + $0x64] sm:$0xf0] }
  0x48   :  { %1007 = vmatpush.bf16.msrb.mxu3 %v2014_v31  ;;  %v1525_v26 = vor.u32 %v1943_v4, %v1522_v23  ;;  %v1954_v31 = vld [vmem:[%s3209_s0 + $0xa0] sm:$0xf0]  ;;  %v1967_v4 = vld [vmem:[%s3209_s0 + $0x108] sm:$0xf0]  ;;  %v1612_v23 = vld [vmem:[%s3209_s0 + $0xf8] sm:$0xf] }
  0x4a   :  { %953 = vmatpush.bf16.msra.mxu0 %v2237_v7  ;;  %v1624_v7 = vld [vmem:[%s3209_s0 + $0x120] sm:$0xf] }
  0x4b   :  { %v1625_v29 = vor.u32 %v1973_v24, %v1624_v7  ;;  %v1517_v7 = vor.u32 %v1942_v15, %v1514_v17  ;;  %v1521_v24 = vor.u32 %v1946_v1, %v1520_v18  ;;  %v2059_v18 = vunpack.c.h.bf16 %v2078_v62  ;;  %v1963_v1 = vld [vmem:[%s3209_s0 + $0xec] sm:$0xf] }
  0x4e   :  { %954 = vmatpush.bf16.msra.mxu0 %v2252_v10  ;;  %v2031_v10 = vld [vmem:[%s3208_s1 + $0x148] sm:$0xff] }
  0x4f   :  { %1104 = vmatpush.bf16.msrb.mxu1 %v2031_v10  ;;  %v1556_v10 = vld [vmem:[%s3209_s0 + $0x88] sm:$0xf] }
  0x51   :  { %886 = vmatmul.bf16.gmra.mxu3 %v1617_v27  ;;  %915 = vmatmul.bf16.gmra.mxu0 %v1509_v28  ;;  %v1949_v27 = vld [vmem:[%s3209_s0 + $0x7c] sm:$0xf]  ;;  %v1542_v28 = vld [vmem:[%s3209_s0 + $0x94] sm:$0xf0] }
  0x52   :  { %955 = vmatpush.bf16.msra.mxu0 %v2267_v13  ;;  %v2029_v13 = vld [vmem:[%s3208_s1 + $0x138] sm:$0xff] }
  0x53   :  { %984 = vmatmul.bf16.gmra.mxu2 %v1625_v29  ;;  %935 = vmatmul.bf16.gmra.mxu1 %v1621_v30  ;;  %v1548_v29 = vld [vmem:[%s3209_s0 + $0x80] sm:$0xf]  ;;  %v1953_v30 = vld [vmem:[%s3209_s0 + $0x98] sm:$0xf0] }
  0x54   :  { %1105 = vmatpush.bf16.msrb.mxu1 %v2030_v33  ;;  %v1545_v33 = vor.u32 %v1949_v27, %v1542_v28 }
  0x56   :  { %956 = vmatpush.bf16.msra.mxu0 %v2282_v16  ;;  %v1644_v16 = vld [vmem:[%s3209_s0 + $0x150] sm:$0xf] }
  0x57   :  { %v1645_v41 = vor.u32 %v1979_v34, %v1644_v16  ;;  %v1549_v16 = vor.u32 %v1953_v30, %v1548_v29  ;;  %v1601_v30 = vor.u32 %v1963_v1, %v1598_v20 }
  0x5a   :  { %957 = vmatpush.bf16.msra.mxu0 %v2297_v19  ;;  %v1484_v19 = vld [vmem:[%s3209_s0 + $0x8] sm:$0xf] }
  0x5b   :  { %v1485_v42 = vor.u32 %v1938_v35, %v1484_v19  ;;  %v1557_v19 = vor.u32 %v1954_v31, %v1556_v10  ;;  %v1605_v10 = vor.u32 %v1967_v4, %v1604_v21 }
  0x5e   :  { %958 = vmatpush.bf16.msra.mxu0 %v2310_v22  ;;  %v1653_v22 = vor.u32 %v1980_v37, %v1652_v36  ;;  %v2077_v36 = vld [vmem:[%s3210_s2 + $0x10] sm:$0xff]  }
  0x5f   :  { %v2054_v38 = vunpack.c.l.bf16 %v2077_v36 }
  0x61   :  { %891 = vmatmul.bf16.gmra.mxu3 %v1645_v41  ;;  %959 = vmatmul.bf16.vlgmr.msra.gmra.mxu0 %v1485_v42 }
  0x62   :  { %1049 = vmatpush.bf16.msrb.mxu0 %v2029_v13  ;;  %v1550_v13 = vld [vmem:[%s3209_s0 + $0x9c] sm:$0xf0] }
  0x63   :  { %989 = vmatmul.bf16.gmra.mxu2 %v1653_v22  ;;  %940 = vmatmul.bf16.gmra.mxu1 %v1649_v43  ;;  %v1553_v35 = vor.u32 %v1950_v32, %v1550_v13 }
  0x66   :  { %1050 = vmatpush.bf16.msrb.mxu0 %v2028_v40 }
  0x6a   :  { %1051 = vmatpush.bf16.msrb.mxu0 %v2027_v44 }
  0x6e   :  { %1052 = vmatpush.bf16.msrb.mxu0 %v2026_v45  ;;  %v2055_v45 = vunpack.c.h.bf16 %v2077_v36 }
  0x71   :  { %896 = vmatmul.bf16.gmra.mxu3 %v1673_v56  ;;  %964 = vmatmul.bf16.gmra.mxu0 %v1513_v57 }
  0x72   :  { %1053 = vmatpush.bf16.msrb.mxu0 %v2025_v46  ;;  %v1956_v46 = vld [vmem:[%s3209_s0 + $0xb4] sm:$0xf] }
  0x73   :  { %994 = vmatmul.bf16.gmra.mxu2 %v1681_v58  ;;  %945 = vmatmul.bf16.gmra.mxu1 %v1677_v59  ;;  %v1573_v57 = vor.u32 %v1956_v46, %v1570_v47  ;;  %v1577_v58 = vor.u32 %v1960_v49, %v1576_v48 }
  0x76   :  { %1054 = vmatpush.bf16.msrb.mxu0 %v2024_v55 }
  0x7a   :  { %1055 = vmatpush.bf16.msrb.mxu0 %v2023_v60  ;;  %v1585_v60 = vor.u32 %v1961_v51, %v1584_v50  ;;  %v1970_v51 = vld [vmem:[%s3209_s0 + $0x124] sm:$0xf] }
  0x7e   :  { %1056 = vmatpush.bf16.msrb.mxu0 %v2022_v61  ;;  %v1581_v61 = vor.u32 %v1957_v52, %v1578_v53  ;;  %v1632_v52 = vld [vmem:[%s3209_s0 + $0x128] sm:$0xf]  ;;  %v1974_v53 = vld [vmem:[%s3209_s0 + $0x140] sm:$0xf0] }
  0x81   :  { %1008 = vmatmul.bf16.vlgmr.msrb.gmra.mxu3 %v1489_v9  ;;  %1057 = vmatmul.bf16.vlgmr.msrb.gmra.mxu0 %v1493_v11  ;;  %v2045_v9 = vld [vmem:[%s3210_s2] sm:$0xff]  }
  0x82   :  { %v2046_v15 = vunpack.c.l.bf16 %v2045_v9  ;;  %v2047_v36 = vunpack.c.h.bf16 %v2045_v9 }
  0x83   :  { %1914 = vmatmul.msk.bf16.vlgmr.msrb.gmra.mxu2 %vm828_vm0, %v1501_v12  ;;  %1106 = vmatmul.bf16.vlgmr.msrb.gmra.mxu1 %v1497_v14 }
  0x91   :  { %1013 = vmatmul.bf16.gmra.mxu3 %v1517_v7  ;;  %1062 = vmatmul.bf16.gmra.mxu0 %v1521_v24  ;;  %v1968_v7 = vld [vmem:[%s3209_s0 + $0x110] sm:$0xf0] }
  0x92   :  { %v1964_v24 = vld [vmem:[%s3209_s0 + $0xf4] sm:$0xf]  ;;  %v1613_v32 = vor.u32 %v1968_v7, %v1612_v23 }
  0x93   :  { %1915 = vmatmul.msk.bf16.gmra.mxu2 %vm828_vm0, %v1529_v25  ;;  %1111 = vmatmul.bf16.gmra.mxu1 %v1525_v26  ;;  %v1606_v25 = vld [vmem:[%s3209_s0 + $0x10c] sm:$0xf0] }
  0x94   :  { %v1609_v13 = vor.u32 %v1964_v24, %v1606_v25 }
  0x9e   :  { %v862_v34 = vpop.f32.mrf.mxu0 }
  0x9f   :  { %v863_v27 = vadd.f32 %v2046_v15, %v862_v34 }
  0xa0   :  { %v921_v37 = vpop.f32.mrf.mxu1 }
  0xa1   :  { %1018 = vmatmul.bf16.gmra.mxu3 %v1545_v33  ;;  %1067 = vmatmul.bf16.gmra.mxu0 %v1549_v16  ;;  %v2079_v33 = vld [vmem:[%s3210_s2 + $0x20] sm:$0xff]  }
  0xa2   :  { %v2062_v34 = vunpack.c.l.bf16 %v2079_v33  ;;  %v2063_v50 = vunpack.c.h.bf16 %v2079_v33 }
  0xa3   :  { %1916 = vmatmul.msk.bf16.gmra.mxu2 %vm828_vm0, %v1557_v19  ;;  %1116 = vmatmul.bf16.gmra.mxu1 %v1553_v35 }
  0xa4   :  { %v872_v39 = vpop.f32.mrf.mxu3 }
  0xa5   :  { %v873_v40 = vadd.f32 %v2054_v38, %v872_v39 }
  0xa6   :  { %v970_v41 = vpop.f32.mrf.mxu2  ;;  %v2649_v42 = vpop.f32.mrf.mxu0 }
  0xa7   :  { %v922_v22 = vadd.f32 %v921_v37, %v873_v40  ;;  %v865_v39 = vadd.f32 %v2047_v36, %v2649_v42  ;;  %v1626_v42 = vld [vmem:[%s3209_s0 + $0x13c] sm:$0xf0] }
  0xa8   :  { %v923_v43 = vpop.f32.mrf.mxu1 }
  0xa9   :  { %v2651_v44 = vadd.f32 %v970_v41, %v922_v22  ;;  %v2076_v22 = vld [vmem:[%s3210_s2 + $0x8] sm:$0xff]  }
  0xaa   :  { %v2050_v48 = vunpack.c.l.bf16 %v2076_v22  ;;  %v2051_v15 = vunpack.c.h.bf16 %v2076_v22 }
  0xac   :  { %v874_v54 = vpop.f32.mrf.mxu3 }
  0xad   :  { %v875_v55 = vadd.f32 %v2055_v45, %v874_v54  ;;  %v1640_v54 = vld [vmem:[%s3209_s0 + $0x130] sm:$0xf] }
  0xae   :  { %v972_v56 = vpop.f32.mrf.mxu2  ;;  %v2677_v59 = vpop.f32.mrf.mxu0 }
  0xaf   :  { %v924_v63 = vadd.f32 %v923_v43, %v875_v55  ;;  %v1975_v55 = vld [vmem:[%s3209_s0 + $0x148] sm:$0xf0] }
  0xb0   :  { %v926_v0 = vpop.f32.mrf.mxu1 }
  0xb1   :  { %v2682_v2 = vadd.f32 %v972_v56, %v924_v63  ;;  %1023 = vmatmul.bf16.gmra.mxu3 %v1573_v57  ;;  %1072 = vmatmul.bf16.gmra.mxu0 %v1577_v58  ;;  %v1971_v56 = vld [vmem:[%s3209_s0 + $0x12c] sm:$0xf]  ;;  %v1634_v57 = vld [vmem:[%s3209_s0 + $0x144] sm:$0xf0]  ;;  %v1629_v63 = vor.u32 %v1970_v51, %v1626_v42 }
  0xb3   :  { %1917 = vmatmul.msk.bf16.gmra.mxu2 %vm828_vm0, %v1585_v60  ;;  %1121 = vmatmul.bf16.gmra.mxu1 %v1581_v61  ;;  %v868_v60 = vadd.f32 %v2050_v48, %v2677_v59 }
  0xb4   :  { %v877_v5 = vpop.f32.mrf.mxu3 }
  0xb5   :  { %v878_v6 = vadd.f32 %v2058_v3, %v877_v5  ;;  %v1641_v5 = vor.u32 %v1975_v55, %v1640_v54 }
  0xb6   :  { %v975_v8 = vpop.f32.mrf.mxu2  ;;  %v2688_v11 = vpop.f32.mrf.mxu0 }
  0xb7   :  { %v927_v12 = vadd.f32 %v926_v0, %v878_v6  ;;  %v1633_v0 = vor.u32 %v1974_v53, %v1632_v52  ;;  %v1637_v6 = vor.u32 %v1971_v56, %v1634_v57  ;;  %v870_v20 = vadd.f32 %v2051_v15, %v2688_v11  ;;  %v1660_v11 = vld [vmem:[%s3209_s0 + $0x160] sm:$0xf]  ;;  %v1984_v57 = vld [vmem:[%s3209_s0 + $0x194] sm:$0xf] }
  0xb8   :  { %v928_v14 = vpop.f32.mrf.mxu1 }
  0xb9   :  { %v2690_v17 = vadd.f32 %v975_v8, %v927_v12  ;;  %v2080_v8 = vld [vmem:[%s3210_s2 + $0x28] sm:$0xff]  }
  0xba   :  { %v2066_v59 = vunpack.c.l.bf16 %v2080_v8 }
  0xbc   :  { %v879_v26 = vpop.f32.mrf.mxu3 }
  0xbd   :  { %v880_v28 = vadd.f32 %v2059_v18, %v879_v26 }
  0xbe   :  { %v977_v29 = vpop.f32.mrf.mxu2  ;;  %v911_v31 = vpop.f32.mrf.mxu0 }
  0xbf   :  { %v929_v16 = vadd.f32 %v928_v14, %v880_v28  ;;  %v2719_v19 = vadd.f32 %v911_v31, %v863_v27  ;;  %v2067_v27 = vunpack.c.h.bf16 %v2080_v8  ;;  %v1977_v28 = vld [vmem:[%s3209_s0 + $0x15c] sm:$0xf]  ;;  %v1982_v31 = vld [vmem:[%s3209_s0 + $0x180] sm:$0xf0] }
  0xc0   :  { %v931_v35 = vpop.f32.mrf.mxu1 }
  0xc1   :  { %v2721_v37 = vadd.f32 %v977_v29, %v929_v16  ;;  %1028 = vmatmul.bf16.gmra.mxu3 %v1601_v30  ;;  %1077 = vmatmul.bf16.gmra.mxu0 %v1605_v10  ;;  %v1654_v29 = vld [vmem:[%s3209_s0 + $0x174] sm:$0xf0]  ;;  %v1981_v30 = vld [vmem:[%s3209_s0 + $0x178] sm:$0xf0]  ;;  %v1668_v10 = vld [vmem:[%s3209_s0 + $0x168] sm:$0xf] }
  0xc2   :  { %v1657_v36 = vor.u32 %v1977_v28, %v1654_v29 }
  0xc3   :  { %1918 = vmatmul.msk.bf16.gmra.mxu2 %vm828_vm0, %v1613_v32  ;;  %1126 = vmatmul.bf16.gmra.mxu1 %v1609_v13  ;;  %v1978_v32 = vld [vmem:[%s3209_s0 + $0x164] sm:$0xf]  ;;  %v1662_v13 = vld [vmem:[%s3209_s0 + $0x17c] sm:$0xf0] }
  0xc4   :  { %v882_v38 = vpop.f32.mrf.mxu3 }
  0xc5   :  { %v883_v40 = vadd.f32 %v2062_v34, %v882_v38  ;;  %v1661_v34 = vor.u32 %v1981_v30, %v1660_v11 }
  0xc6   :  { %v980_v41 = vpop.f32.mrf.mxu2  ;;  %v913_v43 = vpop.f32.mrf.mxu0 }
  0xc7   :  { %v932_v45 = vadd.f32 %v931_v35, %v883_v40  ;;  %v2728_v46 = vadd.f32 %v913_v43, %v865_v39  ;;  %v1669_v39 = vor.u32 %v1982_v31, %v1668_v10  ;;  %v1665_v40 = vor.u32 %v1978_v32, %v1662_v13 }
  0xc8   :  { %v933_v47 = vpop.f32.mrf.mxu1 }
  0xc9   :  { %v2730_v49 = vadd.f32 %v980_v41, %v932_v45  ;;  %v2081_v41 = vld [vmem:[%s3210_s2 + $0x30] sm:$0xff]  }
  0xca   :  { %v2070_v48 = vunpack.c.l.bf16 %v2081_v41 }
  0xcc   :  { %v884_v58 = vpop.f32.mrf.mxu3 }
  0xcd   :  { %v885_v61 = vadd.f32 %v2063_v50, %v884_v58  ;;  %v1682_v58 = vld [vmem:[%s3209_s0 + $0x1ac] sm:$0xf0] }
  0xce   :  { %v982_v62 = vpop.f32.mrf.mxu2  ;;  %v916_v3 = vpop.f32.mrf.mxu0  ;;  %v1685_v8 = vor.u32 %v1984_v57, %v1682_v58 }
  0xcf   :  { %v934_v9 = vadd.f32 %v933_v47, %v885_v61  ;;  %v2760_v12 = vadd.f32 %v916_v3, %v868_v60  ;;  %v1688_v60 = vld [vmem:[%s3209_s0 + $0x198] sm:$0xf]  ;;  %v1696_v61 = vld [vmem:[%s3209_s0 + $0x1a0] sm:$0xf] }
  0xd0   :  { %v936_v14 = vpop.f32.mrf.mxu1 }
  0xd1   :  { %v2762_v18 = vadd.f32 %v982_v62, %v934_v9  ;;  %1033 = vmatmul.bf16.gmra.mxu3 %v1629_v63  ;;  %1082 = vmatmul.bf16.gmra.mxu0 %v1633_v0  ;;  %v1989_v62 = vld [vmem:[%s3209_s0 + $0x1b8] sm:$0xf0]  ;;  %v1690_v0 = vld [vmem:[%s3209_s0 + $0x1b4] sm:$0xf0] }
  0xd2   :  { %v1985_v63 = vld [vmem:[%s3209_s0 + $0x19c] sm:$0xf]  ;;  %v1697_v15 = vor.u32 %v1989_v62, %v1696_v61 }
  0xd3   :  { %1919 = vmatmul.msk.bf16.gmra.mxu2 %vm828_vm0, %v1641_v5  ;;  %1131 = vmatmul.bf16.gmra.mxu1 %v1637_v6 }
  0xd4   :  { %v887_v1 = vpop.f32.mrf.mxu3 }
  0xd5   :  { %v888_v21 = vadd.f32 %v2066_v59, %v887_v1  ;;  %v1693_v59 = vor.u32 %v1985_v63, %v1690_v0  ;;  %v2082_v1 = vld [vmem:[%s3210_s2 + $0x38] sm:$0xff]  }
  0xd6   :  { %v985_v4 = vpop.f32.mrf.mxu2  ;;  %v918_v23 = vpop.f32.mrf.mxu0 }
  0xd7   :  { %v937_v7 = vadd.f32 %v936_v14, %v888_v21  ;;  %v2766_v24 = vadd.f32 %v918_v23, %v870_v20 }
  0xd8   :  { %v938_v25 = vpop.f32.mrf.mxu1 }
  0xd9   :  { %v2768_v26 = vadd.f32 %v985_v4, %v937_v7  ;;  %v2074_v7 = vunpack.c.l.bf16 %v2082_v1 }
  0xdc   :  { %v889_v33 = vpop.f32.mrf.mxu3 }
  0xdd   :  { %v890_v16 = vadd.f32 %v2067_v27, %v889_v33 }
  0xde   :  { %v987_v35 = vpop.f32.mrf.mxu2  ;;  %v960_v38 = vpop.f32.mrf.mxu0 }
  0xdf   :  { %v939_v22 = vadd.f32 %v938_v25, %v890_v16  ;;  %v961_v43 = vadd.f32 %v960_v38, %v2719_v19  ;;  %v2071_v19 = vunpack.c.h.bf16 %v2081_v41 }
  0xe0   :  { %v941_v45 = vpop.f32.mrf.mxu1 }
  0xe1   :  { %v2798_v47 = vadd.f32 %v987_v35, %v939_v22  ;;  %1038 = vmatmul.bf16.gmra.mxu3 %v1657_v36  ;;  %1087 = vmatmul.bf16.gmra.mxu0 %v1661_v34 }
  0xe3   :  { %1920 = vmatmul.msk.bf16.gmra.mxu2 %vm828_vm0, %v1669_v39  ;;  %1136 = vmatmul.bf16.gmra.mxu1 %v1665_v40 }
  0xe4   :  { %v892_v50 = vpop.f32.mrf.mxu3 }
  0xe5   :  { %v893_v51 = vadd.f32 %v2070_v48, %v892_v50 }
  0xe6   :  { %v990_v42 = vpop.f32.mrf.mxu2  ;;  %v962_v52 = vpop.f32.mrf.mxu0 }
  0xe7   :  { %v942_v53 = vadd.f32 %v941_v45, %v893_v51  ;;  %v963_v54 = vadd.f32 %v962_v52, %v2728_v46  ;;  %v1988_v46 = vld [vmem:[%s3209_s0 + $0x1b0] sm:$0xf0] }
  0xe8   :  { %v943_v55 = vpop.f32.mrf.mxu1  ;;  %v1689_v9 = vor.u32 %v1988_v46, %v1688_v60 }
  0xe9   :  { %v2802_v56 = vadd.f32 %v990_v42, %v942_v53 }
  0xec   :  { %v894_v3 = vpop.f32.mrf.mxu3 }
  0xed   :  { %v895_v5 = vadd.f32 %v2071_v19, %v894_v3 }
  0xee   :  { %v992_v6 = vpop.f32.mrf.mxu2  ;;  %v965_v14 = vpop.f32.mrf.mxu0 }
  0xef   :  { %v944_v20 = vadd.f32 %v943_v55, %v895_v5  ;;  %v966_v21 = vadd.f32 %v965_v14, %v2760_v12  ;;  %v2075_v12 = vunpack.c.h.bf16 %v2082_v1 }
  0xf0   :  { %v946_v4 = vpop.f32.mrf.mxu1 }
  0xf1   :  { %v2832_v23 = vadd.f32 %v992_v6, %v944_v20  ;;  %1043 = vmatmul.bf16.gmra.mxu3 %v1685_v8  ;;  %1092 = vmatmul.bf16.gmra.mxu0 %v1689_v9 }
  0xf3   :  { %1921 = vmatmul.msk.bf16.gmra.mxu2 %vm828_vm0, %v1697_v15  ;;  %1141 = vmatmul.bf16.gmra.mxu1 %v1693_v59 }
  0xf4   :  { %v897_v25 = vpop.f32.mrf.mxu3 }
  0xf5   :  { %v898_v27 = vadd.f32 %v2074_v7, %v897_v25 }
  0xf6   :  { %v995_v28 = vpop.f32.mrf.mxu2  ;;  %v967_v29 = vpop.f32.mrf.mxu0 }
  0xf7   :  { %v947_v11 = vadd.f32 %v946_v4, %v898_v27  ;;  %v968_v30 = vadd.f32 %v967_v29, %v2766_v24 }
  0xf8   :  { %v948_v10 = vpop.f32.mrf.mxu1 }
  0xf9   :  { %v2836_v31 = vadd.f32 %v995_v28, %v947_v11 }
  0xfc   :  { %v899_v32 = vpop.f32.mrf.mxu3 }
  0xfd   :  { %v900_v13 = vadd.f32 %v2075_v12, %v899_v32 }
  0xfe   :  { %v997_v33 = vpop.f32.mrf.mxu2  ;;  %v1058_v16 = vpop.f32.mrf.mxu0 }
  0xff   :  { %v949_v35 = vadd.f32 %v948_v10, %v900_v13 }
 0x100   :  { %v1107_v36 = vpop.f32.mrf.mxu1 }
 0x101   :  { %v2838_v34 = vadd.f32 %v997_v33, %v949_v35 }
 0x104   :  { %v1009_v38 = vpop.f32.mrf.mxu3 }
 0x105   :  { %v1010_v39 = vadd.f32 %v1009_v38, %v961_v43 }
 0x106   :  { %v1156_v40 = vpop.f32.mrf.mxu2  ;;  %v1060_v41 = vpop.f32.mrf.mxu0 }
 0x107   :  { %v1059_v22 = vadd.f32 %v1058_v16, %v1010_v39 }
 0x108   :  { %v1109_v45 = vpop.f32.mrf.mxu1 }
 0x109   :  { %v1108_v48 = vadd.f32 %v1107_v36, %v1059_v22 }
 0x10b   :  { %v1157_v24 = vadd.f32 %v1156_v40, %v1108_v48 }
 0x10c   :  { %v1011_v50 = vpop.f32.mrf.mxu3 }
 0x10d   :  { %v1012_v51 = vadd.f32 %v1011_v50, %v963_v54  ;;  %v1922_v12 = vmul.f32 -1.442695, %v1157_v24 }
 0x10e   :  { %v1158_v42 = vpop.f32.mrf.mxu2  ;;  %v1063_v52 = vpop.f32.mrf.mxu0 }
 0x10f   :  { %v1061_v53 = vadd.f32 %v1060_v41, %v1012_v51  ;;  %2107 = vpow2.f32 %v1922_v12 }
 0x110   :  { %v1112_v55 = vpop.f32.mrf.mxu1 }
 0x111   :  { %v1110_v19 = vadd.f32 %v1109_v45, %v1061_v53 }
 0x113   :  { %v1159_v57 = vadd.f32 %v1158_v42, %v1110_v19 }
 0x114   :  { %v1014_v58 = vpop.f32.mrf.mxu3 }
 0x115   :  { %v1015_v60 = vadd.f32 %v1014_v58, %v966_v21  ;;  %v1923_v13 = vmul.f32 -1.442695, %v1159_v57  ;;  %v2108_v48 = vpop.eup %2107 }
 0x116   :  { %v1161_v46 = vpop.f32.mrf.mxu2  ;;  %v1065_v61 = vpop.f32.mrf.mxu0 }
 0x117   :  { %v1064_v62 = vadd.f32 %v1063_v52, %v1015_v60  ;;  %2109 = vpow2.f32 %v1923_v13 }
 0x118   :  { %v1114_v43 = vpop.f32.mrf.mxu1 }
 0x119   :  { %v1113_v63 = vadd.f32 %v1112_v55, %v1064_v62  ;;  %v2844_v55 = vadd.f32 1.0, %v2108_v48 }
 0x11b   :  { %v1162_v0 = vadd.f32 %v1161_v46, %v1113_v63  ;;  %vm1217_vm2 = vweird.f32 %v2844_v55 }
 0x11c   :  { %v1016_v3 = vpop.f32.mrf.mxu3 }
 0x11d   :  { %v1017_v5 = vadd.f32 %v1016_v3, %v968_v30  ;;  %v1924_v45 = vmul.f32 -1.442695, %v1162_v0  ;;  %v2110_v24 = vpop.eup %2109 }
 0x11e   :  { %v1163_v6 = vpop.f32.mrf.mxu2  ;;  %v1068_v8 = vpop.f32.mrf.mxu0  ;;  %v2846_v60 = vadd.f32 1.0, %v2110_v24 }
 0x11f   :  { %v1066_v9 = vadd.f32 %v1065_v61, %v1017_v5  ;;  %2111 = vpow2.f32 %v1924_v45 }
 0x120   :  { %v1117_v54 = vpop.f32.mrf.mxu1  ;;  %vm1232_vm6 = vweird.f32 %v2846_v60 }
 0x121   :  { %v1115_v14 = vadd.f32 %v1114_v43, %v1066_v9 }
 0x123   :  { %v1164_v15 = vadd.f32 %v1163_v6, %v1115_v14 }
 0x124   :  { %v1019_v59 = vpop.f32.mrf.mxu3 }
 0x125   :  { %v1020_v11 = vadd.f32 %v1019_v59, %v2651_v44  ;;  %v1925_v61 = vmul.f32 -1.442695, %v1164_v15  ;;  %v2112_v63 = vpop.eup %2111 }
 0x126   :  { %v1166_v1 = vpop.f32.mrf.mxu2  ;;  %v1070_v20 = vpop.f32.mrf.mxu0  ;;  %v2852_v15 = vadd.f32 1.0, %v2112_v63  ;;  %v1236_v63 = vand.u32 2147483647, %v2846_v60 }
 0x127   :  { %v1069_v32 = vadd.f32 %v1068_v8, %v1020_v11 }
 0x128   :  { %v1119_v4 = vpop.f32.mrf.mxu1  ;;  %vm2924_vm8 = vcmp.eq.f32.partialorder %v1236_v63, 8.507059e+37  ;;  %vm1247_vm9 = vweird.f32 %v2852_v15 }
 0x129   :  { %v1118_v36 = vadd.f32 %v1117_v54, %v1069_v32 }
 0x12b   :  { %v1167_v22 = vadd.f32 %v1166_v1, %v1118_v36 }
 0x12c   :  { %v1021_v7 = vpop.f32.mrf.mxu3 }
 0x12d   :  { %v1022_v33 = vadd.f32 %v1021_v7, %v2682_v2  ;;  %v1926_v52 = vmul.f32 -1.442695, %v1167_v22 }
 0x12e   :  { %v1168_v21 = vpop.f32.mrf.mxu2  ;;  %v1073_v25 = vpop.f32.mrf.mxu0 }
 0x12f   :  { %v1071_v39 = vadd.f32 %v1070_v20, %v1022_v33  ;;  %2113 = vpow2.f32 %v1926_v52 }
 0x130   :  { %v1122_v27 = vpop.f32.mrf.mxu1  ;;  %2115 = vrcp.f32 %v2844_v55 }
 0x131   :  { %v1120_v44 = vadd.f32 %v1119_v4, %v1071_v39  ;;  %2117 = vrcp.f32 %v2846_v60 }
 0x132   :  { %2119 = vpow2.f32 %v1925_v61 }
 0x133   :  { %v1169_v19 = vadd.f32 %v1168_v21, %v1120_v44 }
 0x134   :  { %v1024_v28 = vpop.f32.mrf.mxu3 }
 0x135   :  { %v1025_v41 = vadd.f32 %v1024_v28, %v2690_v17  ;;  %v2114_v14 = vpop.eup %2113 }
 0x136   :  { %v1171_v29 = vpop.f32.mrf.mxu2  ;;  %v1075_v10 = vpop.f32.mrf.mxu0 }
 0x137   :  { %v1074_v51 = vadd.f32 %v1073_v25, %v1025_v41  ;;  %v2854_v59 = vpop.eup %2115  ;;  %v2858_v25 = vadd.f32 1.0, %v2114_v14  ;;  %v1238_v14 = vand.u32 2147483648, %v2846_v60 }
 0x138   :  { %v1124_v30 = vpop.f32.mrf.mxu1  ;;  %v2856_v4 = vpop.eup %2117  ;;  %vm1218_vm1 = vweird.f32 %v2854_v59 }
 0x139   :  { %v1123_v17 = vadd.f32 %v1122_v27, %v1074_v51  ;;  %v1213_v27 = vmul.f32 %v2854_v59, %v2844_v55  ;;  %v1228_v11 = vmul.f32 %v2856_v4, %v2846_v60  ;;  %vm1233_vm3 = vweird.f32 %v2856_v4  ;;  %vm2902_vm4 = vmor %vm1217_vm2, %vm1218_vm1 }
 0x13a   :  { %vm2920_vm7 = vmor %vm1232_vm6, %vm1233_vm3  ;;  %vm1293_vm12 = vweird.f32 %v2858_v25  ;;  %vm1461_vm6 = vcmask 130048  }
 0x13b   :  { %v1172_v0 = vadd.f32 %v1171_v29, %v1123_v17  ;;  %v1214_v36 = vsub.f32 1.0, %v1213_v27  ;;  %v1221_v17 = vand.u32 2147483647, %v2844_v55 }
 0x13c   :  { %v1026_v16 = vpop.f32.mrf.mxu3 }
 0x13d   :  { %v1027_v46 = vadd.f32 %v1026_v16, %v2721_v37  ;;  %v1928_v1 = vmul.f32 -1.442695, %v1172_v0  ;;  %vm2906_vm5 = vcmp.eq.f32.partialorder %v1221_v17, 8.507059e+37 }
 0x13e   :  { %v1173_v35 = vpop.f32.mrf.mxu2  ;;  %v1078_v38 = vpop.f32.mrf.mxu0 }
 0x13f   :  { %v1076_v3 = vadd.f32 %v1075_v10, %v1027_v46  ;;  %v1223_v46 = vand.u32 2147483648, %v2844_v55 }
 0x140   :  { %v1127_v40 = vpop.f32.mrf.mxu1 }
 0x141   :  { %v1125_v20 = vadd.f32 %v1124_v30, %v1076_v3 }
 0x143   :  { %v1174_v10 = vadd.f32 %v1173_v35, %v1125_v20 }
 0x144   :  { %v1029_v50 = vpop.f32.mrf.mxu3 }
 0x145   :  { %v1030_v42 = vadd.f32 %v1029_v50, %v2730_v49  ;;  %v1927_v49 = vmul.f32 -1.442695, %v1169_v19  ;;  %v1929_v41 = vmul.f32 -1.442695, %v1174_v10  ;;  %v1215_v50 = vmul.f32 %v2854_v59, %v1214_v36 }
 0x146   :  { %v1176_v2 = vpop.f32.mrf.mxu2  ;;  %v1080_v53 = vpop.f32.mrf.mxu0 }
 0x147   :  { %v1079_v57 = vadd.f32 %v1078_v38, %v1030_v42  ;;  %2121 = vpow2.f32 %v1927_v49 }
 0x148   :  { %v1129_v58 = vpop.f32.mrf.mxu1  ;;  %2123 = vrcp.f32 %v2852_v15 }
 0x149   :  { %v1128_v62 = vadd.f32 %v1127_v40, %v1079_v57  ;;  %2125 = vpow2.f32 %v1928_v1  ;;  %v1229_v40 = vsub.f32 1.0, %v1228_v11 }
 0x14b   :  { %v1177_v8 = vadd.f32 %v1176_v2, %v1128_v62  ;;  %v1230_v2 = vmul.f32 %v2856_v4, %v1229_v40  ;;  %v1216_v62 = vadd.f32 %v2854_v59, %v1215_v50 }
 0x14c   :  { %v1031_v43 = vpop.f32.mrf.mxu3 }
 0x14d   :  { %v1032_v5 = vadd.f32 %v1031_v43, %v2762_v18  ;;  %v1930_v7 = vmul.f32 -1.442695, %v1177_v8  ;;  %v2120_v18 = vpop.eup %2119  ;;  %v1231_v8 = vadd.f32 %v2856_v4, %v1230_v2 }
 0x14e   :  { %v1178_v6 = vpop.f32.mrf.mxu2  ;;  %v1083_v9 = vpop.f32.mrf.mxu0  ;;  %v2866_v33 = vadd.f32 1.0, %v2120_v18  ;;  %v1220_v18 = vsel %vm2902_vm4, %v2854_v59, %v1216_v62  ;;  %v1253_v59 = vand.u32 2147483648, %v2852_v15  ;;  %v1297_v62 = vand.u32 2147483647, %v2858_v25 }
 0x14f   :  { %v1081_v37 = vadd.f32 %v1080_v53, %v1032_v5  ;;  %v2122_v29 = vpop.eup %2121  ;;  %2127 = vpow2.f32 %v1930_v7 }
 0x150   :  { %v1132_v54 = vpop.f32.mrf.mxu1  ;;  %2129 = vrcp.f32 %v2858_v25  ;;  %v2869_v38 = vadd.f32 1.0, %v2122_v29  ;;  %v2871_v22 = vpop.eup %2123  ;;  %v1268_v55 = vand.u32 2147483648, %v2866_v33  ;;  %vm1298_vm15 = vcmp.eq.f32.partialorder %v1297_v62, 8.507059e+37 }
 0x151   :  { %v1130_v21 = vadd.f32 %v1129_v58, %v1081_v37  ;;  %2131 = vrcp.f32 %v2866_v33  ;;  %v1243_v52 = vmul.f32 %v2871_v22, %v2852_v15  ;;  %vm1248_vm10 = vweird.f32 %v2871_v22 }
 0x152   :  { %2133 = vrcp.f32 %v2869_v38  ;;  %vm2979_vm13 = vmor %vm1247_vm9, %vm1248_vm10  ;;  %vm1308_vm0 = vweird.f32 %v2869_v38  ;;  %vm1262_vm9 = vweird.f32 %v2866_v33 }
 0x153   :  { %v1179_v32 = vadd.f32 %v1178_v6, %v1130_v21  ;;  %2135 = vpow2.f32 %v1929_v41  ;;  %v1244_v3 = vsub.f32 1.0, %v1243_v52 }
 0x154   :  { %v1034_v28 = vpop.f32.mrf.mxu3 }
 0x155   :  { %v1035_v30 = vadd.f32 %v1034_v28, %v2768_v26  ;;  %v1931_v35 = vmul.f32 -1.442695, %v1179_v32  ;;  %v2126_v26 = vpop.eup %2125  ;;  %v1245_v60 = vmul.f32 %v2871_v22, %v1244_v3  ;;  %v1314_v3 = vand.u32 2147483648, %v2869_v38 }
 0x156   :  { %v1181_v12 = vpop.f32.mrf.mxu2  ;;  %v1085_v13 = vpop.f32.mrf.mxu0  ;;  %v2882_v53 = vadd.f32 1.0, %v2126_v26 }
 0x157   :  { %v1084_v16 = vadd.f32 %v1083_v9, %v1035_v30  ;;  %v2128_v44 = vpop.eup %2127  ;;  %2137 = vpow2.f32 %v1931_v35  ;;  %v1315_v11 = vor.u32 1.1754944e-38, %v1314_v3 }
 0x158   :  { %v1134_v39 = vpop.f32.mrf.mxu1  ;;  %v2876_v24 = vpop.eup %2129  ;;  %v2884_v57 = vadd.f32 1.0, %v2128_v44  ;;  %2139 = vrcp.f32 %v2882_v53  ;;  %v2954_v44 = vor.u32 1.1754944e-38, %v1253_v59  ;;  %v1428_v59 = vld [vmem:[%s3211_s3] sm:$0xff]  ;;  %vm1323_vm3 = vweird.f32 %v2882_v53 }
 0x159   :  { %v1133_v45 = vadd.f32 %v1132_v54, %v1084_v16  ;;  %v2892_v49 = vpop.eup %2131  ;;  %v1224_v54 = vor.u32 1.1754944e-38, %v1223_v46  ;;  %v1239_v16 = vor.u32 1.1754944e-38, %v1238_v14  ;;  %vm1294_vm11 = vweird.f32 %v2876_v24 }
 0x15a   :  { %v2897_v0 = vpop.eup %2133  ;;  %2141 = vrcp.f32 %v2884_v57  ;;  %v1258_v27 = vmul.f32 %v2892_v49, %v2866_v33  ;;  %vm2986_vm14 = vmor %vm1293_vm12, %vm1294_vm11  ;;  %vm1369_vm11 = vweird.f32 %v2884_v57 }
 0x15b   :  { %v1182_v19 = vadd.f32 %v1181_v12, %v1133_v45  ;;  %v2136_v9 = vpop.eup %2135  ;;  %v1304_v12 = vmul.f32 %v2897_v0, %v2869_v38  ;;  %vm1309_vm1 = vweird.f32 %v2897_v0 }
 0x15c   :  { %v1036_v48 = vpop.f32.mrf.mxu3  ;;  %v2929_v30 = vadd.f32 1.0, %v2136_v9  ;;  %v1259_v35 = vsub.f32 1.0, %v1258_v27  ;;  %v1266_v9 = vand.u32 2147483647, %v2866_v33  ;;  %vm3033_vm4 = vmor %vm1308_vm0, %vm1309_vm1 }
 0x15d   :  { %v1037_v51 = vadd.f32 %v1036_v48, %v2798_v47  ;;  %v1289_v47 = vmul.f32 %v2876_v24, %v2858_v25  ;;  %v1932_v5 = vmul.f32 -1.442695, %v1182_v19  ;;  %v2138_v1 = vpop.eup %2137  ;;  %v1299_v48 = vand.u32 2147483648, %v2858_v25 }
 0x15e   :  { %v1183_v42 = vpop.f32.mrf.mxu2  ;;  %v1088_v61 = vpop.f32.mrf.mxu0  ;;  %v2937_v32 = vadd.f32 1.0, %v2138_v1  ;;  %v1260_v63 = vmul.f32 %v2892_v49, %v1259_v35 }
 0x15f   :  { %v1086_v58 = vadd.f32 %v1085_v13, %v1037_v51  ;;  %v1290_v20 = vsub.f32 1.0, %v1289_v47  ;;  %2143 = vpow2.f32 %v1932_v5  ;;  %v2941_v13 = vsel %vm2906_vm5, %v1224_v54, %v1220_v18  ;;  %v2943_v36 = vpop.eup %2139 }
 0x160   :  { %v1137_v6 = vpop.f32.mrf.mxu1  ;;  %v2948_v41 = vpop.eup %2141  ;;  %2145 = vrcp.f32 %v2929_v30  ;;  %v2959_v51 = vadd.f32 %v2871_v22, %v1245_v60  ;;  %v1319_v19 = vmul.f32 %v2943_v36, %v2882_v53  ;;  %v1300_v18 = vor.u32 1.1754944e-38, %v1299_v48 }
 0x161   :  { %v1135_v43 = vadd.f32 %v1134_v39, %v1086_v58  ;;  %v1291_v39 = vmul.f32 %v2876_v24, %v1290_v20  ;;  %2147 = vrcp.f32 %v2937_v32  ;;  %v1365_v58 = vmul.f32 %v2948_v41, %v2884_v57 }
 0x162   :  { %v1320_v14 = vsub.f32 1.0, %v1319_v19  ;;  %v1329_v19 = vand.u32 2147483648, %v2882_v53  ;;  %vm1324_vm5 = vweird.f32 %v2943_v36 }
 0x163   :  { %v1184_v7 = vadd.f32 %v1183_v42, %v1135_v43  ;;  %v1305_v42 = vsub.f32 1.0, %v1304_v12  ;;  %v1292_v17 = vadd.f32 %v2876_v24, %v1291_v39  ;;  %v1366_v1 = vsub.f32 1.0, %v1365_v58  ;;  %vm3061_vm10 = vmor %vm1323_vm3, %vm1324_vm5 }
 0x164   :  { %v1039_v21 = vpop.f32.mrf.mxu3  ;;  %v1321_v12 = vmul.f32 %v2943_v36, %v1320_v14  ;;  %v1373_v14 = vand.u32 2147483647, %v2884_v57  ;;  %vm1384_vm3 = vweird.f32 %v2937_v32 }
 0x165   :  { %v1040_v28 = vadd.f32 %v1039_v21, %v2802_v56  ;;  %v1235_v56 = vsel %vm2920_vm7, %v2856_v4, %v1231_v8  ;;  %v1933_v40 = vmul.f32 -1.442695, %v1184_v7  ;;  %v1251_v4 = vand.u32 2147483647, %v2852_v15  ;;  %v2144_v52 = vpop.eup %2143 }
 0x166   :  { %v1186_v29 = vpop.f32.mrf.mxu2  ;;  %v2952_v26 = vsel %vm2924_vm8, %v1239_v16, %v1235_v56  ;;  %v1090_v50 = vpop.f32.mrf.mxu0  ;;  %v1306_v25 = vmul.f32 %v2897_v0, %v1305_v42  ;;  %v2991_v37 = vadd.f32 1.0, %v2144_v52  ;;  %v1296_v20 = vsel %vm2986_vm14, %v2876_v24, %v1292_v17 }
 0x167   :  { %v1089_v45 = vadd.f32 %v1088_v61, %v1040_v28  ;;  %2149 = vpow2.f32 %v1933_v40  ;;  %v2994_v54 = vpop.eup %2145  ;;  %v1250_v7 = vsel %vm2979_vm13, %v2871_v22, %v2959_v51  ;;  %v3006_v28 = vadd.f32 %v2892_v49, %v1260_v63 }
 0x168   :  { %v1139_v46 = vpop.f32.mrf.mxu1  ;;  %v3003_v21 = vpop.eup %2147  ;;  %v1301_v10 = vsel %vm1298_vm15, %v1300_v18, %v1296_v20  ;;  %v1307_v60 = vadd.f32 %v2897_v0, %v1306_v25  ;;  %v1334_v16 = vmul.f32 %v2994_v54, %v2929_v30  ;;  %v1367_v39 = vmul.f32 %v2948_v41, %v1366_v1  ;;  %v1429_v20 = vld [vmem:[%s3211_s3 + $0x8] sm:$0xff] }
 0x169   :  { %v1138_v2 = vadd.f32 %v1137_v6, %v1089_v45  ;;  %v1312_v6 = vand.u32 2147483647, %v2869_v38  ;;  %v1380_v48 = vmul.f32 %v3003_v21, %v2937_v32  ;;  %v1432_v58 = vmul.f32 %v1428_v59, %v1301_v10 }
 0x16a   :  { %v1335_v38 = vsub.f32 1.0, %v1334_v16  ;;  %v1322_v63 = vadd.f32 %v2943_v36, %v1321_v12  ;;  %vm1263_vm7 = vweird.f32 %v2892_v49  ;;  %v1368_v3 = vadd.f32 %v2948_v41, %v1367_v39 }
 0x16b   :  { %v1187_v61 = vadd.f32 %v1186_v29, %v1138_v2  ;;  %vm3010_vm2 = vcmp.eq.f32.partialorder %v1312_v6, 8.507059e+37  ;;  %vm1370_vm8 = vweird.f32 %v2948_v41  ;;  %v1330_v6 = vor.u32 1.1754944e-38, %v1329_v19  ;;  %vm3125_vm5 = vmor %vm1262_vm9, %vm1263_vm7 }
 0x16c   :  { %v1041_v47 = vpop.f32.mrf.mxu3  ;;  %vm3074_vm12 = vcmp.eq.f32.partialorder %v1251_v4, 8.507059e+37  ;;  %vm3085_vm15 = vmor %vm1369_vm11, %vm1370_vm8  ;;  %v1326_v4 = vsel %vm3061_vm10, %v2943_v36, %v1322_v63  ;;  %v1344_v10 = vand.u32 2147483648, %v2929_v30  ;;  %vm1339_vm0 = vweird.f32 %v2994_v54 }
 0x16d   :  { %v1042_v43 = vadd.f32 %v1041_v47, %v2832_v23  ;;  %2151 = vtanh.f32 %v1187_v61  ;;  %v2150_v29 = vpop.eup %2149  ;;  %v1327_v47 = vand.u32 2147483647, %v2882_v53  ;;  %v1372_v59 = vsel %vm3085_vm15, %v2948_v41, %v1368_v3 }
 0x16e   :  { %v1188_v5 = vpop.f32.mrf.mxu2  ;;  %2153 = vrcp.f32 %v2991_v37  ;;  %v1093_v40 = vpop.f32.mrf.mxu0  ;;  %vm1374_vm1 = vcmp.eq.f32.partialorder %v1373_v14, 8.507059e+37  ;;  %vm1338_vm8 = vweird.f32 %v2929_v30  ;;  %v1269_v8 = vor.u32 1.1754944e-38, %v1268_v55 }
 0x16f   :  { %v1091_v27 = vadd.f32 %v1090_v50, %v1042_v43  ;;  %v3026_v50 = vadd.f32 1.0, %v2150_v29  ;;  %vm3078_vm14 = vcmp.eq.f32.partialorder %v1327_v47, 8.507059e+37  ;;  %vm3150_vm7 = vmor %vm1338_vm8, %vm1339_vm0  ;;  %v1403_v53 = vand.u32 2147483647, %v2991_v37 }
 0x170   :  { %v1331_v36 = vsel %vm3078_vm14, %v1330_v6, %v1326_v4  ;;  %v1255_v6 = vsel %vm3074_vm12, %v2954_v44, %v1250_v7  ;;  %vm1399_vm12 = vweird.f32 %v2991_v37  ;;  %vm1267_vm14 = vcmp.eq.f32.partialorder %v1266_v9, 8.507059e+37 }
 0x171   :  { %v1140_v56 = vadd.f32 %v1139_v46, %v1091_v27  ;;  %v1142_v46 = vpop.f32.mrf.mxu1  ;;  %v1336_v27 = vmul.f32 %v2994_v54, %v1335_v38  ;;  %vm1404_vm0 = vcmp.eq.f32.partialorder %v1403_v53, 8.507059e+37 }
 0x173   :  { %v2152_v45 = vpop.eup %2151  ;;  %v1189_v42 = vadd.f32 %v1188_v5, %v1140_v56  ;;  %v1381_v5 = vsub.f32 1.0, %v1380_v48  ;;  %v1337_v52 = vadd.f32 %v2994_v54, %v1336_v27 }
 0x174   :  { %v1044_v35 = vpop.f32.mrf.mxu3  ;;  %v1436_v17 = vmul.f32 %v2152_v45, %v2941_v13  ;;  %v3046_v13 = vpop.eup %2153 }
 0x175   :  { %v1045_v2 = vadd.f32 %v1044_v35, %v2836_v31  ;;  %v1311_v31 = vsel %vm3033_vm4, %v2897_v0, %v1307_v60  ;;  %2155 = vtanh.f32 %v1189_v42  ;;  %v1375_v0 = vand.u32 2147483648, %v2884_v57 }
 0x176   :  { %v1440_v61 = vadd.f32 %v1436_v17, %v1432_v58  ;;  %v1191_v43 = vpop.f32.mrf.mxu2  ;;  %2157 = vrcp.f32 %v3026_v50  ;;  %v1316_v1 = vsel %vm3010_vm2, %v1315_v11, %v1311_v31  ;;  %v1395_v29 = vmul.f32 %v3046_v13, %v2991_v37 }
 0x177   :  { %v1094_v62 = vadd.f32 %v1093_v40, %v1045_v2  ;;  %v1382_v56 = vmul.f32 %v3003_v21, %v1381_v5  ;;  %v1376_v12 = vor.u32 1.1754944e-38, %v1375_v0  ;;  %v1433_v16 = vmul.f32 %v1429_v20, %v1316_v1  ;;  %v1095_v40 = vpop.f32.mrf.mxu0 }
 0x178   :  { %2159 = vtanh.f32 %v1440_v61  ;;  %1462 = vst.msk [vmem:[%s3212_s5] sm:$0xff] %vm1461_vm6, %v1440_v61  ;;  %v1396_v42 = vsub.f32 1.0, %v1395_v29  ;;  %vm1385_vm2 = vweird.f32 %v3003_v21  ;;  %v1390_v17 = vand.u32 2147483648, %v2937_v32 }
 0x179   :  { %v1143_v23 = vadd.f32 %v1142_v46, %v1094_v62  ;;  %v1377_v48 = vsel %vm1374_vm1, %v1376_v12, %v1372_v59  ;;  %vm1456_vm4 = vcmask 125952   ;;  %v1430_v46 = vld [vmem:[%s3211_s3 + $0x10] sm:$0xff]  ;;  %v1388_v31 = vand.u32 2147483647, %v2937_v32  ;;  %vm3134_vm10 = vmor %vm1384_vm3, %vm1385_vm2 }
 0x17a   :  { %v1397_v5 = vmul.f32 %v3046_v13, %v1396_v42  ;;  %v1342_v0 = vand.u32 2147483647, %v2929_v30  ;;  %v1434_v22 = vmul.f32 %v1430_v46, %v1331_v36  ;;  %v1391_v44 = vor.u32 1.1754944e-38, %v1390_v17 }
 0x17b   :  { %v1192_v15 = vadd.f32 %v1191_v43, %v1143_v23  ;;  %v2156_v24 = vpop.eup %2155  ;;  %v1265_v30 = vsel %vm3125_vm5, %v2892_v49, %v3006_v28  ;;  %v1341_v7 = vsel %vm3150_vm7, %v2994_v54, %v1337_v52  ;;  %vm1389_vm13 = vcmp.eq.f32.partialorder %v1388_v31, 8.507059e+37  ;;  %v1431_v54 = vld [vmem:[%s3211_s3 + $0x18] sm:$0xff] }
 0x17c   :  { %v1046_v11 = vpop.f32.mrf.mxu3  ;;  %v1437_v39 = vmul.f32 %v2156_v24, %v2952_v26  ;;  %v3101_v35 = vpop.eup %2157  ;;  %v1383_v26 = vadd.f32 %v3003_v21, %v1382_v56  ;;  %v1398_v18 = vadd.f32 %v3046_v13, %v1397_v5  ;;  %vm1400_vm9 = vweird.f32 %v3046_v13 }
 0x17d   :  { %v1047_v60 = vadd.f32 %v1046_v11, %v2838_v34  ;;  %2161 = vtanh.f32 %v1192_v15  ;;  %v1144_v34 = vpop.f32.mrf.mxu1  ;;  %v1410_v38 = vmul.f32 %v3101_v35, %v3026_v50  ;;  %vm1343_vm11 = vcmp.eq.f32.partialorder %v1342_v0, 8.507059e+37  ;;  %vm1401_vm15 = vmor %vm1399_vm12, %vm1400_vm9 }
 0x17e   :  { %v2160_v41 = vpop.eup %2159  ;;  %v1441_v2 = vadd.f32 %v1437_v39, %v1433_v16  ;;  %v1193_v47 = vpop.f32.mrf.mxu2  ;;  %v1387_v23 = vsel %vm3134_vm10, %v3003_v21, %v1383_v26  ;;  %v1345_v21 = vor.u32 1.1754944e-38, %v1344_v10  ;;  %v1405_v49 = vand.u32 2147483648, %v2991_v37 }
 0x17f   :  { %v1096_v45 = vadd.f32 %v1095_v40, %v1047_v60  ;;  %v1448_v19 = vmul.f32 %v2160_v41, %v1377_v48  ;;  %v1411_v25 = vsub.f32 1.0, %v1410_v38  ;;  %v1392_v20 = vsel %vm1389_vm13, %v1391_v44, %v1387_v23 }
 0x180   :  { %2163 = vtanh.f32 %v1441_v2  ;;  %1463 = vst.msk [vmem:[%s3212_s5 + $0x8] sm:$0xff] %vm1461_vm6, %v1441_v2  ;;  %v1346_v55 = vsel %vm1343_vm11, %v1345_v21, %v1341_v7  ;;  %v1270_v15 = vsel %vm1267_vm14, %v1269_v8, %v1265_v30  ;;  %v1402_v4 = vsel %vm1401_vm15, %v3046_v13, %v1398_v18 }
 0x181   :  { %v1145_v58 = vadd.f32 %v1144_v34, %v1096_v45  ;;  %v1452_v61 = vpack.c.bf16 %v1448_v19, %v1448_v19  ;;  %v1412_v57 = vmul.f32 %v3101_v35, %v1411_v25  ;;  %v1435_v11 = vmul.f32 %v1431_v54, %v1346_v55 }
 0x182   :  { %v1406_v10 = vor.u32 1.1754944e-38, %v1405_v49  ;;  %vm1415_vm1 = vweird.f32 %v3101_v35  ;;  %v1420_v56 = vand.u32 2147483648, %v3026_v50  ;;  %vm1414_vm2 = vweird.f32 %v3026_v50 }
 0x183   :  { %v1194_v62 = vadd.f32 %v1193_v47, %v1145_v58  ;;  %v2162_v63 = vpop.eup %2161  ;;  %1457 = vst.msk [vmem:[%s3213_s4] sm:$0xf] %vm1456_vm4, %v1452_v61  ;;  %v1413_v59 = vadd.f32 %v3101_v35, %v1412_v57  ;;  %v1418_v13 = vand.u32 2147483647, %v3026_v50  ;;  %vm1416_vm3 = vmor %vm1414_vm2, %vm1415_vm1 }
 0x184   :  { %v1438_v51 = vmul.f32 %v2162_v63, %v1255_v6  ;;  %v1407_v9 = vsel %vm1404_vm0, %v1406_v10, %v1402_v4  ;;  %v1421_v39 = vor.u32 1.1754944e-38, %v1420_v56 }
 0x185   :  { %2165 = vtanh.f32 %v1194_v62  ;;  %v1417_v16 = vsel %vm1416_vm3, %v3101_v35, %v1413_v59  ;;  %vm1419_vm5 = vcmp.eq.f32.partialorder %v1418_v13, 8.507059e+37 }
 0x186   :  { %v1442_v14 = vadd.f32 %v1438_v51, %v1434_v22  ;;  %v2164_v1 = vpop.eup %2163  ;;  %v1422_v36 = vsel %vm1419_vm5, %v1421_v39, %v1417_v16 }
 0x187   :  { %v1449_v28 = vmul.f32 %v2164_v1, %v1392_v20 }
 0x188   :  { %2167 = vtanh.f32 %v1442_v14  ;;  %1464 = vst.msk [vmem:[%s3212_s5 + $0x10] sm:$0xff] %vm1461_vm6, %v1442_v14 }
 0x189   :  { %v1453_v29 = vpack.c.bf16 %v1449_v28, %v1449_v28 }
 0x18b   :  { %v2166_v27 = vpop.eup %2165  ;;  %1458 = vst.msk [vmem:[%s3213_s4 + $0x4] sm:$0xf] %vm1456_vm4, %v1453_v29 }
 0x18c   :  { %v1439_v24 = vmul.f32 %v2166_v27, %v1270_v15 }
 0x18e   :  { %v1443_v37 = vadd.f32 %v1439_v24, %v1435_v11  ;;  %v2168_v33 = vpop.eup %2167 }
 0x18f   :  { %v1450_v60 = vmul.f32 %v2168_v33, %v1407_v9 }
 0x190   :  { %2169 = vtanh.f32 %v1443_v37  ;;  %1465 = vst.msk [vmem:[%s3212_s5 + $0x18] sm:$0xff] %vm1461_vm6, %v1443_v37 }
 0x191   :  { %v1454_v12 = vpack.c.bf16 %v1450_v60, %v1450_v60 }
 0x193   :  { %1459 = vst.msk [vmem:[%s3213_s4 + $0x8] sm:$0xf] %vm1456_vm4, %v1454_v12 }
 0x196   :  { %v2170_v40 = vpop.eup %2169 }
 0x197   :  { %v1451_v45 = vmul.f32 %v2170_v40, %v1422_v36 }
 0x199   :  { %v1455_v41 = vpack.c.bf16 %v1451_v45, %v1451_v45 }
 0x19b   :  { %1460 = vst.msk [vmem:[%s3213_s4 + $0xc] sm:$0xf] %vm1456_vm4, %v1455_v41 }

// kernel: bires_center_lstm_forward.24
= control target key start
LH: loop header
LB: loop body
LE: loop exit
PB: predicated region body
PF: predicated region fallthrough
CT: control target
= control target key end

     0   :  { %v167_v1 = vmov 0   ;;  %vm85_vm0 = vcmask 523264   ;;  %vm119_vm1 = vcmask 125952   ;;  %s234_s1 = inlined_call_operand.vmem [shape: bf16[64,16], index: 1, kind: input, shape index: {}]   ;;  %s235_s2 = inlined_call_operand.vmem [shape: f32[32,1], index: 2, kind: input, shape index: {}]   ;;  %s236_s0 = inlined_call_operand.vmem [shape: bf16[32,64], index: 0, kind: input, shape index: {}]   ;;  %s237_s3 = inlined_call_operand.vmem [shape: bf16[32,16], index: 3, kind: output, shape index: {}]  }
   0x1   :  { %v159_v0 = vld [vmem:[%s234_s1 + $0x18] sm:$0xff]  ;;  %166 = vset.pattern.permute.xlu1 %v167_v1  ;;  %165 = vset.pattern.permute.xlu0 %v167_v1  ;;  %v158_v2 = vld [vmem:[%s234_s1 + $0x10] sm:$0xff]  ;;  %v27_v4 = vld [vmem:[%s235_s2] sm:$0xff] }
   0x2   :  { %96 = vmatpush.bf16.msra.mxu0 %v159_v0  ;;  %160 = vmatpush.bf16.msra.mxu1 %v159_v0  ;;  %v29_v3 = vld [vmem:[%s235_s2 + $0x10] sm:$0xff]  ;;  %v157_v5 = vld [vmem:[%s234_s1 + $0x8] sm:$0xff]  ;;  %v30_v6 = vld [vmem:[%s235_s2 + $0x18] sm:$0xff] }
   0x3   :  { %43 = vperm.xlu1 %166, %v29_v3   ;;  %33 = vperm.xlu0 %165, %v27_v4   ;;  %v28_v7 = vld [vmem:[%s235_s2 + $0x8] sm:$0xff]  ;;  %v156_v8 = vld [vmem:[%s234_s1] sm:$0xff] }
   0x4   :  { %v154_v9 = vld [vmem:[%s236_s0] sm:$0xff]  ;;  %v155_v10 = vld [vmem:[%s236_s0 + $0x8] sm:$0xff] }
   0x6   :  { %97 = vmatpush.bf16.msra.mxu0 %v158_v2  ;;  %161 = vmatpush.bf16.msra.mxu1 %v158_v2 }
   0xa   :  { %98 = vmatpush.bf16.msra.mxu0 %v157_v5  ;;  %162 = vmatpush.bf16.msra.mxu1 %v157_v5 }
   0xb   :  { %48 = vperm.xlu1 %166, %v30_v6   ;;  %38 = vperm.xlu0 %165, %v28_v7  }
   0xe   :  { %99 = vmatpush.bf16.msra.mxu0 %v156_v8  ;;  %163 = vmatpush.bf16.msra.mxu1 %v156_v8 }
  0x11   :  { %152 = vmatmul.msk.bf16.vlgmr.msra.gmra.mxu0 %vm85_vm0, %v154_v9  ;;  %153 = vmatmul.msk.bf16.vlgmr.msra.gmra.mxu1 %vm85_vm0, %v155_v10 }
  0x75   :  { %v44_v11 = vpop.permute.xlu1 %43  ;;  %v34_v12 = vpop.permute.xlu0 %33 }
  0x7d   :  { %v49_v21 = vpop.permute.xlu1 %48  ;;  %v39_v22 = vpop.permute.xlu0 %38 }
  0x8e   :  { %v101_v13 = vpop.f32.mrf.mxu0  ;;  %v106_v14 = vpop.f32.mrf.mxu1 }
  0x8f   :  { %v102_v15 = vadd.f32 %v101_v13, %v34_v12  ;;  %v107_v16 = vadd.f32 %v106_v14, %v44_v11 }
  0x91   :  { %v111_v17 = vmax.f32 %v102_v15, 0.0  ;;  %v113_v18 = vmax.f32 %v107_v16, 0.0 }
  0x93   :  { %v115_v19 = vpack.c.bf16 %v111_v17, %v111_v17  ;;  %v117_v20 = vpack.c.bf16 %v113_v18, %v113_v18 }
  0x95   :  { %120 = vst.msk [vmem:[%s237_s3] sm:$0xf] %vm119_vm1, %v115_v19 }
  0x96   :  { %122 = vst.msk [vmem:[%s237_s3 + $0x8] sm:$0xf] %vm119_vm1, %v117_v20  ;;  %v103_v23 = vpop.f32.mrf.mxu0  ;;  %v108_v24 = vpop.f32.mrf.mxu1 }
  0x97   :  { %v104_v25 = vadd.f32 %v103_v23, %v39_v22  ;;  %v109_v26 = vadd.f32 %v108_v24, %v49_v21 }
  0x99   :  { %v112_v27 = vmax.f32 %v104_v25, 0.0  ;;  %v114_v28 = vmax.f32 %v109_v26, 0.0 }
  0x9b   :  { %v116_v29 = vpack.c.bf16 %v112_v27, %v112_v27  ;;  %v118_v30 = vpack.c.bf16 %v114_v28, %v114_v28 }
  0x9d   :  { %121 = vst.msk [vmem:[%s237_s3 + $0x4] sm:$0xf] %vm119_vm1, %v116_v29 }
  0x9e   :  { %123 = vst.msk [vmem:[%s237_s3 + $0xc] sm:$0xf] %vm119_vm1, %v118_v30 }

// kernel: bires_center_lstm_forward.23
= control target key start
LH: loop header
LB: loop body
LE: loop exit
PB: predicated region body
PF: predicated region fallthrough
CT: control target
= control target key end

     0   :  { %s3249_s0 = inlined_call_operand.vmem [shape: bf16[128,864], index: 0, kind: input, shape index: {}]   ;;  %s3250_s1 = inlined_call_operand.vmem [shape: bf16[864,16], index: 1, kind: input, shape index: {}]   ;;  %s3251_s2 = inlined_call_operand.vmem [shape: bf16[128,16], index: 2, kind: input, shape index: {}]   ;;  %s3252_s3 = inlined_call_operand.vmem [shape: f32[32,16], index: 3, kind: input, shape index: {}]   ;;  %s3253_s4 = inlined_call_operand.vmem [shape: bf16[32,16], index: 4, kind: output, shape index: {0}]   ;;  %s3254_s5 = inlined_call_operand.hbm [shape: f32[32,16], index: 5, kind: output, shape index: {1}]  }
   0x1   :  { %v2012_v0 = vld [vmem:[%s3250_s1 + $0x38] sm:$0xff]  ;;  %v2011_v3 = vld [vmem:[%s3250_s1 + $0x30] sm:$0xff]  ;;  %v2010_v6 = vld [vmem:[%s3250_s1 + $0x28] sm:$0xff] }
   0x2   :  { %v2254_v1 = vld [vmem:[%s3250_s1 + $0xb8] sm:$0xff]  ;;  %854 = vmatpush.bf16.msra.mxu0 %v2012_v0  ;;  %2098 = vmatpush.bf16.msra.mxu3 %v2012_v0  ;;  %v2269_v4 = vld [vmem:[%s3250_s1 + $0xb0] sm:$0xff]  ;;  %v2284_v7 = vld [vmem:[%s3250_s1 + $0xa8] sm:$0xff] }
   0x3   :  { %v2259_v2 = vld [vmem:[%s3250_s1 + $0x78] sm:$0xff]  ;;  %2114 = vmatpush.bf16.msra.mxu2 %v2254_v1  ;;  %v2274_v5 = vld [vmem:[%s3250_s1 + $0x70] sm:$0xff]  ;;  %v2289_v8 = vld [vmem:[%s3250_s1 + $0x68] sm:$0xff] }
   0x4   :  { %2106 = vmatpush.bf16.msra.mxu1 %v2259_v2  ;;  %v2009_v9 = vld [vmem:[%s3250_s1 + $0x20] sm:$0xff] }
   0x5   :  { %v2299_v10 = vld [vmem:[%s3250_s1 + $0xa0] sm:$0xff] }
   0x6   :  { %855 = vmatpush.bf16.msra.mxu0 %v2011_v3  ;;  %2099 = vmatpush.bf16.msra.mxu3 %v2011_v3  ;;  %v2304_v11 = vld [vmem:[%s3250_s1 + $0x60] sm:$0xff] }
   0x7   :  { %2115 = vmatpush.bf16.msra.mxu2 %v2269_v4 }
   0x8   :  { %2107 = vmatpush.bf16.msra.mxu1 %v2274_v5 }
   0xa   :  { %856 = vmatpush.bf16.msra.mxu0 %v2010_v6  ;;  %2100 = vmatpush.bf16.msra.mxu3 %v2010_v6 }
   0xb   :  { %2116 = vmatpush.bf16.msra.mxu2 %v2284_v7 }
   0xc   :  { %2108 = vmatpush.bf16.msra.mxu1 %v2289_v8 }
   0xd   :  { %11 = vsyncpa [#allocation3], 0  ;;  %v2008_v12 = vld [vmem:[%s3250_s1 + $0x18] sm:$0xff]  ;;  %v2007_v15 = vld [vmem:[%s3250_s1 + $0x10] sm:$0xff]  ;;  %vm829_vm0 = vcmask 785408   ;;  %s2215_s18 = smov [#allocation2]  }
   0xe   :  { %857 = vmatpush.bf16.msra.mxu0 %v2009_v9  ;;  %2101 = vmatpush.bf16.msra.mxu3 %v2009_v9  ;;  %v2314_v13 = vld [vmem:[%s3250_s1 + $0x98] sm:$0xff]  ;;  %v2329_v16 = vld [vmem:[%s3250_s1 + $0x90] sm:$0xff]  ;;  %v2006_v18 = vld [vmem:[%s3250_s1 + $0x8] sm:$0xff]  ;;  %s3220_s19 = sshll.u32 %s2215_s18, 4  ;;  %s1475_s22 = sshll.u32 %s3254_s5, 4  ;;  %s1474_s19 = int_to_ptr.vmem [resolvable:$true] %s3220_s19  ;;  %s1476_s22 = int_to_ptr.hbm [resolvable:$true] %s1475_s22 }
   0xf   :  { %2117 = vmatpush.bf16.msra.mxu2 %v2299_v10  ;;  %v2319_v14 = vld [vmem:[%s3250_s1 + $0x58] sm:$0xff]  ;;  %v2334_v17 = vld [vmem:[%s3250_s1 + $0x50] sm:$0xff]  ;;  %v2344_v19 = vld [vmem:[%s3250_s1 + $0x88] sm:$0xff]  ;;  %s2216_s5 = smov 128   ;;  %s2217_s24 = smov 8  }
  0x10   :  { %2109 = vmatpush.bf16.msra.mxu1 %v2304_v11  ;;  %v2349_v20 = vld [vmem:[%s3250_s1 + $0x48] sm:$0xff]  ;;  %v2005_v21 = vld [vmem:[%s3250_s1] sm:$0xff]  ;;  %v1952_v25 = vld [vmem:[%s3249_s0 + $0x18] sm:$0xf0] }
  0x11   :  { %v2357_v22 = vld [vmem:[%s3250_s1 + $0x80] sm:$0xff]  ;;  %v1547_v26 = vld [vmem:[%s3249_s0 + $0x70] sm:$0xf]  ;;  %v1966_v27 = vld [vmem:[%s3249_s0 + $0x88] sm:$0xf0] }
  0x12   :  { %858 = vmatpush.bf16.msra.mxu0 %v2008_v12  ;;  %2102 = vmatpush.bf16.msra.mxu3 %v2008_v12  ;;  %v2362_v23 = vld [vmem:[%s3250_s1 + $0x40] sm:$0xff]  ;;  %v1555_v28 = vld [vmem:[%s3249_s0 + $0x78] sm:$0xf]  ;;  %v1967_v29 = vld [vmem:[%s3249_s0 + $0x90] sm:$0xf0]  ;;  %v1548_v34 = vor.u32 %v1966_v27, %v1547_v26 }
  0x13   :  { %2118 = vmatpush.bf16.msra.mxu2 %v2314_v13  ;;  %v1491_v24 = vld [vmem:[%s3249_s0] sm:$0xf]  ;;  %v1963_v30 = vld [vmem:[%s3249_s0 + $0x74] sm:$0xf]  ;;  %v1549_v31 = vld [vmem:[%s3249_s0 + $0x8c] sm:$0xf0]  ;;  %v1556_v35 = vor.u32 %v1967_v29, %v1555_v28 }
  0x14   :  { %2110 = vmatpush.bf16.msra.mxu1 %v2319_v14  ;;  %v2036_v32 = vld [vmem:[%s3250_s1 + $0xf8] sm:$0xff]  ;;  %v1492_v33 = vor.u32 %v1952_v25, %v1491_v24  ;;  %v1552_v36 = vor.u32 %v1963_v30, %v1549_v31  ;;  %v2058_v37 = vld [vmem:[%s3250_s1 + $0x1a8] sm:$0xff]  ;;  %v2035_v39 = vld [vmem:[%s3250_s1 + $0xf0] sm:$0xff] }
  0x15   :  { %v2052_v38 = vld [vmem:[%s3250_s1 + $0x178] sm:$0xff]  ;;  %v2051_v40 = vld [vmem:[%s3250_s1 + $0x170] sm:$0xff]  ;;  %v2057_v41 = vld [vmem:[%s3250_s1 + $0x1a0] sm:$0xff] }
  0x16   :  { %859 = vmatpush.bf16.msra.mxu0 %v2007_v15  ;;  %2103 = vmatpush.bf16.msra.mxu3 %v2007_v15  ;;  %v2034_v42 = vld [vmem:[%s3250_s1 + $0xe8] sm:$0xff]  ;;  %v2056_v44 = vld [vmem:[%s3250_s1 + $0x198] sm:$0xff]  ;;  %v2033_v45 = vld [vmem:[%s3250_s1 + $0xe0] sm:$0xff] }
  0x17   :  { %2119 = vmatpush.bf16.msra.mxu2 %v2329_v16  ;;  %v2050_v43 = vld [vmem:[%s3250_s1 + $0x168] sm:$0xff]  ;;  %v1519_v46 = vld [vmem:[%s3249_s0 + $0x38] sm:$0xf]  ;;  %v1959_v47 = vld [vmem:[%s3249_s0 + $0x50] sm:$0xf0] }
  0x18   :  { %2111 = vmatpush.bf16.msra.mxu1 %v2334_v17  ;;  %v1575_v48 = vld [vmem:[%s3249_s0 + $0xa8] sm:$0xf]  ;;  %v1973_v49 = vld [vmem:[%s3249_s0 + $0xc0] sm:$0xf0]  ;;  %v1583_v50 = vld [vmem:[%s3249_s0 + $0xb0] sm:$0xf]  ;;  %v1520_v55 = vor.u32 %v1959_v47, %v1519_v46 }
  0x19   :  { %v1974_v51 = vld [vmem:[%s3249_s0 + $0xc8] sm:$0xf0]  ;;  %v1577_v53 = vld [vmem:[%s3249_s0 + $0xc4] sm:$0xf0]  ;;  %v2049_v54 = vld [vmem:[%s3250_s1 + $0x160] sm:$0xff]  ;;  %v1576_v56 = vor.u32 %v1973_v49, %v1575_v48 }
  0x1a   :  { %860 = vmatpush.bf16.msra.mxu0 %v2006_v18  ;;  %2104 = vmatpush.bf16.msra.mxu3 %v2006_v18  ;;  %v1970_v52 = vld [vmem:[%s3249_s0 + $0xac] sm:$0xf]  ;;  %v1584_v57 = vor.u32 %v1974_v51, %v1583_v50  ;;  %v2032_v59 = vld [vmem:[%s3250_s1 + $0xd8] sm:$0xff]  ;;  %v2055_v60 = vld [vmem:[%s3250_s1 + $0x190] sm:$0xff] }
  0x1b   :  { %2120 = vmatpush.bf16.msra.mxu2 %v2344_v19  ;;  %v1580_v58 = vor.u32 %v1970_v52, %v1577_v53  ;;  %v2048_v61 = vld [vmem:[%s3250_s1 + $0x158] sm:$0xff]  ;;  %v2031_v62 = vld [vmem:[%s3250_s1 + $0xd0] sm:$0xff]  ;;  %v1603_v63 = vld [vmem:[%s3249_s0 + $0xe0] sm:$0xf] }
  0x1c   :  { %2112 = vmatpush.bf16.msra.mxu1 %v2349_v20  ;;  %v1980_v0 = vld [vmem:[%s3249_s0 + $0xf8] sm:$0xf0]  ;;  %v1493_v3 = vld [vmem:[%s3249_s0 + $0x1c] sm:$0xf0]  ;;  %v1981_v6 = vld [vmem:[%s3249_s0 + $0x100] sm:$0xf0] }
  0x1d   :  { %v1605_v9 = vld [vmem:[%s3249_s0 + $0xfc] sm:$0xf0]  ;;  %v2054_v18 = vld [vmem:[%s3250_s1 + $0x188] sm:$0xff]  ;;  %v1988_v24 = vld [vmem:[%s3249_s0 + $0x138] sm:$0xf0] }
  0x1e   :  { %861 = vmatpush.bf16.msra.mxu0 %v2005_v21  ;;  %2105 = vmatpush.bf16.msra.mxu3 %v2005_v21  ;;  %v1987_v21 = vld [vmem:[%s3249_s0 + $0x130] sm:$0xf0]  ;;  %v1984_v25 = vld [vmem:[%s3249_s0 + $0x11c] sm:$0xf]  ;;  %v1633_v26 = vld [vmem:[%s3249_s0 + $0x134] sm:$0xf0] }
  0x1f   :  { %2121 = vmatpush.bf16.msra.mxu2 %v2357_v22  ;;  %v1636_v30 = vor.u32 %v1984_v25, %v1633_v26  ;;  %v2029_v31 = vld [vmem:[%s3250_s1 + $0xc0] sm:$0xff]  ;;  %v2040_v46 = vld [vmem:[%s3250_s1 + $0x118] sm:$0xff]  ;;  %v1687_v47 = vld [vmem:[%s3249_s0 + $0x188] sm:$0xf] }
  0x20   :  { %2113 = vmatpush.bf16.msra.mxu1 %v2362_v23  ;;  %v2001_v48 = vld [vmem:[%s3249_s0 + $0x1a0] sm:$0xf0]  ;;  %v1527_v49 = vld [vmem:[%s3249_s0 + $0x40] sm:$0xf]  ;;  %v1960_v50 = vld [vmem:[%s3249_s0 + $0x58] sm:$0xf0] }
  0x21   :  { %862 = vmatmul.bf16.vlgmr.msra.gmra.mxu0 %v1492_v33  ;;  %872 = vmatmul.bf16.vlgmr.msra.gmra.mxu3 %v1548_v34  ;;  %v2045_v33 = vld [vmem:[%s3250_s1 + $0x140] sm:$0xff]  ;;  %v1994_v34 = vld [vmem:[%s3249_s0 + $0x168] sm:$0xf0]  ;;  %v1695_v51 = vld [vmem:[%s3249_s0 + $0x190] sm:$0xf] }
  0x22   :  { %1001 = vmatpush.bf16.msrb.mxu3 %v2036_v32  ;;  %903 = vmatpush.bf16.msrb.mxu0 %v2259_v2  ;;  %v1949_v2 = vld [vmem:[%s3249_s0 + $0x4] sm:$0xf]  ;;  %v2002_v52 = vld [vmem:[%s3249_s0 + $0x1a8] sm:$0xf0] }
  0x23   :  { %970 = vmatmul.bf16.vlgmr.msra.gmra.mxu2 %v1556_v35  ;;  %921 = vmatmul.bf16.vlgmr.msra.gmra.mxu1 %v1552_v36  ;;  %v1496_v12 = vor.u32 %v1949_v2, %v1493_v3  ;;  %v2053_v32 = vld [vmem:[%s3250_s1 + $0x180] sm:$0xff]  ;;  %v1667_v36 = vld [vmem:[%s3249_s0 + $0x158] sm:$0xf]  ;;  %v1998_v53 = vld [vmem:[%s3249_s0 + $0x18c] sm:$0xf] }
  0x24   :  { %1150 = vmatpush.bf16.msrb.mxu2 %v2058_v37  ;;  %1099 = vmatpush.bf16.msrb.mxu1 %v2052_v38  ;;  %v1953_v35 = vld [vmem:[%s3249_s0 + $0x20] sm:$0xf0]  ;;  %v1995_v37 = vld [vmem:[%s3249_s0 + $0x170] sm:$0xf0]  ;;  %v1954_v2 = vld [vmem:[%s3249_s0 + $0x28] sm:$0xf0] }
  0x25   :  { %v1991_v38 = vld [vmem:[%s3249_s0 + $0x154] sm:$0xf]  ;;  %v1515_v3 = vld [vmem:[%s3249_s0 + $0x18] sm:$0xf] }
  0x26   :  { %904 = vmatpush.bf16.msrb.mxu0 %v2274_v5  ;;  %1002 = vmatpush.bf16.msrb.mxu3 %v2035_v39  ;;  %v1611_v5 = vld [vmem:[%s3249_s0 + $0xe8] sm:$0xf]  ;;  %v1661_v39 = vld [vmem:[%s3249_s0 + $0x16c] sm:$0xf0] }
  0x28   :  { %1100 = vmatpush.bf16.msrb.mxu1 %v2051_v40  ;;  %1151 = vmatpush.bf16.msrb.mxu2 %v2057_v41  ;;  %v2043_v40 = vld [vmem:[%s3250_s1 + $0x130] sm:$0xff] }
  0x2a   :  { %905 = vmatpush.bf16.msrb.mxu0 %v2289_v8  ;;  %1003 = vmatpush.bf16.msrb.mxu3 %v2034_v42  ;;  %v1977_v8 = vld [vmem:[%s3249_s0 + $0xe4] sm:$0xf] }
  0x2b   :  { %v1608_v15 = vor.u32 %v1977_v8, %v1605_v9  ;;  %v1509_v8 = vld [vmem:[%s3249_s0 + $0x2c] sm:$0xf0] }
  0x2c   :  { %1101 = vmatpush.bf16.msrb.mxu1 %v2050_v43  ;;  %1152 = vmatpush.bf16.msrb.mxu2 %v2056_v44  ;;  %v1664_v43 = vor.u32 %v1991_v38, %v1661_v39  ;;  %v2042_v44 = vld [vmem:[%s3250_s1 + $0x128] sm:$0xff] }
  0x2e   :  { %906 = vmatpush.bf16.msrb.mxu0 %v2304_v11  ;;  %1004 = vmatpush.bf16.msrb.mxu3 %v2033_v45  ;;  %v1604_v11 = vor.u32 %v1980_v0, %v1603_v63  ;;  %v2041_v45 = vld [vmem:[%s3250_s1 + $0x120] sm:$0xff]  ;;  %v1501_v63 = vld [vmem:[%s3249_s0 + $0x24] sm:$0xf0]  ;;  %v1507_v0 = vld [vmem:[%s3249_s0 + $0x10] sm:$0xf] }
  0x30   :  { %1102 = vmatpush.bf16.msrb.mxu1 %v2049_v54  ;;  %1153 = vmatpush.bf16.msrb.mxu2 %v2055_v60  ;;  %v1689_v54 = vld [vmem:[%s3249_s0 + $0x1a4] sm:$0xf0] }
  0x31   :  { %867 = vmatmul.bf16.gmra.mxu0 %v1520_v55  ;;  %877 = vmatmul.bf16.gmra.mxu3 %v1576_v56  ;;  %v2039_v55 = vld [vmem:[%s3250_s1 + $0x110] sm:$0xff]  ;;  %v1688_v56 = vor.u32 %v2001_v48, %v1687_v47  ;;  %v2038_v60 = vld [vmem:[%s3250_s1 + $0x108] sm:$0xff]  ;;  %v1591_v48 = vld [vmem:[%s3249_s0 + $0xb8] sm:$0xf] }
  0x32   :  { %907 = vmatpush.bf16.msrb.mxu0 %v2319_v14  ;;  %1005 = vmatpush.bf16.msrb.mxu3 %v2032_v59  ;;  %v1612_v14 = vor.u32 %v1981_v6, %v1611_v5  ;;  %v1692_v59 = vor.u32 %v1998_v53, %v1689_v54  ;;  %v1955_v5 = vld [vmem:[%s3249_s0 + $0x30] sm:$0xf0]  ;;  %v1585_v47 = vld [vmem:[%s3249_s0 + $0xcc] sm:$0xf0]  ;;  %v1593_v53 = vld [vmem:[%s3249_s0 + $0xd4] sm:$0xf0] }
  0x33   :  { %975 = vmatmul.bf16.gmra.mxu2 %v1584_v57  ;;  %926 = vmatmul.bf16.gmra.mxu1 %v1580_v58  ;;  %v1528_v57 = vor.u32 %v1960_v50, %v1527_v49  ;;  %v1696_v58 = vor.u32 %v2002_v52, %v1695_v51  ;;  %v1951_v6 = vld [vmem:[%s3249_s0 + $0x14] sm:$0xf]  ;;  %v1599_v50 = vld [vmem:[%s3249_s0 + $0xc0] sm:$0xf]  ;;  %v1976_v51 = vld [vmem:[%s3249_s0 + $0xd8] sm:$0xf0] }
  0x34   :  { %1103 = vmatpush.bf16.msrb.mxu1 %v2048_v61  ;;  %1154 = vmatpush.bf16.msrb.mxu2 %v2054_v18  ;;  %v2037_v61 = vld [vmem:[%s3250_s1 + $0x100] sm:$0xff]  ;;  %v1535_v18 = vld [vmem:[%s3249_s0 + $0x48] sm:$0xf]  ;;  %v1975_v49 = vld [vmem:[%s3249_s0 + $0xd0] sm:$0xf0] }
  0x35   :  { %v1972_v52 = vld [vmem:[%s3249_s0 + $0xbc] sm:$0xf] }
  0x36   :  { %908 = vmatpush.bf16.msrb.mxu0 %v2334_v17  ;;  %1006 = vmatpush.bf16.msrb.mxu3 %v2031_v62  ;;  %v2047_v17 = vld [vmem:[%s3250_s1 + $0x150] sm:$0xff]  ;;  %v1950_v62 = vld [vmem:[%s3249_s0 + $0xc] sm:$0xf] }
  0x37   :  { %v1504_v9 = vor.u32 %v1950_v62, %v1501_v63  ;;  %v2093_v62 = vld [vmem:[%s3251_s2 + $0x18] sm:$0xff]  }
  0x38   :  { %1104 = vmatpush.bf16.msrb.mxu1 %v2047_v17  ;;  %1155 = vmatpush.bf16.msrb.mxu2 %v2053_v32  ;;  %v1529_v17 = vld [vmem:[%s3249_s0 + $0x5c] sm:$0xf0]  ;;  %v1965_v32 = vld [vmem:[%s3249_s0 + $0x84] sm:$0xf] }
  0x3a   :  { %909 = vmatpush.bf16.msrb.mxu0 %v2349_v20  ;;  %v1631_v20 = vld [vmem:[%s3249_s0 + $0x118] sm:$0xf] }
  0x3b   :  { %v1632_v27 = vor.u32 %v1987_v21, %v1631_v20  ;;  %v1543_v20 = vld [vmem:[%s3249_s0 + $0x50] sm:$0xf]  ;;  %v1962_v21 = vld [vmem:[%s3249_s0 + $0x68] sm:$0xf0] }
  0x3c   :  { %v1544_v25 = vor.u32 %v1962_v21, %v1543_v20  ;;  %v1613_v20 = vld [vmem:[%s3249_s0 + $0x104] sm:$0xf0]  ;;  %v1619_v21 = vld [vmem:[%s3249_s0 + $0xf0] sm:$0xf] }
  0x3e   :  { %910 = vmatpush.bf16.msrb.mxu0 %v2362_v23  ;;  %v1521_v23 = vld [vmem:[%s3249_s0 + $0x54] sm:$0xf0] }
  0x41   :  { %882 = vmatmul.bf16.gmra.mxu3 %v1604_v11  ;;  %911 = vmatmul.bf16.vlgmr.msrb.gmra.mxu0 %v1496_v12  ;;  %v1508_v11 = vor.u32 %v1954_v2, %v1507_v0  ;;  %v1516_v12 = vor.u32 %v1955_v5, %v1515_v3  ;;  %v2073_v3 = vunpack.c.l.bf16 %v2093_v62 }
  0x42   :  { %952 = vmatpush.bf16.msra.mxu0 %v2254_v1  ;;  %v2030_v1 = vld [vmem:[%s3250_s1 + $0xc8] sm:$0xff] }
  0x43   :  { %980 = vmatmul.bf16.gmra.mxu2 %v1612_v14  ;;  %931 = vmatmul.bf16.gmra.mxu1 %v1608_v15  ;;  %v1512_v14 = vor.u32 %v1951_v6, %v1509_v8  ;;  %v1957_v15 = vld [vmem:[%s3249_s0 + $0x44] sm:$0xf] }
  0x44   :  { %1007 = vmatpush.bf16.msrb.mxu3 %v2030_v1  ;;  %v1961_v1 = vld [vmem:[%s3249_s0 + $0x60] sm:$0xf0] }
  0x46   :  { %953 = vmatpush.bf16.msra.mxu0 %v2269_v4  ;;  %v1956_v4 = vld [vmem:[%s3249_s0 + $0x3c] sm:$0xf] }
  0x47   :  { %v1524_v28 = vor.u32 %v1956_v4, %v1521_v23  ;;  %v1958_v4 = vld [vmem:[%s3249_s0 + $0x4c] sm:$0xf]  ;;  %v1537_v23 = vld [vmem:[%s3249_s0 + $0x64] sm:$0xf0] }
  0x48   :  { %1008 = vmatpush.bf16.msrb.mxu3 %v2029_v31  ;;  %v1540_v26 = vor.u32 %v1958_v4, %v1537_v23  ;;  %v1969_v31 = vld [vmem:[%s3249_s0 + $0xa0] sm:$0xf0]  ;;  %v1982_v4 = vld [vmem:[%s3249_s0 + $0x108] sm:$0xf0]  ;;  %v1627_v23 = vld [vmem:[%s3249_s0 + $0xf8] sm:$0xf] }
  0x4a   :  { %954 = vmatpush.bf16.msra.mxu0 %v2284_v7  ;;  %v1639_v7 = vld [vmem:[%s3249_s0 + $0x120] sm:$0xf] }
  0x4b   :  { %v1640_v29 = vor.u32 %v1988_v24, %v1639_v7  ;;  %v1532_v7 = vor.u32 %v1957_v15, %v1529_v17  ;;  %v1536_v24 = vor.u32 %v1961_v1, %v1535_v18  ;;  %v2074_v18 = vunpack.c.h.bf16 %v2093_v62  ;;  %v1978_v1 = vld [vmem:[%s3249_s0 + $0xec] sm:$0xf] }
  0x4e   :  { %955 = vmatpush.bf16.msra.mxu0 %v2299_v10  ;;  %v2046_v10 = vld [vmem:[%s3250_s1 + $0x148] sm:$0xff] }
  0x4f   :  { %1105 = vmatpush.bf16.msrb.mxu1 %v2046_v10  ;;  %v1571_v10 = vld [vmem:[%s3249_s0 + $0x88] sm:$0xf] }
  0x51   :  { %887 = vmatmul.bf16.gmra.mxu3 %v1632_v27  ;;  %916 = vmatmul.bf16.gmra.mxu0 %v1524_v28  ;;  %v1964_v27 = vld [vmem:[%s3249_s0 + $0x7c] sm:$0xf]  ;;  %v1557_v28 = vld [vmem:[%s3249_s0 + $0x94] sm:$0xf0] }
  0x52   :  { %956 = vmatpush.bf16.msra.mxu0 %v2314_v13  ;;  %v2044_v13 = vld [vmem:[%s3250_s1 + $0x138] sm:$0xff] }
  0x53   :  { %985 = vmatmul.bf16.gmra.mxu2 %v1640_v29  ;;  %936 = vmatmul.bf16.gmra.mxu1 %v1636_v30  ;;  %v1563_v29 = vld [vmem:[%s3249_s0 + $0x80] sm:$0xf]  ;;  %v1968_v30 = vld [vmem:[%s3249_s0 + $0x98] sm:$0xf0] }
  0x54   :  { %1106 = vmatpush.bf16.msrb.mxu1 %v2045_v33  ;;  %v1560_v33 = vor.u32 %v1964_v27, %v1557_v28 }
  0x56   :  { %957 = vmatpush.bf16.msra.mxu0 %v2329_v16  ;;  %v1659_v16 = vld [vmem:[%s3249_s0 + $0x150] sm:$0xf] }
  0x57   :  { %v1660_v41 = vor.u32 %v1994_v34, %v1659_v16  ;;  %v1564_v16 = vor.u32 %v1968_v30, %v1563_v29  ;;  %v1616_v30 = vor.u32 %v1978_v1, %v1613_v20 }
  0x5a   :  { %958 = vmatpush.bf16.msra.mxu0 %v2344_v19  ;;  %v1499_v19 = vld [vmem:[%s3249_s0 + $0x8] sm:$0xf] }
  0x5b   :  { %v1500_v42 = vor.u32 %v1953_v35, %v1499_v19  ;;  %v1572_v19 = vor.u32 %v1969_v31, %v1571_v10  ;;  %v1620_v10 = vor.u32 %v1982_v4, %v1619_v21 }
  0x5e   :  { %959 = vmatpush.bf16.msra.mxu0 %v2357_v22  ;;  %v1668_v22 = vor.u32 %v1995_v37, %v1667_v36  ;;  %v2092_v36 = vld [vmem:[%s3251_s2 + $0x10] sm:$0xff]  }
  0x5f   :  { %v2069_v38 = vunpack.c.l.bf16 %v2092_v36 }
  0x61   :  { %892 = vmatmul.bf16.gmra.mxu3 %v1660_v41  ;;  %960 = vmatmul.bf16.vlgmr.msra.gmra.mxu0 %v1500_v42 }
  0x62   :  { %1050 = vmatpush.bf16.msrb.mxu0 %v2044_v13  ;;  %v1565_v13 = vld [vmem:[%s3249_s0 + $0x9c] sm:$0xf0] }
  0x63   :  { %990 = vmatmul.bf16.gmra.mxu2 %v1668_v22  ;;  %941 = vmatmul.bf16.gmra.mxu1 %v1664_v43  ;;  %v1568_v35 = vor.u32 %v1965_v32, %v1565_v13 }
  0x66   :  { %1051 = vmatpush.bf16.msrb.mxu0 %v2043_v40 }
  0x6a   :  { %1052 = vmatpush.bf16.msrb.mxu0 %v2042_v44 }
  0x6e   :  { %1053 = vmatpush.bf16.msrb.mxu0 %v2041_v45  ;;  %v2070_v45 = vunpack.c.h.bf16 %v2092_v36 }
  0x71   :  { %897 = vmatmul.bf16.gmra.mxu3 %v1688_v56  ;;  %965 = vmatmul.bf16.gmra.mxu0 %v1528_v57 }
  0x72   :  { %1054 = vmatpush.bf16.msrb.mxu0 %v2040_v46  ;;  %v1971_v46 = vld [vmem:[%s3249_s0 + $0xb4] sm:$0xf] }
  0x73   :  { %995 = vmatmul.bf16.gmra.mxu2 %v1696_v58  ;;  %946 = vmatmul.bf16.gmra.mxu1 %v1692_v59  ;;  %v1588_v57 = vor.u32 %v1971_v46, %v1585_v47  ;;  %v1592_v58 = vor.u32 %v1975_v49, %v1591_v48 }
  0x76   :  { %1055 = vmatpush.bf16.msrb.mxu0 %v2039_v55 }
  0x7a   :  { %1056 = vmatpush.bf16.msrb.mxu0 %v2038_v60  ;;  %v1600_v60 = vor.u32 %v1976_v51, %v1599_v50  ;;  %v1985_v51 = vld [vmem:[%s3249_s0 + $0x124] sm:$0xf] }
  0x7e   :  { %1057 = vmatpush.bf16.msrb.mxu0 %v2037_v61  ;;  %v1596_v61 = vor.u32 %v1972_v52, %v1593_v53  ;;  %v1647_v52 = vld [vmem:[%s3249_s0 + $0x128] sm:$0xf]  ;;  %v1989_v53 = vld [vmem:[%s3249_s0 + $0x140] sm:$0xf0] }
  0x81   :  { %1009 = vmatmul.bf16.vlgmr.msrb.gmra.mxu3 %v1504_v9  ;;  %1058 = vmatmul.bf16.vlgmr.msrb.gmra.mxu0 %v1508_v11  ;;  %v2060_v9 = vld [vmem:[%s3251_s2] sm:$0xff]  }
  0x82   :  { %v2061_v15 = vunpack.c.l.bf16 %v2060_v9  ;;  %v2062_v36 = vunpack.c.h.bf16 %v2060_v9 }
  0x83   :  { %1929 = vmatmul.msk.bf16.vlgmr.msrb.gmra.mxu2 %vm829_vm0, %v1516_v12  ;;  %1107 = vmatmul.bf16.vlgmr.msrb.gmra.mxu1 %v1512_v14 }
  0x91   :  { %1014 = vmatmul.bf16.gmra.mxu3 %v1532_v7  ;;  %1063 = vmatmul.bf16.gmra.mxu0 %v1536_v24  ;;  %v1983_v7 = vld [vmem:[%s3249_s0 + $0x110] sm:$0xf0] }
  0x92   :  { %v1979_v24 = vld [vmem:[%s3249_s0 + $0xf4] sm:$0xf]  ;;  %v1628_v32 = vor.u32 %v1983_v7, %v1627_v23 }
  0x93   :  { %1930 = vmatmul.msk.bf16.gmra.mxu2 %vm829_vm0, %v1544_v25  ;;  %1112 = vmatmul.bf16.gmra.mxu1 %v1540_v26  ;;  %v1621_v25 = vld [vmem:[%s3249_s0 + $0x10c] sm:$0xf0] }
  0x94   :  { %v1624_v13 = vor.u32 %v1979_v24, %v1621_v25 }
  0x9e   :  { %v863_v34 = vpop.f32.mrf.mxu0 }
  0x9f   :  { %v864_v27 = vadd.f32 %v2061_v15, %v863_v34 }
  0xa0   :  { %v922_v37 = vpop.f32.mrf.mxu1 }
  0xa1   :  { %1019 = vmatmul.bf16.gmra.mxu3 %v1560_v33  ;;  %1068 = vmatmul.bf16.gmra.mxu0 %v1564_v16  ;;  %v2094_v33 = vld [vmem:[%s3251_s2 + $0x20] sm:$0xff]  }
  0xa2   :  { %v2077_v34 = vunpack.c.l.bf16 %v2094_v33  ;;  %v2078_v50 = vunpack.c.h.bf16 %v2094_v33 }
  0xa3   :  { %1931 = vmatmul.msk.bf16.gmra.mxu2 %vm829_vm0, %v1572_v19  ;;  %1117 = vmatmul.bf16.gmra.mxu1 %v1568_v35 }
  0xa4   :  { %v873_v39 = vpop.f32.mrf.mxu3 }
  0xa5   :  { %v874_v40 = vadd.f32 %v2069_v38, %v873_v39 }
  0xa6   :  { %v971_v41 = vpop.f32.mrf.mxu2  ;;  %v2696_v42 = vpop.f32.mrf.mxu0 }
  0xa7   :  { %v923_v22 = vadd.f32 %v922_v37, %v874_v40  ;;  %v866_v39 = vadd.f32 %v2062_v36, %v2696_v42  ;;  %v1641_v42 = vld [vmem:[%s3249_s0 + $0x13c] sm:$0xf0] }
  0xa8   :  { %v924_v43 = vpop.f32.mrf.mxu1 }
  0xa9   :  { %v2698_v44 = vadd.f32 %v971_v41, %v923_v22  ;;  %v2091_v22 = vld [vmem:[%s3251_s2 + $0x8] sm:$0xff]  }
  0xaa   :  { %v2065_v48 = vunpack.c.l.bf16 %v2091_v22  ;;  %v2066_v15 = vunpack.c.h.bf16 %v2091_v22 }
  0xac   :  { %v875_v54 = vpop.f32.mrf.mxu3 }
  0xad   :  { %v876_v55 = vadd.f32 %v2070_v45, %v875_v54  ;;  %v1655_v54 = vld [vmem:[%s3249_s0 + $0x130] sm:$0xf] }
  0xae   :  { %v973_v56 = vpop.f32.mrf.mxu2  ;;  %v2724_v59 = vpop.f32.mrf.mxu0 }
  0xaf   :  { %v925_v63 = vadd.f32 %v924_v43, %v876_v55  ;;  %v1990_v55 = vld [vmem:[%s3249_s0 + $0x148] sm:$0xf0] }
  0xb0   :  { %v927_v0 = vpop.f32.mrf.mxu1 }
  0xb1   :  { %v2729_v2 = vadd.f32 %v973_v56, %v925_v63  ;;  %1024 = vmatmul.bf16.gmra.mxu3 %v1588_v57  ;;  %1073 = vmatmul.bf16.gmra.mxu0 %v1592_v58  ;;  %v1986_v56 = vld [vmem:[%s3249_s0 + $0x12c] sm:$0xf]  ;;  %v1649_v57 = vld [vmem:[%s3249_s0 + $0x144] sm:$0xf0]  ;;  %v1644_v63 = vor.u32 %v1985_v51, %v1641_v42 }
  0xb3   :  { %1932 = vmatmul.msk.bf16.gmra.mxu2 %vm829_vm0, %v1600_v60  ;;  %1122 = vmatmul.bf16.gmra.mxu1 %v1596_v61  ;;  %v869_v60 = vadd.f32 %v2065_v48, %v2724_v59 }
  0xb4   :  { %v878_v5 = vpop.f32.mrf.mxu3 }
  0xb5   :  { %v879_v6 = vadd.f32 %v2073_v3, %v878_v5  ;;  %v1656_v5 = vor.u32 %v1990_v55, %v1655_v54 }
  0xb6   :  { %v976_v8 = vpop.f32.mrf.mxu2  ;;  %v2735_v11 = vpop.f32.mrf.mxu0 }
  0xb7   :  { %v928_v12 = vadd.f32 %v927_v0, %v879_v6  ;;  %v1648_v0 = vor.u32 %v1989_v53, %v1647_v52  ;;  %v1652_v6 = vor.u32 %v1986_v56, %v1649_v57  ;;  %v871_v20 = vadd.f32 %v2066_v15, %v2735_v11  ;;  %v1675_v11 = vld [vmem:[%s3249_s0 + $0x160] sm:$0xf]  ;;  %v1999_v57 = vld [vmem:[%s3249_s0 + $0x194] sm:$0xf] }
  0xb8   :  { %v929_v14 = vpop.f32.mrf.mxu1 }
  0xb9   :  { %v2737_v17 = vadd.f32 %v976_v8, %v928_v12  ;;  %v2095_v8 = vld [vmem:[%s3251_s2 + $0x28] sm:$0xff]  }
  0xba   :  { %v2081_v59 = vunpack.c.l.bf16 %v2095_v8 }
  0xbc   :  { %v880_v26 = vpop.f32.mrf.mxu3 }
  0xbd   :  { %v881_v28 = vadd.f32 %v2074_v18, %v880_v26 }
  0xbe   :  { %v978_v29 = vpop.f32.mrf.mxu2  ;;  %v912_v31 = vpop.f32.mrf.mxu0 }
  0xbf   :  { %v930_v16 = vadd.f32 %v929_v14, %v881_v28  ;;  %v2766_v19 = vadd.f32 %v912_v31, %v864_v27  ;;  %v2082_v27 = vunpack.c.h.bf16 %v2095_v8  ;;  %v1992_v28 = vld [vmem:[%s3249_s0 + $0x15c] sm:$0xf]  ;;  %v1997_v31 = vld [vmem:[%s3249_s0 + $0x180] sm:$0xf0] }
  0xc0   :  { %v932_v35 = vpop.f32.mrf.mxu1 }
  0xc1   :  { %v2768_v37 = vadd.f32 %v978_v29, %v930_v16  ;;  %1029 = vmatmul.bf16.gmra.mxu3 %v1616_v30  ;;  %1078 = vmatmul.bf16.gmra.mxu0 %v1620_v10  ;;  %v1669_v29 = vld [vmem:[%s3249_s0 + $0x174] sm:$0xf0]  ;;  %v1996_v30 = vld [vmem:[%s3249_s0 + $0x178] sm:$0xf0]  ;;  %v1683_v10 = vld [vmem:[%s3249_s0 + $0x168] sm:$0xf] }
  0xc2   :  { %v1672_v36 = vor.u32 %v1992_v28, %v1669_v29 }
  0xc3   :  { %1933 = vmatmul.msk.bf16.gmra.mxu2 %vm829_vm0, %v1628_v32  ;;  %1127 = vmatmul.bf16.gmra.mxu1 %v1624_v13  ;;  %v1993_v32 = vld [vmem:[%s3249_s0 + $0x164] sm:$0xf]  ;;  %v1677_v13 = vld [vmem:[%s3249_s0 + $0x17c] sm:$0xf0] }
  0xc4   :  { %v883_v38 = vpop.f32.mrf.mxu3 }
  0xc5   :  { %v884_v40 = vadd.f32 %v2077_v34, %v883_v38  ;;  %v1676_v34 = vor.u32 %v1996_v30, %v1675_v11 }
  0xc6   :  { %v981_v41 = vpop.f32.mrf.mxu2  ;;  %v914_v43 = vpop.f32.mrf.mxu0 }
  0xc7   :  { %v933_v45 = vadd.f32 %v932_v35, %v884_v40  ;;  %v2775_v46 = vadd.f32 %v914_v43, %v866_v39  ;;  %v1684_v39 = vor.u32 %v1997_v31, %v1683_v10  ;;  %v1680_v40 = vor.u32 %v1993_v32, %v1677_v13 }
  0xc8   :  { %v934_v47 = vpop.f32.mrf.mxu1 }
  0xc9   :  { %v2777_v49 = vadd.f32 %v981_v41, %v933_v45  ;;  %v2096_v41 = vld [vmem:[%s3251_s2 + $0x30] sm:$0xff]  }
  0xca   :  { %v2085_v48 = vunpack.c.l.bf16 %v2096_v41 }
  0xcc   :  { %v885_v58 = vpop.f32.mrf.mxu3 }
  0xcd   :  { %v886_v61 = vadd.f32 %v2078_v50, %v885_v58  ;;  %v1697_v58 = vld [vmem:[%s3249_s0 + $0x1ac] sm:$0xf0] }
  0xce   :  { %v983_v62 = vpop.f32.mrf.mxu2  ;;  %v917_v3 = vpop.f32.mrf.mxu0  ;;  %v1700_v8 = vor.u32 %v1999_v57, %v1697_v58 }
  0xcf   :  { %v935_v9 = vadd.f32 %v934_v47, %v886_v61  ;;  %v2807_v12 = vadd.f32 %v917_v3, %v869_v60  ;;  %v1703_v60 = vld [vmem:[%s3249_s0 + $0x198] sm:$0xf]  ;;  %v1711_v61 = vld [vmem:[%s3249_s0 + $0x1a0] sm:$0xf] }
  0xd0   :  { %v937_v14 = vpop.f32.mrf.mxu1 }
  0xd1   :  { %v2809_v18 = vadd.f32 %v983_v62, %v935_v9  ;;  %1034 = vmatmul.bf16.gmra.mxu3 %v1644_v63  ;;  %1083 = vmatmul.bf16.gmra.mxu0 %v1648_v0  ;;  %v2004_v62 = vld [vmem:[%s3249_s0 + $0x1b8] sm:$0xf0]  ;;  %v1705_v0 = vld [vmem:[%s3249_s0 + $0x1b4] sm:$0xf0] }
  0xd2   :  { %v2000_v63 = vld [vmem:[%s3249_s0 + $0x19c] sm:$0xf]  ;;  %v1712_v15 = vor.u32 %v2004_v62, %v1711_v61 }
  0xd3   :  { %1934 = vmatmul.msk.bf16.gmra.mxu2 %vm829_vm0, %v1656_v5  ;;  %1132 = vmatmul.bf16.gmra.mxu1 %v1652_v6 }
  0xd4   :  { %v888_v1 = vpop.f32.mrf.mxu3 }
  0xd5   :  { %v889_v21 = vadd.f32 %v2081_v59, %v888_v1  ;;  %v1708_v59 = vor.u32 %v2000_v63, %v1705_v0  ;;  %v2097_v1 = vld [vmem:[%s3251_s2 + $0x38] sm:$0xff]  }
  0xd6   :  { %v986_v4 = vpop.f32.mrf.mxu2  ;;  %v919_v23 = vpop.f32.mrf.mxu0 }
  0xd7   :  { %v938_v7 = vadd.f32 %v937_v14, %v889_v21  ;;  %v2813_v24 = vadd.f32 %v919_v23, %v871_v20 }
  0xd8   :  { %v939_v25 = vpop.f32.mrf.mxu1 }
  0xd9   :  { %v2815_v26 = vadd.f32 %v986_v4, %v938_v7  ;;  %v2089_v7 = vunpack.c.l.bf16 %v2097_v1 }
  0xdc   :  { %v890_v33 = vpop.f32.mrf.mxu3 }
  0xdd   :  { %v891_v16 = vadd.f32 %v2082_v27, %v890_v33 }
  0xde   :  { %v988_v35 = vpop.f32.mrf.mxu2  ;;  %v961_v38 = vpop.f32.mrf.mxu0 }
  0xdf   :  { %v940_v22 = vadd.f32 %v939_v25, %v891_v16  ;;  %v962_v43 = vadd.f32 %v961_v38, %v2766_v19  ;;  %v2086_v19 = vunpack.c.h.bf16 %v2096_v41 }
  0xe0   :  { %v942_v45 = vpop.f32.mrf.mxu1 }
  0xe1   :  { %v2845_v47 = vadd.f32 %v988_v35, %v940_v22  ;;  %1039 = vmatmul.bf16.gmra.mxu3 %v1672_v36  ;;  %1088 = vmatmul.bf16.gmra.mxu0 %v1676_v34 }
  0xe3   :  { %1935 = vmatmul.msk.bf16.gmra.mxu2 %vm829_vm0, %v1684_v39  ;;  %1137 = vmatmul.bf16.gmra.mxu1 %v1680_v40 }
  0xe4   :  { %v893_v50 = vpop.f32.mrf.mxu3 }
  0xe5   :  { %v894_v51 = vadd.f32 %v2085_v48, %v893_v50 }
  0xe6   :  { %v991_v42 = vpop.f32.mrf.mxu2  ;;  %v963_v52 = vpop.f32.mrf.mxu0 }
  0xe7   :  { %v943_v53 = vadd.f32 %v942_v45, %v894_v51  ;;  %v964_v54 = vadd.f32 %v963_v52, %v2775_v46  ;;  %v2003_v46 = vld [vmem:[%s3249_s0 + $0x1b0] sm:$0xf0] }
  0xe8   :  { %v944_v55 = vpop.f32.mrf.mxu1  ;;  %v1704_v9 = vor.u32 %v2003_v46, %v1703_v60 }
  0xe9   :  { %v2849_v56 = vadd.f32 %v991_v42, %v943_v53 }
  0xec   :  { %v895_v3 = vpop.f32.mrf.mxu3 }
  0xed   :  { %v896_v5 = vadd.f32 %v2086_v19, %v895_v3 }
  0xee   :  { %v993_v6 = vpop.f32.mrf.mxu2  ;;  %v966_v14 = vpop.f32.mrf.mxu0 }
  0xef   :  { %v945_v20 = vadd.f32 %v944_v55, %v896_v5  ;;  %v967_v21 = vadd.f32 %v966_v14, %v2807_v12  ;;  %v2090_v12 = vunpack.c.h.bf16 %v2097_v1 }
  0xf0   :  { %v947_v4 = vpop.f32.mrf.mxu1 }
  0xf1   :  { %v2879_v23 = vadd.f32 %v993_v6, %v945_v20  ;;  %1044 = vmatmul.bf16.gmra.mxu3 %v1700_v8  ;;  %1093 = vmatmul.bf16.gmra.mxu0 %v1704_v9 }
  0xf3   :  { %1936 = vmatmul.msk.bf16.gmra.mxu2 %vm829_vm0, %v1712_v15  ;;  %1142 = vmatmul.bf16.gmra.mxu1 %v1708_v59 }
  0xf4   :  { %v898_v25 = vpop.f32.mrf.mxu3 }
  0xf5   :  { %v899_v27 = vadd.f32 %v2089_v7, %v898_v25 }
  0xf6   :  { %v996_v28 = vpop.f32.mrf.mxu2  ;;  %v968_v29 = vpop.f32.mrf.mxu0 }
  0xf7   :  { %v948_v11 = vadd.f32 %v947_v4, %v899_v27  ;;  %v969_v30 = vadd.f32 %v968_v29, %v2813_v24 }
  0xf8   :  { %v949_v10 = vpop.f32.mrf.mxu1 }
  0xf9   :  { %v2883_v31 = vadd.f32 %v996_v28, %v948_v11 }
  0xfc   :  { %v900_v32 = vpop.f32.mrf.mxu3 }
  0xfd   :  { %v901_v13 = vadd.f32 %v2090_v12, %v900_v32 }
  0xfe   :  { %v998_v33 = vpop.f32.mrf.mxu2  ;;  %v1059_v16 = vpop.f32.mrf.mxu0 }
  0xff   :  { %v950_v35 = vadd.f32 %v949_v10, %v901_v13 }
 0x100   :  { %v1108_v36 = vpop.f32.mrf.mxu1 }
 0x101   :  { %v2885_v34 = vadd.f32 %v998_v33, %v950_v35 }
 0x104   :  { %v1010_v38 = vpop.f32.mrf.mxu3 }
 0x105   :  { %v1011_v39 = vadd.f32 %v1010_v38, %v962_v43 }
 0x106   :  { %v1157_v40 = vpop.f32.mrf.mxu2  ;;  %v1061_v41 = vpop.f32.mrf.mxu0 }
 0x107   :  { %v1060_v22 = vadd.f32 %v1059_v16, %v1011_v39 }
 0x108   :  { %v1110_v45 = vpop.f32.mrf.mxu1 }
 0x109   :  { %v1109_v48 = vadd.f32 %v1108_v36, %v1060_v22 }
 0x10b   :  { %v1158_v24 = vadd.f32 %v1157_v40, %v1109_v48 }
 0x10c   :  { %v1012_v50 = vpop.f32.mrf.mxu3 }
 0x10d   :  { %v1013_v51 = vadd.f32 %v1012_v50, %v964_v54  ;;  %v1937_v12 = vmul.f32 -1.442695, %v1158_v24 }
 0x10e   :  { %v1159_v42 = vpop.f32.mrf.mxu2  ;;  %v1064_v52 = vpop.f32.mrf.mxu0 }
 0x10f   :  { %v1062_v53 = vadd.f32 %v1061_v41, %v1013_v51  ;;  %2125 = vpow2.f32 %v1937_v12 }
 0x110   :  { %v1113_v55 = vpop.f32.mrf.mxu1 }
 0x111   :  { %v1111_v19 = vadd.f32 %v1110_v45, %v1062_v53 }
 0x113   :  { %v1160_v57 = vadd.f32 %v1159_v42, %v1111_v19 }
 0x114   :  { %v1015_v58 = vpop.f32.mrf.mxu3 }
 0x115   :  { %v1016_v60 = vadd.f32 %v1015_v58, %v967_v21  ;;  %v1938_v13 = vmul.f32 -1.442695, %v1160_v57  ;;  %v2126_v48 = vpop.eup %2125 }
 0x116   :  { %v1162_v46 = vpop.f32.mrf.mxu2  ;;  %v1066_v61 = vpop.f32.mrf.mxu0 }
 0x117   :  { %v1065_v62 = vadd.f32 %v1064_v52, %v1016_v60  ;;  %2127 = vpow2.f32 %v1938_v13 }
 0x118   :  { %v1115_v43 = vpop.f32.mrf.mxu1 }
 0x119   :  { %v1114_v63 = vadd.f32 %v1113_v55, %v1065_v62  ;;  %v2891_v55 = vadd.f32 1.0, %v2126_v48 }
 0x11b   :  { %v1163_v0 = vadd.f32 %v1162_v46, %v1114_v63  ;;  %vm1218_vm2 = vweird.f32 %v2891_v55 }
 0x11c   :  { %v1017_v3 = vpop.f32.mrf.mxu3 }
 0x11d   :  { %v1018_v5 = vadd.f32 %v1017_v3, %v969_v30  ;;  %v1939_v45 = vmul.f32 -1.442695, %v1163_v0  ;;  %v2128_v24 = vpop.eup %2127 }
 0x11e   :  { %v1164_v6 = vpop.f32.mrf.mxu2  ;;  %v1069_v8 = vpop.f32.mrf.mxu0  ;;  %v2893_v60 = vadd.f32 1.0, %v2128_v24 }
 0x11f   :  { %v1067_v9 = vadd.f32 %v1066_v61, %v1018_v5  ;;  %2129 = vpow2.f32 %v1939_v45 }
 0x120   :  { %v1118_v54 = vpop.f32.mrf.mxu1  ;;  %vm1233_vm6 = vweird.f32 %v2893_v60 }
 0x121   :  { %v1116_v14 = vadd.f32 %v1115_v43, %v1067_v9 }
 0x123   :  { %v1165_v15 = vadd.f32 %v1164_v6, %v1116_v14 }
 0x124   :  { %v1020_v59 = vpop.f32.mrf.mxu3 }
 0x125   :  { %v1021_v11 = vadd.f32 %v1020_v59, %v2698_v44  ;;  %v1940_v61 = vmul.f32 -1.442695, %v1165_v15  ;;  %v2130_v63 = vpop.eup %2129 }
 0x126   :  { %v1167_v1 = vpop.f32.mrf.mxu2  ;;  %v1071_v20 = vpop.f32.mrf.mxu0  ;;  %v2899_v15 = vadd.f32 1.0, %v2130_v63  ;;  %v1237_v63 = vand.u32 2147483647, %v2893_v60 }
 0x127   :  { %v1070_v32 = vadd.f32 %v1069_v8, %v1021_v11 }
 0x128   :  { %v1120_v4 = vpop.f32.mrf.mxu1  ;;  %vm2971_vm8 = vcmp.eq.f32.partialorder %v1237_v63, 8.507059e+37  ;;  %vm1248_vm9 = vweird.f32 %v2899_v15 }
 0x129   :  { %v1119_v36 = vadd.f32 %v1118_v54, %v1070_v32 }
 0x12b   :  { %v1168_v22 = vadd.f32 %v1167_v1, %v1119_v36 }
 0x12c   :  { %v1022_v7 = vpop.f32.mrf.mxu3 }
 0x12d   :  { %v1023_v33 = vadd.f32 %v1022_v7, %v2729_v2  ;;  %v1941_v52 = vmul.f32 -1.442695, %v1168_v22 }
 0x12e   :  { %v1169_v21 = vpop.f32.mrf.mxu2  ;;  %v1074_v25 = vpop.f32.mrf.mxu0 }
 0x12f   :  { %v1072_v39 = vadd.f32 %v1071_v20, %v1023_v33  ;;  %2131 = vpow2.f32 %v1941_v52 }
 0x130   :  { %v1123_v27 = vpop.f32.mrf.mxu1  ;;  %2133 = vrcp.f32 %v2891_v55 }
 0x131   :  { %v1121_v44 = vadd.f32 %v1120_v4, %v1072_v39  ;;  %2135 = vrcp.f32 %v2893_v60 }
 0x132   :  { %2137 = vpow2.f32 %v1940_v61 }
 0x133   :  { %v1170_v19 = vadd.f32 %v1169_v21, %v1121_v44 }
 0x134   :  { %v1025_v28 = vpop.f32.mrf.mxu3 }
 0x135   :  { %v1026_v41 = vadd.f32 %v1025_v28, %v2737_v17  ;;  %v2132_v14 = vpop.eup %2131 }
 0x136   :  { %v1172_v29 = vpop.f32.mrf.mxu2  ;;  %v1076_v10 = vpop.f32.mrf.mxu0 }
 0x137   :  { %v1075_v51 = vadd.f32 %v1074_v25, %v1026_v41  ;;  %v2901_v59 = vpop.eup %2133  ;;  %v2905_v25 = vadd.f32 1.0, %v2132_v14  ;;  %v1239_v14 = vand.u32 2147483648, %v2893_v60 }
 0x138   :  { %v1125_v30 = vpop.f32.mrf.mxu1  ;;  %v2903_v4 = vpop.eup %2135  ;;  %vm1219_vm1 = vweird.f32 %v2901_v59 }
 0x139   :  { %v1124_v17 = vadd.f32 %v1123_v27, %v1075_v51  ;;  %v1214_v27 = vmul.f32 %v2901_v59, %v2891_v55  ;;  %v1229_v11 = vmul.f32 %v2903_v4, %v2893_v60  ;;  %vm1234_vm3 = vweird.f32 %v2903_v4  ;;  %vm2949_vm4 = vmor %vm1218_vm2, %vm1219_vm1 }
 0x13a   :  { %vm2967_vm7 = vmor %vm1233_vm6, %vm1234_vm3  ;;  %vm1294_vm12 = vweird.f32 %v2905_v25  ;;  %vm1462_vm6 = vcmask 130048  }
 0x13b   :  { %v1173_v0 = vadd.f32 %v1172_v29, %v1124_v17  ;;  %v1215_v36 = vsub.f32 1.0, %v1214_v27  ;;  %v1222_v17 = vand.u32 2147483647, %v2891_v55 }
 0x13c   :  { %v1027_v16 = vpop.f32.mrf.mxu3 }
 0x13d   :  { %v1028_v46 = vadd.f32 %v1027_v16, %v2768_v37  ;;  %v1943_v1 = vmul.f32 -1.442695, %v1173_v0  ;;  %vm2953_vm5 = vcmp.eq.f32.partialorder %v1222_v17, 8.507059e+37 }
 0x13e   :  { %v1174_v35 = vpop.f32.mrf.mxu2  ;;  %v1079_v38 = vpop.f32.mrf.mxu0 }
 0x13f   :  { %v1077_v3 = vadd.f32 %v1076_v10, %v1028_v46  ;;  %v1224_v46 = vand.u32 2147483648, %v2891_v55 }
 0x140   :  { %v1128_v40 = vpop.f32.mrf.mxu1 }
 0x141   :  { %v1126_v20 = vadd.f32 %v1125_v30, %v1077_v3 }
 0x143   :  { %v1175_v10 = vadd.f32 %v1174_v35, %v1126_v20 }
 0x144   :  { %v1030_v50 = vpop.f32.mrf.mxu3 }
 0x145   :  { %v1031_v42 = vadd.f32 %v1030_v50, %v2777_v49  ;;  %v1942_v49 = vmul.f32 -1.442695, %v1170_v19  ;;  %v1944_v41 = vmul.f32 -1.442695, %v1175_v10  ;;  %v1216_v50 = vmul.f32 %v2901_v59, %v1215_v36 }
 0x146   :  { %v1177_v2 = vpop.f32.mrf.mxu2  ;;  %v1081_v53 = vpop.f32.mrf.mxu0 }
 0x147   :  { %v1080_v57 = vadd.f32 %v1079_v38, %v1031_v42  ;;  %2139 = vpow2.f32 %v1942_v49 }
 0x148   :  { %v1130_v58 = vpop.f32.mrf.mxu1  ;;  %2141 = vrcp.f32 %v2899_v15 }
 0x149   :  { %v1129_v62 = vadd.f32 %v1128_v40, %v1080_v57  ;;  %2143 = vpow2.f32 %v1943_v1  ;;  %v1230_v40 = vsub.f32 1.0, %v1229_v11 }
 0x14b   :  { %v1178_v8 = vadd.f32 %v1177_v2, %v1129_v62  ;;  %v1231_v2 = vmul.f32 %v2903_v4, %v1230_v40  ;;  %v1217_v62 = vadd.f32 %v2901_v59, %v1216_v50 }
 0x14c   :  { %v1032_v43 = vpop.f32.mrf.mxu3 }
 0x14d   :  { %v1033_v5 = vadd.f32 %v1032_v43, %v2809_v18  ;;  %v1945_v7 = vmul.f32 -1.442695, %v1178_v8  ;;  %v2138_v18 = vpop.eup %2137  ;;  %v1232_v8 = vadd.f32 %v2903_v4, %v1231_v2 }
 0x14e   :  { %v1179_v6 = vpop.f32.mrf.mxu2  ;;  %v1084_v9 = vpop.f32.mrf.mxu0  ;;  %v2913_v33 = vadd.f32 1.0, %v2138_v18  ;;  %v1221_v18 = vsel %vm2949_vm4, %v2901_v59, %v1217_v62  ;;  %v1254_v59 = vand.u32 2147483648, %v2899_v15  ;;  %v1298_v62 = vand.u32 2147483647, %v2905_v25 }
 0x14f   :  { %v1082_v37 = vadd.f32 %v1081_v53, %v1033_v5  ;;  %v2140_v29 = vpop.eup %2139  ;;  %2145 = vpow2.f32 %v1945_v7 }
 0x150   :  { %v1133_v54 = vpop.f32.mrf.mxu1  ;;  %2147 = vrcp.f32 %v2905_v25  ;;  %v2916_v38 = vadd.f32 1.0, %v2140_v29  ;;  %v2918_v22 = vpop.eup %2141  ;;  %v1269_v55 = vand.u32 2147483648, %v2913_v33  ;;  %vm1299_vm15 = vcmp.eq.f32.partialorder %v1298_v62, 8.507059e+37 }
 0x151   :  { %v1131_v21 = vadd.f32 %v1130_v58, %v1082_v37  ;;  %2149 = vrcp.f32 %v2913_v33  ;;  %v1244_v52 = vmul.f32 %v2918_v22, %v2899_v15  ;;  %vm1249_vm10 = vweird.f32 %v2918_v22 }
 0x152   :  { %2151 = vrcp.f32 %v2916_v38  ;;  %vm3026_vm13 = vmor %vm1248_vm9, %vm1249_vm10  ;;  %vm1309_vm0 = vweird.f32 %v2916_v38  ;;  %vm1263_vm9 = vweird.f32 %v2913_v33 }
 0x153   :  { %v1180_v32 = vadd.f32 %v1179_v6, %v1131_v21  ;;  %2153 = vpow2.f32 %v1944_v41  ;;  %v1245_v3 = vsub.f32 1.0, %v1244_v52 }
 0x154   :  { %v1035_v28 = vpop.f32.mrf.mxu3 }
 0x155   :  { %v1036_v30 = vadd.f32 %v1035_v28, %v2815_v26  ;;  %v1946_v35 = vmul.f32 -1.442695, %v1180_v32  ;;  %v2144_v26 = vpop.eup %2143  ;;  %v1246_v60 = vmul.f32 %v2918_v22, %v1245_v3  ;;  %v1315_v3 = vand.u32 2147483648, %v2916_v38 }
 0x156   :  { %v1182_v12 = vpop.f32.mrf.mxu2  ;;  %v1086_v13 = vpop.f32.mrf.mxu0  ;;  %v2929_v53 = vadd.f32 1.0, %v2144_v26 }
 0x157   :  { %v1085_v16 = vadd.f32 %v1084_v9, %v1036_v30  ;;  %v2146_v44 = vpop.eup %2145  ;;  %2155 = vpow2.f32 %v1946_v35  ;;  %v1316_v11 = vor.u32 1.1754944e-38, %v1315_v3 }
 0x158   :  { %v1135_v39 = vpop.f32.mrf.mxu1  ;;  %v2923_v24 = vpop.eup %2147  ;;  %v2931_v57 = vadd.f32 1.0, %v2146_v44  ;;  %2157 = vrcp.f32 %v2929_v53  ;;  %v3001_v44 = vor.u32 1.1754944e-38, %v1254_v59  ;;  %v1429_v59 = vld [vmem:[%s3252_s3] sm:$0xff]  ;;  %vm1324_vm3 = vweird.f32 %v2929_v53 }
 0x159   :  { %v1134_v45 = vadd.f32 %v1133_v54, %v1085_v16  ;;  %v2939_v49 = vpop.eup %2149  ;;  %v1225_v54 = vor.u32 1.1754944e-38, %v1224_v46  ;;  %v1240_v16 = vor.u32 1.1754944e-38, %v1239_v14  ;;  %vm1295_vm11 = vweird.f32 %v2923_v24 }
 0x15a   :  { %v2944_v0 = vpop.eup %2151  ;;  %2159 = vrcp.f32 %v2931_v57  ;;  %v1259_v27 = vmul.f32 %v2939_v49, %v2913_v33  ;;  %vm3033_vm14 = vmor %vm1294_vm12, %vm1295_vm11  ;;  %vm1370_vm11 = vweird.f32 %v2931_v57 }
 0x15b   :  { %v1183_v19 = vadd.f32 %v1182_v12, %v1134_v45  ;;  %v2154_v9 = vpop.eup %2153  ;;  %v1305_v12 = vmul.f32 %v2944_v0, %v2916_v38  ;;  %vm1310_vm1 = vweird.f32 %v2944_v0 }
 0x15c   :  { %v1037_v48 = vpop.f32.mrf.mxu3  ;;  %v2976_v30 = vadd.f32 1.0, %v2154_v9  ;;  %v1260_v35 = vsub.f32 1.0, %v1259_v27  ;;  %v1267_v9 = vand.u32 2147483647, %v2913_v33  ;;  %vm3080_vm4 = vmor %vm1309_vm0, %vm1310_vm1 }
 0x15d   :  { %v1038_v51 = vadd.f32 %v1037_v48, %v2845_v47  ;;  %v1290_v47 = vmul.f32 %v2923_v24, %v2905_v25  ;;  %v1947_v5 = vmul.f32 -1.442695, %v1183_v19  ;;  %v2156_v1 = vpop.eup %2155  ;;  %v1300_v48 = vand.u32 2147483648, %v2905_v25 }
 0x15e   :  { %v1184_v42 = vpop.f32.mrf.mxu2  ;;  %v1089_v61 = vpop.f32.mrf.mxu0  ;;  %v2984_v32 = vadd.f32 1.0, %v2156_v1  ;;  %v1261_v63 = vmul.f32 %v2939_v49, %v1260_v35 }
 0x15f   :  { %v1087_v58 = vadd.f32 %v1086_v13, %v1038_v51  ;;  %v1291_v20 = vsub.f32 1.0, %v1290_v47  ;;  %2161 = vpow2.f32 %v1947_v5  ;;  %v2988_v13 = vsel %vm2953_vm5, %v1225_v54, %v1221_v18  ;;  %v2990_v36 = vpop.eup %2157 }
 0x160   :  { %v1138_v6 = vpop.f32.mrf.mxu1  ;;  %v2995_v41 = vpop.eup %2159  ;;  %2163 = vrcp.f32 %v2976_v30  ;;  %v3006_v51 = vadd.f32 %v2918_v22, %v1246_v60  ;;  %v1320_v19 = vmul.f32 %v2990_v36, %v2929_v53  ;;  %v1301_v18 = vor.u32 1.1754944e-38, %v1300_v48 }
 0x161   :  { %v1136_v43 = vadd.f32 %v1135_v39, %v1087_v58  ;;  %v1292_v39 = vmul.f32 %v2923_v24, %v1291_v20  ;;  %2165 = vrcp.f32 %v2984_v32  ;;  %v1366_v58 = vmul.f32 %v2995_v41, %v2931_v57 }
 0x162   :  { %v1321_v14 = vsub.f32 1.0, %v1320_v19  ;;  %v1330_v19 = vand.u32 2147483648, %v2929_v53  ;;  %vm1325_vm5 = vweird.f32 %v2990_v36 }
 0x163   :  { %v1185_v7 = vadd.f32 %v1184_v42, %v1136_v43  ;;  %v1306_v42 = vsub.f32 1.0, %v1305_v12  ;;  %v1293_v17 = vadd.f32 %v2923_v24, %v1292_v39  ;;  %v1367_v1 = vsub.f32 1.0, %v1366_v58  ;;  %vm3105_vm10 = vmor %vm1324_vm3, %vm1325_vm5 }
 0x164   :  { %v1040_v21 = vpop.f32.mrf.mxu3  ;;  %v1322_v12 = vmul.f32 %v2990_v36, %v1321_v14  ;;  %v1374_v14 = vand.u32 2147483647, %v2931_v57  ;;  %vm1385_vm3 = vweird.f32 %v2984_v32 }
 0x165   :  { %v1041_v28 = vadd.f32 %v1040_v21, %v2849_v56  ;;  %v1236_v56 = vsel %vm2967_vm7, %v2903_v4, %v1232_v8  ;;  %v1948_v40 = vmul.f32 -1.442695, %v1185_v7  ;;  %v1252_v4 = vand.u32 2147483647, %v2899_v15  ;;  %v2162_v52 = vpop.eup %2161 }
 0x166   :  { %v1187_v29 = vpop.f32.mrf.mxu2  ;;  %v2999_v26 = vsel %vm2971_vm8, %v1240_v16, %v1236_v56  ;;  %v1091_v50 = vpop.f32.mrf.mxu0  ;;  %v1307_v25 = vmul.f32 %v2944_v0, %v1306_v42  ;;  %v3038_v37 = vadd.f32 1.0, %v2162_v52  ;;  %v1297_v20 = vsel %vm3033_vm14, %v2923_v24, %v1293_v17 }
 0x167   :  { %v1090_v45 = vadd.f32 %v1089_v61, %v1041_v28  ;;  %2167 = vpow2.f32 %v1948_v40  ;;  %v3041_v54 = vpop.eup %2163  ;;  %v1251_v7 = vsel %vm3026_vm13, %v2918_v22, %v3006_v51  ;;  %v3053_v28 = vadd.f32 %v2939_v49, %v1261_v63 }
 0x168   :  { %v1140_v46 = vpop.f32.mrf.mxu1  ;;  %v3050_v21 = vpop.eup %2165  ;;  %v1302_v10 = vsel %vm1299_vm15, %v1301_v18, %v1297_v20  ;;  %v1308_v60 = vadd.f32 %v2944_v0, %v1307_v25  ;;  %v1335_v16 = vmul.f32 %v3041_v54, %v2976_v30  ;;  %v1368_v39 = vmul.f32 %v2995_v41, %v1367_v1  ;;  %v1430_v20 = vld [vmem:[%s3252_s3 + $0x8] sm:$0xff] }
 0x169   :  { %v1139_v2 = vadd.f32 %v1138_v6, %v1090_v45  ;;  %v1313_v6 = vand.u32 2147483647, %v2916_v38  ;;  %v1381_v48 = vmul.f32 %v3050_v21, %v2984_v32  ;;  %v1433_v58 = vmul.f32 %v1429_v59, %v1302_v10 }
 0x16a   :  { %v1336_v38 = vsub.f32 1.0, %v1335_v16  ;;  %v1323_v63 = vadd.f32 %v2990_v36, %v1322_v12  ;;  %vm1264_vm7 = vweird.f32 %v2939_v49  ;;  %v1369_v3 = vadd.f32 %v2995_v41, %v1368_v39 }
 0x16b   :  { %v1188_v61 = vadd.f32 %v1187_v29, %v1139_v2  ;;  %vm3057_vm2 = vcmp.eq.f32.partialorder %v1313_v6, 8.507059e+37  ;;  %vm1371_vm8 = vweird.f32 %v2995_v41  ;;  %v1331_v6 = vor.u32 1.1754944e-38, %v1330_v19  ;;  %vm3166_vm5 = vmor %vm1263_vm9, %vm1264_vm7 }
 0x16c   :  { %v1042_v47 = vpop.f32.mrf.mxu3  ;;  %vm3118_vm12 = vcmp.eq.f32.partialorder %v1252_v4, 8.507059e+37  ;;  %vm3129_vm15 = vmor %vm1370_vm11, %vm1371_vm8  ;;  %v1327_v4 = vsel %vm3105_vm10, %v2990_v36, %v1323_v63  ;;  %v1345_v10 = vand.u32 2147483648, %v2976_v30  ;;  %vm1340_vm0 = vweird.f32 %v3041_v54 }
 0x16d   :  { %v1043_v43 = vadd.f32 %v1042_v47, %v2879_v23  ;;  %2169 = vtanh.f32 %v1188_v61  ;;  %v2168_v29 = vpop.eup %2167  ;;  %v1328_v47 = vand.u32 2147483647, %v2929_v53  ;;  %v1373_v59 = vsel %vm3129_vm15, %v2995_v41, %v1369_v3 }
 0x16e   :  { %v1189_v5 = vpop.f32.mrf.mxu2  ;;  %2171 = vrcp.f32 %v3038_v37  ;;  %v1094_v40 = vpop.f32.mrf.mxu0  ;;  %vm1375_vm1 = vcmp.eq.f32.partialorder %v1374_v14, 8.507059e+37  ;;  %vm1339_vm8 = vweird.f32 %v2976_v30  ;;  %v1270_v8 = vor.u32 1.1754944e-38, %v1269_v55 }
 0x16f   :  { %v1092_v27 = vadd.f32 %v1091_v50, %v1043_v43  ;;  %v3073_v50 = vadd.f32 1.0, %v2168_v29  ;;  %vm3122_vm14 = vcmp.eq.f32.partialorder %v1328_v47, 8.507059e+37  ;;  %vm3189_vm7 = vmor %vm1339_vm8, %vm1340_vm0  ;;  %v1404_v53 = vand.u32 2147483647, %v3038_v37 }
 0x170   :  { %v1332_v36 = vsel %vm3122_vm14, %v1331_v6, %v1327_v4  ;;  %v1343_v6 = vand.u32 2147483647, %v2976_v30  ;;  %v1266_v30 = vsel %vm3166_vm5, %v2939_v49, %v3053_v28  ;;  %v1406_v49 = vand.u32 2147483648, %v3038_v37 }
 0x171   :  { %v1141_v56 = vadd.f32 %v1140_v46, %v1092_v27  ;;  %v1143_v46 = vpop.f32.mrf.mxu1  ;;  %v1337_v27 = vmul.f32 %v3041_v54, %v1336_v38  ;;  %vm1268_vm14 = vcmp.eq.f32.partialorder %v1267_v9, 8.507059e+37  ;;  %vm1405_vm0 = vcmp.eq.f32.partialorder %v1404_v53, 8.507059e+37 }
 0x172   :  { %vm1344_vm11 = vcmp.eq.f32.partialorder %v1343_v6, 8.507059e+37  ;;  %v1407_v4 = vor.u32 1.1754944e-38, %v1406_v49 }
 0x173   :  { %v2170_v45 = vpop.eup %2169  ;;  %v1190_v42 = vadd.f32 %v1189_v5, %v1141_v56  ;;  %v1382_v5 = vsub.f32 1.0, %v1381_v48  ;;  %v1338_v52 = vadd.f32 %v3041_v54, %v1337_v27 }
 0x174   :  { %v1045_v35 = vpop.f32.mrf.mxu3  ;;  %v1437_v17 = vmul.f32 %v2170_v45, %v2988_v13  ;;  %v3093_v13 = vpop.eup %2171 }
 0x175   :  { %v1046_v2 = vadd.f32 %v1045_v35, %v2883_v31  ;;  %v1312_v31 = vsel %vm3080_vm4, %v2944_v0, %v1308_v60  ;;  %2173 = vtanh.f32 %v1190_v42  ;;  %v1376_v0 = vand.u32 2147483648, %v2931_v57 }
 0x176   :  { %v1441_v61 = vadd.f32 %v1437_v17, %v1433_v58  ;;  %v1192_v43 = vpop.f32.mrf.mxu2  ;;  %2175 = vrcp.f32 %v3073_v50  ;;  %v1317_v1 = vsel %vm3057_vm2, %v1316_v11, %v1312_v31  ;;  %v1396_v29 = vmul.f32 %v3093_v13, %v3038_v37 }
 0x177   :  { %v1095_v62 = vadd.f32 %v1094_v40, %v1046_v2  ;;  %v1383_v56 = vmul.f32 %v3050_v21, %v1382_v5  ;;  %v1377_v12 = vor.u32 1.1754944e-38, %v1376_v0  ;;  %v1434_v16 = vmul.f32 %v1430_v20, %v1317_v1  ;;  %v1096_v40 = vpop.f32.mrf.mxu0 }
 0x178   :  { %2177 = vtanh.f32 %v1441_v61  ;;  %1463 = vst.msk [vmem:[#allocation2] sm:$0xff] %vm1462_vm6, %v1441_v61  ;;  %v1397_v42 = vsub.f32 1.0, %v1396_v29  ;;  %vm1386_vm2 = vweird.f32 %v3050_v21  ;;  %v1391_v17 = vand.u32 2147483648, %v2984_v32 }
 0x179   :  { %v1144_v23 = vadd.f32 %v1143_v46, %v1095_v62  ;;  %v1378_v48 = vsel %vm1375_vm1, %v1377_v12, %v1373_v59  ;;  %vm1457_vm4 = vcmask 125952   ;;  %v1431_v46 = vld [vmem:[%s3252_s3 + $0x10] sm:$0xff]  ;;  %v1389_v31 = vand.u32 2147483647, %v2984_v32  ;;  %vm3173_vm10 = vmor %vm1385_vm3, %vm1386_vm2 }
 0x17a   :  { %v1398_v3 = vmul.f32 %v3093_v13, %v1397_v42  ;;  %v1256_v5 = vsel %vm3118_vm12, %v3001_v44, %v1251_v7  ;;  %v1435_v22 = vmul.f32 %v1431_v46, %v1332_v36  ;;  %v1392_v44 = vor.u32 1.1754944e-38, %v1391_v17 }
 0x17b   :  { %v1193_v15 = vadd.f32 %v1192_v43, %v1144_v23  ;;  %v2174_v24 = vpop.eup %2173  ;;  %v1342_v7 = vsel %vm3189_vm7, %v3041_v54, %v1338_v52  ;;  %vm1390_vm13 = vcmp.eq.f32.partialorder %v1389_v31, 8.507059e+37  ;;  %vm1401_vm9 = vweird.f32 %v3093_v13  ;;  %v1432_v54 = vld [vmem:[%s3252_s3 + $0x18] sm:$0xff] }
 0x17c   :  { %v1047_v11 = vpop.f32.mrf.mxu3  ;;  %v1438_v39 = vmul.f32 %v2174_v24, %v2999_v26  ;;  %v3145_v35 = vpop.eup %2175  ;;  %v1384_v26 = vadd.f32 %v3050_v21, %v1383_v56  ;;  %v1399_v18 = vadd.f32 %v3093_v13, %v1398_v3  ;;  %vm1400_vm12 = vweird.f32 %v3038_v37 }
 0x17d   :  { %v1048_v60 = vadd.f32 %v1047_v11, %v2885_v34  ;;  %2179 = vtanh.f32 %v1193_v15  ;;  %v1145_v34 = vpop.f32.mrf.mxu1  ;;  %v1411_v38 = vmul.f32 %v3145_v35, %v3073_v50  ;;  %vm1402_vm15 = vmor %vm1400_vm12, %vm1401_vm9  ;;  %v1271_v15 = vsel %vm1268_vm14, %v1270_v8, %v1266_v30 }
 0x17e   :  { %v2178_v41 = vpop.eup %2177  ;;  %v1442_v2 = vadd.f32 %v1438_v39, %v1434_v16  ;;  %v1194_v47 = vpop.f32.mrf.mxu2  ;;  %v1388_v23 = vsel %vm3173_vm10, %v3050_v21, %v1384_v26  ;;  %v1346_v21 = vor.u32 1.1754944e-38, %v1345_v10  ;;  %v1403_v37 = vsel %vm1402_vm15, %v3093_v13, %v1399_v18 }
 0x17f   :  { %v1097_v45 = vadd.f32 %v1096_v40, %v1048_v60  ;;  %v1449_v19 = vmul.f32 %v2178_v41, %v1378_v48  ;;  %v1412_v25 = vsub.f32 1.0, %v1411_v38  ;;  %v1393_v20 = vsel %vm1390_vm13, %v1392_v44, %v1388_v23 }
 0x180   :  { %2181 = vtanh.f32 %v1442_v2  ;;  %1464 = vst.msk [vmem:[#allocation2 + $0x8] sm:$0xff] %vm1462_vm6, %v1442_v2  ;;  %v1347_v55 = vsel %vm1344_vm11, %v1346_v21, %v1342_v7  ;;  %v1408_v10 = vsel %vm1405_vm0, %v1407_v4, %v1403_v37  ;;  %vm1416_vm1 = vweird.f32 %v3145_v35 }
 0x181   :  { %v1146_v58 = vadd.f32 %v1145_v34, %v1097_v45  ;;  %v1453_v61 = vpack.c.bf16 %v1449_v19, %v1449_v19  ;;  %v1413_v57 = vmul.f32 %v3145_v35, %v1412_v25  ;;  %v1436_v33 = vmul.f32 %v1432_v54, %v1347_v55 }
 0x182   :  { %v1421_v13 = vand.u32 2147483648, %v3073_v50  ;;  %vm1415_vm2 = vweird.f32 %v3073_v50  ;;  %v1419_v60 = vand.u32 2147483647, %v3073_v50 }
 0x183   :  { %v1195_v62 = vadd.f32 %v1194_v47, %v1146_v58  ;;  %v2180_v63 = vpop.eup %2179  ;;  %1458 = vst.msk [vmem:[%s3253_s4] sm:$0xf] %vm1457_vm4, %v1453_v61  ;;  %v1414_v59 = vadd.f32 %v3145_v35, %v1413_v57  ;;  %vm1417_vm3 = vmor %vm1415_vm2, %vm1416_vm1 }
 0x184   :  { %v1439_v51 = vmul.f32 %v2180_v63, %v1256_v5  ;;  %v1422_v39 = vor.u32 1.1754944e-38, %v1421_v13  ;;  %vm1420_vm5 = vcmp.eq.f32.partialorder %v1419_v60, 8.507059e+37 }
 0x185   :  { %2183 = vtanh.f32 %v1195_v62  ;;  %v1418_v16 = vsel %vm1417_vm3, %v3145_v35, %v1414_v59 }
 0x186   :  { %v1443_v14 = vadd.f32 %v1439_v51, %v1435_v22  ;;  %v2182_v1 = vpop.eup %2181  ;;  %v1423_v36 = vsel %vm1420_vm5, %v1422_v39, %v1418_v16 }
 0x187   :  { %v1450_v28 = vmul.f32 %v2182_v1, %v1393_v20 }
 0x188   :  { %2185 = vtanh.f32 %v1443_v14  ;;  %1465 = vst.msk [vmem:[#allocation2 + $0x10] sm:$0xff] %vm1462_vm6, %v1443_v14 }
 0x189   :  { %v1454_v29 = vpack.c.bf16 %v1450_v28, %v1450_v28 }
 0x18b   :  { %v2184_v27 = vpop.eup %2183  ;;  %1459 = vst.msk [vmem:[%s3253_s4 + $0x4] sm:$0xf] %vm1457_vm4, %v1454_v29 }
 0x18c   :  { %v1440_v9 = vmul.f32 %v2184_v27, %v1271_v15 }
 0x18e   :  { %v1444_v11 = vadd.f32 %v1440_v9, %v1436_v33  ;;  %v2186_v24 = vpop.eup %2185 }
 0x18f   :  { %v1451_v56 = vmul.f32 %v2186_v24, %v1408_v10 }
 0x190   :  { %2187 = vtanh.f32 %v1444_v11  ;;  %1466 = vst.msk [vmem:[#allocation2 + $0x18] sm:$0xff] %vm1462_vm6, %v1444_v11 }
 0x191   :  { %1481 = dma.vmem_to_hbm [thread:$0]  %s1474_s19, 512, %s1476_s22, [#allocation3], %s2216_s5, %s2216_s5, %s2217_s24   ;;  %v1455_v12 = vpack.c.bf16 %v1451_v56, %v1451_v56 }
 0x193   :  { %1460 = vst.msk [vmem:[%s3253_s4 + $0x8] sm:$0xf] %vm1457_vm4, %v1455_v12 }
 0x196   :  { %v2188_v40 = vpop.eup %2187 }
 0x197   :  { %v1452_v45 = vmul.f32 %v2188_v40, %v1423_v36 }
 0x199   :  { %v1456_v41 = vpack.c.bf16 %v1452_v45, %v1452_v45 }
 0x19b   :  { %1461 = vst.msk [vmem:[%s3253_s4 + $0xc] sm:$0xf] %vm1457_vm4, %v1456_v41 }
 0x19c   :  { %2213 = dma.done.wait [#allocation3], 512  }
 0x19d   :  { %2214 = vsyncadd [#allocation3], 4294966784 }
 0x19e   :  { %1488 = vsyncpa [#allocation3], 1 }

// kernel: bires_center_lstm_forward.29
= control target key start
LH: loop header
LB: loop body
LE: loop exit
PB: predicated region body
PF: predicated region fallthrough
CT: control target
= control target key end

     0   :  { %v362_v0 = vmov 0   ;;  %vm183_vm0 = vcmask 261120   ;;  %vm273_vm1 = vcmask 125952   ;;  %s533_s2 = inlined_call_operand.vmem [shape: f32[128,1], index: 2, kind: input, shape index: {}]   ;;  %s534_s1 = inlined_call_operand.vmem [shape: bf16[32,16], index: 1, kind: input, shape index: {}]   ;;  %s535_s0 = inlined_call_operand.vmem [shape: bf16[128,32], index: 0, kind: input, shape index: {}]   ;;  %s536_s3 = inlined_call_operand.vmem [shape: bf16[128,16], index: 3, kind: output, shape index: {}]  }
   0x1   :  { %360 = vset.pattern.permute.xlu1 %v362_v0  ;;  %359 = vset.pattern.permute.xlu0 %v362_v0  ;;  %v37_v1 = vld [vmem:[%s533_s2 + $0x10] sm:$0xff]  ;;  %v35_v2 = vld [vmem:[%s533_s2] sm:$0xff]  ;;  %v351_v3 = vld [vmem:[%s534_s1 + $0x8] sm:$0xff] }
   0x2   :  { %63 = vperm.xlu1 %360, %v37_v1   ;;  %53 = vperm.xlu0 %359, %v35_v2   ;;  %v350_v4 = vld [vmem:[%s534_s1] sm:$0xff]  ;;  %v38_v6 = vld [vmem:[%s533_s2 + $0x18] sm:$0xff]  ;;  %v36_v7 = vld [vmem:[%s533_s2 + $0x8] sm:$0xff] }
   0x3   :  { %214 = vmatpush.bf16.msra.mxu0 %v351_v3  ;;  %352 = vmatpush.bf16.msra.mxu1 %v351_v3  ;;  %v39_v5 = vld [vmem:[%s533_s2 + $0x20] sm:$0xff]  ;;  %v344_v9 = vld [vmem:[%s535_s0 + $0x10] sm:$0xff]  ;;  %v40_v12 = vld [vmem:[%s533_s2 + $0x28] sm:$0xff] }
   0x4   :  { %353 = vmatpush.bf16.msra.mxu2 %v351_v3  ;;  %354 = vmatpush.bf16.msra.mxu3 %v351_v3  ;;  %v342_v8 = vld [vmem:[%s535_s0] sm:$0xff]  ;;  %v348_v11 = vld [vmem:[%s535_s0 + $0x30] sm:$0xff]  ;;  %v42_v13 = vld [vmem:[%s533_s2 + $0x38] sm:$0xff] }
   0x5   :  { %361 = vset.pattern.permute.xlu2 %v362_v0  ;;  %v346_v10 = vld [vmem:[%s535_s0 + $0x20] sm:$0xff]  ;;  %v41_v14 = vld [vmem:[%s533_s2 + $0x30] sm:$0xff]  ;;  %v44_v17 = vld [vmem:[%s533_s2 + $0x48] sm:$0xff] }
   0x6   :  { %73 = vperm.xlu2 %361, %v39_v5   ;;  %v43_v15 = vld [vmem:[%s533_s2 + $0x40] sm:$0xff]  ;;  %v45_v16 = vld [vmem:[%s533_s2 + $0x50] sm:$0xff]  ;;  %v343_v18 = vld [vmem:[%s535_s0 + $0x8] sm:$0xff] }
   0x7   :  { %215 = vmatpush.bf16.msra.mxu0 %v350_v4  ;;  %355 = vmatpush.bf16.msra.mxu1 %v350_v4  ;;  %v345_v19 = vld [vmem:[%s535_s0 + $0x18] sm:$0xff]  ;;  %v347_v20 = vld [vmem:[%s535_s0 + $0x28] sm:$0xff]  ;;  %v47_v24 = vld [vmem:[%s533_s2 + $0x60] sm:$0xff] }
   0x8   :  { %356 = vmatpush.bf16.msra.mxu2 %v350_v4  ;;  %357 = vmatpush.bf16.msra.mxu3 %v350_v4  ;;  %v349_v21 = vld [vmem:[%s535_s0 + $0x38] sm:$0xff]  ;;  %v48_v23 = vld [vmem:[%s533_s2 + $0x68] sm:$0xff]  ;;  %v49_v25 = vld [vmem:[%s533_s2 + $0x70] sm:$0xff] }
   0x9   :  { %v46_v22 = vld [vmem:[%s533_s2 + $0x58] sm:$0xff] }
   0xa   :  { %68 = vperm.xlu1 %360, %v38_v6   ;;  %58 = vperm.xlu0 %359, %v36_v7   ;;  %v50_v26 = vld [vmem:[%s533_s2 + $0x78] sm:$0xff] }
   0xb   :  { %334 = vmatmul.msk.bf16.vlgmr.msra.gmra.mxu0 %vm183_vm0, %v342_v8  ;;  %336 = vmatmul.msk.bf16.vlgmr.msra.gmra.mxu1 %vm183_vm0, %v344_v9 }
   0xc   :  { %338 = vmatmul.msk.bf16.vlgmr.msra.gmra.mxu2 %vm183_vm0, %v346_v10  ;;  %340 = vmatmul.msk.bf16.vlgmr.msra.gmra.mxu3 %vm183_vm0, %v348_v11 }
   0xe   :  { %78 = vperm.xlu2 %361, %v40_v12  }
  0x12   :  { %88 = vperm.xlu1 %360, %v42_v13   ;;  %83 = vperm.xlu0 %359, %v41_v14  }
  0x16   :  { %93 = vperm.xlu2 %361, %v43_v15  }
  0x1a   :  { %103 = vperm.xlu1 %360, %v45_v16   ;;  %98 = vperm.xlu0 %359, %v44_v17  }
  0x1b   :  { %335 = vmatmul.msk.bf16.gmra.mxu0 %vm183_vm0, %v343_v18  ;;  %337 = vmatmul.msk.bf16.gmra.mxu1 %vm183_vm0, %v345_v19 }
  0x1c   :  { %339 = vmatmul.msk.bf16.gmra.mxu2 %vm183_vm0, %v347_v20  ;;  %341 = vmatmul.msk.bf16.gmra.mxu3 %vm183_vm0, %v349_v21 }
  0x1e   :  { %108 = vperm.xlu2 %361, %v46_v22  }
  0x22   :  { %118 = vperm.xlu1 %360, %v48_v23   ;;  %113 = vperm.xlu0 %359, %v47_v24  }
  0x26   :  { %123 = vperm.xlu2 %361, %v49_v25  }
  0x2a   :  { %128 = vperm.xlu0 %359, %v50_v26  }
  0x60   :  { %v74_v29 = vpop.permute.xlu2 %73 }
  0x68   :  { %v79_v32 = vpop.permute.xlu2 %78 }
  0x70   :  { %v94_v39 = vpop.permute.xlu2 %93 }
  0x74   :  { %v64_v27 = vpop.permute.xlu1 %63  ;;  %v54_v28 = vpop.permute.xlu0 %53 }
  0x78   :  { %v109_v54 = vpop.permute.xlu2 %108 }
  0x7c   :  { %v69_v30 = vpop.permute.xlu1 %68  ;;  %v59_v31 = vpop.permute.xlu0 %58 }
  0x80   :  { %v124_v7 = vpop.permute.xlu2 %123 }
  0x84   :  { %v89_v33 = vpop.permute.xlu1 %88  ;;  %v84_v34 = vpop.permute.xlu0 %83 }
  0x88   :  { %v217_v35 = vpop.f32.mrf.mxu0  ;;  %v227_v36 = vpop.f32.mrf.mxu1 }
  0x89   :  { %v218_v37 = vadd.f32 %v217_v35, %v54_v28  ;;  %v228_v38 = vadd.f32 %v227_v36, %v74_v29 }
  0x8b   :  { %v257_v40 = vpack.c.bf16 %v218_v37, %v218_v37  ;;  %v261_v41 = vpack.c.bf16 %v228_v38, %v228_v38 }
  0x8c   :  { %v104_v42 = vpop.permute.xlu1 %103  ;;  %v99_v43 = vpop.permute.xlu0 %98 }
  0x8d   :  { %274 = vst.msk [vmem:[%s536_s3] sm:$0xf] %vm273_vm1, %v257_v40 }
  0x8e   :  { %278 = vst.msk [vmem:[%s536_s3 + $0x10] sm:$0xf] %vm273_vm1, %v261_v41 }
  0x8f   :  { %v237_v44 = vpop.f32.mrf.mxu2  ;;  %v247_v45 = vpop.f32.mrf.mxu3 }
  0x90   :  { %v238_v46 = vadd.f32 %v237_v44, %v94_v39  ;;  %v219_v47 = vpop.f32.mrf.mxu0  ;;  %v229_v48 = vpop.f32.mrf.mxu1 }
  0x91   :  { %v220_v49 = vadd.f32 %v219_v47, %v59_v31  ;;  %v230_v50 = vadd.f32 %v229_v48, %v79_v32 }
  0x92   :  { %v265_v51 = vpack.c.bf16 %v238_v46, %v238_v46 }
  0x93   :  { %v258_v52 = vpack.c.bf16 %v220_v49, %v220_v49  ;;  %v262_v53 = vpack.c.bf16 %v230_v50, %v230_v50 }
  0x94   :  { %282 = vst.msk [vmem:[%s536_s3 + $0x20] sm:$0xf] %vm273_vm1, %v265_v51  ;;  %v114_v55 = vpop.permute.xlu0 %113  ;;  %v119_v56 = vpop.permute.xlu1 %118 }
  0x95   :  { %275 = vst.msk [vmem:[%s536_s3 + $0x4] sm:$0xf] %vm273_vm1, %v258_v52  ;;  %v248_v57 = vadd.f32 %v247_v45, %v114_v55 }
  0x96   :  { %279 = vst.msk [vmem:[%s536_s3 + $0x14] sm:$0xf] %vm273_vm1, %v262_v53 }
  0x97   :  { %v269_v58 = vpack.c.bf16 %v248_v57, %v248_v57  ;;  %v239_v59 = vpop.f32.mrf.mxu2  ;;  %v249_v60 = vpop.f32.mrf.mxu3 }
  0x98   :  { %v240_v61 = vadd.f32 %v239_v59, %v99_v43  ;;  %v250_v62 = vadd.f32 %v249_v60, %v119_v56  ;;  %v222_v63 = vpop.f32.mrf.mxu0  ;;  %v232_v0 = vpop.f32.mrf.mxu1 }
  0x99   :  { %286 = vst.msk [vmem:[%s536_s3 + $0x30] sm:$0xf] %vm273_vm1, %v269_v58  ;;  %v223_v1 = vadd.f32 %v222_v63, %v64_v27  ;;  %v233_v2 = vadd.f32 %v232_v0, %v84_v34 }
  0x9a   :  { %v266_v3 = vpack.c.bf16 %v240_v61, %v240_v61  ;;  %v270_v4 = vpack.c.bf16 %v250_v62, %v250_v62 }
  0x9b   :  { %v259_v5 = vpack.c.bf16 %v223_v1, %v223_v1  ;;  %v263_v6 = vpack.c.bf16 %v233_v2, %v233_v2 }
  0x9c   :  { %283 = vst.msk [vmem:[%s536_s3 + $0x24] sm:$0xf] %vm273_vm1, %v266_v3  ;;  %v129_v20 = vpop.permute.xlu0 %128 }
  0x9d   :  { %287 = vst.msk [vmem:[%s536_s3 + $0x34] sm:$0xf] %vm273_vm1, %v270_v4 }
  0x9e   :  { %276 = vst.msk [vmem:[%s536_s3 + $0x8] sm:$0xf] %vm273_vm1, %v259_v5 }
  0x9f   :  { %280 = vst.msk [vmem:[%s536_s3 + $0x18] sm:$0xf] %vm273_vm1, %v263_v6  ;;  %v242_v8 = vpop.f32.mrf.mxu2  ;;  %v252_v9 = vpop.f32.mrf.mxu3 }
  0xa0   :  { %v243_v10 = vadd.f32 %v242_v8, %v104_v42  ;;  %v253_v11 = vadd.f32 %v252_v9, %v124_v7  ;;  %v224_v12 = vpop.f32.mrf.mxu0  ;;  %v234_v13 = vpop.f32.mrf.mxu1 }
  0xa1   :  { %v225_v14 = vadd.f32 %v224_v12, %v69_v30  ;;  %v235_v15 = vadd.f32 %v234_v13, %v89_v33 }
  0xa2   :  { %v267_v16 = vpack.c.bf16 %v243_v10, %v243_v10  ;;  %v271_v17 = vpack.c.bf16 %v253_v11, %v253_v11 }
  0xa3   :  { %v260_v18 = vpack.c.bf16 %v225_v14, %v225_v14  ;;  %v264_v19 = vpack.c.bf16 %v235_v15, %v235_v15 }
  0xa4   :  { %284 = vst.msk [vmem:[%s536_s3 + $0x28] sm:$0xf] %vm273_vm1, %v267_v16 }
  0xa5   :  { %288 = vst.msk [vmem:[%s536_s3 + $0x38] sm:$0xf] %vm273_vm1, %v271_v17 }
  0xa6   :  { %277 = vst.msk [vmem:[%s536_s3 + $0xc] sm:$0xf] %vm273_vm1, %v260_v18 }
  0xa7   :  { %281 = vst.msk [vmem:[%s536_s3 + $0x1c] sm:$0xf] %vm273_vm1, %v264_v19  ;;  %v244_v21 = vpop.f32.mrf.mxu2  ;;  %v254_v22 = vpop.f32.mrf.mxu3 }
  0xa8   :  { %v245_v23 = vadd.f32 %v244_v21, %v109_v54  ;;  %v255_v24 = vadd.f32 %v254_v22, %v129_v20 }
  0xaa   :  { %v268_v25 = vpack.c.bf16 %v245_v23, %v245_v23  ;;  %v272_v26 = vpack.c.bf16 %v255_v24, %v255_v24 }
  0xac   :  { %285 = vst.msk [vmem:[%s536_s3 + $0x2c] sm:$0xf] %vm273_vm1, %v268_v25 }
  0xad   :  { %289 = vst.msk [vmem:[%s536_s3 + $0x3c] sm:$0xf] %vm273_vm1, %v272_v26 }

// kernel: bires_center_lstm_forward.25
= control target key start
LH: loop header
LB: loop body
LE: loop exit
PB: predicated region body
PF: predicated region fallthrough
CT: control target
= control target key end

     0   :  { %v1878_v13 = vmov 0   ;;  %vm887_vm0 = vcmask 785408   ;;  %vm1271_vm1 = vcmask 125952   ;;  %s2653_s1 = inlined_call_operand.vmem [shape: bf16[864,16], index: 1, kind: input, shape index: {}]   ;;  %s2654_s2 = inlined_call_operand.vmem [shape: f32[128,1], index: 2, kind: input, shape index: {}]   ;;  %s2655_s0 = inlined_call_operand.vmem [shape: bf16[128,864], index: 0, kind: input, shape index: {}]   ;;  %s2656_s3 = inlined_call_operand.vmem [shape: bf16[128,16], index: 3, kind: output, shape index: {}]  }
   0x1   :  { %v1803_v0 = vld [vmem:[%s2653_s1 + $0x38] sm:$0xff]  ;;  %v1802_v3 = vld [vmem:[%s2653_s1 + $0x30] sm:$0xff]  ;;  %v1801_v6 = vld [vmem:[%s2653_s1 + $0x28] sm:$0xff]  ;;  %1875 = vset.pattern.permute.xlu0 %v1878_v13  ;;  %1876 = vset.pattern.permute.xlu1 %v1878_v13 }
   0x2   :  { %v1905_v1 = vld [vmem:[%s2653_s1 + $0xb8] sm:$0xff]  ;;  %912 = vmatpush.bf16.msra.mxu0 %v1803_v0  ;;  %1850 = vmatpush.bf16.msra.mxu3 %v1803_v0  ;;  %v1920_v4 = vld [vmem:[%s2653_s1 + $0xb0] sm:$0xff]  ;;  %v1935_v7 = vld [vmem:[%s2653_s1 + $0xa8] sm:$0xff] }
   0x3   :  { %v1910_v2 = vld [vmem:[%s2653_s1 + $0x78] sm:$0xff]  ;;  %1866 = vmatpush.bf16.msra.mxu2 %v1905_v1  ;;  %v1925_v5 = vld [vmem:[%s2653_s1 + $0x70] sm:$0xff]  ;;  %v1940_v8 = vld [vmem:[%s2653_s1 + $0x68] sm:$0xff]  ;;  %1877 = vset.pattern.permute.xlu2 %v1878_v13 }
   0x4   :  { %1858 = vmatpush.bf16.msra.mxu1 %v1910_v2  ;;  %v1800_v9 = vld [vmem:[%s2653_s1 + $0x20] sm:$0xff]  ;;  %v1799_v14 = vld [vmem:[%s2653_s1 + $0x18] sm:$0xff]  ;;  %v1798_v17 = vld [vmem:[%s2653_s1 + $0x10] sm:$0xff] }
   0x5   :  { %v1950_v10 = vld [vmem:[%s2653_s1 + $0xa0] sm:$0xff]  ;;  %v1968_v15 = vld [vmem:[%s2653_s1 + $0x98] sm:$0xff]  ;;  %v188_v18 = vld [vmem:[%s2654_s2 + $0x8] sm:$0xff] }
   0x6   :  { %913 = vmatpush.bf16.msra.mxu0 %v1802_v3  ;;  %1851 = vmatpush.bf16.msra.mxu3 %v1802_v3  ;;  %v1955_v11 = vld [vmem:[%s2653_s1 + $0x60] sm:$0xff]  ;;  %v1973_v16 = vld [vmem:[%s2653_s1 + $0x58] sm:$0xff]  ;;  %v1986_v19 = vld [vmem:[%s2653_s1 + $0x90] sm:$0xff] }
   0x7   :  { %1867 = vmatpush.bf16.msra.mxu2 %v1920_v4  ;;  %v187_v12 = vld [vmem:[%s2654_s2] sm:$0xff]  ;;  %v1991_v20 = vld [vmem:[%s2653_s1 + $0x50] sm:$0xff]  ;;  %v1797_v22 = vld [vmem:[%s2653_s1 + $0x8] sm:$0xff] }
   0x8   :  { %1859 = vmatpush.bf16.msra.mxu1 %v1925_v5  ;;  %205 = vperm.xlu0 %1875, %v187_v12   ;;  %v189_v21 = vld [vmem:[%s2654_s2 + $0x10] sm:$0xff]  ;;  %v2004_v23 = vld [vmem:[%s2653_s1 + $0x88] sm:$0xff]  ;;  %v1796_v25 = vld [vmem:[%s2653_s1] sm:$0xff] }
   0x9   :  { %v2009_v24 = vld [vmem:[%s2653_s1 + $0x48] sm:$0xff]  ;;  %215 = vperm.xlu1 %1876, %v189_v21   ;;  %v2017_v26 = vld [vmem:[%s2653_s1 + $0x80] sm:$0xff]  ;;  %v1743_v29 = vld [vmem:[%s2655_s0 + $0x18] sm:$0xf0] }
   0xa   :  { %914 = vmatpush.bf16.msra.mxu0 %v1801_v6  ;;  %1852 = vmatpush.bf16.msra.mxu3 %v1801_v6  ;;  %v2022_v27 = vld [vmem:[%s2653_s1 + $0x40] sm:$0xff]  ;;  %v1350_v30 = vld [vmem:[%s2655_s0 + $0x70] sm:$0xf]  ;;  %v1757_v31 = vld [vmem:[%s2655_s0 + $0x88] sm:$0xf0] }
   0xb   :  { %1868 = vmatpush.bf16.msra.mxu2 %v1935_v7  ;;  %v1294_v28 = vld [vmem:[%s2655_s0] sm:$0xf]  ;;  %v1358_v32 = vld [vmem:[%s2655_s0 + $0x78] sm:$0xf]  ;;  %v1758_v33 = vld [vmem:[%s2655_s0 + $0x90] sm:$0xf0]  ;;  %v1351_v38 = vor.u32 %v1757_v31, %v1350_v30 }
   0xc   :  { %1860 = vmatpush.bf16.msra.mxu1 %v1940_v8  ;;  %v1754_v34 = vld [vmem:[%s2655_s0 + $0x74] sm:$0xf]  ;;  %v1352_v35 = vld [vmem:[%s2655_s0 + $0x8c] sm:$0xf0]  ;;  %v1827_v36 = vld [vmem:[%s2653_s1 + $0xf8] sm:$0xff]  ;;  %v1295_v37 = vor.u32 %v1743_v29, %v1294_v28  ;;  %v1359_v39 = vor.u32 %v1758_v33, %v1358_v32 }
   0xd   :  { %v1355_v40 = vor.u32 %v1754_v34, %v1352_v35  ;;  %v1849_v41 = vld [vmem:[%s2653_s1 + $0x1a8] sm:$0xff]  ;;  %v1843_v42 = vld [vmem:[%s2653_s1 + $0x178] sm:$0xff]  ;;  %v1826_v43 = vld [vmem:[%s2653_s1 + $0xf0] sm:$0xff] }
   0xe   :  { %915 = vmatpush.bf16.msra.mxu0 %v1800_v9  ;;  %1853 = vmatpush.bf16.msra.mxu3 %v1800_v9  ;;  %v190_v44 = vld [vmem:[%s2654_s2 + $0x18] sm:$0xff]  ;;  %v193_v45 = vld [vmem:[%s2654_s2 + $0x30] sm:$0xff]  ;;  %v1848_v47 = vld [vmem:[%s2653_s1 + $0x1a0] sm:$0xff] }
   0xf   :  { %1869 = vmatpush.bf16.msra.mxu2 %v1950_v10  ;;  %v1842_v46 = vld [vmem:[%s2653_s1 + $0x170] sm:$0xff]  ;;  %v191_v48 = vld [vmem:[%s2654_s2 + $0x20] sm:$0xff]  ;;  %v1825_v49 = vld [vmem:[%s2653_s1 + $0xe8] sm:$0xff] }
  0x10   :  { %1861 = vmatpush.bf16.msra.mxu1 %v1955_v11  ;;  %210 = vperm.xlu0 %1875, %v188_v18   ;;  %v1841_v50 = vld [vmem:[%s2653_s1 + $0x168] sm:$0xff]  ;;  %v1847_v51 = vld [vmem:[%s2653_s1 + $0x198] sm:$0xff]  ;;  %v1824_v53 = vld [vmem:[%s2653_s1 + $0xe0] sm:$0xff] }
  0x11   :  { %220 = vperm.xlu1 %1876, %v190_v44   ;;  %225 = vperm.xlu2 %1877, %v191_v48   ;;  %v1322_v52 = vld [vmem:[%s2655_s0 + $0x38] sm:$0xf]  ;;  %v1750_v54 = vld [vmem:[%s2655_s0 + $0x50] sm:$0xf0]  ;;  %v1378_v55 = vld [vmem:[%s2655_s0 + $0xa8] sm:$0xf] }
  0x12   :  { %916 = vmatpush.bf16.msra.mxu0 %v1799_v14  ;;  %1854 = vmatpush.bf16.msra.mxu3 %v1799_v14  ;;  %v1764_v56 = vld [vmem:[%s2655_s0 + $0xc0] sm:$0xf0]  ;;  %v1386_v57 = vld [vmem:[%s2655_s0 + $0xb0] sm:$0xf]  ;;  %v1765_v58 = vld [vmem:[%s2655_s0 + $0xc8] sm:$0xf0]  ;;  %v1323_v63 = vor.u32 %v1750_v54, %v1322_v52 }
  0x13   :  { %1870 = vmatpush.bf16.msra.mxu2 %v1968_v15  ;;  %v194_v59 = vld [vmem:[%s2654_s2 + $0x38] sm:$0xff]  ;;  %v1761_v60 = vld [vmem:[%s2655_s0 + $0xac] sm:$0xf]  ;;  %v1380_v61 = vld [vmem:[%s2655_s0 + $0xc4] sm:$0xf0]  ;;  %v1379_v0 = vor.u32 %v1764_v56, %v1378_v55 }
  0x14   :  { %1862 = vmatpush.bf16.msra.mxu1 %v1973_v16  ;;  %v1840_v62 = vld [vmem:[%s2653_s1 + $0x160] sm:$0xff]  ;;  %v1383_v3 = vor.u32 %v1761_v60, %v1380_v61  ;;  %v192_v6 = vld [vmem:[%s2654_s2 + $0x28] sm:$0xff]  ;;  %v1822_v12 = vld [vmem:[%s2653_s1 + $0xd0] sm:$0xff] }
  0x15   :  { %v196_v9 = vld [vmem:[%s2654_s2 + $0x48] sm:$0xff]  ;;  %v1406_v13 = vld [vmem:[%s2655_s0 + $0xe0] sm:$0xf]  ;;  %v1771_v14 = vld [vmem:[%s2655_s0 + $0xf8] sm:$0xf0] }
  0x16   :  { %917 = vmatpush.bf16.msra.mxu0 %v1798_v17  ;;  %1855 = vmatpush.bf16.msra.mxu3 %v1798_v17  ;;  %v1296_v17 = vld [vmem:[%s2655_s0 + $0x1c] sm:$0xf0]  ;;  %v1414_v18 = vld [vmem:[%s2655_s0 + $0xe8] sm:$0xf]  ;;  %v1768_v21 = vld [vmem:[%s2655_s0 + $0xe4] sm:$0xf] }
  0x17   :  { %1871 = vmatpush.bf16.msra.mxu2 %v1986_v19  ;;  %v197_v30 = vld [vmem:[%s2654_s2 + $0x50] sm:$0xff]  ;;  %v195_v32 = vld [vmem:[%s2654_s2 + $0x40] sm:$0xff]  ;;  %v1747_v34 = vld [vmem:[%s2655_s0 + $0x3c] sm:$0xf] }
  0x18   :  { %1863 = vmatpush.bf16.msra.mxu1 %v1991_v20  ;;  %235 = vperm.xlu0 %1875, %v193_v45   ;;  %v1838_v31 = vld [vmem:[%s2653_s1 + $0x150] sm:$0xff]  ;;  %v1324_v35 = vld [vmem:[%s2655_s0 + $0x54] sm:$0xf0]  ;;  %v1820_v44 = vld [vmem:[%s2653_s1 + $0xc0] sm:$0xff] }
  0x19   :  { %240 = vperm.xlu1 %1876, %v194_v59   ;;  %230 = vperm.xlu2 %1877, %v192_v6   ;;  %v1778_v33 = vld [vmem:[%s2655_s0 + $0x130] sm:$0xf0]  ;;  %v200_v45 = vld [vmem:[%s2654_s2 + $0x68] sm:$0xff]  ;;  %v198_v59 = vld [vmem:[%s2654_s2 + $0x58] sm:$0xff] }
  0x1a   :  { %918 = vmatpush.bf16.msra.mxu0 %v1797_v22  ;;  %1856 = vmatpush.bf16.msra.mxu3 %v1797_v22  ;;  %v1408_v22 = vld [vmem:[%s2655_s0 + $0xfc] sm:$0xf0]  ;;  %v1785_v48 = vld [vmem:[%s2655_s0 + $0x168] sm:$0xf0]  ;;  %v1782_v52 = vld [vmem:[%s2655_s0 + $0x154] sm:$0xf] }
  0x1b   :  { %1872 = vmatpush.bf16.msra.mxu2 %v2004_v23  ;;  %v1411_v29 = vor.u32 %v1768_v21, %v1408_v22  ;;  %v1834_v54 = vld [vmem:[%s2653_s1 + $0x130] sm:$0xff]  ;;  %v202_v60 = vld [vmem:[%s2654_s2 + $0x78] sm:$0xff]  ;;  %v1832_v61 = vld [vmem:[%s2653_s1 + $0x120] sm:$0xff] }
  0x1c   :  { %1864 = vmatpush.bf16.msra.mxu1 %v2009_v24  ;;  %v1793_v6 = vld [vmem:[%s2655_s0 + $0x1a8] sm:$0xf0]  ;;  %v1304_v22 = vld [vmem:[%s2655_s0 + $0x24] sm:$0xf0] }
  0x1d   :  { %v1741_v21 = vld [vmem:[%s2655_s0 + $0xc] sm:$0xf] }
  0x1e   :  { %919 = vmatpush.bf16.msra.mxu0 %v1796_v25  ;;  %1857 = vmatpush.bf16.msra.mxu3 %v1796_v25 }
  0x1f   :  { %1873 = vmatpush.bf16.msra.mxu2 %v2017_v26 }
  0x20   :  { %1865 = vmatpush.bf16.msra.mxu1 %v2022_v27  ;;  %250 = vperm.xlu0 %1875, %v196_v9   ;;  %v1492_v9 = vld [vmem:[%s2655_s0 + $0x1a4] sm:$0xf0] }
  0x21   :  { %920 = vmatmul.bf16.vlgmr.msra.gmra.mxu0 %v1295_v37  ;;  %930 = vmatmul.bf16.vlgmr.msra.gmra.mxu3 %v1351_v38  ;;  %v1775_v37 = vld [vmem:[%s2655_s0 + $0x11c] sm:$0xf]  ;;  %v1436_v38 = vld [vmem:[%s2655_s0 + $0x134] sm:$0xf0] }
  0x22   :  { %1059 = vmatpush.bf16.msrb.mxu3 %v1827_v36  ;;  %961 = vmatpush.bf16.msrb.mxu0 %v1910_v2  ;;  %v1387_v2 = vor.u32 %v1765_v58, %v1386_v57  ;;  %v1779_v36 = vld [vmem:[%s2655_s0 + $0x138] sm:$0xf0]  ;;  %v1833_v58 = vld [vmem:[%s2653_s1 + $0x128] sm:$0xff] }
  0x23   :  { %1028 = vmatmul.bf16.vlgmr.msra.gmra.mxu2 %v1359_v39  ;;  %979 = vmatmul.bf16.vlgmr.msra.gmra.mxu1 %v1355_v40  ;;  %v1327_v40 = vor.u32 %v1747_v34, %v1324_v35  ;;  %v1332_v34 = vld [vmem:[%s2655_s0 + $0x5c] sm:$0xf0]  ;;  %v1338_v35 = vld [vmem:[%s2655_s0 + $0x48] sm:$0xf] }
  0x24   :  { %1208 = vmatpush.bf16.msrb.mxu2 %v1849_v41  ;;  %1157 = vmatpush.bf16.msrb.mxu1 %v1843_v42  ;;  %v1439_v42 = vor.u32 %v1775_v37, %v1436_v38  ;;  %v1753_v37 = vld [vmem:[%s2655_s0 + $0x68] sm:$0xf0] }
  0x25   :  { %255 = vperm.xlu1 %1876, %v197_v30   ;;  %245 = vperm.xlu2 %1877, %v195_v32   ;;  %v1742_v30 = vld [vmem:[%s2655_s0 + $0x14] sm:$0xf]  ;;  %v1749_v38 = vld [vmem:[%s2655_s0 + $0x4c] sm:$0xf] }
  0x26   :  { %962 = vmatpush.bf16.msrb.mxu0 %v1925_v5  ;;  %1060 = vmatpush.bf16.msrb.mxu3 %v1826_v43  ;;  %v1823_v5 = vld [vmem:[%s2653_s1 + $0xd8] sm:$0xff]  ;;  %v1837_v43 = vld [vmem:[%s2653_s1 + $0x148] sm:$0xff] }
  0x28   :  { %1158 = vmatpush.bf16.msrb.mxu1 %v1842_v46  ;;  %1209 = vmatpush.bf16.msrb.mxu2 %v1848_v47  ;;  %v1835_v46 = vld [vmem:[%s2653_s1 + $0x138] sm:$0xff]  ;;  %v1462_v47 = vld [vmem:[%s2655_s0 + $0x150] sm:$0xf] }
  0x29   :  { %v1463_v55 = vor.u32 %v1785_v48, %v1462_v47  ;;  %v1756_v47 = vld [vmem:[%s2655_s0 + $0x84] sm:$0xf]  ;;  %v1368_v48 = vld [vmem:[%s2655_s0 + $0x9c] sm:$0xf0] }
  0x2a   :  { %963 = vmatpush.bf16.msrb.mxu0 %v1940_v8  ;;  %1061 = vmatpush.bf16.msrb.mxu3 %v1825_v49  ;;  %v1846_v8 = vld [vmem:[%s2653_s1 + $0x190] sm:$0xff]  ;;  %v1744_v49 = vld [vmem:[%s2655_s0 + $0x20] sm:$0xf0] }
  0x2c   :  { %1159 = vmatpush.bf16.msrb.mxu1 %v1841_v50  ;;  %1210 = vmatpush.bf16.msrb.mxu2 %v1847_v51  ;;  %v1470_v50 = vld [vmem:[%s2655_s0 + $0x158] sm:$0xf]  ;;  %v1786_v51 = vld [vmem:[%s2655_s0 + $0x170] sm:$0xf0] }
  0x2d   :  { %270 = vperm.xlu1 %1876, %v200_v45   ;;  %260 = vperm.xlu2 %1877, %v198_v59   ;;  %v1759_v45 = vld [vmem:[%s2655_s0 + $0x98] sm:$0xf0] }
  0x2e   :  { %964 = vmatpush.bf16.msrb.mxu0 %v1955_v11  ;;  %1062 = vmatpush.bf16.msrb.mxu3 %v1824_v53  ;;  %v1839_v11 = vld [vmem:[%s2653_s1 + $0x158] sm:$0xff]  ;;  %v1464_v53 = vld [vmem:[%s2655_s0 + $0x16c] sm:$0xf0] }
  0x2f   :  { %v1467_v57 = vor.u32 %v1782_v52, %v1464_v53  ;;  %v1371_v52 = vor.u32 %v1756_v47, %v1368_v48 }
  0x30   :  { %1160 = vmatpush.bf16.msrb.mxu1 %v1840_v62  ;;  %1211 = vmatpush.bf16.msrb.mxu2 %v1846_v8  ;;  %v1831_v62 = vld [vmem:[%s2653_s1 + $0x118] sm:$0xff]  ;;  %v1789_v8 = vld [vmem:[%s2655_s0 + $0x18c] sm:$0xf] }
  0x31   :  { %925 = vmatmul.bf16.gmra.mxu0 %v1323_v63  ;;  %935 = vmatmul.bf16.gmra.mxu3 %v1379_v0  ;;  %v1490_v63 = vld [vmem:[%s2655_s0 + $0x188] sm:$0xf]  ;;  %v1792_v0 = vld [vmem:[%s2655_s0 + $0x1a0] sm:$0xf0] }
  0x32   :  { %965 = vmatpush.bf16.msrb.mxu0 %v1973_v16  ;;  %1063 = vmatpush.bf16.msrb.mxu3 %v1823_v5  ;;  %v1740_v16 = vld [vmem:[%s2655_s0 + $0x4] sm:$0xf]  ;;  %v1498_v5 = vld [vmem:[%s2655_s0 + $0x190] sm:$0xf] }
  0x33   :  { %1033 = vmatmul.bf16.gmra.mxu2 %v1387_v2  ;;  %984 = vmatmul.bf16.gmra.mxu1 %v1383_v3  ;;  %v1299_v25 = vor.u32 %v1740_v16, %v1296_v17  ;;  %v1330_v2 = vld [vmem:[%s2655_s0 + $0x40] sm:$0xf]  ;;  %v1751_v3 = vld [vmem:[%s2655_s0 + $0x58] sm:$0xf0]  ;;  %v1495_v16 = vor.u32 %v1789_v8, %v1492_v9  ;;  %v1829_v17 = vld [vmem:[%s2653_s1 + $0x108] sm:$0xff] }
  0x34   :  { %1161 = vmatpush.bf16.msrb.mxu1 %v1839_v11  ;;  %v1830_v11 = vld [vmem:[%s2653_s1 + $0x110] sm:$0xff]  ;;  %v1402_v8 = vld [vmem:[%s2655_s0 + $0xc0] sm:$0xf]  ;;  %v1767_v9 = vld [vmem:[%s2655_s0 + $0xd8] sm:$0xf0] }
  0x36   :  { %966 = vmatpush.bf16.msrb.mxu0 %v1991_v20  ;;  %1064 = vmatpush.bf16.msrb.mxu3 %v1822_v12  ;;  %v1772_v20 = vld [vmem:[%s2655_s0 + $0x100] sm:$0xf0]  ;;  %v1491_v12 = vor.u32 %v1792_v0, %v1490_v63  ;;  %v1762_v63 = vld [vmem:[%s2655_s0 + $0xb4] sm:$0xf]  ;;  %v1388_v0 = vld [vmem:[%s2655_s0 + $0xcc] sm:$0xf0] }
  0x37   :  { %v1415_v28 = vor.u32 %v1772_v20, %v1414_v18  ;;  %v201_v18 = vld [vmem:[%s2654_s2 + $0x70] sm:$0xff]  ;;  %v1828_v20 = vld [vmem:[%s2653_s1 + $0x100] sm:$0xff] }
  0x38   :  { %1162 = vmatpush.bf16.msrb.mxu1 %v1838_v31  ;;  %275 = vperm.xlu2 %1877, %v201_v18   ;;  %v1312_v31 = vld [vmem:[%s2655_s0 + $0x2c] sm:$0xf0] }
  0x3a   :  { %967 = vmatpush.bf16.msrb.mxu0 %v2009_v24  ;;  %v1407_v24 = vor.u32 %v1771_v14, %v1406_v13  ;;  %v1331_v13 = vor.u32 %v1751_v3, %v1330_v2  ;;  %v1499_v14 = vor.u32 %v1793_v6, %v1498_v5  ;;  %v1394_v5 = vld [vmem:[%s2655_s0 + $0xb8] sm:$0xf]  ;;  %v1766_v6 = vld [vmem:[%s2655_s0 + $0xd0] sm:$0xf0] }
  0x3b   :  { %v1395_v18 = vor.u32 %v1766_v6, %v1394_v5  ;;  %v1780_v5 = vld [vmem:[%s2655_s0 + $0x140] sm:$0xf0]  ;;  %v1458_v6 = vld [vmem:[%s2655_s0 + $0x130] sm:$0xf] }
  0x3c   :  { %1163 = vmatpush.bf16.msrb.mxu1 %v1837_v43  ;;  %v1755_v43 = vld [vmem:[%s2655_s0 + $0x7c] sm:$0xf] }
  0x3e   :  { %968 = vmatpush.bf16.msrb.mxu0 %v2022_v27  ;;  %v1821_v27 = vld [vmem:[%s2653_s1 + $0xc8] sm:$0xff] }
  0x3f   :  { %1065 = vmatpush.bf16.msrb.mxu3 %v1821_v27 }
  0x41   :  { %940 = vmatmul.bf16.gmra.mxu3 %v1407_v24  ;;  %969 = vmatmul.bf16.vlgmr.msrb.gmra.mxu0 %v1299_v25  ;;  %v1310_v24 = vld [vmem:[%s2655_s0 + $0x10] sm:$0xf]  ;;  %v1745_v25 = vld [vmem:[%s2655_s0 + $0x28] sm:$0xf0] }
  0x42   :  { %1010 = vmatpush.bf16.msra.mxu0 %v1905_v1  ;;  %v1845_v1 = vld [vmem:[%s2653_s1 + $0x188] sm:$0xff]  ;;  %v1311_v27 = vor.u32 %v1745_v25, %v1310_v24 }
  0x43   :  { %1038 = vmatmul.bf16.gmra.mxu2 %v1415_v28  ;;  %989 = vmatmul.bf16.gmra.mxu1 %v1411_v29  ;;  %v1318_v28 = vld [vmem:[%s2655_s0 + $0x18] sm:$0xf]  ;;  %v1746_v29 = vld [vmem:[%s2655_s0 + $0x30] sm:$0xf0] }
  0x44   :  { %1212 = vmatpush.bf16.msrb.mxu2 %v1845_v1  ;;  %1066 = vmatpush.bf16.msrb.mxu3 %v1820_v44  ;;  %v1307_v1 = vor.u32 %v1741_v21, %v1304_v22  ;;  %v1319_v32 = vor.u32 %v1746_v29, %v1318_v28  ;;  %v1360_v44 = vld [vmem:[%s2655_s0 + $0x94] sm:$0xf0]  ;;  %v1403_v21 = vor.u32 %v1767_v9, %v1402_v8  ;;  %v1781_v8 = vld [vmem:[%s2655_s0 + $0x148] sm:$0xf0] }
  0x45   :  { %v1777_v9 = vld [vmem:[%s2655_s0 + $0x12c] sm:$0xf] }
  0x46   :  { %1011 = vmatpush.bf16.msra.mxu0 %v1920_v4  ;;  %v1434_v4 = vld [vmem:[%s2655_s0 + $0x118] sm:$0xf] }
  0x47   :  { %v1435_v39 = vor.u32 %v1778_v33, %v1434_v4  ;;  %v1315_v4 = vor.u32 %v1742_v30, %v1312_v31  ;;  %v1748_v33 = vld [vmem:[%s2655_s0 + $0x44] sm:$0xf] }
  0x4a   :  { %1012 = vmatpush.bf16.msra.mxu0 %v1935_v7  ;;  %v1442_v7 = vld [vmem:[%s2655_s0 + $0x120] sm:$0xf] }
  0x4b   :  { %v1443_v41 = vor.u32 %v1779_v36, %v1442_v7  ;;  %v1752_v7 = vld [vmem:[%s2655_s0 + $0x60] sm:$0xf0]  ;;  %v1346_v36 = vld [vmem:[%s2655_s0 + $0x50] sm:$0xf] }
  0x4e   :  { %1013 = vmatpush.bf16.msra.mxu0 %v1950_v10  ;;  %v199_v10 = vld [vmem:[%s2654_s2 + $0x60] sm:$0xff] }
  0x4f   :  { %265 = vperm.xlu0 %1875, %v199_v10  }
  0x51   :  { %945 = vmatmul.bf16.gmra.mxu3 %v1435_v39  ;;  %974 = vmatmul.bf16.gmra.mxu0 %v1327_v40  ;;  %v1340_v39 = vld [vmem:[%s2655_s0 + $0x64] sm:$0xf0]  ;;  %v1335_v40 = vor.u32 %v1748_v33, %v1332_v34 }
  0x52   :  { %1014 = vmatpush.bf16.msra.mxu0 %v1968_v15  ;;  %v1844_v15 = vld [vmem:[%s2653_s1 + $0x180] sm:$0xff]  ;;  %v1343_v10 = vor.u32 %v1749_v38, %v1340_v39  ;;  %v1773_v38 = vld [vmem:[%s2655_s0 + $0x108] sm:$0xf0]  ;;  %v1430_v39 = vld [vmem:[%s2655_s0 + $0xf8] sm:$0xf] }
  0x53   :  { %1043 = vmatmul.bf16.gmra.mxu2 %v1443_v41  ;;  %994 = vmatmul.bf16.gmra.mxu1 %v1439_v42  ;;  %v1339_v41 = vor.u32 %v1752_v7, %v1338_v35  ;;  %v1347_v42 = vor.u32 %v1753_v37, %v1346_v36  ;;  %v1769_v35 = vld [vmem:[%s2655_s0 + $0xec] sm:$0xf]  ;;  %v1416_v7 = vld [vmem:[%s2655_s0 + $0x104] sm:$0xf0]  ;;  %v1422_v37 = vld [vmem:[%s2655_s0 + $0xf0] sm:$0xf] }
  0x54   :  { %1213 = vmatpush.bf16.msrb.mxu2 %v1844_v15  ;;  %v1366_v15 = vld [vmem:[%s2655_s0 + $0x80] sm:$0xf] }
  0x56   :  { %1015 = vmatpush.bf16.msra.mxu0 %v1986_v19  ;;  %v1836_v19 = vld [vmem:[%s2653_s1 + $0x140] sm:$0xff] }
  0x57   :  { %1164 = vmatpush.bf16.msrb.mxu1 %v1836_v19  ;;  %280 = vperm.xlu0 %1875, %v202_v60   ;;  %v1760_v19 = vld [vmem:[%s2655_s0 + $0xa0] sm:$0xf0] }
  0x5a   :  { %1016 = vmatpush.bf16.msra.mxu0 %v2004_v23  ;;  %v1302_v23 = vld [vmem:[%s2655_s0 + $0x8] sm:$0xf] }
  0x5b   :  { %v1303_v56 = vor.u32 %v1744_v49, %v1302_v23  ;;  %v1363_v23 = vor.u32 %v1755_v43, %v1360_v44  ;;  %v1367_v49 = vor.u32 %v1759_v45, %v1366_v15  ;;  %v1419_v15 = vor.u32 %v1769_v35, %v1416_v7 }
  0x5c   :  { %v1423_v45 = vor.u32 %v1773_v38, %v1422_v37  ;;  %v1783_v37 = vld [vmem:[%s2655_s0 + $0x15c] sm:$0xf]  ;;  %v1472_v38 = vld [vmem:[%s2655_s0 + $0x174] sm:$0xf0] }
  0x5e   :  { %1017 = vmatpush.bf16.msra.mxu0 %v2017_v26  ;;  %v1471_v26 = vor.u32 %v1786_v51, %v1470_v50 }
  0x61   :  { %950 = vmatmul.bf16.gmra.mxu3 %v1463_v55  ;;  %1018 = vmatmul.bf16.vlgmr.msra.gmra.mxu0 %v1303_v56 }
  0x62   :  { %1108 = vmatpush.bf16.msrb.mxu0 %v1835_v46  ;;  %v1374_v46 = vld [vmem:[%s2655_s0 + $0x88] sm:$0xf] }
  0x63   :  { %1048 = vmatmul.bf16.gmra.mxu2 %v1471_v26  ;;  %999 = vmatmul.bf16.gmra.mxu1 %v1467_v57  ;;  %v1375_v51 = vor.u32 %v1760_v19, %v1374_v46 }
  0x66   :  { %1109 = vmatpush.bf16.msrb.mxu0 %v1834_v54 }
  0x6a   :  { %1110 = vmatpush.bf16.msrb.mxu0 %v1833_v58 }
  0x6b   :  { %v226_v55 = vpop.permute.xlu2 %225 }
  0x6e   :  { %1111 = vmatpush.bf16.msrb.mxu0 %v1832_v61 }
  0x71   :  { %955 = vmatmul.bf16.gmra.mxu3 %v1491_v12  ;;  %1023 = vmatmul.bf16.gmra.mxu0 %v1331_v13  ;;  %v1396_v12 = vld [vmem:[%s2655_s0 + $0xd4] sm:$0xf0] }
  0x72   :  { %1112 = vmatpush.bf16.msrb.mxu0 %v1831_v62 }
  0x73   :  { %1053 = vmatmul.bf16.gmra.mxu2 %v1499_v14  ;;  %1004 = vmatmul.bf16.gmra.mxu1 %v1495_v16  ;;  %v231_v3 = vpop.permute.xlu2 %230 }
  0x76   :  { %1113 = vmatpush.bf16.msrb.mxu0 %v1830_v11  ;;  %v1763_v11 = vld [vmem:[%s2655_s0 + $0xbc] sm:$0xf] }
  0x77   :  { %v1399_v22 = vor.u32 %v1763_v11, %v1396_v12  ;;  %v1452_v11 = vld [vmem:[%s2655_s0 + $0x144] sm:$0xf0] }
  0x7a   :  { %1114 = vmatpush.bf16.msrb.mxu0 %v1829_v17  ;;  %v2393_v54 = vpop.permute.xlu0 %205  ;;  %v1391_v17 = vor.u32 %v1762_v63, %v1388_v0  ;;  %v1444_v63 = vld [vmem:[%s2655_s0 + $0x13c] sm:$0xf0] }
  0x7b   :  { %v2398_v59 = vpop.permute.xlu1 %215 }
  0x7e   :  { %1115 = vmatpush.bf16.msrb.mxu0 %v1828_v20 }
  0x81   :  { %1067 = vmatmul.bf16.vlgmr.msrb.gmra.mxu3 %v1307_v1  ;;  %1116 = vmatmul.bf16.vlgmr.msrb.gmra.mxu0 %v1311_v27 }
  0x82   :  { %v2408_v2 = vpop.permute.xlu0 %210 }
  0x83   :  { %1732 = vmatmul.msk.bf16.vlgmr.msrb.gmra.mxu2 %vm887_vm0, %v1319_v32  ;;  %1165 = vmatmul.bf16.vlgmr.msrb.gmra.mxu1 %v1315_v4  ;;  %v2430_v28 = vpop.permute.xlu1 %220 }
  0x8a   :  { %v236_v30 = vpop.permute.xlu0 %235 }
  0x8b   :  { %v241_v36 = vpop.permute.xlu1 %240 }
  0x91   :  { %1072 = vmatmul.bf16.gmra.mxu3 %v1335_v40  ;;  %1121 = vmatmul.bf16.gmra.mxu0 %v1339_v41  ;;  %v1774_v40 = vld [vmem:[%s2655_s0 + $0x110] sm:$0xf0] }
  0x92   :  { %v1770_v41 = vld [vmem:[%s2655_s0 + $0xf4] sm:$0xf]  ;;  %v1431_v19 = vor.u32 %v1774_v40, %v1430_v39  ;;  %v251_v0 = vpop.permute.xlu0 %250  ;;  %v1478_v40 = vld [vmem:[%s2655_s0 + $0x160] sm:$0xf] }
  0x93   :  { %1733 = vmatmul.msk.bf16.gmra.mxu2 %vm887_vm0, %v1347_v42  ;;  %1170 = vmatmul.bf16.gmra.mxu1 %v1343_v10  ;;  %v1424_v42 = vld [vmem:[%s2655_s0 + $0x10c] sm:$0xf0] }
  0x94   :  { %v1427_v47 = vor.u32 %v1770_v41, %v1424_v42  ;;  %v1787_v41 = vld [vmem:[%s2655_s0 + $0x178] sm:$0xf0]  ;;  %v1486_v42 = vld [vmem:[%s2655_s0 + $0x168] sm:$0xf] }
  0x9e   :  { %v2391_v50 = vpop.f32.mrf.mxu0 }
  0xa0   :  { %v980_v53 = vpop.f32.mrf.mxu1 }
  0xa1   :  { %1077 = vmatmul.bf16.gmra.mxu3 %v1363_v23  ;;  %1126 = vmatmul.bf16.gmra.mxu0 %v1367_v49 }
  0xa3   :  { %1734 = vmatmul.msk.bf16.gmra.mxu2 %vm887_vm0, %v1375_v51  ;;  %1175 = vmatmul.bf16.gmra.mxu1 %v1371_v52  ;;  %v246_v51 = vpop.permute.xlu2 %245 }
  0xa4   :  { %v931_v56 = vpop.f32.mrf.mxu3 }
  0xa5   :  { %v932_v26 = vadd.f32 %v931_v56, %v226_v55 }
  0xa6   :  { %v1029_v57 = vpop.f32.mrf.mxu2  ;;  %v2396_v58 = vpop.f32.mrf.mxu0 }
  0xa7   :  { %v981_v60 = vadd.f32 %v980_v53, %v932_v26 }
  0xa8   :  { %v982_v61 = vpop.f32.mrf.mxu1 }
  0xa9   :  { %v2400_v62 = vadd.f32 %v1029_v57, %v981_v60 }
  0xab   :  { %v261_v39 = vpop.permute.xlu2 %260 }
  0xac   :  { %v933_v13 = vpop.f32.mrf.mxu3 }
  0xad   :  { %v934_v14 = vadd.f32 %v933_v13, %v231_v3  ;;  %v1450_v3 = vld [vmem:[%s2655_s0 + $0x128] sm:$0xf] }
  0xae   :  { %v1031_v16 = vpop.f32.mrf.mxu2  ;;  %v2428_v20 = vpop.f32.mrf.mxu0 }
  0xaf   :  { %v983_v24 = vadd.f32 %v982_v61, %v934_v14  ;;  %v1776_v61 = vld [vmem:[%s2655_s0 + $0x124] sm:$0xf] }
  0xb0   :  { %v985_v25 = vpop.f32.mrf.mxu1 }
  0xb1   :  { %v2432_v29 = vadd.f32 %v1031_v16, %v983_v24  ;;  %1082 = vmatmul.bf16.gmra.mxu3 %v1391_v17  ;;  %1131 = vmatmul.bf16.gmra.mxu0 %v1395_v18  ;;  %v1447_v16 = vor.u32 %v1776_v61, %v1444_v63  ;;  %v1451_v17 = vor.u32 %v1780_v5, %v1450_v3 }
  0xb3   :  { %1735 = vmatmul.msk.bf16.gmra.mxu2 %vm887_vm0, %v1403_v21  ;;  %1180 = vmatmul.bf16.gmra.mxu1 %v1399_v22  ;;  %v1459_v21 = vor.u32 %v1781_v8, %v1458_v6  ;;  %v1455_v22 = vor.u32 %v1777_v9, %v1452_v11  ;;  %v1790_v9 = vld [vmem:[%s2655_s0 + $0x194] sm:$0xf]  ;;  %v1500_v11 = vld [vmem:[%s2655_s0 + $0x1ac] sm:$0xf0] }
  0xb4   :  { %v936_v31 = vpop.f32.mrf.mxu3 }
  0xb5   :  { %v937_v1 = vadd.f32 %v936_v31, %v236_v30  ;;  %v256_v31 = vpop.permute.xlu1 %255 }
  0xb6   :  { %v1034_v27 = vpop.f32.mrf.mxu2  ;;  %v2435_v32 = vpop.f32.mrf.mxu0 }
  0xb7   :  { %v986_v4 = vadd.f32 %v985_v25, %v937_v1 }
  0xb8   :  { %v987_v33 = vpop.f32.mrf.mxu1 }
  0xb9   :  { %v2437_v34 = vadd.f32 %v1034_v27, %v986_v4 }
  0xbc   :  { %v938_v10 = vpop.f32.mrf.mxu3 }
  0xbd   :  { %v939_v43 = vadd.f32 %v938_v10, %v241_v36  ;;  %v1788_v10 = vld [vmem:[%s2655_s0 + $0x180] sm:$0xf0] }
  0xbe   :  { %v1036_v44 = vpop.f32.mrf.mxu2  ;;  %v2463_v46 = vpop.f32.mrf.mxu0 }
  0xbf   :  { %v988_v48 = vadd.f32 %v987_v33, %v939_v43  ;;  %v1784_v43 = vld [vmem:[%s2655_s0 + $0x164] sm:$0xf] }
  0xc0   :  { %v990_v23 = vpop.f32.mrf.mxu1 }
  0xc1   :  { %v2465_v49 = vadd.f32 %v1036_v44, %v988_v48  ;;  %1087 = vmatmul.bf16.gmra.mxu3 %v1419_v15  ;;  %1136 = vmatmul.bf16.gmra.mxu0 %v1423_v45  ;;  %v1480_v44 = vld [vmem:[%s2655_s0 + $0x17c] sm:$0xf0]  ;;  %v1479_v48 = vor.u32 %v1787_v41, %v1478_v40  ;;  %v276_v40 = vpop.permute.xlu2 %275 }
  0xc3   :  { %1736 = vmatmul.msk.bf16.gmra.mxu2 %vm887_vm0, %v1431_v19  ;;  %1185 = vmatmul.bf16.gmra.mxu1 %v1427_v47  ;;  %v1475_v47 = vor.u32 %v1783_v37, %v1472_v38 }
  0xc4   :  { %v941_v52 = vpop.f32.mrf.mxu3 }
  0xc5   :  { %v942_v53 = vadd.f32 %v941_v52, %v246_v51  ;;  %v1487_v51 = vor.u32 %v1788_v10, %v1486_v42  ;;  %v1483_v52 = vor.u32 %v1784_v43, %v1480_v44 }
  0xc6   :  { %v1039_v55 = vpop.f32.mrf.mxu2  ;;  %v2468_v56 = vpop.f32.mrf.mxu0 }
  0xc7   :  { %v991_v26 = vadd.f32 %v990_v23, %v942_v53 }
  0xc8   :  { %v992_v57 = vpop.f32.mrf.mxu1 }
  0xc9   :  { %v2470_v60 = vadd.f32 %v1039_v55, %v991_v26 }
  0xcc   :  { %v943_v12 = vpop.f32.mrf.mxu3 }
  0xcd   :  { %v944_v13 = vadd.f32 %v943_v12, %v251_v0  ;;  %v271_v12 = vpop.permute.xlu1 %270 }
  0xce   :  { %v1041_v14 = vpop.f32.mrf.mxu2  ;;  %v2496_v18 = vpop.f32.mrf.mxu0 }
  0xcf   :  { %v993_v24 = vadd.f32 %v992_v57, %v944_v13  ;;  %v266_v57 = vpop.permute.xlu0 %265  ;;  %v1506_v13 = vld [vmem:[%s2655_s0 + $0x198] sm:$0xf] }
  0xd0   :  { %v995_v25 = vpop.f32.mrf.mxu1 }
  0xd1   :  { %v2498_v30 = vadd.f32 %v1041_v14, %v993_v24  ;;  %1092 = vmatmul.bf16.gmra.mxu3 %v1447_v16  ;;  %1141 = vmatmul.bf16.gmra.mxu0 %v1451_v17  ;;  %v1794_v14 = vld [vmem:[%s2655_s0 + $0x1b0] sm:$0xf0]  ;;  %v1514_v16 = vld [vmem:[%s2655_s0 + $0x1a0] sm:$0xf]  ;;  %v1795_v17 = vld [vmem:[%s2655_s0 + $0x1b8] sm:$0xf0] }
  0xd3   :  { %1737 = vmatmul.msk.bf16.gmra.mxu2 %vm887_vm0, %v1459_v21  ;;  %1190 = vmatmul.bf16.gmra.mxu1 %v1455_v22  ;;  %v1791_v21 = vld [vmem:[%s2655_s0 + $0x19c] sm:$0xf]  ;;  %v1508_v22 = vld [vmem:[%s2655_s0 + $0x1b4] sm:$0xf0] }
  0xd4   :  { %v946_v1 = vpop.f32.mrf.mxu3 }
  0xd5   :  { %v947_v27 = vadd.f32 %v946_v1, %v256_v31  ;;  %v1503_v1 = vor.u32 %v1790_v9, %v1500_v11 }
  0xd6   :  { %v1044_v4 = vpop.f32.mrf.mxu2  ;;  %v2501_v33 = vpop.f32.mrf.mxu0 }
  0xd7   :  { %v996_v35 = vadd.f32 %v995_v25, %v947_v27  ;;  %v1507_v27 = vor.u32 %v1794_v14, %v1506_v13 }
  0xd8   :  { %v997_v7 = vpop.f32.mrf.mxu1 }
  0xd9   :  { %v2503_v36 = vadd.f32 %v1044_v4, %v996_v35  ;;  %v1515_v35 = vor.u32 %v1795_v17, %v1514_v16 }
  0xdc   :  { %v948_v15 = vpop.f32.mrf.mxu3 }
  0xdd   :  { %v949_v45 = vadd.f32 %v948_v15, %v261_v39 }
  0xde   :  { %v1046_v19 = vpop.f32.mrf.mxu2  ;;  %v1019_v23 = vpop.f32.mrf.mxu0 }
  0xdf   :  { %v998_v53 = vadd.f32 %v997_v7, %v949_v45  ;;  %v1511_v7 = vor.u32 %v1791_v21, %v1508_v22 }
  0xe0   :  { %v1000_v55 = vpop.f32.mrf.mxu1 }
  0xe1   :  { %v2529_v26 = vadd.f32 %v1046_v19, %v998_v53  ;;  %1097 = vmatmul.bf16.gmra.mxu3 %v1475_v47  ;;  %1146 = vmatmul.bf16.gmra.mxu0 %v1479_v48  ;;  %v281_v19 = vpop.permute.xlu0 %280  ;;  %v922_v53 = vadd.f32 %v2391_v50, %v2393_v54 }
  0xe3   :  { %1738 = vmatmul.msk.bf16.gmra.mxu2 %vm887_vm0, %v1487_v51  ;;  %1195 = vmatmul.bf16.gmra.mxu1 %v1483_v52 }
  0xe4   :  { %v951_v61 = vpop.f32.mrf.mxu3 }
  0xe5   :  { %v952_v63 = vadd.f32 %v951_v61, %v266_v57  ;;  %v971_v61 = vadd.f32 %v2463_v46, %v922_v53 }
  0xe6   :  { %v1049_v0 = vpop.f32.mrf.mxu2  ;;  %v1021_v3 = vpop.f32.mrf.mxu0 }
  0xe7   :  { %v1001_v5 = vadd.f32 %v1000_v55, %v952_v63 }
  0xe8   :  { %v1002_v6 = vpop.f32.mrf.mxu1 }
  0xe9   :  { %v2532_v8 = vadd.f32 %v1049_v0, %v1001_v5  ;;  %v1020_v0 = vadd.f32 %v1019_v23, %v971_v61 }
  0xec   :  { %v953_v24 = vpop.f32.mrf.mxu3 }
  0xed   :  { %v954_v25 = vadd.f32 %v953_v24, %v271_v12  ;;  %v924_v12 = vadd.f32 %v2396_v58, %v2408_v2 }
  0xee   :  { %v1051_v31 = vpop.f32.mrf.mxu2  ;;  %v1024_v4 = vpop.f32.mrf.mxu0 }
  0xef   :  { %v1003_v37 = vadd.f32 %v1002_v6, %v954_v25  ;;  %v973_v16 = vadd.f32 %v2468_v56, %v924_v12  ;;  %v927_v25 = vadd.f32 %v2428_v20, %v2398_v59  ;;  %v929_v59 = vadd.f32 %v2435_v32, %v2430_v28 }
  0xf0   :  { %v1005_v38 = vpop.f32.mrf.mxu1 }
  0xf1   :  { %v2558_v39 = vadd.f32 %v1051_v31, %v1003_v37  ;;  %1102 = vmatmul.bf16.gmra.mxu3 %v1503_v1  ;;  %1151 = vmatmul.bf16.gmra.mxu0 %v1507_v27  ;;  %v1022_v50 = vadd.f32 %v1021_v3, %v973_v16  ;;  %v976_v56 = vadd.f32 %v2496_v18, %v927_v25 }
  0xf2   :  { %v978_v18 = vadd.f32 %v2501_v33, %v929_v59 }
  0xf3   :  { %1739 = vmatmul.msk.bf16.gmra.mxu2 %vm887_vm0, %v1515_v35  ;;  %1200 = vmatmul.bf16.gmra.mxu1 %v1511_v7  ;;  %v1025_v31 = vadd.f32 %v1024_v4, %v976_v56 }
  0xf4   :  { %v956_v41 = vpop.f32.mrf.mxu3 }
  0xf5   :  { %v957_v42 = vadd.f32 %v956_v41, %v276_v40 }
  0xf6   :  { %v1054_v10 = vpop.f32.mrf.mxu2  ;;  %v1026_v43 = vpop.f32.mrf.mxu0 }
  0xf7   :  { %v1006_v44 = vadd.f32 %v1005_v38, %v957_v42  ;;  %v1027_v4 = vadd.f32 %v1026_v43, %v978_v18 }
  0xf8   :  { %v1007_v15 = vpop.f32.mrf.mxu1 }
  0xf9   :  { %v2561_v45 = vadd.f32 %v1054_v10, %v1006_v44 }
  0xfc   :  { %v958_v47 = vpop.f32.mrf.mxu3 }
  0xfd   :  { %v959_v48 = vadd.f32 %v958_v47, %v281_v19 }
  0xfe   :  { %v1056_v51 = vpop.f32.mrf.mxu2  ;;  %v1117_v52 = vpop.f32.mrf.mxu0 }
  0xff   :  { %v1008_v55 = vadd.f32 %v1007_v15, %v959_v48 }
 0x100   :  { %v1166_v57 = vpop.f32.mrf.mxu1 }
 0x101   :  { %v2566_v63 = vadd.f32 %v1056_v51, %v1008_v55 }
 0x104   :  { %v1068_v5 = vpop.f32.mrf.mxu3 }
 0x105   :  { %v1069_v6 = vadd.f32 %v1068_v5, %v1020_v0 }
 0x106   :  { %v1215_v9 = vpop.f32.mrf.mxu2  ;;  %v1119_v11 = vpop.f32.mrf.mxu0 }
 0x107   :  { %v1118_v13 = vadd.f32 %v1117_v52, %v1069_v6 }
 0x108   :  { %v1168_v14 = vpop.f32.mrf.mxu1 }
 0x109   :  { %v1167_v17 = vadd.f32 %v1166_v57, %v1118_v13 }
 0x10b   :  { %v1216_v54 = vadd.f32 %v1215_v9, %v1167_v17 }
 0x10c   :  { %v1070_v21 = vpop.f32.mrf.mxu3 }
 0x10d   :  { %v1255_v46 = vpack.c.bf16 %v1216_v54, %v1216_v54  ;;  %v1071_v22 = vadd.f32 %v1070_v21, %v1022_v50 }
 0x10e   :  { %v1217_v24 = vpop.f32.mrf.mxu2  ;;  %v1122_v23 = vpop.f32.mrf.mxu0 }
 0x10f   :  { %1272 = vst.msk [vmem:[%s2656_s3] sm:$0xf] %vm1271_vm1, %v1255_v46  ;;  %v1120_v58 = vadd.f32 %v1119_v11, %v1071_v22 }
 0x110   :  { %v1171_v2 = vpop.f32.mrf.mxu1 }
 0x111   :  { %v1169_v3 = vadd.f32 %v1168_v14, %v1120_v58 }
 0x113   :  { %v1218_v1 = vadd.f32 %v1217_v24, %v1169_v3 }
 0x114   :  { %v1073_v27 = vpop.f32.mrf.mxu3 }
 0x115   :  { %v1256_v35 = vpack.c.bf16 %v1218_v1, %v1218_v1  ;;  %v1074_v7 = vadd.f32 %v1073_v27, %v1025_v31 }
 0x116   :  { %v1220_v37 = vpop.f32.mrf.mxu2  ;;  %v1124_v38 = vpop.f32.mrf.mxu0 }
 0x117   :  { %1273 = vst.msk [vmem:[%s2656_s3 + $0x4] sm:$0xf] %vm1271_vm1, %v1256_v35  ;;  %v1123_v20 = vadd.f32 %v1122_v23, %v1074_v7 }
 0x118   :  { %v1173_v40 = vpop.f32.mrf.mxu1 }
 0x119   :  { %v1172_v41 = vadd.f32 %v1171_v2, %v1123_v20 }
 0x11b   :  { %v1221_v42 = vadd.f32 %v1220_v37, %v1172_v41 }
 0x11c   :  { %v1075_v10 = vpop.f32.mrf.mxu3 }
 0x11d   :  { %v1257_v44 = vpack.c.bf16 %v1221_v42, %v1221_v42  ;;  %v1076_v15 = vadd.f32 %v1075_v10, %v1027_v4 }
 0x11e   :  { %v1222_v19 = vpop.f32.mrf.mxu2  ;;  %v1127_v47 = vpop.f32.mrf.mxu0 }
 0x11f   :  { %1274 = vst.msk [vmem:[%s2656_s3 + $0x8] sm:$0xf] %vm1271_vm1, %v1257_v44  ;;  %v1125_v28 = vadd.f32 %v1124_v38, %v1076_v15 }
 0x120   :  { %v1176_v32 = vpop.f32.mrf.mxu1 }
 0x121   :  { %v1174_v48 = vadd.f32 %v1173_v40, %v1125_v28 }
 0x123   :  { %v1223_v51 = vadd.f32 %v1222_v19, %v1174_v48 }
 0x124   :  { %v1078_v52 = vpop.f32.mrf.mxu3 }
 0x125   :  { %v1258_v53 = vpack.c.bf16 %v1223_v51, %v1223_v51  ;;  %v1079_v33 = vadd.f32 %v1078_v52, %v2400_v62 }
 0x126   :  { %v1225_v43 = vpop.f32.mrf.mxu2  ;;  %v1129_v55 = vpop.f32.mrf.mxu0 }
 0x127   :  { %1275 = vst.msk [vmem:[%s2656_s3 + $0xc] sm:$0xf] %vm1271_vm1, %v1258_v53  ;;  %v1128_v57 = vadd.f32 %v1127_v47, %v1079_v33 }
 0x128   :  { %v1178_v61 = vpop.f32.mrf.mxu1 }
 0x129   :  { %v1177_v0 = vadd.f32 %v1176_v32, %v1128_v57 }
 0x12b   :  { %v1226_v5 = vadd.f32 %v1225_v43, %v1177_v0 }
 0x12c   :  { %v1080_v6 = vpop.f32.mrf.mxu3 }
 0x12d   :  { %v1259_v9 = vpack.c.bf16 %v1226_v5, %v1226_v5  ;;  %v1081_v11 = vadd.f32 %v1080_v6, %v2432_v29 }
 0x12e   :  { %v1227_v12 = vpop.f32.mrf.mxu2  ;;  %v1132_v13 = vpop.f32.mrf.mxu0 }
 0x12f   :  { %1276 = vst.msk [vmem:[%s2656_s3 + $0x10] sm:$0xf] %vm1271_vm1, %v1259_v9  ;;  %v1130_v62 = vadd.f32 %v1129_v55, %v1081_v11 }
 0x130   :  { %v1181_v14 = vpop.f32.mrf.mxu1 }
 0x131   :  { %v1179_v16 = vadd.f32 %v1178_v61, %v1130_v62 }
 0x133   :  { %v1228_v17 = vadd.f32 %v1227_v12, %v1179_v16 }
 0x134   :  { %v1083_v50 = vpop.f32.mrf.mxu3 }
 0x135   :  { %v1260_v54 = vpack.c.bf16 %v1228_v17, %v1228_v17  ;;  %v1084_v21 = vadd.f32 %v1083_v50, %v2437_v34 }
 0x136   :  { %v1230_v46 = vpop.f32.mrf.mxu2  ;;  %v1134_v22 = vpop.f32.mrf.mxu0 }
 0x137   :  { %1277 = vst.msk [vmem:[%s2656_s3 + $0x14] sm:$0xf] %vm1271_vm1, %v1260_v54  ;;  %v1133_v29 = vadd.f32 %v1132_v13, %v1084_v21 }
 0x138   :  { %v1183_v24 = vpop.f32.mrf.mxu1 }
 0x139   :  { %v1182_v23 = vadd.f32 %v1181_v14, %v1133_v29 }
 0x13b   :  { %v1231_v25 = vadd.f32 %v1230_v46, %v1182_v23 }
 0x13c   :  { %v1085_v58 = vpop.f32.mrf.mxu3 }
 0x13d   :  { %v1261_v2 = vpack.c.bf16 %v1231_v25, %v1231_v25  ;;  %v1086_v56 = vadd.f32 %v1085_v58, %v2465_v49 }
 0x13e   :  { %v1232_v3 = vpop.f32.mrf.mxu2  ;;  %v1137_v31 = vpop.f32.mrf.mxu0 }
 0x13f   :  { %1278 = vst.msk [vmem:[%s2656_s3 + $0x18] sm:$0xf] %vm1271_vm1, %v1261_v2  ;;  %v1135_v34 = vadd.f32 %v1134_v22, %v1086_v56 }
 0x140   :  { %v1186_v1 = vpop.f32.mrf.mxu1 }
 0x141   :  { %v1184_v27 = vadd.f32 %v1183_v24, %v1135_v34 }
 0x143   :  { %v1233_v35 = vadd.f32 %v1232_v3, %v1184_v27 }
 0x144   :  { %v1088_v7 = vpop.f32.mrf.mxu3 }
 0x145   :  { %v1262_v37 = vpack.c.bf16 %v1233_v35, %v1233_v35  ;;  %v1089_v38 = vadd.f32 %v1088_v7, %v2470_v60 }
 0x146   :  { %v1235_v59 = vpop.f32.mrf.mxu2  ;;  %v1139_v20 = vpop.f32.mrf.mxu0 }
 0x147   :  { %1279 = vst.msk [vmem:[%s2656_s3 + $0x1c] sm:$0xf] %vm1271_vm1, %v1262_v37  ;;  %v1138_v49 = vadd.f32 %v1137_v31, %v1089_v38 }
 0x148   :  { %v1188_v40 = vpop.f32.mrf.mxu1 }
 0x149   :  { %v1187_v18 = vadd.f32 %v1186_v1, %v1138_v49 }
 0x14b   :  { %v1236_v41 = vadd.f32 %v1235_v59, %v1187_v18 }
 0x14c   :  { %v1090_v4 = vpop.f32.mrf.mxu3 }
 0x14d   :  { %v1263_v42 = vpack.c.bf16 %v1236_v41, %v1236_v41  ;;  %v1091_v10 = vadd.f32 %v1090_v4, %v2498_v30 }
 0x14e   :  { %v1237_v44 = vpop.f32.mrf.mxu2  ;;  %v1142_v15 = vpop.f32.mrf.mxu0 }
 0x14f   :  { %1280 = vst.msk [vmem:[%s2656_s3 + $0x20] sm:$0xf] %vm1271_vm1, %v1263_v42  ;;  %v1140_v60 = vadd.f32 %v1139_v20, %v1091_v10 }
 0x150   :  { %v1191_v19 = vpop.f32.mrf.mxu1 }
 0x151   :  { %v1189_v47 = vadd.f32 %v1188_v40, %v1140_v60 }
 0x153   :  { %v1238_v28 = vadd.f32 %v1237_v44, %v1189_v47 }
 0x154   :  { %v1093_v32 = vpop.f32.mrf.mxu3 }
 0x155   :  { %v1264_v48 = vpack.c.bf16 %v1238_v28, %v1238_v28  ;;  %v1094_v51 = vadd.f32 %v1093_v32, %v2503_v36 }
 0x156   :  { %v1240_v52 = vpop.f32.mrf.mxu2  ;;  %v1144_v53 = vpop.f32.mrf.mxu0 }
 0x157   :  { %1281 = vst.msk [vmem:[%s2656_s3 + $0x24] sm:$0xf] %vm1271_vm1, %v1264_v48  ;;  %v1143_v30 = vadd.f32 %v1142_v15, %v1094_v51 }
 0x158   :  { %v1193_v33 = vpop.f32.mrf.mxu1 }
 0x159   :  { %v1192_v43 = vadd.f32 %v1191_v19, %v1143_v30 }
 0x15b   :  { %v1241_v55 = vadd.f32 %v1240_v52, %v1192_v43 }
 0x15c   :  { %v1095_v57 = vpop.f32.mrf.mxu3 }
 0x15d   :  { %v1265_v61 = vpack.c.bf16 %v1241_v55, %v1241_v55  ;;  %v1096_v0 = vadd.f32 %v1095_v57, %v2529_v26 }
 0x15e   :  { %v1242_v5 = vpop.f32.mrf.mxu2  ;;  %v1147_v6 = vpop.f32.mrf.mxu0 }
 0x15f   :  { %1282 = vst.msk [vmem:[%s2656_s3 + $0x28] sm:$0xf] %vm1271_vm1, %v1265_v61  ;;  %v1145_v36 = vadd.f32 %v1144_v53, %v1096_v0 }
 0x160   :  { %v1196_v11 = vpop.f32.mrf.mxu1 }
 0x161   :  { %v1194_v9 = vadd.f32 %v1193_v33, %v1145_v36 }
 0x163   :  { %v1243_v12 = vadd.f32 %v1242_v5, %v1194_v9 }
 0x164   :  { %v1098_v13 = vpop.f32.mrf.mxu3 }
 0x165   :  { %v1266_v62 = vpack.c.bf16 %v1243_v12, %v1243_v12  ;;  %v1099_v14 = vadd.f32 %v1098_v13, %v2532_v8 }
 0x166   :  { %v1245_v16 = vpop.f32.mrf.mxu2  ;;  %v1149_v50 = vpop.f32.mrf.mxu0 }
 0x167   :  { %1283 = vst.msk [vmem:[%s2656_s3 + $0x2c] sm:$0xf] %vm1271_vm1, %v1266_v62  ;;  %v1148_v26 = vadd.f32 %v1147_v6, %v1099_v14 }
 0x168   :  { %v1198_v21 = vpop.f32.mrf.mxu1 }
 0x169   :  { %v1197_v17 = vadd.f32 %v1196_v11, %v1148_v26 }
 0x16b   :  { %v1246_v54 = vadd.f32 %v1245_v16, %v1197_v17 }
 0x16c   :  { %v1100_v46 = vpop.f32.mrf.mxu3 }
 0x16d   :  { %v1267_v22 = vpack.c.bf16 %v1246_v54, %v1246_v54  ;;  %v1101_v29 = vadd.f32 %v1100_v46, %v2558_v39 }
 0x16e   :  { %v1247_v24 = vpop.f32.mrf.mxu2  ;;  %v1152_v58 = vpop.f32.mrf.mxu0 }
 0x16f   :  { %1284 = vst.msk [vmem:[%s2656_s3 + $0x30] sm:$0xf] %vm1271_vm1, %v1267_v22  ;;  %v1150_v8 = vadd.f32 %v1149_v50, %v1101_v29 }
 0x170   :  { %v1201_v31 = vpop.f32.mrf.mxu1 }
 0x171   :  { %v1199_v23 = vadd.f32 %v1198_v21, %v1150_v8 }
 0x173   :  { %v1248_v25 = vadd.f32 %v1247_v24, %v1199_v23 }
 0x174   :  { %v1103_v2 = vpop.f32.mrf.mxu3 }
 0x175   :  { %v1268_v56 = vpack.c.bf16 %v1248_v25, %v1248_v25  ;;  %v1104_v3 = vadd.f32 %v1103_v2, %v2561_v45 }
 0x176   :  { %v1250_v34 = vpop.f32.mrf.mxu2  ;;  %v1154_v38 = vpop.f32.mrf.mxu0 }
 0x177   :  { %1285 = vst.msk [vmem:[%s2656_s3 + $0x34] sm:$0xf] %vm1271_vm1, %v1268_v56  ;;  %v1153_v39 = vadd.f32 %v1152_v58, %v1104_v3 }
 0x178   :  { %v1203_v59 = vpop.f32.mrf.mxu1 }
 0x179   :  { %v1202_v1 = vadd.f32 %v1201_v31, %v1153_v39 }
 0x17b   :  { %v1251_v27 = vadd.f32 %v1250_v34, %v1202_v1 }
 0x17c   :  { %v1105_v35 = vpop.f32.mrf.mxu3 }
 0x17d   :  { %v1269_v7 = vpack.c.bf16 %v1251_v27, %v1251_v27  ;;  %v1106_v37 = vadd.f32 %v1105_v35, %v2566_v63 }
 0x17e   :  { %v1252_v49 = vpop.f32.mrf.mxu2 }
 0x17f   :  { %1286 = vst.msk [vmem:[%s2656_s3 + $0x38] sm:$0xf] %vm1271_vm1, %v1269_v7  ;;  %v1155_v45 = vadd.f32 %v1154_v38, %v1106_v37 }
 0x181   :  { %v1204_v20 = vadd.f32 %v1203_v59, %v1155_v45 }
 0x183   :  { %v1253_v40 = vadd.f32 %v1252_v49, %v1204_v20 }
 0x185   :  { %v1270_v18 = vpack.c.bf16 %v1253_v40, %v1253_v40 }
 0x187   :  { %1287 = vst.msk [vmem:[%s2656_s3 + $0x3c] sm:$0xf] %vm1271_vm1, %v1270_v18 }

// kernel: bires_center_lstm_forward.31
= control target key start
LH: loop header
LB: loop body
LE: loop exit
PB: predicated region body
PF: predicated region fallthrough
CT: control target
= control target key end

     0   :  { %v198_v0 = vmov 0   ;;  %vm99_vm0 = vcmask 130048   ;;  %vm149_vm1 = vcmask 125952   ;;  %s290_s2 = inlined_call_operand.vmem [shape: f32[64,1], index: 2, kind: input, shape index: {}]   ;;  %s291_s1 = inlined_call_operand.vmem [shape: bf16[16,16], index: 1, kind: input, shape index: {}]   ;;  %s292_s0 = inlined_call_operand.vmem [shape: bf16[64,16], index: 0, kind: input, shape index: {}]   ;;  %s293_s3 = inlined_call_operand.vmem [shape: bf16[64,16], index: 3, kind: output, shape index: {}]  }
   0x1   :  { %196 = vset.pattern.permute.xlu1 %v198_v0  ;;  %195 = vset.pattern.permute.xlu0 %v198_v0  ;;  %v27_v1 = vld [vmem:[%s290_s2 + $0x10] sm:$0xff]  ;;  %v25_v2 = vld [vmem:[%s290_s2] sm:$0xff]  ;;  %v187_v5 = vld [vmem:[%s292_s0 + $0x8] sm:$0xff] }
   0x2   :  { %v190_v3 = vld [vmem:[%s291_s1] sm:$0xff]  ;;  %45 = vperm.xlu1 %196, %v27_v1   ;;  %35 = vperm.xlu0 %195, %v25_v2   ;;  %v188_v6 = vld [vmem:[%s292_s0 + $0x10] sm:$0xff]  ;;  %v189_v7 = vld [vmem:[%s292_s0 + $0x18] sm:$0xff] }
   0x3   :  { %v186_v4 = vld [vmem:[%s292_s0] sm:$0xff]  ;;  %119 = vmatpush.bf16.msra.mxu0 %v190_v3  ;;  %191 = vmatpush.bf16.msra.mxu1 %v190_v3  ;;  %v28_v9 = vld [vmem:[%s290_s2 + $0x18] sm:$0xff]  ;;  %v26_v10 = vld [vmem:[%s290_s2 + $0x8] sm:$0xff] }
   0x4   :  { %192 = vmatpush.bf16.msra.mxu2 %v190_v3  ;;  %193 = vmatpush.bf16.msra.mxu3 %v190_v3  ;;  %v29_v8 = vld [vmem:[%s290_s2 + $0x20] sm:$0xff]  ;;  %v30_v11 = vld [vmem:[%s290_s2 + $0x28] sm:$0xff]  ;;  %v32_v12 = vld [vmem:[%s290_s2 + $0x38] sm:$0xff] }
   0x5   :  { %197 = vset.pattern.permute.xlu2 %v198_v0  ;;  %v31_v13 = vld [vmem:[%s290_s2 + $0x30] sm:$0xff] }
   0x6   :  { %182 = vmatmul.msk.bf16.vlgmr.msra.gmra.mxu0 %vm99_vm0, %v186_v4  ;;  %183 = vmatmul.msk.bf16.vlgmr.msra.gmra.mxu1 %vm99_vm0, %v187_v5 }
   0x7   :  { %184 = vmatmul.msk.bf16.vlgmr.msra.gmra.mxu2 %vm99_vm0, %v188_v6  ;;  %185 = vmatmul.msk.bf16.vlgmr.msra.gmra.mxu3 %vm99_vm0, %v189_v7 }
   0x8   :  { %55 = vperm.xlu2 %197, %v29_v8  }
   0xa   :  { %50 = vperm.xlu1 %196, %v28_v9   ;;  %40 = vperm.xlu0 %195, %v26_v10  }
  0x10   :  { %60 = vperm.xlu2 %197, %v30_v11  }
  0x12   :  { %70 = vperm.xlu1 %196, %v32_v12   ;;  %65 = vperm.xlu0 %195, %v31_v13  }
  0x62   :  { %v56_v24 = vpop.permute.xlu2 %55 }
  0x6a   :  { %v61_v39 = vpop.permute.xlu2 %60 }
  0x74   :  { %v36_v14 = vpop.permute.xlu0 %35  ;;  %v46_v15 = vpop.permute.xlu1 %45 }
  0x7c   :  { %v41_v16 = vpop.permute.xlu0 %40  ;;  %v51_v23 = vpop.permute.xlu1 %50 }
  0x83   :  { %v121_v17 = vpop.f32.mrf.mxu0  ;;  %v126_v18 = vpop.f32.mrf.mxu1 }
  0x84   :  { %v122_v19 = vadd.f32 %v121_v17, %v36_v14  ;;  %v127_v20 = vadd.f32 %v126_v18, %v46_v15  ;;  %v66_v25 = vpop.permute.xlu0 %65  ;;  %v71_v38 = vpop.permute.xlu1 %70 }
  0x86   :  { %v141_v21 = vpack.c.bf16 %v122_v19, %v122_v19  ;;  %v143_v22 = vpack.c.bf16 %v127_v20, %v127_v20 }
  0x88   :  { %150 = vst.msk [vmem:[%s293_s3] sm:$0xf] %vm149_vm1, %v141_v21 }
  0x89   :  { %152 = vst.msk [vmem:[%s293_s3 + $0x8] sm:$0xf] %vm149_vm1, %v143_v22 }
  0x8a   :  { %v131_v26 = vpop.f32.mrf.mxu2  ;;  %v136_v27 = vpop.f32.mrf.mxu3 }
  0x8b   :  { %v132_v28 = vadd.f32 %v131_v26, %v56_v24  ;;  %v137_v29 = vadd.f32 %v136_v27, %v66_v25  ;;  %v123_v30 = vpop.f32.mrf.mxu0  ;;  %v128_v31 = vpop.f32.mrf.mxu1 }
  0x8c   :  { %v124_v32 = vadd.f32 %v123_v30, %v41_v16  ;;  %v129_v33 = vadd.f32 %v128_v31, %v51_v23 }
  0x8d   :  { %v145_v34 = vpack.c.bf16 %v132_v28, %v132_v28  ;;  %v147_v35 = vpack.c.bf16 %v137_v29, %v137_v29 }
  0x8e   :  { %v142_v36 = vpack.c.bf16 %v124_v32, %v124_v32  ;;  %v144_v37 = vpack.c.bf16 %v129_v33, %v129_v33 }
  0x8f   :  { %154 = vst.msk [vmem:[%s293_s3 + $0x10] sm:$0xf] %vm149_vm1, %v145_v34 }
  0x90   :  { %156 = vst.msk [vmem:[%s293_s3 + $0x18] sm:$0xf] %vm149_vm1, %v147_v35 }
  0x91   :  { %151 = vst.msk [vmem:[%s293_s3 + $0x4] sm:$0xf] %vm149_vm1, %v142_v36 }
  0x92   :  { %153 = vst.msk [vmem:[%s293_s3 + $0xc] sm:$0xf] %vm149_vm1, %v144_v37  ;;  %v133_v40 = vpop.f32.mrf.mxu2  ;;  %v138_v41 = vpop.f32.mrf.mxu3 }
  0x93   :  { %v134_v42 = vadd.f32 %v133_v40, %v61_v39  ;;  %v139_v43 = vadd.f32 %v138_v41, %v71_v38 }
  0x95   :  { %v146_v44 = vpack.c.bf16 %v134_v42, %v134_v42  ;;  %v148_v45 = vpack.c.bf16 %v139_v43, %v139_v43 }
  0x97   :  { %155 = vst.msk [vmem:[%s293_s3 + $0x14] sm:$0xf] %vm149_vm1, %v146_v44 }
  0x98   :  { %157 = vst.msk [vmem:[%s293_s3 + $0x1c] sm:$0xf] %vm149_vm1, %v148_v45 }

// kernel: bires_center_lstm_forward.30
= control target key start
LH: loop header
LB: loop body
LE: loop exit
PB: predicated region body
PF: predicated region fallthrough
CT: control target
= control target key end

     0   :  { %v923_v20 = vmov 0   ;;  %vm502_vm0 = vcmask 785408   ;;  %vm608_vm1 = vcmask 125952   ;;  %s1160_s1 = inlined_call_operand.vmem [shape: bf16[864,16], index: 1, kind: input, shape index: {}]   ;;  %s1161_s2 = inlined_call_operand.vmem [shape: f32[16,1], index: 2, kind: input, shape index: {}]   ;;  %s1162_s0 = inlined_call_operand.vmem [shape: bf16[16,864], index: 0, kind: input, shape index: {}]   ;;  %s1163_s3 = inlined_call_operand.vmem [shape: bf16[16,16], index: 3, kind: output, shape index: {}]  }
   0x1   :  { %v874_v0 = vld [vmem:[%s1160_s1 + $0x38] sm:$0xff]  ;;  %v873_v3 = vld [vmem:[%s1160_s1 + $0x30] sm:$0xff]  ;;  %v872_v8 = vld [vmem:[%s1160_s1 + $0x28] sm:$0xff]  ;;  %922 = vset.pattern.permute.xlu0 %v923_v20 }
   0x2   :  { %v882_v1 = vld [vmem:[%s1160_s1 + $0x78] sm:$0xff]  ;;  %506 = vmatpush.bf16.msra.mxu0 %v874_v0  ;;  %v881_v4 = vld [vmem:[%s1160_s1 + $0x70] sm:$0xff]  ;;  %v880_v9 = vld [vmem:[%s1160_s1 + $0x68] sm:$0xff] }
   0x3   :  { %v890_v2 = vld [vmem:[%s1160_s1 + $0xb8] sm:$0xff]  ;;  %520 = vmatpush.bf16.msra.mxu1 %v882_v1  ;;  %v889_v6 = vld [vmem:[%s1160_s1 + $0xb0] sm:$0xff]  ;;  %v888_v10 = vld [vmem:[%s1160_s1 + $0xa8] sm:$0xff] }
   0x4   :  { %v898_v5 = vld [vmem:[%s1160_s1 + $0xf8] sm:$0xff]  ;;  %534 = vmatpush.bf16.msra.mxu2 %v890_v2  ;;  %v897_v7 = vld [vmem:[%s1160_s1 + $0xf0] sm:$0xff]  ;;  %v896_v11 = vld [vmem:[%s1160_s1 + $0xe8] sm:$0xff] }
   0x5   :  { %548 = vmatpush.bf16.msra.mxu3 %v898_v5  ;;  %v871_v12 = vld [vmem:[%s1160_s1 + $0x20] sm:$0xff]  ;;  %v870_v16 = vld [vmem:[%s1160_s1 + $0x18] sm:$0xff]  ;;  %v869_v21 = vld [vmem:[%s1160_s1 + $0x10] sm:$0xff] }
   0x6   :  { %507 = vmatpush.bf16.msra.mxu0 %v873_v3  ;;  %v879_v13 = vld [vmem:[%s1160_s1 + $0x60] sm:$0xff]  ;;  %v878_v17 = vld [vmem:[%s1160_s1 + $0x58] sm:$0xff]  ;;  %v877_v22 = vld [vmem:[%s1160_s1 + $0x50] sm:$0xff] }
   0x7   :  { %521 = vmatpush.bf16.msra.mxu1 %v881_v4  ;;  %v887_v14 = vld [vmem:[%s1160_s1 + $0xa0] sm:$0xff]  ;;  %v886_v18 = vld [vmem:[%s1160_s1 + $0x98] sm:$0xff]  ;;  %v885_v24 = vld [vmem:[%s1160_s1 + $0x90] sm:$0xff] }
   0x8   :  { %535 = vmatpush.bf16.msra.mxu2 %v889_v6  ;;  %v895_v15 = vld [vmem:[%s1160_s1 + $0xe0] sm:$0xff]  ;;  %v894_v19 = vld [vmem:[%s1160_s1 + $0xd8] sm:$0xff]  ;;  %v893_v25 = vld [vmem:[%s1160_s1 + $0xd0] sm:$0xff] }
   0x9   :  { %549 = vmatpush.bf16.msra.mxu3 %v897_v7  ;;  %v131_v23 = vld [vmem:[%s1161_s2] sm:$0xff]  ;;  %v868_v26 = vld [vmem:[%s1160_s1 + $0x8] sm:$0xff]  ;;  %v906_v34 = vld [vmem:[%s1160_s1 + $0x138] sm:$0xff] }
   0xa   :  { %508 = vmatpush.bf16.msra.mxu0 %v872_v8  ;;  %135 = vperm.xlu0 %922, %v131_v23   ;;  %v876_v27 = vld [vmem:[%s1160_s1 + $0x48] sm:$0xff]  ;;  %v867_v29 = vld [vmem:[%s1160_s1] sm:$0xff]  ;;  %v863_v37 = vld [vmem:[%s1162_s0 + $0x18] sm:$0xf0] }
   0xb   :  { %522 = vmatpush.bf16.msra.mxu1 %v880_v9  ;;  %v884_v28 = vld [vmem:[%s1160_s1 + $0x88] sm:$0xff]  ;;  %v875_v32 = vld [vmem:[%s1160_s1 + $0x40] sm:$0xff]  ;;  %v914_v41 = vld [vmem:[%s1160_s1 + $0x178] sm:$0xff] }
   0xc   :  { %536 = vmatpush.bf16.msra.mxu2 %v888_v10  ;;  %v892_v30 = vld [vmem:[%s1160_s1 + $0xc8] sm:$0xff]  ;;  %v883_v33 = vld [vmem:[%s1160_s1 + $0x80] sm:$0xff]  ;;  %v905_v49 = vld [vmem:[%s1160_s1 + $0x130] sm:$0xff] }
   0xd   :  { %550 = vmatpush.bf16.msra.mxu3 %v896_v11  ;;  %v132_v31 = vld [vmem:[%s1161_s2 + $0x8] sm:$0xff]  ;;  %v617_v36 = vld [vmem:[%s1162_s0] sm:$0xf]  ;;  %v864_v38 = vld [vmem:[%s1162_s0 + $0x20] sm:$0xf0] }
   0xe   :  { %509 = vmatpush.bf16.msra.mxu0 %v871_v12  ;;  %v625_v35 = vld [vmem:[%s1162_s0 + $0x8] sm:$0xf]  ;;  %v860_v39 = vld [vmem:[%s1162_s0 + $0x4] sm:$0xf]  ;;  %v619_v40 = vld [vmem:[%s1162_s0 + $0x1c] sm:$0xf0]  ;;  %v618_v44 = vor.u32 %v863_v37, %v617_v36 }
   0xf   :  { %523 = vmatpush.bf16.msra.mxu1 %v879_v13  ;;  %v920_v42 = vld [vmem:[%s1160_s1 + $0x1a8] sm:$0xff]  ;;  %v891_v43 = vld [vmem:[%s1160_s1 + $0xc0] sm:$0xff]  ;;  %v626_v45 = vor.u32 %v864_v38, %v625_v35  ;;  %v622_v48 = vor.u32 %v860_v39, %v619_v40  ;;  %v913_v50 = vld [vmem:[%s1160_s1 + $0x170] sm:$0xff] }
  0x10   :  { %537 = vmatpush.bf16.msra.mxu2 %v887_v14  ;;  %v861_v46 = vld [vmem:[%s1162_s0 + $0xc] sm:$0xf]  ;;  %v627_v47 = vld [vmem:[%s1162_s0 + $0x24] sm:$0xf0]  ;;  %v919_v51 = vld [vmem:[%s1160_s1 + $0x1a0] sm:$0xff] }
  0x11   :  { %551 = vmatpush.bf16.msra.mxu3 %v895_v15  ;;  %v630_v52 = vor.u32 %v861_v46, %v627_v47  ;;  %v904_v53 = vld [vmem:[%s1160_s1 + $0x128] sm:$0xff]  ;;  %v918_v55 = vld [vmem:[%s1160_s1 + $0x198] sm:$0xff]  ;;  %v903_v56 = vld [vmem:[%s1160_s1 + $0x120] sm:$0xff] }
  0x12   :  { %510 = vmatpush.bf16.msra.mxu0 %v870_v16  ;;  %140 = vperm.xlu0 %922, %v132_v31   ;;  %v912_v54 = vld [vmem:[%s1160_s1 + $0x168] sm:$0xff]  ;;  %v911_v57 = vld [vmem:[%s1160_s1 + $0x160] sm:$0xff]  ;;  %v917_v58 = vld [vmem:[%s1160_s1 + $0x190] sm:$0xff] }
  0x13   :  { %524 = vmatpush.bf16.msra.mxu1 %v878_v17  ;;  %v902_v59 = vld [vmem:[%s1160_s1 + $0x118] sm:$0xff]  ;;  %v916_v61 = vld [vmem:[%s1160_s1 + $0x188] sm:$0xff]  ;;  %v901_v62 = vld [vmem:[%s1160_s1 + $0x110] sm:$0xff] }
  0x14   :  { %538 = vmatpush.bf16.msra.mxu2 %v886_v18  ;;  %v910_v60 = vld [vmem:[%s1160_s1 + $0x158] sm:$0xff]  ;;  %v909_v63 = vld [vmem:[%s1160_s1 + $0x150] sm:$0xff]  ;;  %v915_v0 = vld [vmem:[%s1160_s1 + $0x180] sm:$0xff] }
  0x15   :  { %552 = vmatpush.bf16.msra.mxu3 %v894_v19  ;;  %v641_v1 = vld [vmem:[%s1162_s0 + $0x18] sm:$0xf]  ;;  %v866_v2 = vld [vmem:[%s1162_s0 + $0x30] sm:$0xf0]  ;;  %v900_v4 = vld [vmem:[%s1160_s1 + $0x108] sm:$0xff] }
  0x16   :  { %511 = vmatpush.bf16.msra.mxu0 %v869_v21  ;;  %v642_v3 = vor.u32 %v866_v2, %v641_v1  ;;  %v908_v5 = vld [vmem:[%s1160_s1 + $0x148] sm:$0xff]  ;;  %v899_v6 = vld [vmem:[%s1160_s1 + $0x100] sm:$0xff]  ;;  %v633_v7 = vld [vmem:[%s1162_s0 + $0x10] sm:$0xf] }
  0x17   :  { %525 = vmatpush.bf16.msra.mxu1 %v877_v22  ;;  %v865_v8 = vld [vmem:[%s1162_s0 + $0x28] sm:$0xf0]  ;;  %v907_v9 = vld [vmem:[%s1160_s1 + $0x140] sm:$0xff]  ;;  %v862_v10 = vld [vmem:[%s1162_s0 + $0x14] sm:$0xf] }
  0x18   :  { %539 = vmatpush.bf16.msra.mxu2 %v885_v24  ;;  %v635_v11 = vld [vmem:[%s1162_s0 + $0x2c] sm:$0xf0]  ;;  %v634_v12 = vor.u32 %v865_v8, %v633_v7 }
  0x19   :  { %553 = vmatpush.bf16.msra.mxu3 %v893_v25  ;;  %v638_v13 = vor.u32 %v862_v10, %v635_v11 }
  0x1a   :  { %512 = vmatpush.bf16.msra.mxu0 %v868_v26 }
  0x1b   :  { %526 = vmatpush.bf16.msra.mxu1 %v876_v27 }
  0x1c   :  { %540 = vmatpush.bf16.msra.mxu2 %v884_v28 }
  0x1d   :  { %554 = vmatpush.bf16.msra.mxu3 %v892_v30 }
  0x1e   :  { %513 = vmatpush.bf16.msra.mxu0 %v867_v29 }
  0x1f   :  { %527 = vmatpush.bf16.msra.mxu1 %v875_v32 }
  0x20   :  { %541 = vmatpush.bf16.msra.mxu2 %v883_v33 }
  0x21   :  { %555 = vmatpush.bf16.msra.mxu3 %v891_v43  ;;  %514 = vmatmul.bf16.vlgmr.msra.gmra.mxu0 %v618_v44 }
  0x22   :  { %562 = vmatpush.bf16.msrb.mxu0 %v906_v34  ;;  %528 = vmatmul.bf16.vlgmr.msra.gmra.mxu1 %v622_v48 }
  0x23   :  { %576 = vmatpush.bf16.msrb.mxu1 %v914_v41  ;;  %542 = vmatmul.bf16.vlgmr.msra.gmra.mxu2 %v626_v45 }
  0x24   :  { %592 = vmatpush.bf16.msrb.mxu2 %v920_v42  ;;  %556 = vmatmul.bf16.vlgmr.msra.gmra.mxu3 %v630_v52 }
  0x26   :  { %563 = vmatpush.bf16.msrb.mxu0 %v905_v49 }
  0x27   :  { %577 = vmatpush.bf16.msrb.mxu1 %v913_v50 }
  0x28   :  { %593 = vmatpush.bf16.msrb.mxu2 %v919_v51 }
  0x2a   :  { %564 = vmatpush.bf16.msrb.mxu0 %v904_v53 }
  0x2b   :  { %578 = vmatpush.bf16.msrb.mxu1 %v912_v54 }
  0x2c   :  { %594 = vmatpush.bf16.msrb.mxu2 %v918_v55 }
  0x2e   :  { %565 = vmatpush.bf16.msrb.mxu0 %v903_v56 }
  0x2f   :  { %579 = vmatpush.bf16.msrb.mxu1 %v911_v57 }
  0x30   :  { %595 = vmatpush.bf16.msrb.mxu2 %v917_v58 }
  0x32   :  { %566 = vmatpush.bf16.msrb.mxu0 %v902_v59 }
  0x33   :  { %580 = vmatpush.bf16.msrb.mxu1 %v910_v60 }
  0x34   :  { %596 = vmatpush.bf16.msrb.mxu2 %v916_v61 }
  0x36   :  { %567 = vmatpush.bf16.msrb.mxu0 %v901_v62 }
  0x37   :  { %581 = vmatpush.bf16.msrb.mxu1 %v909_v63 }
  0x38   :  { %597 = vmatpush.bf16.msrb.mxu2 %v915_v0 }
  0x3a   :  { %568 = vmatpush.bf16.msrb.mxu0 %v900_v4 }
  0x3b   :  { %859 = vmatmul.msk.bf16.vlgmr.msrb.gmra.mxu2 %vm502_vm0, %v642_v3  ;;  %582 = vmatpush.bf16.msrb.mxu1 %v908_v5 }
  0x3e   :  { %569 = vmatpush.bf16.msrb.mxu0 %v899_v6 }
  0x3f   :  { %583 = vmatpush.bf16.msrb.mxu1 %v907_v9 }
  0x41   :  { %570 = vmatmul.bf16.vlgmr.msrb.gmra.mxu0 %v634_v12 }
  0x42   :  { %584 = vmatmul.bf16.vlgmr.msrb.gmra.mxu1 %v638_v13 }
  0x7c   :  { %v136_v14 = vpop.permute.xlu0 %135 }
  0x84   :  { %v141_v20 = vpop.permute.xlu0 %140 }
  0x9e   :  { %v515_v15 = vpop.f32.mrf.mxu0 }
  0x9f   :  { %v529_v16 = vpop.f32.mrf.mxu1  ;;  %v516_v18 = vadd.f32 %v515_v15, %v136_v14 }
  0xa1   :  { %v530_v19 = vadd.f32 %v529_v16, %v516_v18 }
  0xa6   :  { %v543_v17 = vpop.f32.mrf.mxu2  ;;  %v517_v21 = vpop.f32.mrf.mxu0 }
  0xa7   :  { %v531_v22 = vpop.f32.mrf.mxu1  ;;  %v557_v23 = vpop.f32.mrf.mxu3  ;;  %v544_v25 = vadd.f32 %v543_v17, %v530_v19  ;;  %v518_v26 = vadd.f32 %v517_v21, %v141_v20 }
  0xa9   :  { %v558_v27 = vadd.f32 %v557_v23, %v544_v25  ;;  %v532_v28 = vadd.f32 %v531_v22, %v518_v26 }
  0xae   :  { %v545_v24 = vpop.f32.mrf.mxu2 }
  0xaf   :  { %v546_v33 = vadd.f32 %v545_v24, %v532_v28  ;;  %v559_v35 = vpop.f32.mrf.mxu3 }
  0xb1   :  { %v560_v37 = vadd.f32 %v559_v35, %v546_v33 }
  0xbe   :  { %v571_v29 = vpop.f32.mrf.mxu0  ;;  %v599_v32 = vpop.f32.mrf.mxu2 }
  0xbf   :  { %v572_v30 = vadd.f32 %v571_v29, %v558_v27  ;;  %v585_v31 = vpop.f32.mrf.mxu1 }
  0xc1   :  { %v586_v34 = vadd.f32 %v585_v31, %v572_v30 }
  0xc3   :  { %v600_v36 = vadd.f32 %v599_v32, %v586_v34 }
  0xc5   :  { %v604_v38 = vmax.f32 %v600_v36, 0.0 }
  0xc6   :  { %v573_v39 = vpop.f32.mrf.mxu0  ;;  %v601_v44 = vpop.f32.mrf.mxu2 }
  0xc7   :  { %v606_v40 = vpack.c.bf16 %v604_v38, %v604_v38  ;;  %v574_v41 = vadd.f32 %v573_v39, %v560_v37  ;;  %v587_v42 = vpop.f32.mrf.mxu1 }
  0xc9   :  { %609 = vst.msk [vmem:[%s1163_s3] sm:$0xf] %vm608_vm1, %v606_v40  ;;  %v588_v43 = vadd.f32 %v587_v42, %v574_v41 }
  0xcb   :  { %v602_v45 = vadd.f32 %v601_v44, %v588_v43 }
  0xcd   :  { %v605_v46 = vmax.f32 %v602_v45, 0.0 }
  0xcf   :  { %v607_v47 = vpack.c.bf16 %v605_v46, %v605_v46 }
  0xd1   :  { %610 = vst.msk [vmem:[%s1163_s3 + $0x4] sm:$0xf] %vm608_vm1, %v607_v47 }

// kernel: bires_center_lstm_forward.33
= control target key start
LH: loop header
LB: loop body
LE: loop exit
PB: predicated region body
PF: predicated region fallthrough
CT: control target
= control target key end

     0   :  { %vm61_vm0 = vcmask 1043456   ;;  %v123_v2 = vmov 0   ;;  %vm54_vm1 = vcmask 64512   ;;  %s171_s1 = inlined_call_operand.vmem [shape: bf16[8,128], index: 1, kind: input, shape index: {}]   ;;  %s172_s0 = inlined_call_operand.vmem [shape: bf16[32,8], index: 0, kind: input, shape index: {}]   ;;  %s173_s2 = inlined_call_operand.vmem [shape: f32[32,1], index: 2, kind: input, shape index: {}]   ;;  %s174_s3 = inlined_call_operand.vmem [shape: bf16[32,128], index: 3, kind: output, shape index: {}]  }
   0x1   :  { %v19_v0 = vld [vmem:[%s171_s1] sm:$0xf]  ;;  %122 = vset.pattern.permute.xlu1 %v123_v2  ;;  %121 = vset.pattern.permute.xlu0 %v123_v2  ;;  %v107_v4 = vld [vmem:[%s172_s0 + $0x8] sm:$0xff]  ;;  %v22_v5 = vld [vmem:[%s173_s2 + $0x10] sm:$0xff] }
   0x2   :  { %v106_v1 = vld [vmem:[%s172_s0] sm:$0xff]  ;;  %v63_v3 = vsel %vm61_vm0, %v19_v0, 0  ;;  %36 = vperm.xlu1 %122, %v22_v5   ;;  %v23_v7 = vld [vmem:[%s173_s2 + $0x18] sm:$0xff]  ;;  %v21_v8 = vld [vmem:[%s173_s2 + $0x8] sm:$0xff] }
   0x3   :  { %v20_v6 = vld [vmem:[%s173_s2] sm:$0xff]  ;;  %72 = vmatpush.bf16.msra.mxu0 %v63_v3  ;;  %119 = vmatpush.bf16.msra.mxu1 %v63_v3 }
   0x4   :  { %26 = vperm.xlu0 %121, %v20_v6  }
   0x6   :  { %104 = vmatmul.msk.bf16.vlgmr.msra.gmra.mxu0 %vm54_vm1, %v106_v1  ;;  %105 = vmatmul.msk.bf16.vlgmr.msra.gmra.mxu1 %vm54_vm1, %v107_v4 }
   0xa   :  { %41 = vperm.xlu1 %122, %v23_v7  }
   0xc   :  { %31 = vperm.xlu0 %121, %v21_v8  }
  0x74   :  { %v37_v9 = vpop.permute.xlu1 %36 }
  0x76   :  { %v27_v10 = vpop.permute.xlu0 %26 }
  0x7c   :  { %v42_v13 = vpop.permute.xlu1 %41 }
  0x7e   :  { %v32_v14 = vpop.permute.xlu0 %31 }
  0x83   :  { %v74_v11 = vpop.f32.mrf.mxu0  ;;  %v79_v12 = vpop.f32.mrf.mxu1 }
  0x84   :  { %v75_v17 = vadd.f32 %v74_v11, %v27_v10  ;;  %v80_v18 = vadd.f32 %v79_v12, %v37_v9 }
  0x8b   :  { %v76_v15 = vpop.f32.mrf.mxu0  ;;  %v81_v16 = vpop.f32.mrf.mxu1 }
  0x8c   :  { %v77_v19 = vadd.f32 %v76_v15, %v32_v14  ;;  %v82_v20 = vadd.f32 %v81_v16, %v42_v13 }
  0x8e   :  { %v111_v21 = vpack.c.bf16 %v77_v19, %v75_v17  ;;  %v116_v22 = vpack.c.bf16 %v82_v20, %v80_v18 }
  0x90   :  { %112 = vst [vmem:[%s174_s3] sm:$0xff] %v111_v21  }
  0x91   :  { %118 = vst [vmem:[%s174_s3 + $0x8] sm:$0xff] %v116_v22  }

// kernel: bires_center_lstm_forward.32
= control target key start
LH: loop header
LB: loop body
LE: loop exit
PB: predicated region body
PF: predicated region fallthrough
CT: control target
= control target key end

     0   :  { %v453_v6 = vmov 0   ;;  %vm252_vm0 = vcmask 392192   ;;  %s567_s1 = inlined_call_operand.vmem [shape: bf16[432,128], index: 1, kind: input, shape index: {}]   ;;  %s568_s0 = inlined_call_operand.vmem [shape: bf16[8,432], index: 0, kind: input, shape index: {}]   ;;  %s569_s2 = inlined_call_operand.vmem [shape: f32[8,1], index: 2, kind: input, shape index: {}]   ;;  %s570_s3 = inlined_call_operand.vmem [shape: bf16[8,128], index: 3, kind: output, shape index: {}]  }
   0x1   :  { %v431_v0 = vld [vmem:[%s567_s1 + $0x38] sm:$0xff]  ;;  %v430_v3 = vld [vmem:[%s567_s1 + $0x30] sm:$0xff]  ;;  %452 = vset.pattern.permute.xlu0 %v453_v6  ;;  %v429_v8 = vld [vmem:[%s567_s1 + $0x28] sm:$0xff] }
   0x2   :  { %v439_v1 = vld [vmem:[%s567_s1 + $0x78] sm:$0xff]  ;;  %256 = vmatpush.bf16.msra.mxu0 %v431_v0  ;;  %v438_v4 = vld [vmem:[%s567_s1 + $0x70] sm:$0xff]  ;;  %v437_v9 = vld [vmem:[%s567_s1 + $0x68] sm:$0xff] }
   0x3   :  { %v447_v2 = vld [vmem:[%s567_s1 + $0xb8] sm:$0xff]  ;;  %269 = vmatpush.bf16.msra.mxu1 %v439_v1  ;;  %v446_v5 = vld [vmem:[%s567_s1 + $0xb0] sm:$0xff]  ;;  %v445_v10 = vld [vmem:[%s567_s1 + $0xa8] sm:$0xff] }
   0x4   :  { %282 = vmatpush.bf16.msra.mxu2 %v447_v2  ;;  %v450_v7 = vld [vmem:[%s567_s1 + $0xd0] sm:$0xff]  ;;  %v449_v11 = vld [vmem:[%s567_s1 + $0xc8] sm:$0xff]  ;;  %v71_v13 = vld [vmem:[%s569_s2] sm:$0xff] }
   0x5   :  { %300 = vmatpush.bf16.msra.mxu3 %v450_v7  ;;  %v16_v12 = vld [vmem:[%s568_s0 + $0x8] sm:$0xff]  ;;  %v428_v14 = vld [vmem:[%s567_s1 + $0x20] sm:$0xff]  ;;  %74 = vperm.xlu0 %452, %v71_v13   ;;  %v427_v19 = vld [vmem:[%s567_s1 + $0x18] sm:$0xff] }
   0x6   :  { %257 = vmatpush.bf16.msra.mxu0 %v430_v3  ;;  %v436_v15 = vld [vmem:[%s567_s1 + $0x60] sm:$0xff]  ;;  %v82_v18 = vunpack.c.h.b16 %v16_v12  ;;  %v435_v20 = vld [vmem:[%s567_s1 + $0x58] sm:$0xff]  ;;  %v426_v23 = vld [vmem:[%s567_s1 + $0x10] sm:$0xff]  ;;  %v81_v34 = vunpack.c.l.b16 %v16_v12 }
   0x7   :  { %270 = vmatpush.bf16.msra.mxu1 %v438_v4  ;;  %v444_v16 = vld [vmem:[%s567_s1 + $0xa0] sm:$0xff]  ;;  %v443_v21 = vld [vmem:[%s567_s1 + $0x98] sm:$0xff]  ;;  %v434_v24 = vld [vmem:[%s567_s1 + $0x50] sm:$0xff] }
   0x8   :  { %283 = vmatpush.bf16.msra.mxu2 %v446_v5  ;;  %v448_v17 = vld [vmem:[%s567_s1 + $0xc0] sm:$0xff]  ;;  %v86_v22 = vpack.c.b16 %v82_v18, %v82_v18  ;;  %v442_v25 = vld [vmem:[%s567_s1 + $0x90] sm:$0xff]  ;;  %v425_v26 = vld [vmem:[%s567_s1 + $0x8] sm:$0xff]  ;;  %v85_v38 = vpack.c.b16 %v81_v34, %v81_v34 }
   0x9   :  { %301 = vmatpush.bf16.msra.mxu3 %v449_v11  ;;  %v433_v27 = vld [vmem:[%s567_s1 + $0x48] sm:$0xff]  ;;  %v15_v28 = vld [vmem:[%s568_s0] sm:$0xff] }
   0xa   :  { %258 = vmatpush.bf16.msra.mxu0 %v429_v8  ;;  %v441_v29 = vld [vmem:[%s567_s1 + $0x88] sm:$0xff]  ;;  %v79_v30 = vunpack.c.l.b16 %v15_v28  ;;  %v80_v31 = vunpack.c.h.b16 %v15_v28  ;;  %v424_v32 = vld [vmem:[%s567_s1] sm:$0xff] }
   0xb   :  { %271 = vmatpush.bf16.msra.mxu1 %v437_v9  ;;  %v432_v33 = vld [vmem:[%s567_s1 + $0x40] sm:$0xff] }
   0xc   :  { %284 = vmatpush.bf16.msra.mxu2 %v445_v10  ;;  %v440_v35 = vld [vmem:[%s567_s1 + $0x80] sm:$0xff]  ;;  %v83_v36 = vpack.c.b16 %v79_v30, %v79_v30  ;;  %v84_v37 = vpack.c.b16 %v80_v31, %v80_v31 }
   0xd   :  { %302 = vmatpush.bf16.msra.mxu3 %v448_v17 }
   0xe   :  { %259 = vmatpush.bf16.msra.mxu0 %v428_v14 }
   0xf   :  { %272 = vmatpush.bf16.msra.mxu1 %v436_v15 }
  0x10   :  { %285 = vmatpush.bf16.msra.mxu2 %v444_v16  ;;  %423 = vmatmul.msk.bf16.vlgmr.msra.gmra.mxu3 %vm252_vm0, %v86_v22 }
  0x12   :  { %260 = vmatpush.bf16.msra.mxu0 %v427_v19 }
  0x13   :  { %273 = vmatpush.bf16.msra.mxu1 %v435_v20 }
  0x14   :  { %286 = vmatpush.bf16.msra.mxu2 %v443_v21 }
  0x16   :  { %261 = vmatpush.bf16.msra.mxu0 %v426_v23 }
  0x17   :  { %274 = vmatpush.bf16.msra.mxu1 %v434_v24 }
  0x18   :  { %287 = vmatpush.bf16.msra.mxu2 %v442_v25 }
  0x1a   :  { %262 = vmatpush.bf16.msra.mxu0 %v425_v26 }
  0x1b   :  { %275 = vmatpush.bf16.msra.mxu1 %v433_v27 }
  0x1c   :  { %288 = vmatpush.bf16.msra.mxu2 %v441_v29 }
  0x1e   :  { %263 = vmatpush.bf16.msra.mxu0 %v424_v32 }
  0x1f   :  { %276 = vmatpush.bf16.msra.mxu1 %v432_v33 }
  0x20   :  { %289 = vmatpush.bf16.msra.mxu2 %v440_v35 }
  0x21   :  { %264 = vmatmul.bf16.vlgmr.msra.gmra.mxu0 %v83_v36 }
  0x22   :  { %277 = vmatmul.bf16.vlgmr.msra.gmra.mxu1 %v84_v37 }
  0x23   :  { %290 = vmatmul.bf16.vlgmr.msra.gmra.mxu2 %v85_v38 }
  0x77   :  { %v75_v40 = vpop.permute.xlu0 %74 }
  0x93   :  { %v304_v39 = vpop.f32.mrf.mxu3 }
  0x9b   :  { %v306_v44 = vpop.f32.mrf.mxu3 }
  0x9e   :  { %v265_v41 = vpop.f32.mrf.mxu0 }
  0x9f   :  { %v278_v42 = vpop.f32.mrf.mxu1  ;;  %v266_v43 = vadd.f32 %v265_v41, %v75_v40 }
  0xa1   :  { %v279_v45 = vadd.f32 %v278_v42, %v266_v43 }
  0xa6   :  { %v291_v46 = vpop.f32.mrf.mxu2  ;;  %v267_v48 = vpop.f32.mrf.mxu0 }
  0xa7   :  { %v292_v47 = vadd.f32 %v291_v46, %v279_v45  ;;  %v280_v49 = vpop.f32.mrf.mxu1 }
  0xa9   :  { %v305_v50 = vadd.f32 %v304_v39, %v292_v47 }
  0xab   :  { %v308_v51 = vmax.f32 %v305_v50, 0.0 }
  0xad   :  { %v309_v52 = vpack.c.bf16 %v308_v51, %v308_v51 }
  0xae   :  { %v293_v53 = vpop.f32.mrf.mxu2 }
  0xaf   :  { %310 = vst [vmem:[%s570_s3] sm:$0xf] %v309_v52 }

// kernel: bires_center_lstm_forward.34
= control target key start
LH: loop header
LB: loop body
LE: loop exit
PB: predicated region body
PF: predicated region fallthrough
CT: control target
= control target key end

     0   :  { %s1189_s12 = smov 0   ;;  %s1191_s13 = smov 0   ;;  %s1488_s0 = inlined_call_operand.vmem [shape: bf16[4,216], index: 0, kind: input, shape index: {}]   ;;  %s1489_s1 = inlined_call_operand.vmem [shape: bf16[216,1024], index: 1, kind: input, shape index: {}]   ;;  %s1490_s2 = inlined_call_operand.vmem [shape: f32[4,1], index: 2, kind: input, shape index: {}]   ;;  %s1491_s3 = inlined_call_operand.vmem [shape: bf16[4,1024], index: 3, kind: output, shape index: {}]  }
   0x1   :  { %s1193_s14 = smov 0  }
   0x2 LB: > { %s840_s15 = sadd.s32 4294967295, %s1166_s14   ;;  %s1206_s16 = sadd.s32 1, %s1166_s14   ;;  %s1166_s14 = sphi %s1193_s14, %s1494_s14   ;;  %s1162_s13 = sphi %s1191_s13, %s1493_s13   ;;  %s1158_s12 = sphi %s1189_s12, %s1492_s12  }
   0x3   : > { %s38_s17 = ssub.s32 %s1166_s14, %s1206_s16  ;;  %s41_s18 = sadd.s32 1, %s1162_s13 }
   0x4   : > { %p39_p0 = scmp.eq.s32.totalorder %s38_s17, 0  ;;  %p48_p1 = scmp.ne.s32.totalorder %s1162_s13, %s1158_s12 }
   0x5   : > { %p49_p2 = scmp.eq.s32.totalorder %s1166_s14, 0  ;;  %p843_p4 = scmp.ge.s32.totalorder %s1166_s14, 2 }
   0x6   : > { %s1215_s19 = scalar_select %p39_p0, %s1162_s13, %s41_s18  }
   0x7   : > { %p50_p3 = por %p49_p2, %p48_p1  ;;  %127 = sbr.rel (%p843_p4) target bundleno = 70 (0x46), region = 24 }
   0xc   : > { %130 = sbr.rel (!%p50_p3) target bundleno = 70 (0x46), region = 28  ;;  %s132_s20 = sand.u32 (%p50_p3), 1, %s1162_s13  }
   0xd   : > { %s1063_s21 = sshll.u32 (%p50_p3), %s1166_s14, 4  ;;  %s1116_s22 = smul.u32 (%p50_p3), 432, %s132_s20 }
   0xe   : > { %s1223_s25 = scalar_lea.vmem (%p50_p3), %s1489_s1, %s1063_s21 }
   0xf   : > { %v150_v0 = vld [vmem:[%s1223_s25] sm:$0xff] (%p50_p3)  ;;  %v152_v1 = vld [vmem:[%s1223_s25 + $0x8] sm:$0xff] (%p50_p3)  ;;  %s1228_s26 = scalar_lea.vmem (%p50_p3), [#allocation2], %s1116_s22 }
  0x10   : > { %v154_v2 = vld [vmem:[%s1223_s25 + $0x20] sm:$0xff] (%p50_p3)  ;;  %151 = vst [vmem:[%s1228_s26] sm:$0xff] (%p50_p3), %v150_v0  ;;  %v156_v3 = vld [vmem:[%s1223_s25 + $0x28] sm:$0xff] (%p50_p3) }
  0x11   : > { %153 = vst [vmem:[%s1228_s26 + $0x8] sm:$0xff] %v152_v1  ;;  %v158_v4 = vld [vmem:[%s1223_s25 + $0x40] sm:$0xff]  ;;  %v160_v5 = vld [vmem:[%s1223_s25 + $0x48] sm:$0xff] }
  0x12   : > { %155 = vst [vmem:[%s1228_s26 + $0x10] sm:$0xff] %v154_v2  ;;  %v162_v6 = vld [vmem:[%s1223_s25 + $0x60] sm:$0xff]  ;;  %v164_v7 = vld [vmem:[%s1223_s25 + $0x68] sm:$0xff] }
  0x13   : > { %157 = vst [vmem:[%s1228_s26 + $0x18] sm:$0xff] %v156_v3  ;;  %v166_v8 = vld [vmem:[%s1223_s25 + $0x80] sm:$0xff]  ;;  %v168_v9 = vld [vmem:[%s1223_s25 + $0x88] sm:$0xff] }
  0x14   : > { %159 = vst [vmem:[%s1228_s26 + $0x20] sm:$0xff] %v158_v4  ;;  %v170_v10 = vld [vmem:[%s1223_s25 + $0xa0] sm:$0xff]  ;;  %v172_v11 = vld [vmem:[%s1223_s25 + $0xa8] sm:$0xff] }
  0x15   : > { %161 = vst [vmem:[%s1228_s26 + $0x28] sm:$0xff] %v160_v5  ;;  %v174_v12 = vld [vmem:[%s1223_s25 + $0xc0] sm:$0xff]  ;;  %v176_v13 = vld [vmem:[%s1223_s25 + $0xc8] sm:$0xff] }
  0x16   : > { %163 = vst [vmem:[%s1228_s26 + $0x30] sm:$0xff] %v162_v6  ;;  %v178_v14 = vld [vmem:[%s1223_s25 + $0xe0] sm:$0xff]  ;;  %v180_v15 = vld [vmem:[%s1223_s25 + $0xe8] sm:$0xff] }
  0x17   : > { %165 = vst [vmem:[%s1228_s26 + $0x38] sm:$0xff] %v164_v7  ;;  %v182_v16 = vld [vmem:[%s1223_s25 + $0x100] sm:$0xff]  ;;  %v184_v17 = vld [vmem:[%s1223_s25 + $0x108] sm:$0xff] }
  0x18   : > { %167 = vst [vmem:[%s1228_s26 + $0x40] sm:$0xff] %v166_v8  ;;  %v186_v18 = vld [vmem:[%s1223_s25 + $0x120] sm:$0xff]  ;;  %v188_v19 = vld [vmem:[%s1223_s25 + $0x128] sm:$0xff] }
  0x19   : > { %169 = vst [vmem:[%s1228_s26 + $0x48] sm:$0xff] %v168_v9  ;;  %v190_v20 = vld [vmem:[%s1223_s25 + $0x140] sm:$0xff]  ;;  %v192_v21 = vld [vmem:[%s1223_s25 + $0x148] sm:$0xff] }
  0x1a   : > { %171 = vst [vmem:[%s1228_s26 + $0x50] sm:$0xff] %v170_v10  ;;  %v194_v22 = vld [vmem:[%s1223_s25 + $0x160] sm:$0xff]  ;;  %v196_v23 = vld [vmem:[%s1223_s25 + $0x168] sm:$0xff] }
  0x1b   : > { %173 = vst [vmem:[%s1228_s26 + $0x58] sm:$0xff] %v172_v11  ;;  %v198_v24 = vld [vmem:[%s1223_s25 + $0x180] sm:$0xff]  ;;  %v200_v25 = vld [vmem:[%s1223_s25 + $0x188] sm:$0xff] }
  0x1c   : > { %175 = vst [vmem:[%s1228_s26 + $0x60] sm:$0xff] %v174_v12  ;;  %v202_v26 = vld [vmem:[%s1223_s25 + $0x1a0] sm:$0xff]  ;;  %v204_v27 = vld [vmem:[%s1223_s25 + $0x1a8] sm:$0xff] }
  0x1d   : > { %177 = vst [vmem:[%s1228_s26 + $0x68] sm:$0xff] %v176_v13  ;;  %v206_v28 = vld [vmem:[%s1223_s25 + $0x1c0] sm:$0xff]  ;;  %v208_v29 = vld [vmem:[%s1223_s25 + $0x1c8] sm:$0xff] }
  0x1e   : > { %179 = vst [vmem:[%s1228_s26 + $0x70] sm:$0xff] %v178_v14  ;;  %v210_v30 = vld [vmem:[%s1223_s25 + $0x1e0] sm:$0xff]  ;;  %v212_v31 = vld [vmem:[%s1223_s25 + $0x1e8] sm:$0xff] }
  0x1f   : > { %181 = vst [vmem:[%s1228_s26 + $0x78] sm:$0xff] %v180_v15  ;;  %v214_v32 = vld [vmem:[%s1223_s25 + $0x200] sm:$0xff]  ;;  %v216_v33 = vld [vmem:[%s1223_s25 + $0x208] sm:$0xff] }
  0x20   : > { %183 = vst [vmem:[%s1228_s26 + $0x80] sm:$0xff] %v182_v16  ;;  %v218_v34 = vld [vmem:[%s1223_s25 + $0x220] sm:$0xff]  ;;  %v220_v35 = vld [vmem:[%s1223_s25 + $0x228] sm:$0xff] }
  0x21   : > { %185 = vst [vmem:[%s1228_s26 + $0x88] sm:$0xff] %v184_v17  ;;  %v222_v36 = vld [vmem:[%s1223_s25 + $0x240] sm:$0xff]  ;;  %v224_v37 = vld [vmem:[%s1223_s25 + $0x248] sm:$0xff] }
  0x22   : > { %187 = vst [vmem:[%s1228_s26 + $0x90] sm:$0xff] %v186_v18  ;;  %v226_v38 = vld [vmem:[%s1223_s25 + $0x260] sm:$0xff]  ;;  %v228_v39 = vld [vmem:[%s1223_s25 + $0x268] sm:$0xff] }
  0x23   : > { %189 = vst [vmem:[%s1228_s26 + $0x98] sm:$0xff] %v188_v19  ;;  %v230_v40 = vld [vmem:[%s1223_s25 + $0x280] sm:$0xff]  ;;  %v232_v41 = vld [vmem:[%s1223_s25 + $0x288] sm:$0xff] }
  0x24   : > { %191 = vst [vmem:[%s1228_s26 + $0xa0] sm:$0xff] %v190_v20  ;;  %v234_v42 = vld [vmem:[%s1223_s25 + $0x2a0] sm:$0xff]  ;;  %v236_v43 = vld [vmem:[%s1223_s25 + $0x2a8] sm:$0xff] }
  0x25   : > { %193 = vst [vmem:[%s1228_s26 + $0xa8] sm:$0xff] %v192_v21  ;;  %v238_v44 = vld [vmem:[%s1223_s25 + $0x2c0] sm:$0xff]  ;;  %v240_v45 = vld [vmem:[%s1223_s25 + $0x2c8] sm:$0xff] }
  0x26   : > { %195 = vst [vmem:[%s1228_s26 + $0xb0] sm:$0xff] %v194_v22  ;;  %v242_v46 = vld [vmem:[%s1223_s25 + $0x2e0] sm:$0xff]  ;;  %v244_v47 = vld [vmem:[%s1223_s25 + $0x2e8] sm:$0xff] }
  0x27   : > { %197 = vst [vmem:[%s1228_s26 + $0xb8] sm:$0xff] %v196_v23  ;;  %v246_v48 = vld [vmem:[%s1223_s25 + $0x300] sm:$0xff]  ;;  %v248_v49 = vld [vmem:[%s1223_s25 + $0x308] sm:$0xff] }
  0x28   : > { %199 = vst [vmem:[%s1228_s26 + $0xc0] sm:$0xff] %v198_v24  ;;  %v250_v50 = vld [vmem:[%s1223_s25 + $0x320] sm:$0xff]  ;;  %v252_v51 = vld [vmem:[%s1223_s25 + $0x328] sm:$0xff] }
  0x29   : > { %201 = vst [vmem:[%s1228_s26 + $0xc8] sm:$0xff] %v200_v25  ;;  %v254_v52 = vld [vmem:[%s1223_s25 + $0x340] sm:$0xff]  ;;  %v256_v53 = vld [vmem:[%s1223_s25 + $0x348] sm:$0xff] }
  0x2a   : > { %203 = vst [vmem:[%s1228_s26 + $0xd0] sm:$0xff] %v202_v26 }
  0x2b   : > { %205 = vst [vmem:[%s1228_s26 + $0xd8] sm:$0xff] %v204_v27 }
  0x2c   : > { %207 = vst [vmem:[%s1228_s26 + $0xe0] sm:$0xff] %v206_v28 }
  0x2d   : > { %209 = vst [vmem:[%s1228_s26 + $0xe8] sm:$0xff] %v208_v29 }
  0x2e   : > { %211 = vst [vmem:[%s1228_s26 + $0xf0] sm:$0xff] %v210_v30 }
  0x2f   : > { %213 = vst [vmem:[%s1228_s26 + $0xf8] sm:$0xff] %v212_v31 }
  0x30   : > { %215 = vst [vmem:[%s1228_s26 + $0x100] sm:$0xff] %v214_v32 }
  0x31   : > { %217 = vst [vmem:[%s1228_s26 + $0x108] sm:$0xff] %v216_v33 }
  0x32   : > { %219 = vst [vmem:[%s1228_s26 + $0x110] sm:$0xff] %v218_v34 }
  0x33   : > { %221 = vst [vmem:[%s1228_s26 + $0x118] sm:$0xff] %v220_v35 }
  0x34   : > { %223 = vst [vmem:[%s1228_s26 + $0x120] sm:$0xff] %v222_v36 }
  0x35   : > { %225 = vst [vmem:[%s1228_s26 + $0x128] sm:$0xff] %v224_v37 }
  0x36   : > { %227 = vst [vmem:[%s1228_s26 + $0x130] sm:$0xff] %v226_v38 }
  0x37   : > { %229 = vst [vmem:[%s1228_s26 + $0x138] sm:$0xff] %v228_v39 }
  0x38   : > { %231 = vst [vmem:[%s1228_s26 + $0x140] sm:$0xff] %v230_v40 }
  0x39   : > { %233 = vst [vmem:[%s1228_s26 + $0x148] sm:$0xff] %v232_v41 }
  0x3a   : > { %235 = vst [vmem:[%s1228_s26 + $0x150] sm:$0xff] %v234_v42 }
  0x3b   : > { %237 = vst [vmem:[%s1228_s26 + $0x158] sm:$0xff] %v236_v43 }
  0x3c   : > { %239 = vst [vmem:[%s1228_s26 + $0x160] sm:$0xff] %v238_v44 }
  0x3d   : > { %241 = vst [vmem:[%s1228_s26 + $0x168] sm:$0xff] %v240_v45 }
  0x3e   : > { %243 = vst [vmem:[%s1228_s26 + $0x170] sm:$0xff] %v242_v46 }
  0x3f   : > { %245 = vst [vmem:[%s1228_s26 + $0x178] sm:$0xff] %v244_v47 }
  0x40   : > { %247 = vst [vmem:[%s1228_s26 + $0x180] sm:$0xff] %v246_v48 }
  0x41   : > { %249 = vst [vmem:[%s1228_s26 + $0x188] sm:$0xff] %v248_v49 }
  0x42   : > { %251 = vst [vmem:[%s1228_s26 + $0x190] sm:$0xff] %v250_v50 }
  0x43   : > { %253 = vst [vmem:[%s1228_s26 + $0x198] sm:$0xff] %v252_v51 }
  0x44   : > { %255 = vst [vmem:[%s1228_s26 + $0x1a0] sm:$0xff] %v254_v52 }
  0x45   : > { %257 = vst [vmem:[%s1228_s26 + $0x1a8] sm:$0xff] %v256_v53 }
  0x46 PF: > { %p846_p5 = scmp.ge.s32.totalorder %s1166_s14, 1  ;;  %p262_p6 = scmp.lt.s32.totalorder %s1166_s14, 3 }
  0x48   : > { %p263_p7 = pnand %p846_p5, %p262_p6 }
  0x49   : > { %s269_s27 = sand.u32 (!%p263_p7), 1, %s1158_s12   ;;  %s847_s7 = sshll.u32 (!%p263_p7), %s840_s15, 2 }
  0x4a   : > { %266 = sbr.rel (%p263_p7) target bundleno = 284 (0x11c), region = 51  ;;  %p294_p8 = scmp.lt.s32.totalorder (!%p263_p7), %s847_s7, 7 }
  0x4b   : > { %s1117_s30 = smul.u32 (!%p263_p7), 432, %s269_s27 }
  0x4d   : > { %s1341_s4 = scalar_lea.vmem (!%p263_p7), [#allocation2], %s1117_s30 }
  0x4f   : > { %v300_v54 = vld [vmem:[%s1488_s0] sm:$0xf]  ;;  %v963_v55 = vld [vmem:[%s1341_s4 + $0xe0] sm:$0xf]  ;;  %v1094_v56 = vld [vmem:[%s1341_s4 + $0xec] sm:$0xf0] }
  0x50   : > { %362 = vst [vmem:[#allocation1] ss:$4 sm:$0xff] %v300_v54  ;;  %v1092_v57 = vld [vmem:[%s1341_s4 + $0xe4] sm:$0xf]  ;;  %v964_v58 = vor.u32 %v1094_v56, %v963_v55  ;;  %v965_v59 = vld [vmem:[%s1341_s4 + $0xf0] sm:$0xf0] }
  0x51   : > { %v353_v60 = vld [vmem:[%s1341_s4 + $0x1a0] sm:$0xff]  ;;  %v968_v62 = vor.u32 %v1092_v57, %v965_v59  ;;  %v1090_v0 = vld [vmem:[%s1341_s4 + $0xcc] sm:$0xf0]  ;;  %v949_v2 = vld [vmem:[%s1341_s4 + $0xd0] sm:$0xf0]  ;;  %vm639_vm0 = vcmask 1043456  }
  0x52   : > { %v947_v61 = vld [vmem:[%s1341_s4 + $0xc0] sm:$0xf]  ;;  %v524_v63 = vunpack.c.l.b16 %v353_v60  ;;  %v1088_v1 = vld [vmem:[%s1341_s4 + $0xc4] sm:$0xf]  ;;  %v525_v3 = vunpack.c.h.b16 %v353_v60  ;;  %652 = vmatpush.bf16.msra.mxu0 %v964_v58  ;;  %v1114_v6 = vld [vmem:[%s1341_s4 + $0x18c] sm:$0xf0] }
  0x53   : > { %v948_v4 = vor.u32 %v1090_v0, %v947_v61  ;;  %v1043_v5 = vld [vmem:[%s1341_s4 + $0x180] sm:$0xf]  ;;  %678 = vmatpush.bf16.msra.mxu2 %v968_v62  ;;  %v952_v8 = vor.u32 %v1088_v1, %v949_v2  ;;  %v1086_v11 = vld [vmem:[%s1341_s4 + $0xac] sm:$0xf0]  ;;  %v1084_v12 = vld [vmem:[%s1341_s4 + $0xa4] sm:$0xf] }
  0x54   : > { %v580_v7 = vpack.c.b16 %v524_v63, %v524_v63  ;;  %v581_v9 = vpack.c.b16 %v525_v3, %v525_v3  ;;  %v931_v10 = vld [vmem:[%s1341_s4 + $0xa0] sm:$0xf]  ;;  %v933_v13 = vld [vmem:[%s1341_s4 + $0xb0] sm:$0xf0]  ;;  %v1112_v14 = vld [vmem:[%s1341_s4 + $0x184] sm:$0xf]  ;;  %v1044_v18 = vor.u32 %v1114_v6, %v1043_v5 }
  0x55   : > { %v1045_v15 = vld [vmem:[%s1341_s4 + $0x190] sm:$0xf0]  ;;  %v932_v19 = vor.u32 %v1086_v11, %v931_v10  ;;  %v1027_v20 = vld [vmem:[%s1341_s4 + $0x160] sm:$0xf]  ;;  %v1110_v21 = vld [vmem:[%s1341_s4 + $0x16c] sm:$0xf0]  ;;  %v936_v22 = vor.u32 %v1084_v12, %v933_v13 }
  0x56   : > { %v641_v16 = vsel %vm639_vm0, %v580_v7, 0  ;;  %v644_v17 = vsel %vm639_vm0, %v581_v9, 0  ;;  %653 = vmatpush.bf16.msra.mxu0 %v948_v4  ;;  %v1048_v23 = vor.u32 %v1112_v14, %v1045_v15  ;;  %v915_v24 = vld [vmem:[%s1341_s4 + $0x80] sm:$0xf]  ;;  %v1082_v25 = vld [vmem:[%s1341_s4 + $0x8c] sm:$0xf0]  ;;  %v1028_v30 = vor.u32 %v1110_v21, %v1027_v20 }
  0x57   : > { %667 = vmatpush.bf16.msra.mxu1 %v641_v16  ;;  %679 = vmatpush.bf16.msra.mxu2 %v952_v8  ;;  %v1080_v26 = vld [vmem:[%s1341_s4 + $0x84] sm:$0xf]  ;;  %v917_v27 = vld [vmem:[%s1341_s4 + $0x90] sm:$0xf0]  ;;  %v916_v31 = vor.u32 %v1082_v25, %v915_v24  ;;  %v1011_v32 = vld [vmem:[%s1341_s4 + $0x140] sm:$0xf] }
  0x58   : > { %693 = vmatpush.bf16.msra.mxu3 %v644_v17  ;;  %v1108_v28 = vld [vmem:[%s1341_s4 + $0x164] sm:$0xf]  ;;  %v1029_v29 = vld [vmem:[%s1341_s4 + $0x170] sm:$0xf0]  ;;  %v1106_v33 = vld [vmem:[%s1341_s4 + $0x14c] sm:$0xf0]  ;;  %v920_v34 = vor.u32 %v1080_v26, %v917_v27 }
  0x59   : > { %v1032_v35 = vor.u32 %v1108_v28, %v1029_v29  ;;  %v899_v36 = vld [vmem:[%s1341_s4 + $0x60] sm:$0xf]  ;;  %v1078_v37 = vld [vmem:[%s1341_s4 + $0x6c] sm:$0xf0]  ;;  %v1076_v38 = vld [vmem:[%s1341_s4 + $0x64] sm:$0xf]  ;;  %v1012_v42 = vor.u32 %v1106_v33, %v1011_v32 }
  0x5a   : > { %654 = vmatpush.bf16.msra.mxu0 %v932_v19  ;;  %v901_v39 = vld [vmem:[%s1341_s4 + $0x70] sm:$0xf0]  ;;  %v1104_v40 = vld [vmem:[%s1341_s4 + $0x144] sm:$0xf]  ;;  %v900_v43 = vor.u32 %v1078_v37, %v899_v36  ;;  %v995_v44 = vld [vmem:[%s1341_s4 + $0x120] sm:$0xf] }
  0x5b   : > { %668 = vmatpush.bf16.msra.mxu1 %v1044_v18  ;;  %680 = vmatpush.bf16.msra.mxu2 %v936_v22  ;;  %v1013_v41 = vld [vmem:[%s1341_s4 + $0x150] sm:$0xf0]  ;;  %v1102_v45 = vld [vmem:[%s1341_s4 + $0x12c] sm:$0xf0]  ;;  %v883_v46 = vld [vmem:[%s1341_s4 + $0x40] sm:$0xf]  ;;  %v904_v47 = vor.u32 %v1076_v38, %v901_v39 }
  0x5c   : > { %694 = vmatpush.bf16.msra.mxu3 %v1048_v23  ;;  %v1016_v48 = vor.u32 %v1104_v40, %v1013_v41  ;;  %v1074_v49 = vld [vmem:[%s1341_s4 + $0x4c] sm:$0xf0]  ;;  %v1072_v50 = vld [vmem:[%s1341_s4 + $0x44] sm:$0xf]  ;;  %v885_v51 = vld [vmem:[%s1341_s4 + $0x50] sm:$0xf0]  ;;  %v996_v56 = vor.u32 %v1102_v45, %v995_v44 }
  0x5d   : > { %v1100_v52 = vld [vmem:[%s1341_s4 + $0x124] sm:$0xf]  ;;  %v997_v53 = vld [vmem:[%s1341_s4 + $0x130] sm:$0xf0]  ;;  %v354_v54 = vld [vmem:[%s1341_s4 + $0x1a8] sm:$0xff]  ;;  %v884_v57 = vor.u32 %v1074_v49, %v883_v46  ;;  %v888_v60 = vor.u32 %v1072_v50, %v885_v51  ;;  %vm636_vm1 = vcmask 719872  }
  0x5e   : > { %655 = vmatpush.bf16.msra.mxu0 %v916_v31  ;;  %v526_v55 = vunpack.c.l.b16 %v354_v54  ;;  %v979_v58 = vld [vmem:[%s1341_s4 + $0x100] sm:$0xf]  ;;  %v1098_v59 = vld [vmem:[%s1341_s4 + $0x10c] sm:$0xf0]  ;;  %v1000_v61 = vor.u32 %v1100_v52, %v997_v53  ;;  %v1068_v0 = vld [vmem:[%s1341_s4 + $0x24] sm:$0xf]  ;;  %v527_v11 = vunpack.c.h.b16 %v354_v54 }
  0x5f   : > { %669 = vmatpush.bf16.msra.mxu1 %v1028_v30  ;;  %681 = vmatpush.bf16.msra.mxu2 %v920_v34  ;;  %v867_v62 = vld [vmem:[%s1341_s4 + $0x20] sm:$0xf]  ;;  %v1070_v63 = vld [vmem:[%s1341_s4 + $0x2c] sm:$0xf0]  ;;  %v869_v1 = vld [vmem:[%s1341_s4 + $0x30] sm:$0xf0]  ;;  %v980_v7 = vor.u32 %v1098_v59, %v979_v58 }
  0x60   : > { %695 = vmatpush.bf16.msra.mxu3 %v1032_v35  ;;  %v1096_v2 = vld [vmem:[%s1341_s4 + $0x104] sm:$0xf]  ;;  %v981_v3 = vld [vmem:[%s1341_s4 + $0x110] sm:$0xf0]  ;;  %v971_v4 = vld [vmem:[%s1341_s4 + $0xe8] sm:$0xf]  ;;  %v582_v6 = vpack.c.b16 %v526_v55, %v526_v55  ;;  %v868_v8 = vor.u32 %v1070_v63, %v867_v62  ;;  %v872_v12 = vor.u32 %v1068_v0, %v869_v1  ;;  %v583_v25 = vpack.c.b16 %v527_v11, %v527_v11 }
  0x61   : > { %v1095_v5 = vld [vmem:[%s1341_s4 + $0xf4] sm:$0xf0]  ;;  %v851_v9 = vld [vmem:[%s1341_s4] sm:$0xf]  ;;  %v1066_v10 = vld [vmem:[%s1341_s4 + $0xc] sm:$0xf0]  ;;  %v984_v13 = vor.u32 %v1096_v2, %v981_v3 }
  0x62   : > { %656 = vmatpush.bf16.msra.mxu0 %v900_v43  ;;  %v1064_v14 = vld [vmem:[%s1341_s4 + $0x4] sm:$0xf]  ;;  %v853_v15 = vld [vmem:[%s1341_s4 + $0x10] sm:$0xf0]  ;;  %v955_v16 = vld [vmem:[%s1341_s4 + $0xc8] sm:$0xf]  ;;  %v972_v17 = vor.u32 %v1095_v5, %v971_v4  ;;  %v852_v24 = vor.u32 %v1066_v10, %v851_v9 }
  0x63   : > { %670 = vmatpush.bf16.msra.mxu1 %v1012_v42  ;;  %682 = vmatpush.bf16.msra.mxu2 %v904_v47  ;;  %v1091_v18 = vld [vmem:[%s1341_s4 + $0xd4] sm:$0xf0]  ;;  %v1093_v19 = vld [vmem:[%s1341_s4 + $0xec] sm:$0xf]  ;;  %v973_v20 = vld [vmem:[%s1341_s4 + $0xf8] sm:$0xf0]  ;;  %v856_v26 = vor.u32 %v1064_v14, %v853_v15 }
  0x64   : > { %696 = vmatpush.bf16.msra.mxu3 %v1016_v48  ;;  %v647_v21 = vsel %vm639_vm0, %v582_v6, 0  ;;  %v1051_v22 = vld [vmem:[%s1341_s4 + $0x188] sm:$0xf]  ;;  %v1115_v23 = vld [vmem:[%s1341_s4 + $0x194] sm:$0xf0]  ;;  %v976_v27 = vor.u32 %v1093_v19, %v973_v20  ;;  %v956_v29 = vor.u32 %v1091_v18, %v955_v16  ;;  %v650_v37 = vsel %vm639_vm0, %v583_v25, 0 }
  0x65   : > { %v1408_v28 = vld.sshfl [vmem:[#allocation1 + $0x8] sm:$0xff pattern:$0x73625140]  ;;  %v1052_v30 = vor.u32 %v1115_v23, %v1051_v22  ;;  %v939_v31 = vld [vmem:[%s1341_s4 + $0xa8] sm:$0xf]  ;;  %v1168_v55 = vmov 0  }
  0x66   : > { %657 = vmatpush.bf16.msra.mxu0 %v884_v57  ;;  %v1089_v32 = vld [vmem:[%s1341_s4 + $0xcc] sm:$0xf]  ;;  %v957_v33 = vld [vmem:[%s1341_s4 + $0xd8] sm:$0xf0]  ;;  %v1087_v34 = vld [vmem:[%s1341_s4 + $0xb4] sm:$0xf0]  ;;  %1143 = vset.pattern.permute.xlu0 %v1168_v55 }
  0x67   : > { %671 = vmatpush.bf16.msra.mxu1 %v996_v56  ;;  %683 = vmatpush.bf16.msra.mxu2 %v888_v60  ;;  %v1035_v35 = vld [vmem:[%s1341_s4 + $0x168] sm:$0xf]  ;;  %v1111_v36 = vld [vmem:[%s1341_s4 + $0x174] sm:$0xf0]  ;;  %v1113_v38 = vld [vmem:[%s1341_s4 + $0x18c] sm:$0xf]  ;;  %v960_v41 = vor.u32 %v1089_v32, %v957_v33  ;;  %v940_v43 = vor.u32 %v1087_v34, %v939_v31 }
  0x68   : > { %697 = vmatpush.bf16.msra.mxu3 %v1000_v61  ;;  %v1053_v39 = vld [vmem:[%s1341_s4 + $0x198] sm:$0xf0]  ;;  %v923_v42 = vld [vmem:[%s1341_s4 + $0x88] sm:$0xf]  ;;  %v1036_v44 = vor.u32 %v1111_v36, %v1035_v35  ;;  %v1083_v45 = vld [vmem:[%s1341_s4 + $0x94] sm:$0xf0] }
  0x69   : > { %v1423_v40 = vld.sshfl [vmem:[#allocation1] sm:$0xff pattern:$0x73625140]  ;;  %v1056_v48 = vor.u32 %v1113_v38, %v1053_v39  ;;  %v924_v56 = vor.u32 %v1083_v45, %v923_v42  ;;  %s1496_s7 = smov (!%p294_p8, %s847_s7), 7  ;;  %vm767_vm2 = vcmask 1041408   ;;  %vm771_vm3 = vcmask 1045508  }
  0x6a   : > { %658 = vmatpush.bf16.msra.mxu0 %v868_v8  ;;  %v1085_v46 = vld [vmem:[%s1341_s4 + $0xac] sm:$0xf]  ;;  %v941_v47 = vld [vmem:[%s1341_s4 + $0xb8] sm:$0xf0]  ;;  %v1019_v49 = vld [vmem:[%s1341_s4 + $0x148] sm:$0xf] }
  0x6b   : > { %672 = vmatpush.bf16.msra.mxu1 %v980_v7  ;;  %684 = vmatpush.bf16.msra.mxu2 %v872_v12  ;;  %v1107_v50 = vld [vmem:[%s1341_s4 + $0x154] sm:$0xf0]  ;;  %v1109_v51 = vld [vmem:[%s1341_s4 + $0x16c] sm:$0xf]  ;;  %v1037_v52 = vld [vmem:[%s1341_s4 + $0x178] sm:$0xf0]  ;;  %v944_v54 = vor.u32 %v1085_v46, %v941_v47 }
  0x6c   : > { %698 = vmatpush.bf16.msra.mxu3 %v984_v13  ;;  %v355_v53 = vld [vmem:[%s1490_s2] sm:$0xf]  ;;  %v1020_v57 = vor.u32 %v1107_v50, %v1019_v49  ;;  %v1081_v59 = vld [vmem:[%s1341_s4 + $0x8c] sm:$0xf]  ;;  %v925_v60 = vld [vmem:[%s1341_s4 + $0x98] sm:$0xf0]  ;;  %v1040_v61 = vor.u32 %v1109_v51, %v1037_v52 }
  0x6d   : > { %v907_v58 = vld [vmem:[%s1341_s4 + $0x68] sm:$0xf]  ;;  %v1079_v62 = vld [vmem:[%s1341_s4 + $0x74] sm:$0xf0]  ;;  %358 = vperm.xlu0 %1143, %v355_v53   ;;  %v1105_v1 = vld [vmem:[%s1341_s4 + $0x14c] sm:$0xf]  ;;  %v928_v3 = vor.u32 %v1081_v59, %v925_v60 }
  0x6e   : > { %1057 = vmatmul.msk.bf16.vlgmr.msra.gmra.mxu1 %vm636_vm1, %v1408_v28  ;;  %659 = vmatpush.bf16.msra.mxu0 %v852_v24  ;;  %v1003_v63 = vld [vmem:[%s1341_s4 + $0x128] sm:$0xf]  ;;  %v1103_v0 = vld [vmem:[%s1341_s4 + $0x134] sm:$0xf0]  ;;  %v1021_v2 = vld [vmem:[%s1341_s4 + $0x158] sm:$0xf0]  ;;  %v908_v4 = vor.u32 %v1079_v62, %v907_v58 }
  0x6f   : > { %704 = vmatpush.bf16.msrb.mxu1 %v972_v17  ;;  %1058 = vmatmul.msk.bf16.vlgmr.msra.gmra.mxu3 %vm636_vm1, %v1408_v28  ;;  %v1004_v5 = vor.u32 %v1103_v0, %v1003_v63  ;;  %v891_v6 = vld [vmem:[%s1341_s4 + $0x48] sm:$0xf]  ;;  %v1077_v7 = vld [vmem:[%s1341_s4 + $0x6c] sm:$0xf]  ;;  %v909_v8 = vld [vmem:[%s1341_s4 + $0x78] sm:$0xf0]  ;;  %v1024_v9 = vor.u32 %v1105_v1, %v1021_v2 }
  0x70   : > { %719 = vmatpush.bf16.msrb.mxu3 %v647_v21  ;;  %685 = vmatpush.bf16.msra.mxu2 %v856_v26  ;;  %v1075_v10 = vld [vmem:[%s1341_s4 + $0x54] sm:$0xf0]  ;;  %v987_v11 = vld [vmem:[%s1341_s4 + $0x108] sm:$0xf]  ;;  %v1101_v13 = vld [vmem:[%s1341_s4 + $0x12c] sm:$0xf]  ;;  %v912_v15 = vor.u32 %v1077_v7, %v909_v8 }
  0x71   : > { %660 = vmatmul.bf16.vlgmr.msra.gmra.mxu0 %v1423_v40  ;;  %v1099_v12 = vld [vmem:[%s1341_s4 + $0x114] sm:$0xf0]  ;;  %v1005_v14 = vld [vmem:[%s1341_s4 + $0x138] sm:$0xf0]  ;;  %v892_v16 = vor.u32 %v1075_v10, %v891_v6  ;;  %v1073_v18 = vld [vmem:[%s1341_s4 + $0x4c] sm:$0xf] }
  0x72   : > { %730 = vmatpush.bf16.msrb.mxu0 %v976_v27  ;;  %v988_v17 = vor.u32 %v1099_v12, %v987_v11  ;;  %v893_v19 = vld [vmem:[%s1341_s4 + $0x58] sm:$0xf0]  ;;  %v1008_v20 = vor.u32 %v1101_v13, %v1005_v14  ;;  %v875_v21 = vld [vmem:[%s1341_s4 + $0x28] sm:$0xf]  ;;  %v1071_v22 = vld [vmem:[%s1341_s4 + $0x34] sm:$0xf0] }
  0x73   : > { %705 = vmatpush.bf16.msrb.mxu1 %v956_v29  ;;  %686 = vmatmul.bf16.vlgmr.msra.gmra.mxu2 %v1423_v40  ;;  %v1097_v23 = vld [vmem:[%s1341_s4 + $0x10c] sm:$0xf]  ;;  %v989_v24 = vld [vmem:[%s1341_s4 + $0x118] sm:$0xf0]  ;;  %v896_v25 = vor.u32 %v1073_v18, %v893_v19  ;;  %v876_v26 = vor.u32 %v1071_v22, %v875_v21  ;;  %v859_v31 = vld [vmem:[%s1341_s4 + $0x8] sm:$0xf] }
  0x74   : > { %720 = vmatpush.bf16.msrb.mxu3 %v1052_v30  ;;  %745 = vmatpush.bf16.msrb.mxu2 %v650_v37  ;;  %v1069_v27 = vld [vmem:[%s1341_s4 + $0x2c] sm:$0xf]  ;;  %v877_v29 = vld [vmem:[%s1341_s4 + $0x38] sm:$0xf0]  ;;  %v992_v30 = vor.u32 %v1097_v23, %v989_v24  ;;  %v1067_v32 = vld [vmem:[%s1341_s4 + $0x14] sm:$0xf0] }
  0x75   : > { %v880_v33 = vor.u32 %v1069_v27, %v877_v29  ;;  %v860_v34 = vor.u32 %v1067_v32, %v859_v31  ;;  %v1065_v35 = vld [vmem:[%s1341_s4 + $0xc] sm:$0xf]  ;;  %v861_v36 = vld [vmem:[%s1341_s4 + $0x18] sm:$0xf0]  ;;  %s848_s8 = sshll.u32 %s1496_s7, 1 }
  0x76   : > { %731 = vmatpush.bf16.msrb.mxu0 %v960_v41  ;;  %v864_v37 = vor.u32 %v1065_v35, %v861_v36  ;;  %s297_s11 = scalar_lea.vmem %s1491_s3, %s848_s8 }
  0x77   : > { %706 = vmatpush.bf16.msrb.mxu1 %v940_v43 }
  0x78   : > { %721 = vmatpush.bf16.msrb.mxu3 %v1036_v44  ;;  %746 = vmatpush.bf16.msrb.mxu2 %v1056_v48 }
  0x7a   : > { %732 = vmatpush.bf16.msrb.mxu0 %v944_v54 }
  0x7b   : > { %707 = vmatpush.bf16.msrb.mxu1 %v924_v56 }
  0x7c   : > { %722 = vmatpush.bf16.msrb.mxu3 %v1020_v57  ;;  %747 = vmatpush.bf16.msrb.mxu2 %v1040_v61 }
  0x7e   : > { %733 = vmatpush.bf16.msrb.mxu0 %v928_v3 }
  0x7f   : > { %708 = vmatpush.bf16.msrb.mxu1 %v908_v4 }
  0x80   : > { %723 = vmatpush.bf16.msrb.mxu3 %v1004_v5  ;;  %748 = vmatpush.bf16.msrb.mxu2 %v1024_v9 }
  0x82   : > { %734 = vmatpush.bf16.msrb.mxu0 %v912_v15 }
  0x83   : > { %709 = vmatpush.bf16.msrb.mxu1 %v892_v16 }
  0x84   : > { %724 = vmatpush.bf16.msrb.mxu3 %v988_v17  ;;  %749 = vmatpush.bf16.msrb.mxu2 %v1008_v20 }
  0x86   : > { %735 = vmatpush.bf16.msrb.mxu0 %v896_v25 }
  0x87   : > { %1059 = vmatmul.msk.bf16.vlgmr.msrb.gmra.mxu3 %vm636_vm1, %v1408_v28  ;;  %710 = vmatpush.bf16.msrb.mxu1 %v876_v26 }
  0x88   : > { %750 = vmatpush.bf16.msrb.mxu2 %v992_v30 }
  0x8a   : > { %736 = vmatpush.bf16.msrb.mxu0 %v880_v33 }
  0x8b   : > { %711 = vmatpush.bf16.msrb.mxu1 %v860_v34  ;;  %1060 = vmatmul.msk.bf16.vlgmr.msrb.gmra.mxu2 %vm636_vm1, %v1408_v28 }
  0x8e   : > { %712 = vmatmul.bf16.vlgmr.msrb.gmra.mxu1 %v1423_v40  ;;  %737 = vmatpush.bf16.msrb.mxu0 %v864_v37 }
  0x91   : > { %738 = vmatmul.bf16.vlgmr.msrb.gmra.mxu0 %v1423_v40 }
  0xdf   : > { %v359_v47 = vpop.permute.xlu0 %358 }
  0xeb   : > { %v674_v38 = vpop.f32.mrf.mxu1 }
  0xee   : > { %v661_v39 = vpop.f32.mrf.mxu0 }
  0xef   : > { %v662_v48 = vadd.f32 %v661_v39, %v359_v47 }
  0xf1   : > { %v675_v50 = vadd.f32 %v674_v38, %v662_v48 }
  0xf2   : > { %v700_v41 = vpop.f32.mrf.mxu3 }
  0xf3   : > { %v676_v42 = vpop.f32.mrf.mxu1  ;;  %v756_v54 = vmax.f32 %v675_v50, 0.0 }
  0xf6   : > { %v687_v43 = vpop.f32.mrf.mxu2  ;;  %v663_v44 = vpop.f32.mrf.mxu0 }
  0xf7   : > { %v688_v49 = vadd.f32 %v687_v43, %v359_v47 }
  0xf9   : > { %v701_v51 = vadd.f32 %v700_v41, %v688_v49 }
  0xfa   : > { %v702_v45 = vpop.f32.mrf.mxu3 }
  0xfb   : > { %v757_v40 = vmax.f32 %v701_v51, 0.0 }
  0xfd   : > { %v760_v59 = vpack.c.bf16 %v757_v40, %v756_v54 }
  0xfe   : > { %v689_v46 = vpop.f32.mrf.mxu2 }
  0xff   : > { %v764_v1 = vrot.slane %v760_v59, 2 }
 0x101   : > { %v770_v7 = vsel %vm767_vm2, %v760_v59, %v764_v1 }
 0x10a   : > { %v726_v28 = vpop.f32.mrf.mxu3 }
 0x10b   : > { %v713_v52 = vpop.f32.mrf.mxu1 }
 0x10c   : > { %v714_v53 = vadd.f32 %v713_v52, %v359_v47 }
 0x10e   : > { %v727_v55 = vadd.f32 %v726_v28, %v714_v53  ;;  %v752_v56 = vpop.f32.mrf.mxu2  ;;  %v739_v57 = vpop.f32.mrf.mxu0 }
 0x10f   : > { %v740_v58 = vadd.f32 %v739_v57, %v359_v47 }
 0x110   : > { %v758_v60 = vmax.f32 %v727_v55, 0.0 }
 0x111   : > { %v753_v61 = vadd.f32 %v752_v56, %v740_v58 }
 0x112   : > { %v728_v62 = vpop.f32.mrf.mxu3 }
 0x113   : > { %v759_v63 = vmax.f32 %v753_v61, 0.0  ;;  %v715_v0 = vpop.f32.mrf.mxu1 }
 0x115   : > { %v761_v2 = vpack.c.bf16 %v759_v63, %v758_v60 }
 0x116   : > { %v754_v3 = vpop.f32.mrf.mxu2  ;;  %v741_v4 = vpop.f32.mrf.mxu0 }
 0x117   : > { %v765_v5 = vrot.slane %v761_v2, 4  ;;  %v766_v6 = vrot.slane %v761_v2, 6 }
 0x119   : > { %v774_v8 = vsel %vm771_vm3, %v765_v5, %v766_v6 }
 0x11a   : > { %v775_v9 = vsel %vm639_vm0, %v770_v7, %v774_v8 }
 0x11b   : > { %777 = vst [vmem:[%s297_s11] sm:$0xff] %v775_v9 }
 0x11c PF: > { %p10_p9 = scmp.ge.s32.totalorder %s1206_s16, 4   ;;  %s1492_s12 = smov %s1162_s13 }
 0x11d   : > { %s1493_s13 = smov %s1215_s19  ;;  %s1494_s14 = smov %s1206_s16 }
 0x11e   :  { %12 = sbr.rel (!%p10_p9) target bundleno = 2 (0x2), region = 90 }

// kernel: bires_center_lstm_forward.35
= control target key start
LH: loop header
LB: loop body
LE: loop exit
PB: predicated region body
PF: predicated region fallthrough
CT: control target
= control target key end

     0   :  { %s522_s12 = smov 0   ;;  %s584_s0 = inlined_call_operand.vmem [shape: bf16[3,4], index: 0, kind: input, shape index: {}]   ;;  %s585_s1 = inlined_call_operand.vmem [shape: bf16[4,1024], index: 1, kind: input, shape index: {}]   ;;  %s586_s2 = inlined_call_operand.vmem [shape: f32[3,1], index: 2, kind: input, shape index: {}]   ;;  %s587_s3 = inlined_call_operand.vmem [shape: f32[3,1024], index: 3, kind: output, shape index: {}]  }
   0x1 LB: > { %s452_s13 = sadd.s32 4294967295, %s499_s12   ;;  %p456_p0 = scmp.ge.s32.totalorder %s499_s12, 1  ;;  %s499_s12 = sphi %s522_s12, %s13_s12  }
   0x2   : > { %p138_p1 = scmp.lt.s32.totalorder %s499_s12, 3 }
   0x4   : > { %p139_p2 = pnand %p456_p0, %p138_p1 }
   0x5   : > { %s457_s14 = sshll.u32 (!%p139_p2), %s452_s13, 2 }
   0x6   : > { %142 = sbr.rel (%p139_p2) target bundleno = 223 (0xdf), region = 32  ;;  %p163_p3 = scmp.lt.s32.totalorder (!%p139_p2), %s457_s14, 7 }
   0xb   : > { %v501_v0 = vmov 0   ;;  %v177_v1 = vld [vmem:[%s586_s2] sm:$0x7]  ;;  %s589_s14 = smov (!%p163_p3, %s457_s14), 7  ;;  %vm193_vm0 = vcmask 1041408   ;;  %vm189_vm1 = vcmask 31744  }
   0xc   : > { %476 = vset.pattern.permute.xlu0 %v501_v0  ;;  %s458_s17 = sshll.u32 %s589_s14, 1  ;;  %v175_v5 = vld [vmem:[%s584_s0] sm:$0x3]  ;;  %vm254_vm2 = vcmask 1042432   ;;  %s460_s23 = sshll.u32 %s589_s14, 2  ;;  %vm389_vm11 = vcmask 1043456  }
   0xd   : > { %180 = vperm.xlu0 %476, %v177_v1   ;;  %s166_s20 = scalar_lea.vmem %s585_s1, %s458_s17  ;;  %s172_s26 = scalar_lea.vmem %s587_s3, %s460_s23 }
   0xe   : > { %v176_v2 = vld [vmem:[%s166_s20] sm:$0xff] }
   0xf   : > { %184 = vst [vmem:[#allocation1] ss:$4 sm:$0xff] %v176_v2 }
  0x16   : > { %v185_v3 = vld.sshfl [vmem:[#allocation1] sm:$0xff pattern:$0x73625140]  ;;  %v186_v4 = vld.sshfl [vmem:[#allocation1 + $0x8] sm:$0xff pattern:$0x73625140] }
  0x17   : > { %v194_v6 = vsel %vm193_vm0, %v185_v3, 0  ;;  %v196_v7 = vsel %vm193_vm0, %v186_v4, 0  ;;  %v187_v8 = vld.sshfl [vmem:[#allocation1 + $0x10] sm:$0xff pattern:$0x73625140] }
  0x18   : > { %209 = vmatpush.bf16.msra.mxu0 %v194_v6  ;;  %222 = vmatpush.bf16.msra.mxu1 %v196_v7  ;;  %v198_v9 = vsel %vm193_vm0, %v187_v8, 0  ;;  %v188_v10 = vld.sshfl [vmem:[#allocation1 + $0x18] sm:$0xff pattern:$0x73625140] }
  0x19   : > { %235 = vmatpush.bf16.msra.mxu2 %v198_v9  ;;  %v200_v11 = vsel %vm193_vm0, %v188_v10, 0 }
  0x1a   : > { %248 = vmatpush.bf16.msra.mxu3 %v200_v11 }
  0x1b   : > { %461 = vmatmul.msk.bf16.vlgmr.msra.gmra.mxu0 %vm189_vm1, %v175_v5  ;;  %462 = vmatmul.msk.bf16.vlgmr.msra.gmra.mxu1 %vm189_vm1, %v175_v5 }
  0x1c   : > { %463 = vmatmul.msk.bf16.vlgmr.msra.gmra.mxu2 %vm189_vm1, %v175_v5 }
  0x1d   : > { %464 = vmatmul.msk.bf16.vlgmr.msra.gmra.mxu3 %vm189_vm1, %v175_v5 }
  0x7f   : > { %v181_v12 = vpop.permute.xlu0 %180 }
  0x98   : > { %v211_v13 = vpop.f32.mrf.mxu0  ;;  %v224_v14 = vpop.f32.mrf.mxu1 }
  0x99   : > { %v212_v15 = vadd.f32 %v211_v13, %v181_v12  ;;  %v225_v16 = vadd.f32 %v224_v14, %v181_v12 }
  0x9b   : > { %v255_v17 = vsel %vm254_vm2, %v212_v15, -inf  ;;  %v262_v18 = vsel %vm254_vm2, %v225_v16, -inf }
  0x9c   : > { %v256_v19 = vrot.slane %v255_v17, 4  ;;  %v263_v20 = vrot.slane %v262_v18, 4 }
  0x9e   : > { %v257_v21 = vmax.f32 %v255_v17, %v256_v19  ;;  %v264_v22 = vmax.f32 %v262_v18, %v263_v20 }
  0x9f   : > { %v237_v23 = vpop.f32.mrf.mxu2 }
  0xa0   : > { %v258_v24 = vrot.slane %v257_v21, 2  ;;  %v265_v25 = vrot.slane %v264_v22, 2  ;;  %v238_v26 = vadd.f32 %v237_v23, %v181_v12  ;;  %v250_v27 = vpop.f32.mrf.mxu3  ;;  %v213_v28 = vpop.f32.mrf.mxu0 }
  0xa1   : > { %v251_v29 = vadd.f32 %v250_v27, %v181_v12  ;;  %v226_v30 = vpop.f32.mrf.mxu1 }
  0xa2   : > { %v259_v31 = vmax.f32 %v257_v21, %v258_v24  ;;  %v266_v32 = vmax.f32 %v264_v22, %v265_v25  ;;  %v269_v33 = vsel %vm254_vm2, %v238_v26, -inf }
  0xa3   : > { %v270_v34 = vrot.slane %v269_v33, 4  ;;  %v276_v35 = vsel %vm254_vm2, %v251_v29, -inf }
  0xa4   : > { %v260_v36 = vrot.slane %v259_v31, 1  ;;  %v267_v37 = vrot.slane %v266_v32, 1  ;;  %v277_v38 = vrot.slane %v276_v35, 4 }
  0xa5   : > { %v271_v39 = vmax.f32 %v269_v33, %v270_v34 }
  0xa6   : > { %v261_v40 = vmax.f32 %v259_v31, %v260_v36  ;;  %v268_v41 = vmax.f32 %v266_v32, %v267_v37  ;;  %v278_v42 = vmax.f32 %v276_v35, %v277_v38 }
  0xa7   : > { %v272_v43 = vrot.slane %v271_v39, 2  ;;  %v239_v44 = vpop.f32.mrf.mxu2 }
  0xa8   : > { %v283_v45 = vsub.f32 %v212_v15, %v261_v40  ;;  %v284_v46 = vsub.f32 %v225_v16, %v268_v41  ;;  %v279_v47 = vrot.slane %v278_v42, 2  ;;  %v252_v48 = vpop.f32.mrf.mxu3 }
  0xa9   : > { %v273_v49 = vmax.f32 %v271_v39, %v272_v43 }
  0xaa   : > { %v287_v50 = vmul.f32 1.442695, %v283_v45  ;;  %v289_v51 = vmul.f32 1.442695, %v284_v46  ;;  %v280_v52 = vmax.f32 %v278_v42, %v279_v47 }
  0xab   : > { %v274_v53 = vrot.slane %v273_v49, 1 }
  0xac   : > { %477 = vpow2.f32 %v287_v50  ;;  %v281_v54 = vrot.slane %v280_v52, 1 }
  0xad   : > { %479 = vpow2.f32 %v289_v51  ;;  %v275_v55 = vmax.f32 %v273_v49, %v274_v53 }
  0xae   : > { %v282_v56 = vmax.f32 %v280_v52, %v281_v54 }
  0xaf   : > { %v285_v57 = vsub.f32 %v238_v26, %v275_v55 }
  0xb0   : > { %v286_v58 = vsub.f32 %v251_v29, %v282_v56 }
  0xb1   : > { %v291_v59 = vmul.f32 1.442695, %v285_v57 }
  0xb2   : > { %v546_v60 = vpop.eup %477  ;;  %v293_v61 = vmul.f32 1.442695, %v286_v58 }
  0xb3   : > { %v548_v62 = vpop.eup %479  ;;  %v295_v63 = vsel %vm254_vm2, %v546_v60, 0.0  ;;  %481 = vpow2.f32 %v291_v59 }
  0xb4   : > { %v296_v0 = vrot.slane %v295_v63, 4  ;;  %v302_v1 = vsel %vm254_vm2, %v548_v62, 0.0  ;;  %483 = vpow2.f32 %v293_v61 }
  0xb5   : > { %v303_v2 = vrot.slane %v302_v1, 4 }
  0xb6   : > { %v297_v3 = vadd.f32 %v296_v0, %v295_v63 }
  0xb7   : > { %v304_v4 = vadd.f32 %v303_v2, %v302_v1 }
  0xb8   : > { %v298_v5 = vrot.slane %v297_v3, 2 }
  0xb9   : > { %v554_v6 = vpop.eup %481  ;;  %v305_v7 = vrot.slane %v304_v4, 2 }
  0xba   : > { %v556_v8 = vpop.eup %483  ;;  %v299_v9 = vadd.f32 %v298_v5, %v297_v3  ;;  %v309_v10 = vsel %vm254_vm2, %v554_v6, 0.0 }
  0xbb   : > { %v306_v11 = vadd.f32 %v305_v7, %v304_v4  ;;  %v310_v12 = vrot.slane %v309_v10, 4  ;;  %v316_v13 = vsel %vm254_vm2, %v556_v8, 0.0 }
  0xbc   : > { %v300_v14 = vrot.slane %v299_v9, 1  ;;  %v317_v15 = vrot.slane %v316_v13, 4 }
  0xbd   : > { %v307_v16 = vrot.slane %v306_v11, 1  ;;  %v311_v17 = vadd.f32 %v310_v12, %v309_v10 }
  0xbe   : > { %v301_v18 = vadd.f32 %v300_v14, %v299_v9  ;;  %v318_v19 = vadd.f32 %v317_v15, %v316_v13 }
  0xbf   : > { %v308_v20 = vadd.f32 %v307_v16, %v306_v11  ;;  %v312_v21 = vrot.slane %v311_v17, 2 }
  0xc0   : > { %485 = vrcp.f32 %v301_v18  ;;  %v319_v23 = vrot.slane %v318_v19, 2  ;;  %v334_v34 = vand.u32 2147483648, %v301_v18  ;;  %v332_v38 = vand.u32 2147483647, %v301_v18 }
  0xc1   : > { %487 = vrcp.f32 %v308_v20  ;;  %v313_v22 = vadd.f32 %v312_v21, %v311_v17  ;;  %v349_v37 = vand.u32 2147483648, %v308_v20  ;;  %v347_v40 = vand.u32 2147483647, %v308_v20 }
  0xc2   : > { %v320_v25 = vadd.f32 %v319_v23, %v318_v19  ;;  %vm328_vm5 = vweird.f32 %v301_v18  ;;  %vm343_vm7 = vweird.f32 %v308_v20  ;;  %v335_v45 = vor.u32 1.1754944e-38, %v334_v34 }
  0xc3   : > { %v314_v24 = vrot.slane %v313_v22, 1  ;;  %v350_v46 = vor.u32 1.1754944e-38, %v349_v37  ;;  %vm333_vm9 = vcmp.eq.f32.partialorder %v332_v38, 8.507059e+37  ;;  %vm348_vm10 = vcmp.eq.f32.partialorder %v347_v40, 8.507059e+37 }
  0xc4   : > { %v321_v28 = vrot.slane %v320_v25, 1 }
  0xc5   : > { %v562_v27 = vadd.f32 %v314_v24, %v313_v22 }
  0xc6   : > { %v486_v26 = vpop.eup %485  ;;  %v322_v33 = vadd.f32 %v321_v28, %v320_v25 }
  0xc7   : > { %v488_v29 = vpop.eup %487  ;;  %v324_v30 = vmul.f32 %v486_v26, %v301_v18  ;;  %489 = vrcp.f32 %v562_v27  ;;  %vm329_vm3 = vweird.f32 %v486_v26  ;;  %vm358_vm12 = vweird.f32 %v562_v27 }
  0xc8   : > { %v339_v31 = vmul.f32 %v488_v29, %v308_v20  ;;  %491 = vrcp.f32 %v322_v33  ;;  %vm344_vm4 = vweird.f32 %v488_v29  ;;  %vm330_vm6 = vmor %vm328_vm5, %vm329_vm3  ;;  %v362_v61 = vand.u32 2147483647, %v562_v27 }
  0xc9   : > { %v325_v32 = vsub.f32 1.0, %v324_v30  ;;  %vm345_vm8 = vmor %vm343_vm7, %vm344_vm4  ;;  %v364_v63 = vand.u32 2147483648, %v562_v27  ;;  %v377_v2 = vand.u32 2147483647, %v322_v33  ;;  %vm373_vm0 = vweird.f32 %v322_v33 }
  0xca   : > { %v340_v35 = vsub.f32 1.0, %v339_v31  ;;  %vm363_vm2 = vcmp.eq.f32.partialorder %v362_v61, 8.507059e+37 }
  0xcb   : > { %v326_v36 = vmul.f32 %v486_v26, %v325_v32  ;;  %v365_v4 = vor.u32 1.1754944e-38, %v364_v63  ;;  %vm378_vm3 = vcmp.eq.f32.partialorder %v377_v2, 8.507059e+37 }
  0xcc   : > { %v341_v39 = vmul.f32 %v488_v29, %v340_v35 }
  0xcd   : > { %v327_v41 = vadd.f32 %v486_v26, %v326_v36  ;;  %v490_v42 = vpop.eup %489 }
  0xce   : > { %v342_v43 = vadd.f32 %v488_v29, %v341_v39  ;;  %v354_v47 = vmul.f32 %v490_v42, %v562_v27  ;;  %v492_v49 = vpop.eup %491  ;;  %vm359_vm13 = vweird.f32 %v490_v42 }
  0xcf   : > { %v331_v44 = vsel %vm330_vm6, %v486_v26, %v327_v41  ;;  %v369_v54 = vmul.f32 %v492_v49, %v322_v33  ;;  %vm374_vm14 = vweird.f32 %v492_v49  ;;  %vm360_vm15 = vmor %vm358_vm12, %vm359_vm13 }
  0xd0   : > { %v346_v48 = vsel %vm345_vm8, %v488_v29, %v342_v43  ;;  %v336_v50 = vsel %vm333_vm9, %v335_v45, %v331_v44  ;;  %v355_v52 = vsub.f32 1.0, %v354_v47  ;;  %vm375_vm1 = vmor %vm373_vm0, %vm374_vm14 }
  0xd1   : > { %v351_v51 = vsel %vm348_vm10, %v350_v46, %v346_v48  ;;  %v337_v56 = vmul.f32 %v546_v60, %v336_v50  ;;  %v370_v58 = vsub.f32 1.0, %v369_v54 }
  0xd2   : > { %v352_v53 = vmul.f32 %v548_v62, %v351_v51  ;;  %v356_v55 = vmul.f32 %v490_v42, %v355_v52  ;;  %v379_v62 = vand.u32 2147483648, %v322_v33 }
  0xd3   : > { %v371_v1 = vmul.f32 %v492_v49, %v370_v58 }
  0xd4   : > { %v387_v57 = vrot.slane %v352_v53, 4  ;;  %v357_v59 = vadd.f32 %v490_v42, %v356_v55  ;;  %v380_v5 = vor.u32 1.1754944e-38, %v379_v62 }
  0xd5   : > { %v372_v3 = vadd.f32 %v492_v49, %v371_v1 }
  0xd6   : > { %v390_v0 = vsel %vm389_vm11, %v337_v56, %v387_v57  ;;  %v361_v60 = vsel %vm360_vm15, %v490_v42, %v357_v59 }
  0xd7   : > { %394 = vst [vmem:[%s172_s26] sm:$0x77] %v390_v0  ;;  %v376_v7 = vsel %vm375_vm1, %v492_v49, %v372_v3  ;;  %v366_v9 = vsel %vm363_vm2, %v365_v4, %v361_v60 }
  0xd8   : > { %v381_v10 = vsel %vm378_vm3, %v380_v5, %v376_v7  ;;  %v367_v12 = vmul.f32 %v554_v6, %v366_v9 }
  0xd9   : > { %v382_v11 = vmul.f32 %v556_v8, %v381_v10 }
  0xdb   : > { %v388_v13 = vrot.slane %v382_v11, 4 }
  0xdd   : > { %v391_v14 = vsel %vm389_vm11, %v367_v12, %v388_v13 }
  0xde   : > { %395 = vst [vmem:[%s172_s26 + $0x8] sm:$0x77] %v391_v14 }
  0xdf PF: > { %s13_s12 = sadd.s32 1, %s499_s12  }
  0xe0   : > { %p10_p4 = scmp.ge.s32.totalorder %s13_s12, 4  }
  0xe2   :  { %12 = sbr.rel (!%p10_p4) target bundleno = 1 (0x1), region = 62 }

</bundles_post_ra>
